<compile_context>
chip_gen: v7x
topology: tpu7x:2x2x1
jax: 0.10.0
libtpu: 0.0.40
codegen_flags: <defaults>
</compile_context>

<pallas_src>
import numpy as np
import jax
import jax.numpy as jnp
from jax import lax
from jax.experimental import pallas as pl
from jax.experimental.pallas import tpu as pltpu

K_SIZE = 5
SIGMA = 2.0
MAX_LEVELS = 5
_PAD = K_SIZE // 2


# ----------------------------------------------------------------------------
# Gaussian kernel (mirrors build_gauss_kernel, incl. its quirks) + rank-2 split
# ----------------------------------------------------------------------------
def build_gauss_kernel_np(size=5, sigma=1.0):
    if size % 2 != 1:
        raise ValueError('kernel size must be uneven')
    grid = np.float32(np.mgrid[0:size, 0:size].T)
    gaussian = lambda x: np.exp((x - size // 2) ** 2 / (-2 * sigma ** 2)) ** 2
    kernel = np.sum(gaussian(grid), axis=2)
    kernel /= np.sum(kernel)
    return np.float32(kernel)  # (size, size); identical for every channel


def _rank2_components(kern2d):
    # The kernel above satisfies kern2d[i, j] == a[i] + a[j] exactly (a SUM of
    # two 1-D gaussians -- a quirk of build_gauss_kernel).  Recover a.
    a0 = kern2d[0, 0] / np.float32(2.0)
    a = (kern2d[:, 0] - a0).astype(np.float64)
    assert np.abs(a[:, None] + a[None, :] - kern2d).max() < 1e-6
    return [float(v) for v in a]


# ----------------------------------------------------------------------------
# Constant matrices (numpy, trace time).  All are applied via MXU matmuls.
# ----------------------------------------------------------------------------
def _band_left(n, weights, pad):
    # out = M @ x applies the 1-D filter (replicate padding) along axis 0.
    m = np.zeros((n, n), np.float32)
    for t, wt in enumerate(weights):
        for o in range(n):
            i = min(max(o + t - pad, 0), n - 1)
            m[o, i] += np.float32(wt)
    return m


def _pool_left(n):
    # out = M @ x averages non-overlapping row pairs (floor behaviour).
    n2 = n // 2
    m = np.zeros((n2, n), np.float32)
    for r in range(n2):
        m[r, 2 * r] = 0.5
        m[r, 2 * r + 1] = 0.5
    return m


def _block_diag(block, copies):
    r, c = block.shape
    m = np.zeros((copies * r, copies * c), np.float32)
    for p in range(copies):
        m[p * r:(p + 1) * r, p * c:(p + 1) * c] = block
    return m


def _level_sizes(H, W, max_levels):
    sizes = []
    h, w = H, W
    for _ in range(max_levels):
        if h < 2 or w < 2:
            raise ValueError(
                f"LapLoss with max_levels={max_levels} needs spatial dims >= "
                f"{2 ** max_levels}, got ({H}, {W})")
        sizes.append((h, w))
        h //= 2
        w //= 2
    return sizes, (h, w)


def _build_level_matrices(sizes, PB, g1d):
    ones = [1.0] * len(g1d)
    mats = []
    for (h, w) in sizes:
        gh = _band_left(h, g1d, _PAD)                        # (h, h)     weighted along H
        bh = _band_left(h, ones, _PAD)                       # (h, h)     box      along H
        ph = _pool_left(h)                                   # (h//2, h)  2x pool  along H
        bdb = _block_diag(_band_left(w, ones, _PAD).T, PB)   # (PBw, PBw) box      along W
        bdg = _block_diag(_band_left(w, g1d, _PAD).T, PB)    # (PBw, PBw) weighted along W
        bdp = _block_diag(_pool_left(w).T, PB)               # (PBw, PB*(w//2)) 2x pool W
        mats.extend([gh, bh, ph, bdb, bdg, bdp])
    return mats


# ----------------------------------------------------------------------------
# VMEM-aware plane-block selection
# ----------------------------------------------------------------------------
def _vmem_limits():
    try:
        cap = int(pltpu.get_tpu_info().vmem_capacity_bytes)
    except Exception:
        cap = 64 * 1024 * 1024          # conservative (v7x-sized) fallback
    limit = min(cap * 3 // 4, 96 * 1024 * 1024)
    budget = limit // 2                 # room for constants + pipeline buffers
    return budget, limit


def _choose_plane_block(P, H, W, itemsize, budget_bytes):
    def est(pb):
        lvl0 = H * pb * W
        io = 2 * 2 * lvl0 * itemsize    # x & y blocks, double-buffered
        tmp = 12 * lvl0 * 4             # in-kernel f32 temporaries (rough)
        consts = 14 * (pb * W) ** 2     # banded/pool matrices over all levels
        return io + tmp + consts

    # Proper divisors keep G >= 2 (both TensorCores busy on v7x); the 128-lane
    # divisibility keeps the input block lane-dense and stores unmasked.
    cands = [d for d in range(1, P) if P % d == 0 and (d * W) % 128 == 0]
    fitting = [d for d in cands if est(d) <= budget_bytes]
    if fitting:
        return max(fitting)
    if cands:
        return min(cands)
    return P                            # full-array block (always legal); G = 1


# ----------------------------------------------------------------------------
# Fused Pallas kernel: whole Laplacian pyramid for one block of planes
# ----------------------------------------------------------------------------
def _make_laploss_kernel(sizes, final_hw, total_planes):
    n_levels = len(sizes)

    def kernel(x_ref, y_ref, *rest):
        mat_refs = rest[:-1]
        out_ref = rest[-1]
        lvl_mats = [mat_refs[6 * l: 6 * l + 6] for l in range(n_levels)]

        def mm(a, b):
            return jnp.dot(a, b, preferred_element_type=jnp.float32,
                           precision=lax.Precision.HIGHEST)

        cx = x_ref[...].astype(jnp.float32)           # (H, PB*W), lane-dense
        cy = y_ref[...].astype(jnp.float32)
        total = jnp.zeros((1, 1), jnp.float32)

        for l, (h, w) in enumerate(sizes):
            gh_r, bh_r, ph_r, bdb_r, bdg_r, bdp_r = lvl_mats[l]
            gh, bh = gh_r[...], bh_r[...]
            bdb, bdg, bdp = bdb_r[...], bdg_r[...], bdp_r[...]

            def conv(c):
                # 5x5 gaussian, replicate padding;  k[i,j] = g[i] + g[j]:
                #   conv(c) = Gh @ c @ BoxW  +  BoxH @ c @ Gw   (banded consts)
                return mm(gh, mm(c, bdb)) + mm(bh, mm(c, bdg))

            fx = conv(cx)
            fy = conv(cy)
            diff = (cx - fx) - (cy - fy)
            total = total + (jnp.sum(jnp.abs(diff), keepdims=True)
                             * (1.0 / (total_planes * h * w)))

            def pool(f):
                fw = mm(f, bdp)                       # 2x pool along W (MXU)
                if h // 2 == 1:                       # tiny last level: 2 rows
                    return 0.5 * (fw[0:1, :] + fw[1:2, :])
                return mm(ph_r[...], fw)              # 2x pool along H (MXU)

            cx = pool(fx)
            cy = pool(fy)

        fh, fw2 = final_hw
        total = total + (jnp.sum(jnp.abs(cx - cy), keepdims=True)
                         * (1.0 / (total_planes * fh * fw2)))

        # Lane-dense output block: unmasked full-vreg store, no tiny writeback.
        out_ref[...] = jnp.broadcast_to(
            total.reshape(1, 1, 1), out_ref.shape).astype(out_ref.dtype)

    return kernel


# ----------------------------------------------------------------------------
# LapLoss forward
# ----------------------------------------------------------------------------
def lap_loss(x, y, max_levels=MAX_LEVELS, k_size=K_SIZE, sigma=SIGMA):
    g1d = _rank2_components(build_gauss_kernel_np(k_size, sigma))

    N, C, H, W = x.shape
    P = N * C
    sizes, final_hw = _level_sizes(H, W, max_levels)

    budget, vmem_limit = _vmem_limits()
    PB = _choose_plane_block(P, H, W, jnp.dtype(x.dtype).itemsize, budget)
    G = P // PB

    # Lane-dense layout: (N, C, H, W) -> (H, P*W); plane p = n*C + c occupies
    # lane columns [p*W, (p+1)*W).  Keep native dtype (no f32 pre-cast in HBM).
    x2d = jnp.transpose(x, (2, 0, 1, 3)).reshape(H, P * W)
    y2d = jnp.transpose(y, (2, 0, 1, 3)).reshape(H, P * W)

    mats = _build_level_matrices(sizes, PB, g1d)
    kernel = _make_laploss_kernel(sizes, final_hw, P)

    in_specs = [pl.BlockSpec((H, PB * W), lambda b: (0, b)),
                pl.BlockSpec((H, PB * W), lambda b: (0, b))]
    # Constant matrices: grid-invariant blocks -> fetched once, reused each step.
    in_specs += [pl.BlockSpec(m.shape, lambda b: (0, 0)) for m in mats]

    partials = pl.pallas_call(
        kernel,
        out_shape=jax.ShapeDtypeStruct((G, 8, 128), jnp.float32),
        grid=(G,),
        in_specs=in_specs,
        out_specs=pl.BlockSpec((1, 8, 128), lambda b: (b, 0, 0)),
        compiler_params=pltpu.CompilerParams(
            dimension_semantics=("parallel",),
            vmem_limit_bytes=int(vmem_limit),
        ),
    )(x2d, y2d, *mats)

    return jnp.sum(partials[:, 0, 0])


# ----------------------------------------------------------------------------
# Pure-JAX reference (validation only)
# ----------------------------------------------------------------------------
def lap_loss_ref(x, y, kern2d, max_levels=MAX_LEVELS):
    C = x.shape[1]
    k = jnp.broadcast_to(kern2d, (C, 1, kern2d.shape[0], kern2d.shape[1]))

    def conv_gauss(img):
        p = kern2d.shape[0] // 2
        padded = jnp.pad(img, ((0, 0), (0, 0), (p, p), (p, p)), mode='edge')
        return lax.conv_general_dilated(
            padded, k, (1, 1), 'VALID',
            dimension_numbers=('NCHW', 'OIHW', 'NCHW'),
            feature_group_count=C,
            precision=lax.Precision.HIGHEST)

    def pool(img):
        s = lax.reduce_window(img, 0.0, lax.add,
                              (1, 1, 2, 2), (1, 1, 2, 2), 'VALID')
        return s / 4.0

    loss = jnp.float32(0.0)
    cx, cy = x, y
    for _ in range(max_levels):
        fx, fy = conv_gauss(cx), conv_gauss(cy)
        loss = loss + jnp.mean(jnp.abs((cx - fx) - (cy - fy)))
        cx, cy = pool(fx), pool(fy)
    loss = loss + jnp.mean(jnp.abs(cx - cy))
    return loss


if __name__ == "__main__":
    key = jax.random.PRNGKey(0)
    k1, k2 = jax.random.split(key)
    # Spatial size 32 so that all 5 pyramid levels exist (same implicit
    # constraint as the PyTorch original).
    N, C, H, W = 2, 4, 32, 32
    x = jax.random.uniform(k1, (N, C, H, W), dtype=jnp.float32)
    y = jax.random.uniform(k2, (N, C, H, W), dtype=jnp.float32)

    out = jax.block_until_ready(jax.jit(lap_loss)(x, y))

    ref = jax.block_until_ready(
        lap_loss_ref(x, y, jnp.asarray(build_gauss_kernel_np(K_SIZE, SIGMA))))
    err = abs(float(out) - float(ref))
    assert err < 1e-3 * max(1.0, abs(float(ref))), (float(out), float(ref), err)

    print("KERNEL_OK")
</pallas_src>

<mosaic_0001>
module attributes {stable_mosaic.version = 11 : i64} {
  func.func @kernel(%arg0: i32, %arg1: memref<32x128xf32, #tpu.memory_space<vmem>>, %arg2: memref<32x128xf32, #tpu.memory_space<vmem>>, %arg3: memref<32x32xf32, #tpu.memory_space<vmem>>, %arg4: memref<32x32xf32, #tpu.memory_space<vmem>>, %arg5: memref<16x32xf32, #tpu.memory_space<vmem>>, %arg6: memref<128x128xf32, #tpu.memory_space<vmem>>, %arg7: memref<128x128xf32, #tpu.memory_space<vmem>>, %arg8: memref<128x64xf32, #tpu.memory_space<vmem>>, %arg9: memref<16x16xf32, #tpu.memory_space<vmem>>, %arg10: memref<16x16xf32, #tpu.memory_space<vmem>>, %arg11: memref<8x16xf32, #tpu.memory_space<vmem>>, %arg12: memref<64x64xf32, #tpu.memory_space<vmem>>, %arg13: memref<64x64xf32, #tpu.memory_space<vmem>>, %arg14: memref<64x32xf32, #tpu.memory_space<vmem>>, %arg15: memref<8x8xf32, #tpu.memory_space<vmem>>, %arg16: memref<8x8xf32, #tpu.memory_space<vmem>>, %arg17: memref<4x8xf32, #tpu.memory_space<vmem>>, %arg18: memref<32x32xf32, #tpu.memory_space<vmem>>, %arg19: memref<32x32xf32, #tpu.memory_space<vmem>>, %arg20: memref<32x16xf32, #tpu.memory_space<vmem>>, %arg21: memref<4x4xf32, #tpu.memory_space<vmem>>, %arg22: memref<4x4xf32, #tpu.memory_space<vmem>>, %arg23: memref<2x4xf32, #tpu.memory_space<vmem>>, %arg24: memref<16x16xf32, #tpu.memory_space<vmem>>, %arg25: memref<16x16xf32, #tpu.memory_space<vmem>>, %arg26: memref<16x8xf32, #tpu.memory_space<vmem>>, %arg27: memref<2x2xf32, #tpu.memory_space<vmem>>, %arg28: memref<2x2xf32, #tpu.memory_space<vmem>>, %arg29: memref<1x2xf32, #tpu.memory_space<vmem>>, %arg30: memref<8x8xf32, #tpu.memory_space<vmem>>, %arg31: memref<8x8xf32, #tpu.memory_space<vmem>>, %arg32: memref<8x4xf32, #tpu.memory_space<vmem>>, %arg33: memref<1x8x128xf32, #tpu.memory_space<vmem>>) attributes {dimension_semantics = [#tpu.dimension_semantics<parallel>], iteration_bounds = array<i64: 2>, scalar_prefetch = 0 : i64, scratch_operands = 0 : i64, tpu.core_type = #tpu.core_type<tc>, window_params = [{transform_indices = @transform_0, window_bounds = array<i64: 32, 128>}, {transform_indices = @transform_1, window_bounds = array<i64: 32, 128>}, {pipeline_mode = #tpu.pipeline_mode<synchronous>, transform_indices = @transform_2, window_bounds = array<i64: 32, 32>}, {pipeline_mode = #tpu.pipeline_mode<synchronous>, transform_indices = @transform_3, window_bounds = array<i64: 32, 32>}, {pipeline_mode = #tpu.pipeline_mode<synchronous>, transform_indices = @transform_4, window_bounds = array<i64: 16, 32>}, {pipeline_mode = #tpu.pipeline_mode<synchronous>, transform_indices = @transform_5, window_bounds = array<i64: 128, 128>}, {pipeline_mode = #tpu.pipeline_mode<synchronous>, transform_indices = @transform_6, window_bounds = array<i64: 128, 128>}, {pipeline_mode = #tpu.pipeline_mode<synchronous>, transform_indices = @transform_7, window_bounds = array<i64: 128, 64>}, {pipeline_mode = #tpu.pipeline_mode<synchronous>, transform_indices = @transform_8, window_bounds = array<i64: 16, 16>}, {pipeline_mode = #tpu.pipeline_mode<synchronous>, transform_indices = @transform_9, window_bounds = array<i64: 16, 16>}, {pipeline_mode = #tpu.pipeline_mode<synchronous>, transform_indices = @transform_10, window_bounds = array<i64: 8, 16>}, {pipeline_mode = #tpu.pipeline_mode<synchronous>, transform_indices = @transform_11, window_bounds = array<i64: 64, 64>}, {pipeline_mode = #tpu.pipeline_mode<synchronous>, transform_indices = @transform_12, window_bounds = array<i64: 64, 64>}, {pipeline_mode = #tpu.pipeline_mode<synchronous>, transform_indices = @transform_13, window_bounds = array<i64: 64, 32>}, {pipeline_mode = #tpu.pipeline_mode<synchronous>, transform_indices = @transform_14, window_bounds = array<i64: 8, 8>}, {pipeline_mode = #tpu.pipeline_mode<synchronous>, transform_indices = @transform_15, window_bounds = array<i64: 8, 8>}, {pipeline_mode = #tpu.pipeline_mode<synchronous>, transform_indices = @transform_16, window_bounds = array<i64: 4, 8>}, {pipeline_mode = #tpu.pipeline_mode<synchronous>, transform_indices = @transform_17, window_bounds = array<i64: 32, 32>}, {pipeline_mode = #tpu.pipeline_mode<synchronous>, transform_indices = @transform_18, window_bounds = array<i64: 32, 32>}, {pipeline_mode = #tpu.pipeline_mode<synchronous>, transform_indices = @transform_19, window_bounds = array<i64: 32, 16>}, {pipeline_mode = #tpu.pipeline_mode<synchronous>, transform_indices = @transform_20, window_bounds = array<i64: 4, 4>}, {pipeline_mode = #tpu.pipeline_mode<synchronous>, transform_indices = @transform_21, window_bounds = array<i64: 4, 4>}, {pipeline_mode = #tpu.pipeline_mode<synchronous>, transform_indices = @transform_22, window_bounds = array<i64: 2, 4>}, {pipeline_mode = #tpu.pipeline_mode<synchronous>, transform_indices = @transform_23, window_bounds = array<i64: 16, 16>}, {pipeline_mode = #tpu.pipeline_mode<synchronous>, transform_indices = @transform_24, window_bounds = array<i64: 16, 16>}, {pipeline_mode = #tpu.pipeline_mode<synchronous>, transform_indices = @transform_25, window_bounds = array<i64: 16, 8>}, {pipeline_mode = #tpu.pipeline_mode<synchronous>, transform_indices = @transform_26, window_bounds = array<i64: 2, 2>}, {pipeline_mode = #tpu.pipeline_mode<synchronous>, transform_indices = @transform_27, window_bounds = array<i64: 2, 2>}, {pipeline_mode = #tpu.pipeline_mode<synchronous>, transform_indices = @transform_28, window_bounds = array<i64: 1, 2>}, {pipeline_mode = #tpu.pipeline_mode<synchronous>, transform_indices = @transform_29, window_bounds = array<i64: 8, 8>}, {pipeline_mode = #tpu.pipeline_mode<synchronous>, transform_indices = @transform_30, window_bounds = array<i64: 8, 8>}, {pipeline_mode = #tpu.pipeline_mode<synchronous>, transform_indices = @transform_31, window_bounds = array<i64: 8, 4>}, {transform_indices = @transform_32, window_bounds = array<i64: 1, 8, 128>}]} {
    %c0 = arith.constant 0 : index
    %c0_0 = arith.constant 0 : index
    %0 = vector.load %arg1[%c0, %c0_0] : memref<32x128xf32, #tpu.memory_space<vmem>>, vector<32x128xf32>
    %c0_1 = arith.constant 0 : index
    %c0_2 = arith.constant 0 : index
    %1 = vector.load %arg2[%c0_1, %c0_2] : memref<32x128xf32, #tpu.memory_space<vmem>>, vector<32x128xf32>
    %cst = arith.constant 0.000000e+00 : f32
    %2 = vector.broadcast %cst : f32 to vector<1x1xf32>
    %c0_3 = arith.constant 0 : index
    %c0_4 = arith.constant 0 : index
    %3 = vector.load %arg3[%c0_3, %c0_4] : memref<32x32xf32, #tpu.memory_space<vmem>>, vector<32x32xf32>
    %c0_5 = arith.constant 0 : index
    %c0_6 = arith.constant 0 : index
    %4 = vector.load %arg4[%c0_5, %c0_6] : memref<32x32xf32, #tpu.memory_space<vmem>>, vector<32x32xf32>
    %c0_7 = arith.constant 0 : index
    %c0_8 = arith.constant 0 : index
    %5 = vector.load %arg6[%c0_7, %c0_8] : memref<128x128xf32, #tpu.memory_space<vmem>>, vector<128x128xf32>
    %c0_9 = arith.constant 0 : index
    %c0_10 = arith.constant 0 : index
    %6 = vector.load %arg7[%c0_9, %c0_10] : memref<128x128xf32, #tpu.memory_space<vmem>>, vector<128x128xf32>
    %c0_11 = arith.constant 0 : index
    %c0_12 = arith.constant 0 : index
    %7 = vector.load %arg8[%c0_11, %c0_12] : memref<128x64xf32, #tpu.memory_space<vmem>>, vector<128x64xf32>
    %cst_13 = arith.constant dense<0.000000e+00> : vector<32x128xf32>
    %8 = tpu.matmul %0, %5, %cst_13 {dimension_numbers = #tpu.dot_dimension_numbers<[1], [0], [0], [1], [0, 0, 1, 1], [], []>, precision = #tpu.contract_precision<fp32>} : vector<32x128xf32>, vector<128x128xf32>, vector<32x128xf32> -> vector<32x128xf32>
    %cst_14 = arith.constant dense<0.000000e+00> : vector<32x128xf32>
    %9 = tpu.matmul %3, %8, %cst_14 {dimension_numbers = #tpu.dot_dimension_numbers<[1], [0], [0], [1], [0, 0, 1, 1], [], []>, precision = #tpu.contract_precision<fp32>} : vector<32x32xf32>, vector<32x128xf32>, vector<32x128xf32> -> vector<32x128xf32>
    %cst_15 = arith.constant dense<0.000000e+00> : vector<32x128xf32>
    %10 = tpu.matmul %0, %6, %cst_15 {dimension_numbers = #tpu.dot_dimension_numbers<[1], [0], [0], [1], [0, 0, 1, 1], [], []>, precision = #tpu.contract_precision<fp32>} : vector<32x128xf32>, vector<128x128xf32>, vector<32x128xf32> -> vector<32x128xf32>
    %cst_16 = arith.constant dense<0.000000e+00> : vector<32x128xf32>
    %11 = tpu.matmul %4, %10, %cst_16 {dimension_numbers = #tpu.dot_dimension_numbers<[1], [0], [0], [1], [0, 0, 1, 1], [], []>, precision = #tpu.contract_precision<fp32>} : vector<32x32xf32>, vector<32x128xf32>, vector<32x128xf32> -> vector<32x128xf32>
    %12 = arith.addf %9, %11 : vector<32x128xf32>
    %cst_17 = arith.constant dense<0.000000e+00> : vector<32x128xf32>
    %13 = tpu.matmul %1, %5, %cst_17 {dimension_numbers = #tpu.dot_dimension_numbers<[1], [0], [0], [1], [0, 0, 1, 1], [], []>, precision = #tpu.contract_precision<fp32>} : vector<32x128xf32>, vector<128x128xf32>, vector<32x128xf32> -> vector<32x128xf32>
    %cst_18 = arith.constant dense<0.000000e+00> : vector<32x128xf32>
    %14 = tpu.matmul %3, %13, %cst_18 {dimension_numbers = #tpu.dot_dimension_numbers<[1], [0], [0], [1], [0, 0, 1, 1], [], []>, precision = #tpu.contract_precision<fp32>} : vector<32x32xf32>, vector<32x128xf32>, vector<32x128xf32> -> vector<32x128xf32>
    %cst_19 = arith.constant dense<0.000000e+00> : vector<32x128xf32>
    %15 = tpu.matmul %1, %6, %cst_19 {dimension_numbers = #tpu.dot_dimension_numbers<[1], [0], [0], [1], [0, 0, 1, 1], [], []>, precision = #tpu.contract_precision<fp32>} : vector<32x128xf32>, vector<128x128xf32>, vector<32x128xf32> -> vector<32x128xf32>
    %cst_20 = arith.constant dense<0.000000e+00> : vector<32x128xf32>
    %16 = tpu.matmul %4, %15, %cst_20 {dimension_numbers = #tpu.dot_dimension_numbers<[1], [0], [0], [1], [0, 0, 1, 1], [], []>, precision = #tpu.contract_precision<fp32>} : vector<32x32xf32>, vector<32x128xf32>, vector<32x128xf32> -> vector<32x128xf32>
    %17 = arith.addf %14, %16 : vector<32x128xf32>
    %18 = arith.subf %0, %12 : vector<32x128xf32>
    %19 = arith.subf %1, %17 : vector<32x128xf32>
    %20 = arith.subf %18, %19 : vector<32x128xf32>
    %21 = math.absf %20 : vector<32x128xf32>
    %22 = vector.shape_cast %21 : vector<32x128xf32> to vector<1x32x128xf32>
    %cst_21 = arith.constant dense<0.000000e+00> : vector<1xf32>
    %23 = vector.multi_reduction <add>, %22, %cst_21 [1, 2] : vector<1x32x128xf32> to vector<1xf32>
    %24 = vector.shape_cast %23 : vector<1xf32> to vector<1x1x1xf32>
    %25 = vector.extract %24[0, 0, 0] : f32 from vector<1x1x1xf32>
    %26 = vector.broadcast %25 : f32 to vector<1x1xf32>
    %cst_22 = arith.constant 1.22070313E-4 : f32
    %27 = vector.broadcast %cst_22 : f32 to vector<1x1xf32>
    %28 = arith.mulf %26, %27 : vector<1x1xf32>
    %29 = arith.addf %2, %28 : vector<1x1xf32>
    %cst_23 = arith.constant dense<0.000000e+00> : vector<32x64xf32>
    %30 = tpu.matmul %12, %7, %cst_23 {dimension_numbers = #tpu.dot_dimension_numbers<[1], [0], [0], [1], [0, 0, 1, 1], [], []>, precision = #tpu.contract_precision<fp32>} : vector<32x128xf32>, vector<128x64xf32>, vector<32x64xf32> -> vector<32x64xf32>
    %c0_24 = arith.constant 0 : index
    %c0_25 = arith.constant 0 : index
    %31 = vector.load %arg5[%c0_24, %c0_25] : memref<16x32xf32, #tpu.memory_space<vmem>>, vector<16x32xf32>
    %cst_26 = arith.constant dense<0.000000e+00> : vector<16x64xf32>
    %32 = tpu.matmul %31, %30, %cst_26 {dimension_numbers = #tpu.dot_dimension_numbers<[1], [0], [0], [1], [0, 0, 1, 1], [], []>, precision = #tpu.contract_precision<fp32>} : vector<16x32xf32>, vector<32x64xf32>, vector<16x64xf32> -> vector<16x64xf32>
    %cst_27 = arith.constant dense<0.000000e+00> : vector<32x64xf32>
    %33 = tpu.matmul %17, %7, %cst_27 {dimension_numbers = #tpu.dot_dimension_numbers<[1], [0], [0], [1], [0, 0, 1, 1], [], []>, precision = #tpu.contract_precision<fp32>} : vector<32x128xf32>, vector<128x64xf32>, vector<32x64xf32> -> vector<32x64xf32>
    %c0_28 = arith.constant 0 : index
    %c0_29 = arith.constant 0 : index
    %34 = vector.load %arg5[%c0_28, %c0_29] : memref<16x32xf32, #tpu.memory_space<vmem>>, vector<16x32xf32>
    %cst_30 = arith.constant dense<0.000000e+00> : vector<16x64xf32>
    %35 = tpu.matmul %34, %33, %cst_30 {dimension_numbers = #tpu.dot_dimension_numbers<[1], [0], [0], [1], [0, 0, 1, 1], [], []>, precision = #tpu.contract_precision<fp32>} : vector<16x32xf32>, vector<32x64xf32>, vector<16x64xf32> -> vector<16x64xf32>
    %c0_31 = arith.constant 0 : index
    %c0_32 = arith.constant 0 : index
    %36 = vector.load %arg9[%c0_31, %c0_32] : memref<16x16xf32, #tpu.memory_space<vmem>>, vector<16x16xf32>
    %c0_33 = arith.constant 0 : index
    %c0_34 = arith.constant 0 : index
    %37 = vector.load %arg10[%c0_33, %c0_34] : memref<16x16xf32, #tpu.memory_space<vmem>>, vector<16x16xf32>
    %c0_35 = arith.constant 0 : index
    %c0_36 = arith.constant 0 : index
    %38 = vector.load %arg12[%c0_35, %c0_36] : memref<64x64xf32, #tpu.memory_space<vmem>>, vector<64x64xf32>
    %c0_37 = arith.constant 0 : index
    %c0_38 = arith.constant 0 : index
    %39 = vector.load %arg13[%c0_37, %c0_38] : memref<64x64xf32, #tpu.memory_space<vmem>>, vector<64x64xf32>
    %c0_39 = arith.constant 0 : index
    %c0_40 = arith.constant 0 : index
    %40 = vector.load %arg14[%c0_39, %c0_40] : memref<64x32xf32, #tpu.memory_space<vmem>>, vector<64x32xf32>
    %cst_41 = arith.constant dense<0.000000e+00> : vector<16x64xf32>
    %41 = tpu.matmul %32, %38, %cst_41 {dimension_numbers = #tpu.dot_dimension_numbers<[1], [0], [0], [1], [0, 0, 1, 1], [], []>, precision = #tpu.contract_precision<fp32>} : vector<16x64xf32>, vector<64x64xf32>, vector<16x64xf32> -> vector<16x64xf32>
    %cst_42 = arith.constant dense<0.000000e+00> : vector<16x64xf32>
    %42 = tpu.matmul %36, %41, %cst_42 {dimension_numbers = #tpu.dot_dimension_numbers<[1], [0], [0], [1], [0, 0, 1, 1], [], []>, precision = #tpu.contract_precision<fp32>} : vector<16x16xf32>, vector<16x64xf32>, vector<16x64xf32> -> vector<16x64xf32>
    %cst_43 = arith.constant dense<0.000000e+00> : vector<16x64xf32>
    %43 = tpu.matmul %32, %39, %cst_43 {dimension_numbers = #tpu.dot_dimension_numbers<[1], [0], [0], [1], [0, 0, 1, 1], [], []>, precision = #tpu.contract_precision<fp32>} : vector<16x64xf32>, vector<64x64xf32>, vector<16x64xf32> -> vector<16x64xf32>
    %cst_44 = arith.constant dense<0.000000e+00> : vector<16x64xf32>
    %44 = tpu.matmul %37, %43, %cst_44 {dimension_numbers = #tpu.dot_dimension_numbers<[1], [0], [0], [1], [0, 0, 1, 1], [], []>, precision = #tpu.contract_precision<fp32>} : vector<16x16xf32>, vector<16x64xf32>, vector<16x64xf32> -> vector<16x64xf32>
    %45 = arith.addf %42, %44 : vector<16x64xf32>
    %cst_45 = arith.constant dense<0.000000e+00> : vector<16x64xf32>
    %46 = tpu.matmul %35, %38, %cst_45 {dimension_numbers = #tpu.dot_dimension_numbers<[1], [0], [0], [1], [0, 0, 1, 1], [], []>, precision = #tpu.contract_precision<fp32>} : vector<16x64xf32>, vector<64x64xf32>, vector<16x64xf32> -> vector<16x64xf32>
    %cst_46 = arith.constant dense<0.000000e+00> : vector<16x64xf32>
    %47 = tpu.matmul %36, %46, %cst_46 {dimension_numbers = #tpu.dot_dimension_numbers<[1], [0], [0], [1], [0, 0, 1, 1], [], []>, precision = #tpu.contract_precision<fp32>} : vector<16x16xf32>, vector<16x64xf32>, vector<16x64xf32> -> vector<16x64xf32>
    %cst_47 = arith.constant dense<0.000000e+00> : vector<16x64xf32>
    %48 = tpu.matmul %35, %39, %cst_47 {dimension_numbers = #tpu.dot_dimension_numbers<[1], [0], [0], [1], [0, 0, 1, 1], [], []>, precision = #tpu.contract_precision<fp32>} : vector<16x64xf32>, vector<64x64xf32>, vector<16x64xf32> -> vector<16x64xf32>
    %cst_48 = arith.constant dense<0.000000e+00> : vector<16x64xf32>
    %49 = tpu.matmul %37, %48, %cst_48 {dimension_numbers = #tpu.dot_dimension_numbers<[1], [0], [0], [1], [0, 0, 1, 1], [], []>, precision = #tpu.contract_precision<fp32>} : vector<16x16xf32>, vector<16x64xf32>, vector<16x64xf32> -> vector<16x64xf32>
    %50 = arith.addf %47, %49 : vector<16x64xf32>
    %51 = arith.subf %32, %45 : vector<16x64xf32>
    %52 = arith.subf %35, %50 : vector<16x64xf32>
    %53 = arith.subf %51, %52 : vector<16x64xf32>
    %54 = math.absf %53 : vector<16x64xf32>
    %55 = vector.shape_cast %54 : vector<16x64xf32> to vector<1x16x64xf32>
    %cst_49 = arith.constant dense<0.000000e+00> : vector<1xf32>
    %56 = vector.multi_reduction <add>, %55, %cst_49 [1, 2] : vector<1x16x64xf32> to vector<1xf32>
    %57 = vector.shape_cast %56 : vector<1xf32> to vector<1x1x1xf32>
    %58 = vector.extract %57[0, 0, 0] : f32 from vector<1x1x1xf32>
    %59 = vector.broadcast %58 : f32 to vector<1x1xf32>
    %cst_50 = arith.constant 4.8828125E-4 : f32
    %60 = vector.broadcast %cst_50 : f32 to vector<1x1xf32>
    %61 = arith.mulf %59, %60 : vector<1x1xf32>
    %62 = arith.addf %29, %61 : vector<1x1xf32>
    %cst_51 = arith.constant dense<0.000000e+00> : vector<16x32xf32>
    %63 = tpu.matmul %45, %40, %cst_51 {dimension_numbers = #tpu.dot_dimension_numbers<[1], [0], [0], [1], [0, 0, 1, 1], [], []>, precision = #tpu.contract_precision<fp32>} : vector<16x64xf32>, vector<64x32xf32>, vector<16x32xf32> -> vector<16x32xf32>
    %c0_52 = arith.constant 0 : index
    %c0_53 = arith.constant 0 : index
    %64 = vector.load %arg11[%c0_52, %c0_53] : memref<8x16xf32, #tpu.memory_space<vmem>>, vector<8x16xf32>
    %cst_54 = arith.constant dense<0.000000e+00> : vector<8x32xf32>
    %65 = tpu.matmul %64, %63, %cst_54 {dimension_numbers = #tpu.dot_dimension_numbers<[1], [0], [0], [1], [0, 0, 1, 1], [], []>, precision = #tpu.contract_precision<fp32>} : vector<8x16xf32>, vector<16x32xf32>, vector<8x32xf32> -> vector<8x32xf32>
    %cst_55 = arith.constant dense<0.000000e+00> : vector<16x32xf32>
    %66 = tpu.matmul %50, %40, %cst_55 {dimension_numbers = #tpu.dot_dimension_numbers<[1], [0], [0], [1], [0, 0, 1, 1], [], []>, precision = #tpu.contract_precision<fp32>} : vector<16x64xf32>, vector<64x32xf32>, vector<16x32xf32> -> vector<16x32xf32>
    %c0_56 = arith.constant 0 : index
    %c0_57 = arith.constant 0 : index
    %67 = vector.load %arg11[%c0_56, %c0_57] : memref<8x16xf32, #tpu.memory_space<vmem>>, vector<8x16xf32>
    %cst_58 = arith.constant dense<0.000000e+00> : vector<8x32xf32>
    %68 = tpu.matmul %67, %66, %cst_58 {dimension_numbers = #tpu.dot_dimension_numbers<[1], [0], [0], [1], [0, 0, 1, 1], [], []>, precision = #tpu.contract_precision<fp32>} : vector<8x16xf32>, vector<16x32xf32>, vector<8x32xf32> -> vector<8x32xf32>
    %c0_59 = arith.constant 0 : index
    %c0_60 = arith.constant 0 : index
    %69 = vector.load %arg15[%c0_59, %c0_60] : memref<8x8xf32, #tpu.memory_space<vmem>>, vector<8x8xf32>
    %c0_61 = arith.constant 0 : index
    %c0_62 = arith.constant 0 : index
    %70 = vector.load %arg16[%c0_61, %c0_62] : memref<8x8xf32, #tpu.memory_space<vmem>>, vector<8x8xf32>
    %c0_63 = arith.constant 0 : index
    %c0_64 = arith.constant 0 : index
    %71 = vector.load %arg18[%c0_63, %c0_64] : memref<32x32xf32, #tpu.memory_space<vmem>>, vector<32x32xf32>
    %c0_65 = arith.constant 0 : index
    %c0_66 = arith.constant 0 : index
    %72 = vector.load %arg19[%c0_65, %c0_66] : memref<32x32xf32, #tpu.memory_space<vmem>>, vector<32x32xf32>
    %c0_67 = arith.constant 0 : index
    %c0_68 = arith.constant 0 : index
    %73 = vector.load %arg20[%c0_67, %c0_68] : memref<32x16xf32, #tpu.memory_space<vmem>>, vector<32x16xf32>
    %cst_69 = arith.constant dense<0.000000e+00> : vector<8x32xf32>
    %74 = tpu.matmul %65, %71, %cst_69 {dimension_numbers = #tpu.dot_dimension_numbers<[1], [0], [0], [1], [0, 0, 1, 1], [], []>, precision = #tpu.contract_precision<fp32>} : vector<8x32xf32>, vector<32x32xf32>, vector<8x32xf32> -> vector<8x32xf32>
    %cst_70 = arith.constant dense<0.000000e+00> : vector<8x32xf32>
    %75 = tpu.matmul %69, %74, %cst_70 {dimension_numbers = #tpu.dot_dimension_numbers<[1], [0], [0], [1], [0, 0, 1, 1], [], []>, precision = #tpu.contract_precision<fp32>} : vector<8x8xf32>, vector<8x32xf32>, vector<8x32xf32> -> vector<8x32xf32>
    %cst_71 = arith.constant dense<0.000000e+00> : vector<8x32xf32>
    %76 = tpu.matmul %65, %72, %cst_71 {dimension_numbers = #tpu.dot_dimension_numbers<[1], [0], [0], [1], [0, 0, 1, 1], [], []>, precision = #tpu.contract_precision<fp32>} : vector<8x32xf32>, vector<32x32xf32>, vector<8x32xf32> -> vector<8x32xf32>
    %cst_72 = arith.constant dense<0.000000e+00> : vector<8x32xf32>
    %77 = tpu.matmul %70, %76, %cst_72 {dimension_numbers = #tpu.dot_dimension_numbers<[1], [0], [0], [1], [0, 0, 1, 1], [], []>, precision = #tpu.contract_precision<fp32>} : vector<8x8xf32>, vector<8x32xf32>, vector<8x32xf32> -> vector<8x32xf32>
    %78 = arith.addf %75, %77 : vector<8x32xf32>
    %cst_73 = arith.constant dense<0.000000e+00> : vector<8x32xf32>
    %79 = tpu.matmul %68, %71, %cst_73 {dimension_numbers = #tpu.dot_dimension_numbers<[1], [0], [0], [1], [0, 0, 1, 1], [], []>, precision = #tpu.contract_precision<fp32>} : vector<8x32xf32>, vector<32x32xf32>, vector<8x32xf32> -> vector<8x32xf32>
    %cst_74 = arith.constant dense<0.000000e+00> : vector<8x32xf32>
    %80 = tpu.matmul %69, %79, %cst_74 {dimension_numbers = #tpu.dot_dimension_numbers<[1], [0], [0], [1], [0, 0, 1, 1], [], []>, precision = #tpu.contract_precision<fp32>} : vector<8x8xf32>, vector<8x32xf32>, vector<8x32xf32> -> vector<8x32xf32>
    %cst_75 = arith.constant dense<0.000000e+00> : vector<8x32xf32>
    %81 = tpu.matmul %68, %72, %cst_75 {dimension_numbers = #tpu.dot_dimension_numbers<[1], [0], [0], [1], [0, 0, 1, 1], [], []>, precision = #tpu.contract_precision<fp32>} : vector<8x32xf32>, vector<32x32xf32>, vector<8x32xf32> -> vector<8x32xf32>
    %cst_76 = arith.constant dense<0.000000e+00> : vector<8x32xf32>
    %82 = tpu.matmul %70, %81, %cst_76 {dimension_numbers = #tpu.dot_dimension_numbers<[1], [0], [0], [1], [0, 0, 1, 1], [], []>, precision = #tpu.contract_precision<fp32>} : vector<8x8xf32>, vector<8x32xf32>, vector<8x32xf32> -> vector<8x32xf32>
    %83 = arith.addf %80, %82 : vector<8x32xf32>
    %84 = arith.subf %65, %78 : vector<8x32xf32>
    %85 = arith.subf %68, %83 : vector<8x32xf32>
    %86 = arith.subf %84, %85 : vector<8x32xf32>
    %87 = math.absf %86 : vector<8x32xf32>
    %88 = vector.shape_cast %87 : vector<8x32xf32> to vector<1x8x32xf32>
    %cst_77 = arith.constant dense<0.000000e+00> : vector<1xf32>
    %89 = vector.multi_reduction <add>, %88, %cst_77 [1, 2] : vector<1x8x32xf32> to vector<1xf32>
    %90 = vector.shape_cast %89 : vector<1xf32> to vector<1x1x1xf32>
    %91 = vector.extract %90[0, 0, 0] : f32 from vector<1x1x1xf32>
    %92 = vector.broadcast %91 : f32 to vector<1x1xf32>
    %cst_78 = arith.constant 0.001953125 : f32
    %93 = vector.broadcast %cst_78 : f32 to vector<1x1xf32>
    %94 = arith.mulf %92, %93 : vector<1x1xf32>
    %95 = arith.addf %62, %94 : vector<1x1xf32>
    %cst_79 = arith.constant dense<0.000000e+00> : vector<8x16xf32>
    %96 = tpu.matmul %78, %73, %cst_79 {dimension_numbers = #tpu.dot_dimension_numbers<[1], [0], [0], [1], [0, 0, 1, 1], [], []>, precision = #tpu.contract_precision<fp32>} : vector<8x32xf32>, vector<32x16xf32>, vector<8x16xf32> -> vector<8x16xf32>
    %c0_80 = arith.constant 0 : index
    %c0_81 = arith.constant 0 : index
    %97 = vector.load %arg17[%c0_80, %c0_81] : memref<4x8xf32, #tpu.memory_space<vmem>>, vector<4x8xf32>
    %cst_82 = arith.constant dense<0.000000e+00> : vector<4x16xf32>
    %98 = tpu.matmul %97, %96, %cst_82 {dimension_numbers = #tpu.dot_dimension_numbers<[1], [0], [0], [1], [0, 0, 1, 1], [], []>, precision = #tpu.contract_precision<fp32>} : vector<4x8xf32>, vector<8x16xf32>, vector<4x16xf32> -> vector<4x16xf32>
    %cst_83 = arith.constant dense<0.000000e+00> : vector<8x16xf32>
    %99 = tpu.matmul %83, %73, %cst_83 {dimension_numbers = #tpu.dot_dimension_numbers<[1], [0], [0], [1], [0, 0, 1, 1], [], []>, precision = #tpu.contract_precision<fp32>} : vector<8x32xf32>, vector<32x16xf32>, vector<8x16xf32> -> vector<8x16xf32>
    %c0_84 = arith.constant 0 : index
    %c0_85 = arith.constant 0 : index
    %100 = vector.load %arg17[%c0_84, %c0_85] : memref<4x8xf32, #tpu.memory_space<vmem>>, vector<4x8xf32>
    %cst_86 = arith.constant dense<0.000000e+00> : vector<4x16xf32>
    %101 = tpu.matmul %100, %99, %cst_86 {dimension_numbers = #tpu.dot_dimension_numbers<[1], [0], [0], [1], [0, 0, 1, 1], [], []>, precision = #tpu.contract_precision<fp32>} : vector<4x8xf32>, vector<8x16xf32>, vector<4x16xf32> -> vector<4x16xf32>
    %c0_87 = arith.constant 0 : index
    %c0_88 = arith.constant 0 : index
    %102 = vector.load %arg21[%c0_87, %c0_88] : memref<4x4xf32, #tpu.memory_space<vmem>>, vector<4x4xf32>
    %c0_89 = arith.constant 0 : index
    %c0_90 = arith.constant 0 : index
    %103 = vector.load %arg22[%c0_89, %c0_90] : memref<4x4xf32, #tpu.memory_space<vmem>>, vector<4x4xf32>
    %c0_91 = arith.constant 0 : index
    %c0_92 = arith.constant 0 : index
    %104 = vector.load %arg24[%c0_91, %c0_92] : memref<16x16xf32, #tpu.memory_space<vmem>>, vector<16x16xf32>
    %c0_93 = arith.constant 0 : index
    %c0_94 = arith.constant 0 : index
    %105 = vector.load %arg25[%c0_93, %c0_94] : memref<16x16xf32, #tpu.memory_space<vmem>>, vector<16x16xf32>
    %c0_95 = arith.constant 0 : index
    %c0_96 = arith.constant 0 : index
    %106 = vector.load %arg26[%c0_95, %c0_96] : memref<16x8xf32, #tpu.memory_space<vmem>>, vector<16x8xf32>
    %cst_97 = arith.constant dense<0.000000e+00> : vector<4x16xf32>
    %107 = tpu.matmul %98, %104, %cst_97 {dimension_numbers = #tpu.dot_dimension_numbers<[1], [0], [0], [1], [0, 0, 1, 1], [], []>, precision = #tpu.contract_precision<fp32>} : vector<4x16xf32>, vector<16x16xf32>, vector<4x16xf32> -> vector<4x16xf32>
    %cst_98 = arith.constant dense<0.000000e+00> : vector<4x16xf32>
    %108 = tpu.matmul %102, %107, %cst_98 {dimension_numbers = #tpu.dot_dimension_numbers<[1], [0], [0], [1], [0, 0, 1, 1], [], []>, precision = #tpu.contract_precision<fp32>} : vector<4x4xf32>, vector<4x16xf32>, vector<4x16xf32> -> vector<4x16xf32>
    %cst_99 = arith.constant dense<0.000000e+00> : vector<4x16xf32>
    %109 = tpu.matmul %98, %105, %cst_99 {dimension_numbers = #tpu.dot_dimension_numbers<[1], [0], [0], [1], [0, 0, 1, 1], [], []>, precision = #tpu.contract_precision<fp32>} : vector<4x16xf32>, vector<16x16xf32>, vector<4x16xf32> -> vector<4x16xf32>
    %cst_100 = arith.constant dense<0.000000e+00> : vector<4x16xf32>
    %110 = tpu.matmul %103, %109, %cst_100 {dimension_numbers = #tpu.dot_dimension_numbers<[1], [0], [0], [1], [0, 0, 1, 1], [], []>, precision = #tpu.contract_precision<fp32>} : vector<4x4xf32>, vector<4x16xf32>, vector<4x16xf32> -> vector<4x16xf32>
    %111 = arith.addf %108, %110 : vector<4x16xf32>
    %cst_101 = arith.constant dense<0.000000e+00> : vector<4x16xf32>
    %112 = tpu.matmul %101, %104, %cst_101 {dimension_numbers = #tpu.dot_dimension_numbers<[1], [0], [0], [1], [0, 0, 1, 1], [], []>, precision = #tpu.contract_precision<fp32>} : vector<4x16xf32>, vector<16x16xf32>, vector<4x16xf32> -> vector<4x16xf32>
    %cst_102 = arith.constant dense<0.000000e+00> : vector<4x16xf32>
    %113 = tpu.matmul %102, %112, %cst_102 {dimension_numbers = #tpu.dot_dimension_numbers<[1], [0], [0], [1], [0, 0, 1, 1], [], []>, precision = #tpu.contract_precision<fp32>} : vector<4x4xf32>, vector<4x16xf32>, vector<4x16xf32> -> vector<4x16xf32>
    %cst_103 = arith.constant dense<0.000000e+00> : vector<4x16xf32>
    %114 = tpu.matmul %101, %105, %cst_103 {dimension_numbers = #tpu.dot_dimension_numbers<[1], [0], [0], [1], [0, 0, 1, 1], [], []>, precision = #tpu.contract_precision<fp32>} : vector<4x16xf32>, vector<16x16xf32>, vector<4x16xf32> -> vector<4x16xf32>
    %cst_104 = arith.constant dense<0.000000e+00> : vector<4x16xf32>
    %115 = tpu.matmul %103, %114, %cst_104 {dimension_numbers = #tpu.dot_dimension_numbers<[1], [0], [0], [1], [0, 0, 1, 1], [], []>, precision = #tpu.contract_precision<fp32>} : vector<4x4xf32>, vector<4x16xf32>, vector<4x16xf32> -> vector<4x16xf32>
    %116 = arith.addf %113, %115 : vector<4x16xf32>
    %117 = arith.subf %98, %111 : vector<4x16xf32>
    %118 = arith.subf %101, %116 : vector<4x16xf32>
    %119 = arith.subf %117, %118 : vector<4x16xf32>
    %120 = math.absf %119 : vector<4x16xf32>
    %121 = vector.shape_cast %120 : vector<4x16xf32> to vector<1x4x16xf32>
    %cst_105 = arith.constant dense<0.000000e+00> : vector<1xf32>
    %122 = vector.multi_reduction <add>, %121, %cst_105 [1, 2] : vector<1x4x16xf32> to vector<1xf32>
    %123 = vector.shape_cast %122 : vector<1xf32> to vector<1x1x1xf32>
    %124 = vector.extract %123[0, 0, 0] : f32 from vector<1x1x1xf32>
    %125 = vector.broadcast %124 : f32 to vector<1x1xf32>
    %cst_106 = arith.constant 7.812500e-03 : f32
    %126 = vector.broadcast %cst_106 : f32 to vector<1x1xf32>
    %127 = arith.mulf %125, %126 : vector<1x1xf32>
    %128 = arith.addf %95, %127 : vector<1x1xf32>
    %cst_107 = arith.constant dense<0.000000e+00> : vector<4x8xf32>
    %129 = tpu.matmul %111, %106, %cst_107 {dimension_numbers = #tpu.dot_dimension_numbers<[1], [0], [0], [1], [0, 0, 1, 1], [], []>, precision = #tpu.contract_precision<fp32>} : vector<4x16xf32>, vector<16x8xf32>, vector<4x8xf32> -> vector<4x8xf32>
    %c0_108 = arith.constant 0 : index
    %c0_109 = arith.constant 0 : index
    %130 = vector.load %arg23[%c0_108, %c0_109] : memref<2x4xf32, #tpu.memory_space<vmem>>, vector<2x4xf32>
    %cst_110 = arith.constant dense<0.000000e+00> : vector<2x8xf32>
    %131 = tpu.matmul %130, %129, %cst_110 {dimension_numbers = #tpu.dot_dimension_numbers<[1], [0], [0], [1], [0, 0, 1, 1], [], []>, precision = #tpu.contract_precision<fp32>} : vector<2x4xf32>, vector<4x8xf32>, vector<2x8xf32> -> vector<2x8xf32>
    %cst_111 = arith.constant dense<0.000000e+00> : vector<4x8xf32>
    %132 = tpu.matmul %116, %106, %cst_111 {dimension_numbers = #tpu.dot_dimension_numbers<[1], [0], [0], [1], [0, 0, 1, 1], [], []>, precision = #tpu.contract_precision<fp32>} : vector<4x16xf32>, vector<16x8xf32>, vector<4x8xf32> -> vector<4x8xf32>
    %c0_112 = arith.constant 0 : index
    %c0_113 = arith.constant 0 : index
    %133 = vector.load %arg23[%c0_112, %c0_113] : memref<2x4xf32, #tpu.memory_space<vmem>>, vector<2x4xf32>
    %cst_114 = arith.constant dense<0.000000e+00> : vector<2x8xf32>
    %134 = tpu.matmul %133, %132, %cst_114 {dimension_numbers = #tpu.dot_dimension_numbers<[1], [0], [0], [1], [0, 0, 1, 1], [], []>, precision = #tpu.contract_precision<fp32>} : vector<2x4xf32>, vector<4x8xf32>, vector<2x8xf32> -> vector<2x8xf32>
    %c0_115 = arith.constant 0 : index
    %c0_116 = arith.constant 0 : index
    %135 = vector.load %arg27[%c0_115, %c0_116] : memref<2x2xf32, #tpu.memory_space<vmem>>, vector<2x2xf32>
    %c0_117 = arith.constant 0 : index
    %c0_118 = arith.constant 0 : index
    %136 = vector.load %arg28[%c0_117, %c0_118] : memref<2x2xf32, #tpu.memory_space<vmem>>, vector<2x2xf32>
    %c0_119 = arith.constant 0 : index
    %c0_120 = arith.constant 0 : index
    %137 = vector.load %arg30[%c0_119, %c0_120] : memref<8x8xf32, #tpu.memory_space<vmem>>, vector<8x8xf32>
    %c0_121 = arith.constant 0 : index
    %c0_122 = arith.constant 0 : index
    %138 = vector.load %arg31[%c0_121, %c0_122] : memref<8x8xf32, #tpu.memory_space<vmem>>, vector<8x8xf32>
    %c0_123 = arith.constant 0 : index
    %c0_124 = arith.constant 0 : index
    %139 = vector.load %arg32[%c0_123, %c0_124] : memref<8x4xf32, #tpu.memory_space<vmem>>, vector<8x4xf32>
    %cst_125 = arith.constant dense<0.000000e+00> : vector<2x8xf32>
    %140 = tpu.matmul %131, %137, %cst_125 {dimension_numbers = #tpu.dot_dimension_numbers<[1], [0], [0], [1], [0, 0, 1, 1], [], []>, precision = #tpu.contract_precision<fp32>} : vector<2x8xf32>, vector<8x8xf32>, vector<2x8xf32> -> vector<2x8xf32>
    %cst_126 = arith.constant dense<0.000000e+00> : vector<2x8xf32>
    %141 = tpu.matmul %135, %140, %cst_126 {dimension_numbers = #tpu.dot_dimension_numbers<[1], [0], [0], [1], [0, 0, 1, 1], [], []>, precision = #tpu.contract_precision<fp32>} : vector<2x2xf32>, vector<2x8xf32>, vector<2x8xf32> -> vector<2x8xf32>
    %cst_127 = arith.constant dense<0.000000e+00> : vector<2x8xf32>
    %142 = tpu.matmul %131, %138, %cst_127 {dimension_numbers = #tpu.dot_dimension_numbers<[1], [0], [0], [1], [0, 0, 1, 1], [], []>, precision = #tpu.contract_precision<fp32>} : vector<2x8xf32>, vector<8x8xf32>, vector<2x8xf32> -> vector<2x8xf32>
    %cst_128 = arith.constant dense<0.000000e+00> : vector<2x8xf32>
    %143 = tpu.matmul %136, %142, %cst_128 {dimension_numbers = #tpu.dot_dimension_numbers<[1], [0], [0], [1], [0, 0, 1, 1], [], []>, precision = #tpu.contract_precision<fp32>} : vector<2x2xf32>, vector<2x8xf32>, vector<2x8xf32> -> vector<2x8xf32>
    %144 = arith.addf %141, %143 : vector<2x8xf32>
    %cst_129 = arith.constant dense<0.000000e+00> : vector<2x8xf32>
    %145 = tpu.matmul %134, %137, %cst_129 {dimension_numbers = #tpu.dot_dimension_numbers<[1], [0], [0], [1], [0, 0, 1, 1], [], []>, precision = #tpu.contract_precision<fp32>} : vector<2x8xf32>, vector<8x8xf32>, vector<2x8xf32> -> vector<2x8xf32>
    %cst_130 = arith.constant dense<0.000000e+00> : vector<2x8xf32>
    %146 = tpu.matmul %135, %145, %cst_130 {dimension_numbers = #tpu.dot_dimension_numbers<[1], [0], [0], [1], [0, 0, 1, 1], [], []>, precision = #tpu.contract_precision<fp32>} : vector<2x2xf32>, vector<2x8xf32>, vector<2x8xf32> -> vector<2x8xf32>
    %cst_131 = arith.constant dense<0.000000e+00> : vector<2x8xf32>
    %147 = tpu.matmul %134, %138, %cst_131 {dimension_numbers = #tpu.dot_dimension_numbers<[1], [0], [0], [1], [0, 0, 1, 1], [], []>, precision = #tpu.contract_precision<fp32>} : vector<2x8xf32>, vector<8x8xf32>, vector<2x8xf32> -> vector<2x8xf32>
    %cst_132 = arith.constant dense<0.000000e+00> : vector<2x8xf32>
    %148 = tpu.matmul %136, %147, %cst_132 {dimension_numbers = #tpu.dot_dimension_numbers<[1], [0], [0], [1], [0, 0, 1, 1], [], []>, precision = #tpu.contract_precision<fp32>} : vector<2x2xf32>, vector<2x8xf32>, vector<2x8xf32> -> vector<2x8xf32>
    %149 = arith.addf %146, %148 : vector<2x8xf32>
    %150 = arith.subf %131, %144 : vector<2x8xf32>
    %151 = arith.subf %134, %149 : vector<2x8xf32>
    %152 = arith.subf %150, %151 : vector<2x8xf32>
    %153 = math.absf %152 : vector<2x8xf32>
    %154 = vector.shape_cast %153 : vector<2x8xf32> to vector<1x2x8xf32>
    %cst_133 = arith.constant dense<0.000000e+00> : vector<1xf32>
    %155 = vector.multi_reduction <add>, %154, %cst_133 [1, 2] : vector<1x2x8xf32> to vector<1xf32>
    %156 = vector.shape_cast %155 : vector<1xf32> to vector<1x1x1xf32>
    %157 = vector.extract %156[0, 0, 0] : f32 from vector<1x1x1xf32>
    %158 = vector.broadcast %157 : f32 to vector<1x1xf32>
    %cst_134 = arith.constant 3.125000e-02 : f32
    %159 = vector.broadcast %cst_134 : f32 to vector<1x1xf32>
    %160 = arith.mulf %158, %159 : vector<1x1xf32>
    %161 = arith.addf %128, %160 : vector<1x1xf32>
    %cst_135 = arith.constant dense<0.000000e+00> : vector<2x4xf32>
    %162 = tpu.matmul %144, %139, %cst_135 {dimension_numbers = #tpu.dot_dimension_numbers<[1], [0], [0], [1], [0, 0, 1, 1], [], []>, precision = #tpu.contract_precision<fp32>} : vector<2x8xf32>, vector<8x4xf32>, vector<2x4xf32> -> vector<2x4xf32>
    %163 = vector.extract_strided_slice %162 {offsets = [0, 0], sizes = [1, 4], strides = [1, 1]} : vector<2x4xf32> to vector<1x4xf32>
    %164 = vector.extract_strided_slice %162 {offsets = [1, 0], sizes = [1, 4], strides = [1, 1]} : vector<2x4xf32> to vector<1x4xf32>
    %165 = arith.addf %163, %164 : vector<1x4xf32>
    %cst_136 = arith.constant 5.000000e-01 : f32
    %166 = vector.broadcast %cst_136 : f32 to vector<1x4xf32>
    %167 = arith.mulf %166, %165 : vector<1x4xf32>
    %cst_137 = arith.constant dense<0.000000e+00> : vector<2x4xf32>
    %168 = tpu.matmul %149, %139, %cst_137 {dimension_numbers = #tpu.dot_dimension_numbers<[1], [0], [0], [1], [0, 0, 1, 1], [], []>, precision = #tpu.contract_precision<fp32>} : vector<2x8xf32>, vector<8x4xf32>, vector<2x4xf32> -> vector<2x4xf32>
    %169 = vector.extract_strided_slice %168 {offsets = [0, 0], sizes = [1, 4], strides = [1, 1]} : vector<2x4xf32> to vector<1x4xf32>
    %170 = vector.extract_strided_slice %168 {offsets = [1, 0], sizes = [1, 4], strides = [1, 1]} : vector<2x4xf32> to vector<1x4xf32>
    %171 = arith.addf %169, %170 : vector<1x4xf32>
    %cst_138 = arith.constant 5.000000e-01 : f32
    %172 = vector.broadcast %cst_138 : f32 to vector<1x4xf32>
    %173 = arith.mulf %172, %171 : vector<1x4xf32>
    %174 = arith.subf %167, %173 : vector<1x4xf32>
    %175 = math.absf %174 : vector<1x4xf32>
    %176 = vector.shape_cast %175 : vector<1x4xf32> to vector<1x1x4xf32>
    %cst_139 = arith.constant dense<0.000000e+00> : vector<1xf32>
    %177 = vector.multi_reduction <add>, %176, %cst_139 [1, 2] : vector<1x1x4xf32> to vector<1xf32>
    %178 = vector.shape_cast %177 : vector<1xf32> to vector<1x1x1xf32>
    %179 = vector.extract %178[0, 0, 0] : f32 from vector<1x1x1xf32>
    %180 = vector.broadcast %179 : f32 to vector<1x1xf32>
    %cst_140 = arith.constant 1.250000e-01 : f32
    %181 = vector.broadcast %cst_140 : f32 to vector<1x1xf32>
    %182 = arith.mulf %180, %181 : vector<1x1xf32>
    %183 = arith.addf %161, %182 : vector<1x1xf32>
    %184 = vector.shape_cast %183 : vector<1x1xf32> to vector<1x1x1xf32>
    %185 = vector.shape_cast %184 : vector<1x1x1xf32> to vector<1x1x1xf32>
    %186 = vector.broadcast %185 : vector<1x1x1xf32> to vector<1x8x128xf32>
    %c0_141 = arith.constant 0 : index
    %c0_142 = arith.constant 0 : index
    %c0_143 = arith.constant 0 : index
    %187 = vector.load %arg33[%c0_141, %c0_142, %c0_143] : memref<1x8x128xf32, #tpu.memory_space<vmem>>, vector<1x8x128xf32>
    tpu.vector_store %arg33[%c0_141, %c0_142, %c0_143], %186 {strides = array<i32>} : memref<1x8x128xf32, #tpu.memory_space<vmem>>, vector<1x8x128xf32>,
    return
  }
  func.func @transform_0(%arg0: i32) -> (i32, i32) {
    %c0_i32 = arith.constant 0 : i32
    %c0_i32_0 = arith.constant 0 : i32
    return %c0_i32, %arg0 : i32, i32
  }
  func.func @transform_1(%arg0: i32) -> (i32, i32) {
    %c0_i32 = arith.constant 0 : i32
    %c0_i32_0 = arith.constant 0 : i32
    return %c0_i32, %arg0 : i32, i32
  }
  func.func @transform_2(%arg0: i32) -> (i32, i32) {
    %c0_i32 = arith.constant 0 : i32
    %c0_i32_0 = arith.constant 0 : i32
    %c0_i32_1 = arith.constant 0 : i32
    return %c0_i32, %c0_i32_0 : i32, i32
  }
  func.func @transform_3(%arg0: i32) -> (i32, i32) {
    %c0_i32 = arith.constant 0 : i32
    %c0_i32_0 = arith.constant 0 : i32
    %c0_i32_1 = arith.constant 0 : i32
    return %c0_i32, %c0_i32_0 : i32, i32
  }
  func.func @transform_4(%arg0: i32) -> (i32, i32) {
    %c0_i32 = arith.constant 0 : i32
    %c0_i32_0 = arith.constant 0 : i32
    %c0_i32_1 = arith.constant 0 : i32
    return %c0_i32, %c0_i32_0 : i32, i32
  }
  func.func @transform_5(%arg0: i32) -> (i32, i32) {
    %c0_i32 = arith.constant 0 : i32
    %c0_i32_0 = arith.constant 0 : i32
    %c0_i32_1 = arith.constant 0 : i32
    return %c0_i32, %c0_i32_0 : i32, i32
  }
  func.func @transform_6(%arg0: i32) -> (i32, i32) {
    %c0_i32 = arith.constant 0 : i32
    %c0_i32_0 = arith.constant 0 : i32
    %c0_i32_1 = arith.constant 0 : i32
    return %c0_i32, %c0_i32_0 : i32, i32
  }
  func.func @transform_7(%arg0: i32) -> (i32, i32) {
    %c0_i32 = arith.constant 0 : i32
    %c0_i32_0 = arith.constant 0 : i32
    %c0_i32_1 = arith.constant 0 : i32
    return %c0_i32, %c0_i32_0 : i32, i32
  }
  func.func @transform_8(%arg0: i32) -> (i32, i32) {
    %c0_i32 = arith.constant 0 : i32
    %c0_i32_0 = arith.constant 0 : i32
    %c0_i32_1 = arith.constant 0 : i32
    return %c0_i32, %c0_i32_0 : i32, i32
  }
  func.func @transform_9(%arg0: i32) -> (i32, i32) {
    %c0_i32 = arith.constant 0 : i32
    %c0_i32_0 = arith.constant 0 : i32
    %c0_i32_1 = arith.constant 0 : i32
    return %c0_i32, %c0_i32_0 : i32, i32
  }
  func.func @transform_10(%arg0: i32) -> (i32, i32) {
    %c0_i32 = arith.constant 0 : i32
    %c0_i32_0 = arith.constant 0 : i32
    %c0_i32_1 = arith.constant 0 : i32
    return %c0_i32, %c0_i32_0 : i32, i32
  }
  func.func @transform_11(%arg0: i32) -> (i32, i32) {
    %c0_i32 = arith.constant 0 : i32
    %c0_i32_0 = arith.constant 0 : i32
    %c0_i32_1 = arith.constant 0 : i32
    return %c0_i32, %c0_i32_0 : i32, i32
  }
  func.func @transform_12(%arg0: i32) -> (i32, i32) {
    %c0_i32 = arith.constant 0 : i32
    %c0_i32_0 = arith.constant 0 : i32
    %c0_i32_1 = arith.constant 0 : i32
    return %c0_i32, %c0_i32_0 : i32, i32
  }
  func.func @transform_13(%arg0: i32) -> (i32, i32) {
    %c0_i32 = arith.constant 0 : i32
    %c0_i32_0 = arith.constant 0 : i32
    %c0_i32_1 = arith.constant 0 : i32
    return %c0_i32, %c0_i32_0 : i32, i32
  }
  func.func @transform_14(%arg0: i32) -> (i32, i32) {
    %c0_i32 = arith.constant 0 : i32
    %c0_i32_0 = arith.constant 0 : i32
    %c0_i32_1 = arith.constant 0 : i32
    return %c0_i32, %c0_i32_0 : i32, i32
  }
  func.func @transform_15(%arg0: i32) -> (i32, i32) {
    %c0_i32 = arith.constant 0 : i32
    %c0_i32_0 = arith.constant 0 : i32
    %c0_i32_1 = arith.constant 0 : i32
    return %c0_i32, %c0_i32_0 : i32, i32
  }
  func.func @transform_16(%arg0: i32) -> (i32, i32) {
    %c0_i32 = arith.constant 0 : i32
    %c0_i32_0 = arith.constant 0 : i32
    %c0_i32_1 = arith.constant 0 : i32
    return %c0_i32, %c0_i32_0 : i32, i32
  }
  func.func @transform_17(%arg0: i32) -> (i32, i32) {
    %c0_i32 = arith.constant 0 : i32
    %c0_i32_0 = arith.constant 0 : i32
    %c0_i32_1 = arith.constant 0 : i32
    return %c0_i32, %c0_i32_0 : i32, i32
  }
  func.func @transform_18(%arg0: i32) -> (i32, i32) {
    %c0_i32 = arith.constant 0 : i32
    %c0_i32_0 = arith.constant 0 : i32
    %c0_i32_1 = arith.constant 0 : i32
    return %c0_i32, %c0_i32_0 : i32, i32
  }
  func.func @transform_19(%arg0: i32) -> (i32, i32) {
    %c0_i32 = arith.constant 0 : i32
    %c0_i32_0 = arith.constant 0 : i32
    %c0_i32_1 = arith.constant 0 : i32
    return %c0_i32, %c0_i32_0 : i32, i32
  }
  func.func @transform_20(%arg0: i32) -> (i32, i32) {
    %c0_i32 = arith.constant 0 : i32
    %c0_i32_0 = arith.constant 0 : i32
    %c0_i32_1 = arith.constant 0 : i32
    return %c0_i32, %c0_i32_0 : i32, i32
  }
  func.func @transform_21(%arg0: i32) -> (i32, i32) {
    %c0_i32 = arith.constant 0 : i32
    %c0_i32_0 = arith.constant 0 : i32
    %c0_i32_1 = arith.constant 0 : i32
    return %c0_i32, %c0_i32_0 : i32, i32
  }
  func.func @transform_22(%arg0: i32) -> (i32, i32) {
    %c0_i32 = arith.constant 0 : i32
    %c0_i32_0 = arith.constant 0 : i32
    %c0_i32_1 = arith.constant 0 : i32
    return %c0_i32, %c0_i32_0 : i32, i32
  }
  func.func @transform_23(%arg0: i32) -> (i32, i32) {
    %c0_i32 = arith.constant 0 : i32
    %c0_i32_0 = arith.constant 0 : i32
    %c0_i32_1 = arith.constant 0 : i32
    return %c0_i32, %c0_i32_0 : i32, i32
  }
  func.func @transform_24(%arg0: i32) -> (i32, i32) {
    %c0_i32 = arith.constant 0 : i32
    %c0_i32_0 = arith.constant 0 : i32
    %c0_i32_1 = arith.constant 0 : i32
    return %c0_i32, %c0_i32_0 : i32, i32
  }
  func.func @transform_25(%arg0: i32) -> (i32, i32) {
    %c0_i32 = arith.constant 0 : i32
    %c0_i32_0 = arith.constant 0 : i32
    %c0_i32_1 = arith.constant 0 : i32
    return %c0_i32, %c0_i32_0 : i32, i32
  }
  func.func @transform_26(%arg0: i32) -> (i32, i32) {
    %c0_i32 = arith.constant 0 : i32
    %c0_i32_0 = arith.constant 0 : i32
    %c0_i32_1 = arith.constant 0 : i32
    return %c0_i32, %c0_i32_0 : i32, i32
  }
  func.func @transform_27(%arg0: i32) -> (i32, i32) {
    %c0_i32 = arith.constant 0 : i32
    %c0_i32_0 = arith.constant 0 : i32
    %c0_i32_1 = arith.constant 0 : i32
    return %c0_i32, %c0_i32_0 : i32, i32
  }
  func.func @transform_28(%arg0: i32) -> (i32, i32) {
    %c0_i32 = arith.constant 0 : i32
    %c0_i32_0 = arith.constant 0 : i32
    %c0_i32_1 = arith.constant 0 : i32
    return %c0_i32, %c0_i32_0 : i32, i32
  }
  func.func @transform_29(%arg0: i32) -> (i32, i32) {
    %c0_i32 = arith.constant 0 : i32
    %c0_i32_0 = arith.constant 0 : i32
    %c0_i32_1 = arith.constant 0 : i32
    return %c0_i32, %c0_i32_0 : i32, i32
  }
  func.func @transform_30(%arg0: i32) -> (i32, i32) {
    %c0_i32 = arith.constant 0 : i32
    %c0_i32_0 = arith.constant 0 : i32
    %c0_i32_1 = arith.constant 0 : i32
    return %c0_i32, %c0_i32_0 : i32, i32
  }
  func.func @transform_31(%arg0: i32) -> (i32, i32) {
    %c0_i32 = arith.constant 0 : i32
    %c0_i32_0 = arith.constant 0 : i32
    %c0_i32_1 = arith.constant 0 : i32
    return %c0_i32, %c0_i32_0 : i32, i32
  }
  func.func @transform_32(%arg0: i32) -> (i32, i32, i32) {
    %c0_i32 = arith.constant 0 : i32
    %c0_i32_0 = arith.constant 0 : i32
    %c0_i32_1 = arith.constant 0 : i32
    return %arg0, %c0_i32, %c0_i32_0 : i32, i32, i32
  }
}

</mosaic_0001>

<bundles_post_ra>
// kernel: lap_loss.1
= control target key start
LH: loop header
LB: loop body
LE: loop exit
PB: predicated region body
PF: predicated region fallthrough
CT: control target
= control target key end

     0   :  { %s41044_s6 = smov 1   ;;  %s41045_s10 = smov 2   ;;  %s45768_s0 = inlined_call_operand.smem [shape: u32[33], index: -1, kind: input, shape index: {}] }
   0x1   :  { %s41086_s5 = sld [smem:[%s45768_s0]]   ;;  %s41046_s14 = smov 3  }
   0x2   :  { %s41091_s9 = sld [smem:[%s45768_s0 + %s41044_s6]]   ;;  %s41047_s18 = smov 4  }
   0x3   :  { %s41096_s13 = sld [smem:[%s45768_s0 + %s41045_s10]]   ;;  %s41048_s22 = smov 5  }
   0x4   :  { %s41101_s17 = sld [smem:[%s45768_s0 + %s41046_s14]]   ;;  %s41049_s26 = smov 6  }
   0x5   :  { %s41106_s21 = sld [smem:[%s45768_s0 + %s41047_s18]]   ;;  %s41050_s30 = smov 7  }
   0x6   :  { %s41111_s25 = sld [smem:[%s45768_s0 + %s41048_s22]]   ;;  %s41051_s4 = smov 8  }
   0x7   :  { %s41116_s29 = sld [smem:[%s45768_s0 + %s41049_s26]]   ;;  %s41052_s10 = smov 9  }
   0x8   :  { %s41121_s3 = sld [smem:[%s45768_s0 + %s41050_s30]]   ;;  %s41053_s15 = smov 10  }
   0x9   :  { %s41126_s8 = sld [smem:[%s45768_s0 + %s41051_s4]]   ;;  %s41054_s20 = smov 11  }
   0xa   :  { %s41131_s14 = sld [smem:[%s45768_s0 + %s41052_s10]]   ;;  %s41055_s26 = smov 12  }
   0xb   :  { %s41136_s19 = sld [smem:[%s45768_s0 + %s41053_s15]]   ;;  %s41056_s1 = smov 13  }
   0xc   :  { %s41141_s24 = sld [smem:[%s45768_s0 + %s41054_s20]]   ;;  %s41057_s7 = smov 14  }
   0xd   :  { %s41146_s30 = sld [smem:[%s45768_s0 + %s41055_s26]]   ;;  %s41058_s15 = smov 15  }
   0xe   :  { %46023 = sst [smem:[#allocation4_spill]] %s41121_s3  ;;  %s41059_s22 = smov 16  }
   0xf   :  { %s41151_s6 = sld [smem:[%s45768_s0 + %s41056_s1]]   ;;  %s41060_s28 = smov 17  }
  0x10   :  { %s41156_s12 = sld [smem:[%s45768_s0 + %s41057_s7]]   ;;  %s41061_s7 = smov 18  }
  0x11   :  { %s41161_s20 = sld [smem:[%s45768_s0 + %s41058_s15]]   ;;  %s41062_s15 = smov 19  }
  0x12   :  { %s41166_s27 = sld [smem:[%s45768_s0 + %s41059_s22]]   ;;  %s41063_s22 = smov 20  }
  0x13   :  { %s41171_s4 = sld [smem:[%s45768_s0 + %s41060_s28]]   ;;  %s41064_s28 = smov 21  }
  0x16   :  { %46024 = sst [smem:[#allocation5_spill]] %s41156_s12 }
  0x17   :  { %46025 = sst [smem:[#allocation6_spill]] %s41161_s20 }
  0x18   :  { %46026 = sst [smem:[#allocation7_spill]] %s41166_s27 }
  0x19   :  { %46027 = sst [smem:[#allocation8_spill]] %s41171_s4 }
  0x1a   :  { %s41176_s12 = sld [smem:[%s45768_s0 + %s41061_s7]]   ;;  %s41065_s7 = smov 22  }
  0x1b   :  { %s41181_s20 = sld [smem:[%s45768_s0 + %s41062_s15]]   ;;  %s41066_s15 = smov 23  }
  0x1c   :  { %s41186_s27 = sld [smem:[%s45768_s0 + %s41063_s22]]   ;;  %s41067_s22 = smov 24  }
  0x1d   :  { %s41191_s4 = sld [smem:[%s45768_s0 + %s41064_s28]]   ;;  %s41068_s28 = smov 25  }
  0x20   :  { %46028 = sst [smem:[#allocation9_spill]] %s41176_s12 }
  0x21   :  { %46029 = sst [smem:[#allocation10_spill]] %s41181_s20 }
  0x22   :  { %46030 = sst [smem:[#allocation11_spill]] %s41186_s27 }
  0x23   :  { %46031 = sst [smem:[#allocation12_spill]] %s41191_s4 }
  0x24   :  { %s41196_s12 = sld [smem:[%s45768_s0 + %s41065_s7]]   ;;  %s41069_s7 = smov 26  }
  0x25   :  { %s41201_s20 = sld [smem:[%s45768_s0 + %s41066_s15]]   ;;  %s41070_s15 = smov 27  }
  0x26   :  { %s41206_s27 = sld [smem:[%s45768_s0 + %s41067_s22]]   ;;  %s41071_s22 = smov 29  }
  0x27   :  { %s41211_s4 = sld [smem:[%s45768_s0 + %s41068_s28]]   ;;  %s41072_s28 = smov 30  }
  0x2a   :  { %46032 = sst [smem:[#allocation13_spill]] %s41196_s12 }
  0x2b   :  { %46033 = sst [smem:[#allocation14_spill]] %s41201_s20 }
  0x2c   :  { %46034 = sst [smem:[#allocation15_spill]] %s41206_s27 }
  0x2d   :  { %46035 = sst [smem:[#allocation16_spill]] %s41211_s4 }
  0x2e   :  { %s41216_s12 = sld [smem:[%s45768_s0 + %s41069_s7]]   ;;  %s41073_s7 = smov 31  }
  0x2f   :  { %s41221_s20 = sld [smem:[%s45768_s0 + %s41070_s15]]   ;;  %s41074_s15 = smov 32  }
  0x30   :  { %s41226_s27 = sld [smem:[%s45768_s0 + %s41071_s22]]  }
  0x31   :  { %s41231_s4 = sld [smem:[%s45768_s0 + %s41072_s28]]  }
  0x34   :  { %46036 = sst [smem:[#allocation17_spill]] %s41216_s12 }
  0x35   :  { %46037 = sst [smem:[#allocation18_spill]] %s41221_s20 }
  0x36   :  { %s41236_s12 = sld [smem:[%s45768_s0 + %s41073_s7]]  }
  0x37   :  { %46038 = sst [smem:[#allocation19_spill]] %s41231_s4 }
  0x38   :  { %s41241_s20 = sld [smem:[%s45768_s0 + %s41074_s15]]  }
  0x39   :  { %s41243_s22 = smov 0   ;;  %s41245_s23 = smov 0  }
  0x3a   :  { %s41247_s26 = smov 0  }
  0x3b LB: > { %s46039_s3 = sld [smem:[#allocation4_spill]]  ;;  %s41260_s28 = sadd.s32 1, %s41042_s26   ;;  %s41034_s22 = sphi %s41243_s22, %s46412_s22   ;;  %s41042_s26 = sphi %s41247_s26, %s46414_s26   ;;  %s41038_s23 = sphi %s41245_s23, %s46413_s23  }
  0x3c   : > { %s79_s1 = ssub.s32 %s41042_s26, %s41260_s28  ;;  %s82_s2 = sadd.s32 1, %s41038_s23 }
  0x3d   : > { %p80_p0 = scmp.eq.s32.totalorder %s79_s1, 0  ;;  %p89_p1 = scmp.ne.s32.totalorder %s41038_s23, %s41034_s22 }
  0x3e   : > { %p90_p2 = scmp.eq.s32.totalorder %s41042_s26, 0  ;;  %p31647_p4 = scmp.ge.s32.totalorder %s41042_s26, 2 }
  0x3f   : > { %s41269_s7 = scalar_select %p80_p0, %s41038_s23, %s82_s2  }
  0x40   : > { %p41271_p3 = por %p90_p2, %p89_p1  ;;  %887 = sbr.rel (%p31647_p4) target bundleno = 85 (0x55), region = 136 }
  0x47   : > { %890 = sbr.rel (!%p41271_p3) target bundleno = 78 (0x4e), region = 140  ;;  %s892_s11 = sand.u32 (%p41271_p3), 1, %s41038_s23  }
  0x48   : > { %s31649_s15 = sshll.u32 (%p41271_p3), %s41042_s26, 3  ;;  %s31648_s16 = sshll.u32 (%p41271_p3), %s892_s11, 5 }
  0x49   : > { %s896_s18 = scalar_lea.vmem (%p41271_p3), %s41086_s5, %s31649_s15  ;;  %s894_s1 = scalar_lea.vmem (%p41271_p3), [#allocation2], %s31648_s16 }
  0x4a   : > { %v930_v0 = vld [vmem:[%s896_s18] sm:$0xff] (%p41271_p3)  ;;  %v932_v1 = vld [vmem:[%s896_s18 + $0x10] sm:$0xff] (%p41271_p3) }
  0x4b   : > { %v934_v2 = vld [vmem:[%s896_s18 + $0x20] sm:$0xff] (%p41271_p3)  ;;  %931 = vst [vmem:[%s894_s1] sm:$0xff] (%p41271_p3), %v930_v0  ;;  %933 = vst [vmem:[%s894_s1 + $0x8] sm:$0xff] (%p41271_p3), %v932_v1  ;;  %v936_v3 = vld [vmem:[%s896_s18 + $0x30] sm:$0xff] (%p41271_p3) }
  0x4c   : > { %935 = vst [vmem:[%s894_s1 + $0x10] sm:$0xff] (%p41271_p3), %v934_v2  ;;  %937 = vst [vmem:[%s894_s1 + $0x18] sm:$0xff] (%p41271_p3), %v936_v3 }
  0x4e PF: > { %943 = sbr.rel (!%p41271_p3) target bundleno = 85 (0x55), region = 178  ;;  %s945_s2 = sand.u32 (%p41271_p3), 1, %s41038_s23  }
  0x4f   : > { %s31651_s0 = sshll.u32 (%p41271_p3), %s41042_s26, 3  ;;  %s31650_s11 = sshll.u32 (%p41271_p3), %s945_s2, 5 }
  0x50   : > { %s949_s15 = scalar_lea.vmem (%p41271_p3), %s41091_s9, %s31651_s0  ;;  %s947_s16 = scalar_lea.vmem (%p41271_p3), [#allocation3], %s31650_s11 }
  0x51   : > { %v983_v4 = vld [vmem:[%s949_s15] sm:$0xff] (%p41271_p3)  ;;  %v985_v5 = vld [vmem:[%s949_s15 + $0x10] sm:$0xff] (%p41271_p3) }
  0x52   : > { %v987_v6 = vld [vmem:[%s949_s15 + $0x20] sm:$0xff] (%p41271_p3)  ;;  %984 = vst [vmem:[%s947_s16] sm:$0xff] (%p41271_p3), %v983_v4  ;;  %986 = vst [vmem:[%s947_s16 + $0x8] sm:$0xff] (%p41271_p3), %v985_v5  ;;  %v989_v7 = vld [vmem:[%s949_s15 + $0x30] sm:$0xff] (%p41271_p3) }
  0x53   : > { %988 = vst [vmem:[%s947_s16 + $0x10] sm:$0xff] (%p41271_p3), %v987_v6  ;;  %990 = vst [vmem:[%s947_s16 + $0x18] sm:$0xff] (%p41271_p3), %v989_v7 }
  0x55 PF: > { %p31652_p5 = scmp.ge.s32.totalorder %s41042_s26, 1  ;;  %p995_p6 = scmp.lt.s32.totalorder %s41042_s26, 3 }
  0x57   : > { %p996_p7 = pnand %p31652_p5, %p995_p6 }
  0x59   : > { %999 = sbr.rel (%p996_p7) target bundleno = 6701 (0x1a2d), region = 216 }
  0x60   : > { %v41289_v8 = vld [vmem:[%s41111_s25] sm:$0xff]  ;;  %v41292_v9 = vld [vmem:[%s41111_s25 + $0x8] sm:$0xff]  ;;  %s1002_s0 = sand.u32 1, %s41034_s22   ;;  %v41305_v15 = vld [vmem:[%s41111_s25 + $0x10] sm:$0xff]  ;;  %vm2701_vm0 = vcmask 261120   ;;  %vm9385_vm1 = vcmask 523264  }
  0x61   : > { %v41295_v10 = vld [vmem:[%s41116_s29] sm:$0xff]  ;;  %v1162_v11 = vand.u32 4294901760, %v41289_v8  ;;  %v1165_v12 = vand.u32 4294901760, %v41292_v9  ;;  %v41301_v13 = vld [vmem:[%s41116_s29 + $0x8] sm:$0xff]  ;;  %v41308_v16 = vld [vmem:[%s41111_s25 + $0x18] sm:$0xff]  ;;  %v1168_v18 = vand.u32 4294901760, %v41305_v15 }
  0x62   : > { %v1932_v14 = vand.u32 4294901760, %v41295_v10  ;;  %v1935_v17 = vand.u32 4294901760, %v41301_v13  ;;  %v1171_v19 = vand.u32 4294901760, %v41308_v16  ;;  %v41314_v20 = vld [vmem:[%s41116_s29 + $0x10] sm:$0xff]  ;;  %v41317_v21 = vld [vmem:[%s41116_s29 + $0x18] sm:$0xff]  ;;  %v41320_v22 = vld [vmem:[%s41111_s25 + $0x20] sm:$0xff] }
  0x63   : > { %v41326_v23 = vpack.c.bf16 %v1165_v12, %v1162_v11  ;;  %v45792_v24 = vand.u32 4294901760, %v41314_v20  ;;  %v45789_v25 = vand.u32 4294901760, %v41317_v21  ;;  %v41331_v26 = vld [vmem:[%s41111_s25 + $0x28] sm:$0xff]  ;;  %v45788_v27 = vand.u32 4294901760, %v41320_v22  ;;  %v41335_v28 = vld [vmem:[%s41116_s29 + $0x20] sm:$0xff]  ;;  %v41355_v34 = vld [vmem:[%s41111_s25 + $0x30] sm:$0xff] }
  0x64   : > { %v41338_v29 = vld [vmem:[%s41116_s29 + $0x28] sm:$0xff]  ;;  %v41344_v30 = vpack.c.bf16 %v1935_v17, %v1932_v14  ;;  %v41350_v31 = vpack.c.bf16 %v1171_v19, %v1168_v18  ;;  %v45787_v32 = vand.u32 4294901760, %v41331_v26  ;;  %v45786_v33 = vand.u32 4294901760, %v41335_v28  ;;  %v41358_v35 = vld [vmem:[%s41111_s25 + $0x38] sm:$0xff]  ;;  %v41361_v36 = vld [vmem:[%s41116_s29 + $0x30] sm:$0xff]  ;;  %s41363_s22 = sshll.u32 %s1002_s0, 5 }
  0x65   : > { %37767 = vmatprep.subr.bf16.mxu0 %v41326_v23  ;;  %v41370_v37 = vpack.c.bf16 %v45789_v25, %v45792_v24  ;;  %v45783_v38 = vand.u32 4294901760, %v41338_v29  ;;  %v45780_v39 = vand.u32 4294901760, %v41355_v34  ;;  %v45775_v40 = vand.u32 4294901760, %v41358_v35  ;;  %v41376_v41 = vld [vmem:[%s41116_s29 + $0x38] sm:$0xff]  ;;  %v41379_v42 = vld [vmem:[%s41111_s25 + $0x40] sm:$0xff]  ;;  %v41382_v43 = vld [vmem:[%s41111_s25 + $0x48] sm:$0xff] }
  0x66   : > { %46041 = vst [vmem:[#allocation20_spill] sm:$0xff] %v41344_v30  ;;  %46042 = vst [vmem:[#allocation21_spill] sm:$0xff] %v41350_v31  ;;  %37959 = vmatprep.subr.bf16.mxu1 %v41344_v30  ;;  %37769 = vmatpush3.bf16.msra.mxu0 %v41326_v23  ;;  %v45779_v44 = vand.u32 4294901760, %v41361_v36  ;;  %v45776_v45 = vand.u32 4294901760, %v41376_v41  ;;  %v45778_v46 = vand.u32 4294901760, %v41379_v42  ;;  %v41390_v47 = vld [vmem:[%s41116_s29 + $0x40] sm:$0xff]  ;;  %v41404_v50 = vpack.c.bf16 %v45787_v32, %v45788_v27 }
  0x67   : > { %46043 = vst [vmem:[#allocation22_spill] sm:$0xff] %v41370_v37  ;;  %v41393_v48 = vld [vmem:[%s41116_s29 + $0x48] sm:$0xff]  ;;  %v41396_v49 = vld [vmem:[%s41111_s25 + $0x50] sm:$0xff]  ;;  %37961 = vmatpush3.bf16.msra.mxu1 %v41344_v30  ;;  %37771 = vmatprep.subr.bf16.mxu0 %v41350_v31  ;;  %v45777_v51 = vand.u32 4294901760, %v41382_v43  ;;  %v45782_v52 = vand.u32 4294901760, %v41390_v47  ;;  %v41409_v53 = vld [vmem:[%s41111_s25 + $0x58] sm:$0xff]  ;;  %v41422_v56 = vpack.c.bf16 %v45783_v38, %v45786_v33  ;;  %v41449_v3 = vpack.c.bf16 %v45775_v40, %v45780_v39 }
  0x68   : > { %46044 = vst [vmem:[#allocation23_spill] sm:$0xff] %v41404_v50  ;;  %v41412_v54 = vld [vmem:[%s41116_s29 + $0x50] sm:$0xff]  ;;  %v41415_v55 = vld [vmem:[%s41116_s29 + $0x58] sm:$0xff]  ;;  %37963 = vmatprep.subr.bf16.mxu1 %v41370_v37  ;;  %v45781_v57 = vand.u32 4294901760, %v41393_v48  ;;  %v45785_v58 = vand.u32 4294901760, %v41396_v49  ;;  %v45784_v59 = vand.u32 4294901760, %v41409_v53  ;;  %v41455_v4 = vpack.c.bf16 %v45776_v45, %v45779_v44 }
  0x69   : > { %46045 = vst [vmem:[#allocation24_spill] sm:$0xff] %v41422_v56  ;;  %v41428_v60 = vld [vmem:[%s41111_s25 + $0x60] sm:$0xff]  ;;  %v41431_v61 = vld [vmem:[%s41111_s25 + $0x68] sm:$0xff]  ;;  %v45791_v62 = vand.u32 4294901760, %v41412_v54  ;;  %v45790_v63 = vand.u32 4294901760, %v41415_v55  ;;  %v41442_v2 = vld [vmem:[%s41111_s25 + $0x70] sm:$0xff]  ;;  %v41461_v5 = vpack.c.bf16 %v45777_v51, %v45778_v46  ;;  %v41510_v25 = vsub.f32 %v41289_v8, %v1162_v11 }
  0x6a   : > { %v41436_v0 = vld [vmem:[%s41116_s29 + $0x60] sm:$0xff]  ;;  %v41439_v1 = vld [vmem:[%s41116_s29 + $0x68] sm:$0xff]  ;;  %37773 = vmatpush3.bf16.msra.mxu0 %v41350_v31  ;;  %46046 = vst [vmem:[#allocation25_spill] sm:$0xff] %v41449_v3  ;;  %46047 = vst [vmem:[#allocation26_spill] sm:$0xff] %v41455_v4  ;;  %s41470_s10 = scalar_lea.vmem [#allocation2], %s41363_s22  ;;  %v41479_v45 = vpack.c.bf16 %v45781_v57, %v45782_v52  ;;  %v41485_v51 = vpack.c.bf16 %v45784_v59, %v45785_v58  ;;  %v45797_v46 = vand.u32 4294901760, %v41428_v60 }
  0x6b   : > { %46048 = vst [vmem:[#allocation27_spill] sm:$0xff] %v41461_v5  ;;  %v41464_v6 = vld [vmem:[%s41111_s25 + $0x78] sm:$0xff]  ;;  %v41467_v7 = vld [vmem:[%s41116_s29 + $0x70] sm:$0xff]  ;;  %v1097_v40 = vld [vmem:[%s41470_s10] sm:$0xff]  ;;  %37965 = vmatpush3.bf16.msra.mxu1 %v41370_v37  ;;  %37775 = vmatprep.subr.bf16.mxu0 %v41404_v50  ;;  %v45796_v44 = vand.u32 4294901760, %v41431_v61  ;;  %v41497_v57 = vpack.c.bf16 %v45790_v63, %v45791_v62  ;;  %v45813_v52 = vand.u32 4294901760, %v41436_v0  ;;  %v41520_v24 = vsub.f32 %v41292_v9, %v1165_v12 }
  0x6c   : > { %46049 = vst [vmem:[#allocation28_spill] sm:$0xff] %v41479_v45  ;;  %46050 = vst [vmem:[#allocation29_spill] sm:$0xff] %v41485_v51  ;;  %v41490_v39 = vld [vmem:[%s41116_s29 + $0x78] sm:$0xff]  ;;  %37967 = vmatprep.subr.bf16.mxu1 %v41422_v56  ;;  %v45812_v38 = vand.u32 4294901760, %v41439_v1  ;;  %v41501_v59 = vand.u32 4294901760, %v1097_v40  ;;  %v1098_v58 = vld [vmem:[%s41470_s10 + $0x8] sm:$0xff]  ;;  %v41525_v27 = vsub.f32 %v41295_v10, %v1932_v14  ;;  %v41533_v11 = vsub.f32 %v41301_v13, %v1935_v17 }
  0x6d   : > { %46051 = vst [vmem:[#allocation30_spill] sm:$0xff] %v41497_v57  ;;  %v45793_v8 = vand.u32 4294901760, %v41510_v25  ;;  %v41540_v9 = vsub.f32 %v41305_v15, %v1168_v18  ;;  %v45794_v12 = vand.u32 4294901760, %v41520_v24  ;;  %v41551_v13 = vsub.f32 %v41308_v16, %v1171_v19  ;;  %s42288_s18 = scalar_lea.vmem [#allocation3], %s41363_s22  ;;  %s46394_s1 = sld [smem:[#allocation9_spill]] }
  0x6e   : > { %37777 = vmatpush3.bf16.msra.mxu0 %v41404_v50  ;;  %v41515_v62 = vsub.f32 %v1097_v40, %v41501_v59  ;;  %v41535_v40 = vand.u32 4294901760, %v1098_v58  ;;  %v45795_v14 = vand.u32 4294901760, %v41525_v27  ;;  %v45800_v15 = vand.u32 4294901760, %v41533_v11  ;;  %s46395_s2 = sld [smem:[#allocation8_spill]]  ;;  %s46396_s11 = sld [smem:[#allocation6_spill]] }
  0x6f   : > { %37969 = vmatpush3.bf16.msra.mxu1 %v41422_v56  ;;  %37779 = vmatprep.subr.bf16.mxu0 %v41449_v3  ;;  %v1286_v17 = vsub.f32 %v41510_v25, %v45793_v8  ;;  %v45807_v63 = vand.u32 4294901760, %v41540_v9  ;;  %v1293_v16 = vsub.f32 %v41520_v24, %v45794_v12  ;;  %v41593_v8 = vpack.c.bf16 %v45812_v38, %v45813_v52  ;;  %s46397_s15 = sld [smem:[#allocation5_spill]]  ;;  %s46398_s16 = sld [smem:[#allocation10_spill]] }
  0x70   : > { %37971 = vmatprep.subr.bf16.mxu1 %v41455_v4  ;;  %v41544_v10 = vand.u32 4294901760, %v41515_v62  ;;  %v41558_v18 = vsub.f32 %v1098_v58, %v41535_v40  ;;  %v2056_v19 = vsub.f32 %v41525_v27, %v45795_v14  ;;  %v41577_v58 = vpack.c.bf16 %v45796_v44, %v45797_v46  ;;  %s46399_s0 = sld [smem:[#allocation7_spill]]  ;;  %s46407_s4 = sld [smem:[#allocation19_spill]] }
  0x71   : > { %v2063_v12 = vsub.f32 %v41533_v11, %v45800_v15  ;;  %v1300_v14 = vsub.f32 %v41540_v9, %v45807_v63  ;;  %46055 = vst [vmem:[#allocation34_spill] sm:$0xff] %v41593_v8  ;;  %v1287_v46 = vand.u32 4294901760, %v1286_v17  ;;  %v46056_v15 = vand.u32 4294901760, %v41442_v2  ;;  %s46400_s22 = sld [smem:[#allocation15_spill]] }
  0x72   : > { %46052 = vst [vmem:[#allocation31_spill] sm:$0xff] %v41544_v10  ;;  %37781 = vmatpush3.bf16.msra.mxu0 %v41449_v3  ;;  %v1245_v32 = vsub.f32 %v41515_v62, %v41544_v10  ;;  %46053 = vst [vmem:[#allocation32_spill] sm:$0xff] %v41577_v58  ;;  %v41583_v33 = vand.u32 4294901760, %v41558_v18  ;;  %v46057_v3 = vand.u32 4294901760, %v41464_v6  ;;  %v46059_v56 = vand.u32 4294901760, %v41467_v7 }
  0x73   : > { %37973 = vmatpush3.bf16.msra.mxu1 %v41455_v4  ;;  %37783 = vmatprep.subr.bf16.mxu0 %v41461_v5  ;;  %v1294_v4 = vand.u32 4294901760, %v1293_v16  ;;  %v46060_v63 = vand.u32 4294901760, %v41490_v39  ;;  %v46062_v37 = vand.u32 4294901760, %v41551_v13  ;;  %v46064_v16 = vand.u32 4294901760, %v41317_v21 }
  0x74   : > { %46054 = vst [vmem:[#allocation33_spill] sm:$0xff] %v41583_v33  ;;  %37975 = vmatprep.subr.bf16.mxu1 %v41479_v45  ;;  %v1246_v44 = vand.u32 4294901760, %v1245_v32  ;;  %v41599_v10 = vpack.c.bf16 %v46057_v3, %v46056_v15  ;;  %v46063_v32 = vand.u32 4294901760, %v41314_v20  ;;  %v2057_v3 = vand.u32 4294901760, %v2056_v19 }
  0x75   : > { %v41605_v50 = vpack.c.bf16 %v46060_v63, %v46059_v56  ;;  %v1307_v38 = vsub.f32 %v41551_v13, %v46062_v37  ;;  %v2064_v15 = vand.u32 4294901760, %v2063_v12  ;;  %v41619_v52 = vsub.f32 %v41317_v21, %v46064_v16 }
  0x76   : > { %46058 = vst [vmem:[#allocation35_spill] sm:$0xff] %v41599_v10  ;;  %v41613_v17 = vsub.f32 %v41314_v20, %v46063_v32  ;;  %37785 = vmatpush3.bf16.msra.mxu0 %v41461_v5  ;;  %33718 = vmatprep.mubr.f32.mxu0 %v1246_v44  ;;  %v46065_v56 = vand.u32 4294901760, %v41320_v22  ;;  %v1255_v20 = vsub.f32 %v41558_v18, %v41583_v33  ;;  %v1301_v37 = vand.u32 4294901760, %v1300_v14 }
  0x77   : > { %46061 = vst [vmem:[#allocation36_spill] sm:$0xff] %v41605_v50  ;;  %37977 = vmatpush3.bf16.msra.mxu1 %v41479_v45  ;;  %37787 = vmatprep.subr.bf16.mxu0 %v41485_v51  ;;  %v46066_v19 = vand.u32 4294901760, %v41331_v26  ;;  %v41637_v32 = vpack.c.bf16 %v1294_v4, %v1287_v46  ;;  %v1308_v12 = vand.u32 4294901760, %v1307_v38  ;;  %v46070_v46 = vand.u32 4294901760, %v41355_v34 }
  0x78   : > { %v41624_v63 = vsub.f32 %v41320_v22, %v46065_v56  ;;  %37979 = vmatprep.subr.bf16.mxu1 %v41497_v57  ;;  %33946 = vmatprep.mubr.f32.mxu1 %v1246_v44  ;;  %v45816_v22 = vand.u32 4294901760, %v41619_v52  ;;  %v46068_v56 = vand.u32 4294901760, %v41335_v28  ;;  %v46071_v4 = vand.u32 4294901760, %v41613_v17 }
  0x79   : > { %v41634_v21 = vsub.f32 %v41331_v26, %v46066_v19  ;;  %46067 = vst [vmem:[#allocation37_spill] sm:$0xff] %v41637_v32  ;;  %v46069_v26 = vand.u32 4294901760, %v41338_v29  ;;  %v41655_v44 = vsub.f32 %v41355_v34, %v46070_v46  ;;  %vm10552_vm2 = vcmask 130048  }
  0x7a   : > { %v45821_v16 = vand.u32 4294901760, %v41624_v63  ;;  %v41644_v14 = vsub.f32 %v41335_v28, %v46068_v56  ;;  %37789 = vmatpush3.bf16.msra.mxu0 %v41485_v51  ;;  %v2070_v28 = vsub.f32 %v41613_v17, %v46071_v4  ;;  %v2077_v38 = vsub.f32 %v41619_v52, %v45816_v22 }
  0x7b   : > { %v45822_v33 = vand.u32 4294901760, %v41634_v21  ;;  %v41650_v19 = vsub.f32 %v41338_v29, %v46069_v26  ;;  %v46072_v29 = vand.u32 4294901760, %v41358_v35  ;;  %37981 = vmatpush3.bf16.msra.mxu1 %v41497_v57  ;;  %37791 = vmatprep.subr.bf16.mxu0 %v41577_v58  ;;  %v45827_v22 = vand.u32 4294901760, %v41655_v44 }
  0x7c   : > { %v45825_v56 = vand.u32 4294901760, %v41644_v14  ;;  %v1314_v34 = vsub.f32 %v41624_v63, %v45821_v16  ;;  %37983 = vmatprep.subr.bf16.mxu1 %v41593_v8  ;;  %v41687_v16 = vpack.c.bf16 %v1308_v12, %v1301_v37  ;;  %v46076_v12 = vand.u32 4294901760, %v41376_v41 }
  0x7d   : > { %v41668_v26 = vsub.f32 %v41358_v35, %v46072_v29  ;;  %v1321_v46 = vsub.f32 %v41634_v21, %v45822_v33  ;;  %v45826_v4 = vand.u32 4294901760, %v41650_v19  ;;  %v41681_v35 = vpack.c.bf16 %v2064_v15, %v2057_v3 }
  0x7e   : > { %v1256_v29 = vand.u32 4294901760, %v1255_v20  ;;  %v2084_v57 = vsub.f32 %v41644_v14, %v45825_v56  ;;  %46074 = vst [vmem:[#allocation39_spill] sm:$0xff] %v41687_v16  ;;  %v1328_v45 = vsub.f32 %v41655_v44, %v45827_v22  ;;  %v46075_v3 = vand.u32 4294901760, %v41361_v36  ;;  %37793 = vmatpush3.bf16.msra.mxu0 %v41577_v58 }
  0x7f   : > { %46073 = vst [vmem:[#allocation38_spill] sm:$0xff] %v41681_v35  ;;  %v45830_v51 = vand.u32 4294901760, %v41668_v26  ;;  %v2091_v33 = vsub.f32 %v41650_v19, %v45826_v4  ;;  %v2071_v20 = vand.u32 4294901760, %v2070_v28  ;;  %v2078_v56 = vand.u32 4294901760, %v2077_v38  ;;  %37985 = vmatpush3.bf16.msra.mxu1 %v41593_v8  ;;  %37795 = vmatprep.subr.bf16.mxu0 %v41599_v10 }
  0x80   : > { %v41698_v15 = vsub.f32 %v41361_v36, %v46075_v3  ;;  %v41707_v4 = vsub.f32 %v41376_v41, %v46076_v12  ;;  %v1315_v22 = vand.u32 4294901760, %v1314_v34  ;;  %v1322_v36 = vand.u32 4294901760, %v1321_v46  ;;  %37987 = vmatprep.subr.bf16.mxu1 %v41605_v50 }
  0x81   : > { %v1335_v37 = vsub.f32 %v41668_v26, %v45830_v51  ;;  %v2085_v3 = vand.u32 4294901760, %v2084_v57  ;;  %v2092_v28 = vand.u32 4294901760, %v2091_v33  ;;  %v46077_v51 = vand.u32 4294901760, %v41379_v42 }
  0x82   : > { %v45833_v58 = vand.u32 4294901760, %v41698_v15  ;;  %v46078_v41 = vand.u32 4294901760, %v41382_v43  ;;  %v1329_v34 = vand.u32 4294901760, %v1328_v45  ;;  %v46079_v46 = vand.u32 4294901760, %v41390_v47  ;;  %37797 = vmatpush3.bf16.msra.mxu0 %v41599_v10 }
  0x83   : > { %v41717_v5 = vsub.f32 %v41379_v42, %v46077_v51  ;;  %v46080_v38 = vand.u32 4294901760, %v41393_v48  ;;  %v1336_v51 = vand.u32 4294901760, %v1335_v37  ;;  %37989 = vmatpush3.bf16.msra.mxu1 %v41605_v50  ;;  %37799 = vmatprep.subr.bf16.mxu0 %v41637_v32  ;;  %vm41076_vm3 = vmmov 0  }
  0x84   : > { %v41722_v12 = vsub.f32 %v41382_v43, %v46078_v41  ;;  %v2098_v57 = vsub.f32 %v41698_v15, %v45833_v58  ;;  %v41730_v33 = vsub.f32 %v41390_v47, %v46079_v46  ;;  %v46081_v43 = vand.u32 4294901760, %v41707_v4  ;;  %37991 = vmatprep.subr.bf16.mxu1 %v41681_v35 }
  0x85   : > { %v41735_v42 = vsub.f32 %v41393_v48, %v46080_v38  ;;  %v46082_v38 = vand.u32 4294901760, %v41396_v49  ;;  %v46084_v58 = vand.u32 4294901760, %v41717_v5  ;;  %33719 = vmatmul.mubr.f32.vlgmr.msra.gmra.mrb[0].mxu0 %v1256_v29  ;;  %vm16843_vm4 = vcmask 64512  }
  0x86   : > { %v2105_v45 = vsub.f32 %v41707_v4, %v46081_v43  ;;  %v2099_v47 = vand.u32 4294901760, %v2098_v57  ;;  %v41753_v43 = vpack.c.bf16 %v2078_v56, %v2071_v20  ;;  %v46085_v57 = vand.u32 4294901760, %v41409_v53  ;;  %37801 = vmatpush3.bf16.msra.mxu0 %v41637_v32  ;;  %33947 = vmatmul.mubr.f32.vlgmr.msra.gmra.mrb[0].mxu1 %v1256_v29 }
  0x87   : > { %v41750_v37 = vsub.f32 %v41396_v49, %v46082_v38  ;;  %v1342_v50 = vsub.f32 %v41717_v5, %v46084_v58  ;;  %v46086_v48 = vand.u32 4294901760, %v41722_v12  ;;  %v46087_v38 = vand.u32 4294901760, %v41730_v33  ;;  %37993 = vmatpush3.bf16.msra.mxu1 %v41681_v35  ;;  %37803 = vmatprep.subr.bf16.mxu0 %v41687_v16 }
  0x88   : > { %46083 = vst [vmem:[#allocation40_spill] sm:$0xff] %v41753_v43  ;;  %v2106_v41 = vand.u32 4294901760, %v2105_v45  ;;  %v41761_v46 = vsub.f32 %v41409_v53, %v46085_v57  ;;  %v46088_v45 = vand.u32 4294901760, %v41412_v54  ;;  %v41776_v53 = vpack.c.bf16 %v1322_v36, %v1315_v22  ;;  %37995 = vmatprep.subr.bf16.mxu1 %v41753_v43 }
  0x89   : > { %v1349_v49 = vsub.f32 %v41722_v12, %v46086_v48  ;;  %v2112_v56 = vsub.f32 %v41730_v33, %v46087_v38  ;;  %v41778_v57 = vpack.c.bf16 %v2092_v28, %v2085_v3  ;;  %v41783_v38 = vpack.c.bf16 %v1336_v51, %v1329_v34 }
  0x8a   : > { %v41773_v58 = vsub.f32 %v41412_v54, %v46088_v45  ;;  %46089 = vst [vmem:[#allocation41_spill] sm:$0xff] %v41776_v53  ;;  %v45840_v48 = vand.u32 4294901760, %v41761_v46  ;;  %v41785_v20 = vpack.c.bf16 %v2106_v41, %v2099_v47  ;;  %v46093_v54 = vand.u32 4294901760, %v41735_v42  ;;  %v1099_v47 = vld [vmem:[%s41470_s10 + $0x10] sm:$0xff]  ;;  %37805 = vmatpush3.bf16.msra.mxu0 %v41687_v16 }
  0x8b   : > { %46090 = vst [vmem:[#allocation42_spill] sm:$0xff] %v41778_v57  ;;  %46091 = vst [vmem:[#allocation43_spill] sm:$0xff] %v41783_v38  ;;  %v46094_v22 = vand.u32 4294901760, %v41750_v37  ;;  %v46095_v28 = vand.u32 4294901760, %v41415_v55  ;;  %v46096_v51 = vand.u32 4294901760, %v41428_v60  ;;  %v1350_v29 = vand.u32 4294901760, %v1349_v49  ;;  %37997 = vmatpush3.bf16.msra.mxu1 %v41753_v43  ;;  %37807 = vmatprep.subr.bf16.mxu0 %v41776_v53 }
  0x8c   : > { %46092 = vst [vmem:[#allocation44_spill] sm:$0xff] %v41785_v20  ;;  %v2119_v45 = vsub.f32 %v41735_v42, %v46093_v54  ;;  %v1363_v3 = vsub.f32 %v41761_v46, %v45840_v48  ;;  %v1343_v54 = vand.u32 4294901760, %v1342_v50  ;;  %v2113_v35 = vand.u32 4294901760, %v2112_v56  ;;  %37999 = vmatprep.subr.bf16.mxu1 %v41778_v57 }
  0x8d   : > { %v1356_v36 = vsub.f32 %v41750_v37, %v46094_v22  ;;  %v41801_v34 = vsub.f32 %v41415_v55, %v46095_v28  ;;  %v41806_v41 = vsub.f32 %v41428_v60, %v46096_v51  ;;  %v46097_v22 = vand.u32 4294901760, %v41431_v61 }
  0x8e   : > { %v46098_v48 = vand.u32 4294901760, %v41773_v58  ;;  %v46099_v51 = vand.u32 4294901760, %v41436_v0  ;;  %v46100_v56 = vand.u32 4294901760, %v41439_v1  ;;  %v1364_v28 = vand.u32 4294901760, %v1363_v3  ;;  %37809 = vmatpush3.bf16.msra.mxu0 %v41776_v53 }
  0x8f   : > { %v41812_v32 = vsub.f32 %v41431_v61, %v46097_v22  ;;  %v2120_v61 = vand.u32 4294901760, %v2119_v45  ;;  %v41833_v22 = vand.u32 4294901760, %v1099_v47  ;;  %v1357_v60 = vand.u32 4294901760, %v1356_v36  ;;  %38001 = vmatpush3.bf16.msra.mxu1 %v41778_v57  ;;  %37811 = vmatprep.subr.bf16.mxu0 %v41783_v38 }
  0x90   : > { %v2126_v55 = vsub.f32 %v41773_v58, %v46098_v48  ;;  %v41823_v50 = vsub.f32 %v41436_v0, %v46099_v51  ;;  %v41831_v48 = vsub.f32 %v41439_v1, %v46100_v56  ;;  %v46101_v0 = vand.u32 4294901760, %v41801_v34  ;;  %38003 = vmatprep.subr.bf16.mxu1 %v41785_v20 }
  0x91   : > { %v46102_v45 = vand.u32 4294901760, %v41806_v41  ;;  %v41845_v56 = vsub.f32 %v1099_v47, %v41833_v22  ;;  %v46104_v16 = vand.u32 4294901760, %v41442_v2  ;;  %v41853_v3 = vpack.c.bf16 %v1350_v29, %v1343_v54 }
  0x92   : > { %v2133_v51 = vsub.f32 %v41801_v34, %v46101_v0  ;;  %v2127_v0 = vand.u32 4294901760, %v2126_v55  ;;  %v46106_v43 = vand.u32 4294901760, %v41812_v32  ;;  %v41874_v55 = vpack.c.bf16 %v2120_v61, %v2113_v35  ;;  %37813 = vmatpush3.bf16.msra.mxu0 %v41783_v38 }
  0x93   : > { %v1370_v49 = vsub.f32 %v41806_v41, %v46102_v45  ;;  %46103 = vst [vmem:[#allocation45_spill] sm:$0xff] %v41845_v56  ;;  %v41850_v36 = vsub.f32 %v41442_v2, %v46104_v16  ;;  %46105 = vst [vmem:[#allocation46_spill] sm:$0xff] %v41853_v3  ;;  %v46107_v45 = vand.u32 4294901760, %v41464_v6  ;;  %v46108_v16 = vand.u32 4294901760, %v41823_v50  ;;  %38005 = vmatpush3.bf16.msra.mxu1 %v41785_v20 }
  0x94   : > { %v1377_v10 = vsub.f32 %v41812_v32, %v46106_v43  ;;  %v2134_v2 = vand.u32 4294901760, %v2133_v51  ;;  %v41869_v47 = vand.u32 4294901760, %v41845_v56  ;;  %v1100_v43 = vld [vmem:[%s41470_s10 + $0x18] sm:$0xff]  ;;  %46110 = vst [vmem:[#allocation48_spill] sm:$0xff] %v41874_v55  ;;  %v46112_v57 = vand.u32 4294901760, %v41467_v7  ;;  %37815 = vmatprep.subr.bf16.mxu0 %v41853_v3  ;;  %38007 = vmatprep.subr.bf16.mxu1 %v41874_v55 }
  0x95   : > { %v41861_v1 = vsub.f32 %v41464_v6, %v46107_v45  ;;  %v2140_v29 = vsub.f32 %v41823_v50, %v46108_v16  ;;  %v46111_v6 = vand.u32 4294901760, %v41831_v48  ;;  %v41885_v53 = vpack.c.bf16 %v1364_v28, %v1357_v60 }
  0x96   : > { %46109 = vst [vmem:[#allocation47_spill] sm:$0xff] %v41869_v47  ;;  %v41883_v16 = vsub.f32 %v41467_v7, %v46112_v57  ;;  %v1371_v8 = vand.u32 4294901760, %v1370_v49  ;;  %v1265_v54 = vsub.f32 %v41845_v56, %v41869_v47  ;;  %v46114_v35 = vand.u32 4294901760, %v41850_v36  ;;  %37817 = vmatpush3.bf16.msra.mxu0 %v41853_v3 }
  0x97   : > { %v2147_v45 = vsub.f32 %v41831_v48, %v46111_v6  ;;  %v45857_v51 = vand.u32 4294901760, %v41861_v1  ;;  %46113 = vst [vmem:[#allocation49_spill] sm:$0xff] %v41885_v53  ;;  %v46115_v7 = vand.u32 4294901760, %v41490_v39  ;;  %v41902_v28 = vand.u32 4294901760, %v1100_v43  ;;  %38009 = vmatpush3.bf16.msra.mxu1 %v41874_v55  ;;  %37819 = vmatprep.subr.bf16.mxu0 %v41885_v53 }
  0x98   : > { %v1384_v61 = vsub.f32 %v41850_v36, %v46114_v35  ;;  %v2153_v31 = vand.u32 4294901760, %v41883_v16  ;;  %v41906_v60 = vpack.c.bf16 %v2134_v2, %v2127_v0  ;;  %v1378_v49 = vand.u32 4294901760, %v1377_v10 }
  0x99   : > { %v1391_v6 = vsub.f32 %v41861_v1, %v45857_v51  ;;  %v41900_v57 = vsub.f32 %v41490_v39, %v46115_v7  ;;  %v2141_v35 = vand.u32 4294901760, %v2140_v29  ;;  %v1266_v38 = vand.u32 4294901760, %v1265_v54 }
  0x9a   : > { %46116 = vst [vmem:[#allocation50_spill] sm:$0xff] %v41906_v60  ;;  %v2148_v51 = vand.u32 4294901760, %v2147_v45  ;;  %v2154_v47 = vsub.f32 %v41883_v16, %v2153_v31  ;;  %v41912_v39 = vsub.f32 %v1100_v43, %v41902_v28  ;;  %v1385_v7 = vand.u32 4294901760, %v1384_v61  ;;  %38011 = vmatprep.subr.bf16.mxu1 %v41906_v60  ;;  %37821 = vmatpush3.bf16.msra.mxu0 %v41885_v53 }
  0x9b   : > { %v2160_v56 = vand.u32 4294901760, %v41900_v57  ;;  %33721 = vmatprep.mubr.f32.mxu0 %v1266_v38  ;;  %33949 = vmatprep.mubr.f32.mxu1 %v1266_v38  ;;  %v1392_v0 = vand.u32 4294901760, %v1391_v6  ;;  %v41921_v29 = vpack.c.bf16 %v1378_v49, %v1371_v8  ;;  %v41933_v55 = vpack.c.bf16 %v41520_v24, %v41510_v25 }
  0x9c   : > { %v41917_v2 = vand.u32 4294901760, %v41912_v39  ;;  %v2155_v54 = vand.u32 4294901760, %v2154_v47  ;;  %v41924_v43 = vpack.c.bf16 %v2148_v51, %v2141_v35  ;;  %38013 = vmatpush3.bf16.msra.mxu1 %v41906_v60  ;;  %v46120_v47 = vand.u32 4294901760, %v41510_v25 }
  0x9d   : > { %v2161_v10 = vsub.f32 %v41900_v57, %v2160_v56  ;;  %46117 = vst [vmem:[#allocation51_spill] sm:$0xff] %v41921_v29  ;;  %v41929_v61 = vpack.c.bf16 %v1392_v0, %v1385_v7  ;;  %37823 = vmatprep.subr.bf16.mxu0 %v41921_v29  ;;  %v46121_v51 = vand.u32 4294901760, %v41520_v24  ;;  %v46122_v35 = vand.u32 4294901760, %v41525_v27 }
  0x9e   : > { %46118 = vst [vmem:[#allocation52_spill] sm:$0xff] %v41924_v43  ;;  %v1275_v45 = vsub.f32 %v41912_v39, %v41917_v2  ;;  %v46123_v7 = vand.u32 4294901760, %v41533_v11  ;;  %38015 = vmatprep.subr.bf16.mxu1 %v41924_v43  ;;  %v46127_v25 = vand.u32 4294901760, %v41613_v17  ;;  %v46128_v24 = vand.u32 4294901760, %v41619_v52  ;;  %37825 = vmatpush3.bf16.msra.mxu0 %v41921_v29 }
  0x9f   : > { %v2162_v38 = vand.u32 4294901760, %v2161_v10  ;;  %v41943_v49 = vpack.c.bf16 %v46121_v51, %v46120_v47  ;;  %v46125_v10 = vand.u32 4294901760, %v41540_v9  ;;  %v46130_v47 = vand.u32 4294901760, %v41624_v63  ;;  %37827 = vmatprep.subr.bf16.mxu0 %v41929_v61 }
  0xa0   : > { %v1276_v6 = vand.u32 4294901760, %v1275_v45  ;;  %v41949_v0 = vpack.c.bf16 %v46123_v7, %v46122_v35  ;;  %v41962_v45 = vpack.c.bf16 %v46128_v24, %v46127_v25  ;;  %v46131_v51 = vand.u32 4294901760, %v41634_v21  ;;  %38017 = vmatpush3.bf16.msra.mxu1 %v41924_v43 }
  0xa1   : > { %v41937_v8 = vpack.c.bf16 %v2162_v38, %v2155_v54  ;;  %v46126_v54 = vand.u32 4294901760, %v41551_v13  ;;  %v46132_v7 = vand.u32 4294901760, %v41644_v14  ;;  %v46135_v60 = vand.u32 4294901760, %v41655_v44 }
  0xa2   : > { %46124 = vst [vmem:[#allocation54_spill] sm:$0xff] %v41949_v0  ;;  %33722 = vmatmul.mubr.f32.gmra.mrb[2].mxu0 %v1276_v6  ;;  %46129 = vst [vmem:[#allocation55_spill] sm:$0xff] %v41962_v45  ;;  %v41968_v35 = vpack.c.bf16 %v46131_v51, %v46130_v47  ;;  %33950 = vmatmul.mubr.f32.gmra.mrb[2].mxu1 %v1276_v6  ;;  %v46136_v25 = vand.u32 4294901760, %v41668_v26  ;;  %v46137_v20 = vand.u32 4294901760, %v41698_v15  ;;  %v46138_v47 = vand.u32 4294901760, %v41707_v4 }
  0xa3   : > { %46119 = vst [vmem:[#allocation53_spill] sm:$0xff] %v41937_v8  ;;  %v41956_v38 = vpack.c.bf16 %v46126_v54, %v46125_v10  ;;  %33756 = vmatprep.mubr.f32.mxu0 %v41501_v59  ;;  %v46133_v10 = vand.u32 4294901760, %v41650_v19  ;;  %33984 = vmatprep.mubr.f32.mxu1 %v41501_v59  ;;  %v46140_v6 = vand.u32 4294901760, %v41717_v5  ;;  %v46143_v53 = vand.u32 4294901760, %v41730_v33 }
  0xa4   : > { %v41981_v24 = vpack.c.bf16 %v46136_v25, %v46135_v60  ;;  %v41987_v51 = vpack.c.bf16 %v46138_v47, %v46137_v20  ;;  %v46144_v60 = vand.u32 4294901760, %v41735_v42  ;;  %v46146_v3 = vand.u32 4294901760, %v41750_v37  ;;  %38019 = vmatprep.subr.bf16.mxu1 %v41937_v8  ;;  %37829 = vmatpush3.bf16.msra.mxu0 %v41929_v61 }
  0xa5   : > { %v41975_v54 = vpack.c.bf16 %v46133_v10, %v46132_v7  ;;  %v46141_v7 = vand.u32 4294901760, %v41722_v12  ;;  %v46147_v20 = vand.u32 4294901760, %v41761_v46  ;;  %v46148_v29 = vand.u32 4294901760, %v41773_v58  ;;  %38021 = vmatpush3.bf16.msra.mxu1 %v41937_v8  ;;  %37831 = vmatprep.subr.bf16.mxu0 %v41933_v55 }
  0xa6   : > { %46139 = vst [vmem:[#allocation57_spill] sm:$0xff] %v41987_v51  ;;  %v42001_v25 = vpack.c.bf16 %v46144_v60, %v46143_v53  ;;  %v46152_v53 = vand.u32 4294901760, %v41812_v32  ;;  %v42032_v43 = vpack.c.bf16 %v41533_v11, %v41525_v27  ;;  %v42052_v27 = vpack.c.bf16 %v41619_v52, %v41613_v17 }
  0xa7   : > { %46134 = vst [vmem:[#allocation56_spill] sm:$0xff] %v41975_v54  ;;  %v41995_v10 = vpack.c.bf16 %v46141_v7, %v46140_v6  ;;  %v42007_v47 = vpack.c.bf16 %v46147_v20, %v46146_v3  ;;  %v46149_v6 = vand.u32 4294901760, %v41801_v34  ;;  %v46154_v3 = vand.u32 4294901760, %v41831_v48  ;;  %33757 = vmatmul.mubr.f32.vlgmr.msra.gmra.mrb[0].mxu0 %v41535_v40 }
  0xa8   : > { %46145 = vst [vmem:[#allocation59_spill] sm:$0xff] %v42001_v25  ;;  %v46153_v25 = vand.u32 4294901760, %v41823_v50  ;;  %46156 = vst [vmem:[#allocation62_spill] sm:$0xff] %v42032_v43  ;;  %38023 = vmatprep.subr.bf16.mxu1 %v42032_v43  ;;  %37833 = vmatpush3.bf16.msra.mxu0 %v41933_v55  ;;  %v42066_v52 = vpack.c.bf16 %v41650_v19, %v41644_v14  ;;  %v42077_v11 = vpack.c.bf16 %v41668_v26, %v41655_v44  ;;  %v46167_v19 = vld [vmem:[#allocation21_spill] sm:$0xff]  ;;  %v46168_v44 = vld [vmem:[#allocation22_spill] sm:$0xff]  ;;  %vm22425_vm5 = vcmask 31744  }
  0xa9   : > { %46142 = vst [vmem:[#allocation58_spill] sm:$0xff] %v41995_v10  ;;  %v42015_v7 = vpack.c.bf16 %v46149_v6, %v46148_v29  ;;  %v46151_v10 = vand.u32 4294901760, %v41806_v41  ;;  %v46157_v29 = vand.u32 4294901760, %v41850_v36  ;;  %v46158_v6 = vand.u32 4294901760, %v41861_v1  ;;  %46160 = vst [vmem:[#allocation64_spill] sm:$0xff] %v42052_v27  ;;  %33985 = vmatmul.mubr.f32.vlgmr.msra.gmra.mrb[0].mxu1 %v41535_v40  ;;  %33759 = vmatprep.mubr.f32.mxu0 %v41833_v22  ;;  %v46169_v26 = vld [vmem:[#allocation45_spill] sm:$0xff] }
  0xaa   : > { %v42027_v20 = vpack.c.bf16 %v46154_v3, %v46153_v25  ;;  %v42047_v25 = vpack.c.bf16 %v41551_v13, %v41540_v9  ;;  %38025 = vmatpush3.bf16.msra.mxu1 %v42032_v43  ;;  %46161 = vst [vmem:[#allocation65_spill] sm:$0xff] %v42066_v52  ;;  %33987 = vmatprep.mubr.f32.mxu1 %v41833_v22  ;;  %vm22429_vm6 = vcmask 1043456   ;;  %vm25154_vm7 = vcmask 125952  }
  0xab   : > { %46150 = vst [vmem:[#allocation60_spill] sm:$0xff] %v42015_v7  ;;  %v42021_v60 = vpack.c.bf16 %v46152_v53, %v46151_v10  ;;  %v42038_v7 = vpack.c.bf16 %v46158_v6, %v46157_v29  ;;  %v42040_v10 = vpack.c.bf16 %v2160_v56, %v2153_v31  ;;  %v42061_v31 = vpack.c.bf16 %v41634_v21, %v41624_v63  ;;  %v46184_v56 = vld [vmem:[#allocation47_spill] sm:$0xff]  ;;  %v1101_v29 = vld [vmem:[%s42288_s18] sm:$0xff] }
  0xac   : > { %46155 = vst [vmem:[#allocation61_spill] sm:$0xff] %v42027_v20  ;;  %37835 = vmatprep.subr.bf16.mxu0 %v42047_v25  ;;  %38027 = vmatprep.subr.bf16.mxu1 %v42052_v27  ;;  %v42082_v9 = vpack.c.bf16 %v41707_v4, %v41698_v15  ;;  %v42091_v13 = vpack.c.bf16 %v41722_v12, %v41717_v5  ;;  %v46170_v4 = vld [vmem:[#allocation23_spill] sm:$0xff]  ;;  %v46173_v12 = vld [vmem:[#allocation25_spill] sm:$0xff]  ;;  %v42300_v6 = vand.u32 4294901760, %v1101_v29  ;;  %vm27894_vm8 = vcmask 15360  }
  0xad   : > { %46159 = vst [vmem:[#allocation63_spill] sm:$0xff] %v42040_v10  ;;  %33760 = vmatmul.mubr.f32.gmra.mrb[2].mxu0 %v41902_v28  ;;  %33988 = vmatmul.mubr.f32.gmra.mrb[2].mxu1 %v41902_v28  ;;  %v42096_v17 = vpack.c.bf16 %v41735_v42, %v41730_v33  ;;  %v42108_v5 = vpack.c.bf16 %v41801_v34, %v41773_v58  ;;  %v46172_v15 = vld [vmem:[#allocation31_spill] sm:$0xff]  ;;  %v46174_v33 = vld [vmem:[#allocation26_spill] sm:$0xff]  ;;  %v46179_v34 = vld [vmem:[#allocation32_spill] sm:$0xff]  ;;  %vm27898_vm9 = vcmask 1041408   ;;  %vm30597_vm10 = vcmask 58368  }
  0xae   : > { %37837 = vmatpush3.bf16.msra.mxu0 %v42047_v25  ;;  %38029 = vmatpush3.bf16.msra.mxu1 %v42052_v27  ;;  %46162 = vst [vmem:[#allocation66_spill] sm:$0xff] %v42082_v9  ;;  %v42115_v63 = vpack.c.bf16 %v41812_v32, %v41806_v41  ;;  %v42120_v21 = vpack.c.bf16 %v41831_v48, %v41823_v50  ;;  %v46175_v42 = vld [vmem:[#allocation27_spill] sm:$0xff]  ;;  %v46178_v58 = vld [vmem:[#allocation30_spill] sm:$0xff]  ;;  %v46182_v48 = vld [vmem:[#allocation36_spill] sm:$0xff]  ;;  %vm31521_vm11 = vcmask 24576  }
  0xaf   : > { %37839 = vmatprep.subr.bf16.mxu0 %v42061_v31  ;;  %38031 = vmatprep.subr.bf16.mxu1 %v42066_v52  ;;  %46163 = vst [vmem:[#allocation67_spill] sm:$0xff] %v42096_v17  ;;  %46164 = vst [vmem:[#allocation68_spill] sm:$0xff] %v42108_v5  ;;  %v42127_v14 = vpack.c.bf16 %v41861_v1, %v41850_v36  ;;  %v42132_v32 = vpack.c.bf16 %v41900_v57, %v41883_v16  ;;  %v46180_v41 = vld [vmem:[#allocation34_spill] sm:$0xff]  ;;  %v46181_v50 = vld [vmem:[#allocation35_spill] sm:$0xff] }
  0xb0   : > { %33794 = vmatprep.mubr.f32.mxu0 %v41515_v62  ;;  %34022 = vmatprep.mubr.f32.mxu1 %v41515_v62  ;;  %v42103_v62 = vpack.c.bf16 %v41761_v46, %v41750_v37  ;;  %46165 = vst [vmem:[#allocation69_spill] sm:$0xff] %v42120_v21  ;;  %v46176_v46 = vld [vmem:[#allocation28_spill] sm:$0xff]  ;;  %v46177_v37 = vld [vmem:[#allocation29_spill] sm:$0xff]  ;;  %v46185_v36 = vld [vmem:[#allocation58_spill] sm:$0xff] }
  0xb1   : > { %46166 = vst [vmem:[#allocation70_spill] sm:$0xff] %v42132_v32  ;;  %v46183_v1 = vld [vmem:[#allocation33_spill] sm:$0xff]  ;;  %v46186_v16 = vld [vmem:[#allocation59_spill] sm:$0xff] }
  0xb2   : > { %37841 = vmatpush3.bf16.msra.mxu0 %v42061_v31  ;;  %38033 = vmatpush3.bf16.msra.mxu1 %v42066_v52  ;;  %v46187_v57 = vld [vmem:[#allocation60_spill] sm:$0xff] }
  0xb3   : > { %37843 = vmatprep.subr.bf16.mxu0 %v42077_v11  ;;  %38035 = vmatprep.subr.bf16.mxu1 %v42082_v9 }
  0xb6   : > { %37845 = vmatpush3.bf16.msra.mxu0 %v42077_v11  ;;  %38037 = vmatpush3.bf16.msra.mxu1 %v42082_v9 }
  0xb7   : > { %37847 = vmatprep.subr.bf16.mxu0 %v42091_v13  ;;  %38039 = vmatprep.subr.bf16.mxu1 %v42096_v17 }
  0xba   : > { %37849 = vmatpush3.bf16.msra.mxu0 %v42091_v13  ;;  %38041 = vmatpush3.bf16.msra.mxu1 %v42096_v17 }
  0xbb   : > { %37851 = vmatprep.subr.bf16.mxu0 %v42103_v62  ;;  %38043 = vmatprep.subr.bf16.mxu1 %v42108_v5 }
  0xbe   : > { %37853 = vmatpush3.bf16.msra.mxu0 %v42103_v62  ;;  %38045 = vmatpush3.bf16.msra.mxu1 %v42108_v5 }
  0xbf   : > { %37855 = vmatprep.subr.bf16.mxu0 %v42115_v63  ;;  %38047 = vmatprep.subr.bf16.mxu1 %v42120_v21 }
  0xc2   : > { %37857 = vmatpush3.bf16.msra.mxu0 %v42115_v63  ;;  %38049 = vmatpush3.bf16.msra.mxu1 %v42120_v21 }
  0xc3   : > { %37859 = vmatprep.subr.bf16.mxu0 %v42127_v14  ;;  %38051 = vmatprep.subr.bf16.mxu1 %v42132_v32 }
  0xc6   : > { %37861 = vmatpush3.bf16.msra.mxu0 %v42127_v14  ;;  %38053 = vmatpush3.bf16.msra.mxu1 %v42132_v32 }
  0xc7   : > { %37863 = vmatprep.subr.bf16.mxu0 %v41326_v23  ;;  %38055 = vmatprep.subr.bf16.mxu1 %v41344_v30 }
  0xc9   : > { %33795 = vmatmul.mubr.f32.vlgmr.msra.gmra.mrb[0].mxu0 %v41558_v18  ;;  %34023 = vmatmul.mubr.f32.vlgmr.msra.gmra.mrb[0].mxu1 %v41558_v18  ;;  %v46171_v18 = vld [vmem:[#allocation24_spill] sm:$0xff] }
  0xca   : > { %37865 = vmatpush3.bf16.msra.mxu0 %v41326_v23  ;;  %38057 = vmatpush3.bf16.msra.mxu1 %v41344_v30 }
  0xcb   : > { %37867 = vmatprep.subr.bf16.mxu0 %v46167_v19  ;;  %38059 = vmatprep.subr.bf16.mxu1 %v46168_v44 }
  0xcc   : > { %33797 = vmatprep.mubr.f32.mxu0 %v46169_v26  ;;  %34025 = vmatprep.mubr.f32.mxu1 %v46169_v26 }
  0xcd   : > { %33798 = vmatmul.mubr.f32.gmra.mrb[2].mxu0 %v41912_v39  ;;  %34026 = vmatmul.mubr.f32.gmra.mrb[2].mxu1 %v41912_v39  ;;  %v1102_v39 = vld [vmem:[%s42288_s18 + $0x8] sm:$0xff] }
  0xce   : > { %37869 = vmatpush3.bf16.msra.mxu0 %v46167_v19  ;;  %38061 = vmatpush3.bf16.msra.mxu1 %v46168_v44  ;;  %v42294_v53 = vand.u32 4294901760, %v1102_v39 }
  0xcf   : > { %37871 = vmatprep.subr.bf16.mxu0 %v46170_v4  ;;  %38063 = vmatprep.subr.bf16.mxu1 %v46171_v18 }
  0xd0   : > { %33832 = vmatprep.mubr.f32.mxu0 %v46172_v15  ;;  %34060 = vmatprep.mubr.f32.mxu1 %v46172_v15  ;;  %v42305_v15 = vsub.f32 %v1101_v29, %v42300_v6 }
  0xd2   : > { %37873 = vmatpush3.bf16.msra.mxu0 %v46170_v4  ;;  %38065 = vmatpush3.bf16.msra.mxu1 %v46171_v18  ;;  %46189 = vst [vmem:[#allocation21_spill] sm:$0xff] %v42305_v15 }
  0xd3   : > { %37875 = vmatprep.subr.bf16.mxu0 %v46173_v12  ;;  %38067 = vmatprep.subr.bf16.mxu1 %v46174_v33 }
  0xd6   : > { %37877 = vmatpush3.bf16.msra.mxu0 %v46173_v12  ;;  %38069 = vmatpush3.bf16.msra.mxu1 %v46174_v33 }
  0xd7   : > { %37879 = vmatprep.subr.bf16.mxu0 %v46175_v42  ;;  %38071 = vmatprep.subr.bf16.mxu1 %v46176_v46 }
  0xda   : > { %37881 = vmatpush3.bf16.msra.mxu0 %v46175_v42  ;;  %38073 = vmatpush3.bf16.msra.mxu1 %v46176_v46 }
  0xdb   : > { %37883 = vmatprep.subr.bf16.mxu0 %v46177_v37  ;;  %38075 = vmatprep.subr.bf16.mxu1 %v46178_v58 }
  0xde   : > { %37885 = vmatpush3.bf16.msra.mxu0 %v46177_v37  ;;  %38077 = vmatpush3.bf16.msra.mxu1 %v46178_v58 }
  0xdf   : > { %37887 = vmatprep.subr.bf16.mxu0 %v46179_v34  ;;  %38079 = vmatprep.subr.bf16.mxu1 %v46180_v41 }
  0xe2   : > { %37889 = vmatpush3.bf16.msra.mxu0 %v46179_v34  ;;  %38081 = vmatpush3.bf16.msra.mxu1 %v46180_v41 }
  0xe3   : > { %37891 = vmatprep.subr.bf16.mxu0 %v46181_v50  ;;  %38083 = vmatprep.subr.bf16.mxu1 %v46182_v48 }
  0xe6   : > { %37893 = vmatpush3.bf16.msra.mxu0 %v46181_v50  ;;  %38085 = vmatpush3.bf16.msra.mxu1 %v46182_v48 }
  0xe7   : > { %37895 = vmatprep.subr.bf16.mxu0 %v41943_v49  ;;  %38087 = vmatprep.subr.bf16.mxu1 %v41949_v0 }
  0xe9   : > { %33833 = vmatmul.mubr.f32.vlgmr.msra.gmra.mrb[0].mxu0 %v46183_v1  ;;  %34061 = vmatmul.mubr.f32.vlgmr.msra.gmra.mrb[0].mxu1 %v46183_v1 }
  0xea   : > { %37897 = vmatpush3.bf16.msra.mxu0 %v41943_v49  ;;  %38089 = vmatpush3.bf16.msra.mxu1 %v41949_v0 }
  0xeb   : > { %37899 = vmatprep.subr.bf16.mxu0 %v41956_v38  ;;  %38091 = vmatprep.subr.bf16.mxu1 %v41962_v45 }
  0xec   : > { %33835 = vmatprep.mubr.f32.mxu0 %v46184_v56  ;;  %34063 = vmatprep.mubr.f32.mxu1 %v46184_v56  ;;  %v42310_v56 = vsub.f32 %v1102_v39, %v42294_v53 }
  0xed   : > { %33836 = vmatmul.mubr.f32.gmra.mrb[2].mxu0 %v41917_v2  ;;  %34064 = vmatmul.mubr.f32.gmra.mrb[2].mxu1 %v41917_v2 }
  0xee   : > { %37901 = vmatpush3.bf16.msra.mxu0 %v41956_v38  ;;  %38093 = vmatpush3.bf16.msra.mxu1 %v41962_v45  ;;  %46191 = vst [vmem:[#allocation23_spill] sm:$0xff] %v42310_v56 }
  0xef   : > { %37903 = vmatprep.subr.bf16.mxu0 %v41968_v35  ;;  %38095 = vmatprep.subr.bf16.mxu1 %v41975_v54 }
  0xf0   : > { %33870 = vmatprep.mubr.f32.mxu0 %v41501_v59  ;;  %34098 = vmatprep.mubr.f32.mxu1 %v41501_v59 }
  0xf2   : > { %37905 = vmatpush3.bf16.msra.mxu0 %v41968_v35  ;;  %38097 = vmatpush3.bf16.msra.mxu1 %v41975_v54  ;;  %v1104_v54 = vld [vmem:[%s42288_s18 + $0x18] sm:$0xff] }
  0xf3   : > { %37907 = vmatprep.subr.bf16.mxu0 %v41981_v24  ;;  %38099 = vmatprep.subr.bf16.mxu1 %v41987_v51  ;;  %v42343_v45 = vand.u32 4294901760, %v1104_v54 }
  0xf6   : > { %37909 = vmatpush3.bf16.msra.mxu0 %v41981_v24  ;;  %38101 = vmatpush3.bf16.msra.mxu1 %v41987_v51  ;;  %v1103_v51 = vld [vmem:[%s42288_s18 + $0x10] sm:$0xff] }
  0xf7   : > { %37911 = vmatprep.subr.bf16.mxu0 %v46185_v36  ;;  %38103 = vmatprep.subr.bf16.mxu1 %v46186_v16 }
  0xfa   : > { %37913 = vmatpush3.bf16.msra.mxu0 %v46185_v36  ;;  %38105 = vmatpush3.bf16.msra.mxu1 %v46186_v16  ;;  %v46198_v16 = vld [vmem:[#allocation43_spill] sm:$0xff] }
  0xfb   : > { %37915 = vmatprep.subr.bf16.mxu0 %v42007_v47  ;;  %38107 = vmatprep.subr.bf16.mxu1 %v46187_v57 }
  0xfe   : > { %37917 = vmatpush3.bf16.msra.mxu0 %v42007_v47  ;;  %38109 = vmatpush3.bf16.msra.mxu1 %v46187_v57  ;;  %v46197_v57 = vld [vmem:[#allocation41_spill] sm:$0xff] }
  0xff   : > { %37919 = vmatprep.subr.bf16.mxu0 %v42021_v60  ;;  %38111 = vmatprep.subr.bf16.mxu1 %v42027_v20 }
 0x102   : > { %37921 = vmatpush3.bf16.msra.mxu0 %v42021_v60  ;;  %38113 = vmatpush3.bf16.msra.mxu1 %v42027_v20  ;;  %v46196_v20 = vld [vmem:[#allocation39_spill] sm:$0xff] }
 0x103   : > { %37923 = vmatprep.subr.bf16.mxu0 %v42038_v7  ;;  %38115 = vmatprep.subr.bf16.mxu1 %v42040_v10 }
 0x106   : > { %37925 = vmatpush3.bf16.msra.mxu0 %v42038_v7  ;;  %38117 = vmatpush3.bf16.msra.mxu1 %v42040_v10 }
 0x107   : > { %37927 = vmatprep.subr.bf16.mxu0 %v41326_v23  ;;  %38119 = vmatprep.subr.bf16.mxu1 %v41344_v30 }
 0x109   : > { %33871 = vmatmul.mubr.f32.vlgmr.msra.gmra.mrb[0].mxu0 %v41535_v40  ;;  %34099 = vmatmul.mubr.f32.vlgmr.msra.gmra.mrb[0].mxu1 %v41535_v40 }
 0x10a   : > { %37929 = vmatpush3.bf16.msra.mxu0 %v41326_v23  ;;  %38121 = vmatpush3.bf16.msra.mxu1 %v41344_v30 }
 0x10b   : > { %37931 = vmatprep.subr.bf16.mxu0 %v46167_v19  ;;  %38123 = vmatprep.subr.bf16.mxu1 %v46168_v44 }
 0x10c   : > { %33873 = vmatprep.mubr.f32.mxu0 %v41833_v22  ;;  %34101 = vmatprep.mubr.f32.mxu1 %v41833_v22 }
 0x10d   : > { %33874 = vmatmul.mubr.f32.gmra.mrb[2].mxu0 %v41902_v28  ;;  %34102 = vmatmul.mubr.f32.gmra.mrb[2].mxu1 %v41902_v28 }
 0x10e   : > { %37933 = vmatpush3.bf16.msra.mxu0 %v46167_v19  ;;  %38125 = vmatpush3.bf16.msra.mxu1 %v46168_v44 }
 0x10f   : > { %37935 = vmatprep.subr.bf16.mxu0 %v46170_v4  ;;  %38127 = vmatprep.subr.bf16.mxu1 %v46171_v18 }
 0x110   : > { %33908 = vmatprep.mubr.f32.mxu0 %v41501_v59  ;;  %34136 = vmatprep.mubr.f32.mxu1 %v41501_v59  ;;  %v46188_v59 = vld [vmem:[#allocation37_spill] sm:$0xff] }
 0x112   : > { %37937 = vmatpush3.bf16.msra.mxu0 %v46170_v4  ;;  %38129 = vmatpush3.bf16.msra.mxu1 %v46171_v18 }
 0x113   : > { %37939 = vmatprep.subr.bf16.mxu0 %v46173_v12  ;;  %38131 = vmatprep.subr.bf16.mxu1 %v46174_v33 }
 0x116   : > { %37941 = vmatpush3.bf16.msra.mxu0 %v46173_v12  ;;  %38133 = vmatpush3.bf16.msra.mxu1 %v46174_v33 }
 0x117   : > { %37943 = vmatprep.subr.bf16.mxu0 %v46175_v42  ;;  %38135 = vmatprep.subr.bf16.mxu1 %v46176_v46 }
 0x11a   : > { %37945 = vmatpush3.bf16.msra.mxu0 %v46175_v42  ;;  %38137 = vmatpush3.bf16.msra.mxu1 %v46176_v46 }
 0x11b   : > { %37947 = vmatprep.subr.bf16.mxu0 %v46177_v37  ;;  %38139 = vmatprep.subr.bf16.mxu1 %v46178_v58 }
 0x11e   : > { %37949 = vmatpush3.bf16.msra.mxu0 %v46177_v37  ;;  %38141 = vmatpush3.bf16.msra.mxu1 %v46178_v58 }
 0x11f   : > { %37951 = vmatprep.subr.bf16.mxu0 %v46179_v34  ;;  %38143 = vmatprep.subr.bf16.mxu1 %v46180_v41 }
 0x122   : > { %37953 = vmatpush3.bf16.msra.mxu0 %v46179_v34  ;;  %38145 = vmatpush3.bf16.msra.mxu1 %v46180_v41 }
 0x123   : > { %37955 = vmatprep.subr.bf16.mxu0 %v46181_v50  ;;  %38147 = vmatprep.subr.bf16.mxu1 %v46182_v48 }
 0x126   : > { %37957 = vmatpush3.bf16.msra.mxu0 %v46181_v50  ;;  %38149 = vmatpush3.bf16.msra.mxu1 %v46182_v48 }
 0x127   : > { %38247 = vmatprep.subr.bf16.mxu1 %v41326_v23 }
 0x129   : > { %33909 = vmatmul.mubr.f32.vlgmr.msra.gmra.mrb[0].mxu0 %v41535_v40  ;;  %34137 = vmatmul.mubr.f32.vlgmr.msra.gmra.mrb[0].mxu1 %v41535_v40  ;;  %v1109_v40 = vld [vmem:[%s41101_s17] sm:$0xff] }
 0x12a   : > { %33911 = vmatprep.mubr.f32.mxu0 %v41833_v22  ;;  %34139 = vmatprep.mubr.f32.mxu1 %v41833_v22  ;;  %v2703_v22 = vsel %vm2701_vm0, %v1109_v40, 0  ;;  %v42313_v40 = vand.u32 4294901760, %v42305_v15 }
 0x12b   : > { %38249 = vmatpush3.bf16.msra.mxu1 %v41326_v23 }
 0x12c   : > { %38251 = vmatprep.subr.bf16.mxu1 %v46167_v19  ;;  %46192 = vst [vmem:[#allocation31_spill] sm:$0xff] %v42313_v40  ;;  %v4038_v10 = vsub.f32 %v42305_v15, %v42313_v40 }
 0x12d   : > { %33912 = vmatmul.mubr.f32.gmra.mrb[2].mxu0 %v41902_v28  ;;  %34140 = vmatmul.mubr.f32.gmra.mrb[2].mxu1 %v41902_v28  ;;  %v42285_v28 = vand.u32 4294901760, %v2703_v22 }
 0x12f   : > { %38253 = vmatpush3.bf16.msra.mxu1 %v46167_v19  ;;  %v42292_v2 = vsub.f32 %v2703_v22, %v42285_v28  ;;  %v42317_v22 = vand.u32 4294901760, %v42310_v56 }
 0x130   : > { %38255 = vmatprep.subr.bf16.mxu1 %v46170_v4 }
 0x131   : > { %v42297_v3 = vand.u32 4294901760, %v42292_v2  ;;  %46193 = vst [vmem:[#allocation25_spill] sm:$0xff] %v42317_v22  ;;  %v4048_v29 = vsub.f32 %v42310_v56, %v42317_v22 }
 0x133   : > { %38257 = vmatpush3.bf16.msra.mxu1 %v46170_v4  ;;  %v2786_v26 = vsub.f32 %v42292_v2, %v42297_v3  ;;  %v42325_v39 = vand.u32 4294901760, %v4048_v29  ;;  %v46200_v29 = vld [vmem:[#allocation49_spill] sm:$0xff] }
 0x134   : > { %38259 = vmatprep.subr.bf16.mxu1 %v46173_v12 }
 0x135   : > { %v42307_v1 = vand.u32 4294901760, %v2786_v26  ;;  %v42323_v26 = vand.u32 4294901760, %v4038_v10  ;;  %46195 = vst [vmem:[#allocation29_spill] sm:$0xff] %v42325_v39  ;;  %v46199_v10 = vld [vmem:[#allocation46_spill] sm:$0xff] }
 0x137   : > { %38261 = vmatpush3.bf16.msra.mxu1 %v46173_v12  ;;  %46190 = vst [vmem:[#allocation45_spill] sm:$0xff] %v42307_v1  ;;  %34150 = vmatprep.mubr.f32.mxu0 %v42307_v1  ;;  %46194 = vst [vmem:[#allocation27_spill] sm:$0xff] %v42323_v26 }
 0x138   : > { %38263 = vmatprep.subr.bf16.mxu1 %v46175_v42  ;;  %34342 = vmatprep.mubr.f32.mxu1 %v42323_v26 }
 0x13b   : > { %38265 = vmatpush3.bf16.msra.mxu1 %v46175_v42 }
 0x13c   : > { %38267 = vmatprep.subr.bf16.mxu1 %v46177_v37 }
 0x13f   : > { %38269 = vmatpush3.bf16.msra.mxu1 %v46177_v37 }
 0x140   : > { %38271 = vmatprep.subr.bf16.mxu1 %v46179_v34 }
 0x143   : > { %38273 = vmatpush3.bf16.msra.mxu1 %v46179_v34 }
 0x144   : > { %38275 = vmatprep.subr.bf16.mxu1 %v46181_v50 }
 0x147   : > { %38277 = vmatpush3.bf16.msra.mxu1 %v46181_v50 }
 0x148   : > { %38279 = vmatprep.subr.bf16.mxu1 %v46188_v59 }
 0x14a   : > { %34343 = vmatmul.mubr.f32.vlgmr.msra.gmra.mrb[4].mxu1 %v42325_v39 }
 0x14b   : > { %38281 = vmatpush3.bf16.msra.mxu1 %v46188_v59  ;;  %v42340_v59 = vand.u32 4294901760, %v1103_v51 }
 0x14c   : > { %38283 = vmatprep.subr.bf16.mxu1 %v46196_v20 }
 0x14f   : > { %38285 = vmatpush3.bf16.msra.mxu1 %v46196_v20  ;;  %v42347_v20 = vsub.f32 %v1103_v51, %v42340_v59 }
 0x150   : > { %38287 = vmatprep.subr.bf16.mxu1 %v46197_v57 }
 0x151   : > { %46201 = vst [vmem:[#allocation32_spill] sm:$0xff] %v42347_v20 }
 0x153   : > { %38289 = vmatpush3.bf16.msra.mxu1 %v46197_v57  ;;  %v46202_v57 = vld [vmem:[#allocation51_spill] sm:$0xff] }
 0x154   : > { %38291 = vmatprep.subr.bf16.mxu1 %v46198_v16 }
 0x157   : > { %38293 = vmatpush3.bf16.msra.mxu1 %v46198_v16  ;;  %v42351_v16 = vsub.f32 %v1104_v54, %v42343_v45 }
 0x158   : > { %38295 = vmatprep.subr.bf16.mxu1 %v46199_v10 }
 0x159   : > { %46203 = vst [vmem:[#allocation35_spill] sm:$0xff] %v42351_v16  ;;  %v42357_v0 = vand.u32 4294901760, %v42351_v16 }
 0x15b   : > { %38297 = vmatpush3.bf16.msra.mxu1 %v46199_v10  ;;  %v42354_v10 = vand.u32 4294901760, %v42347_v20  ;;  %46205 = vst [vmem:[#allocation47_spill] sm:$0xff] %v42357_v0  ;;  %v4068_v51 = vsub.f32 %v42351_v16, %v42357_v0 }
 0x15c   : > { %38299 = vmatprep.subr.bf16.mxu1 %v46200_v29 }
 0x15d   : > { %46204 = vst [vmem:[#allocation33_spill] sm:$0xff] %v42354_v10  ;;  %v4058_v32 = vsub.f32 %v42347_v20, %v42354_v10  ;;  %v42367_v54 = vand.u32 4294901760, %v4068_v51 }
 0x15f   : > { %38301 = vmatpush3.bf16.msra.mxu1 %v46200_v29  ;;  %v42365_v29 = vand.u32 4294901760, %v4058_v32  ;;  %46207 = vst [vmem:[#allocation37_spill] sm:$0xff] %v42367_v54 }
 0x160   : > { %38303 = vmatprep.subr.bf16.mxu1 %v46202_v57 }
 0x161   : > { %46206 = vst [vmem:[#allocation58_spill] sm:$0xff] %v42365_v29  ;;  %34345 = vmatprep.mubr.f32.mxu1 %v42365_v29 }
 0x162   : > { %34346 = vmatmul.mubr.f32.gmra.mrb[6].mxu1 %v42367_v54 }
 0x163   : > { %38305 = vmatpush3.bf16.msra.mxu1 %v46202_v57  ;;  %34380 = vmatprep.mubr.f32.mxu1 %v42300_v6 }
 0x164   : > { %38307 = vmatprep.subr.bf16.mxu1 %v41929_v61 }
 0x167   : > { %38309 = vmatpush3.bf16.msra.mxu1 %v41929_v61  ;;  %v1111_v61 = vld [vmem:[%s41101_s17 + $0x10] sm:$0xff] }
 0x168   : > { %38311 = vmatprep.subr.bf16.mxu1 %v41933_v55 }
 0x16a   : > { %34381 = vmatmul.mubr.f32.vlgmr.msra.gmra.mrb[4].mxu1 %v42294_v53 }
 0x16b   : > { %38313 = vmatpush3.bf16.msra.mxu1 %v41933_v55  ;;  %34383 = vmatprep.mubr.f32.mxu1 %v42340_v59  ;;  %v1110_v55 = vld [vmem:[%s41101_s17 + $0x8] sm:$0xff] }
 0x16c   : > { %38315 = vmatprep.subr.bf16.mxu1 %v42047_v25 }
 0x16e   : > { %34384 = vmatmul.mubr.f32.gmra.mrb[6].mxu1 %v42343_v45 }
 0x16f   : > { %38317 = vmatpush3.bf16.msra.mxu1 %v42047_v25  ;;  %34418 = vmatprep.mubr.f32.mxu1 %v42305_v15  ;;  %v1112_v25 = vld [vmem:[%s41101_s17 + $0x18] sm:$0xff] }
 0x170   : > { %38319 = vmatprep.subr.bf16.mxu1 %v42061_v31 }
 0x173   : > { %38321 = vmatpush3.bf16.msra.mxu1 %v42061_v31  ;;  %v2706_v31 = vsel %vm2701_vm0, %v1110_v55, 0 }
 0x174   : > { %38323 = vmatprep.subr.bf16.mxu1 %v42077_v11 }
 0x177   : > { %38325 = vmatpush3.bf16.msra.mxu1 %v42077_v11  ;;  %v2709_v11 = vsel %vm2701_vm0, %v1111_v61, 0 }
 0x178   : > { %38327 = vmatprep.subr.bf16.mxu1 %v42091_v13 }
 0x17b   : > { %38329 = vmatpush3.bf16.msra.mxu1 %v42091_v13  ;;  %v2712_v13 = vsel %vm2701_vm0, %v1112_v25, 0 }
 0x17c   : > { %38331 = vmatprep.subr.bf16.mxu1 %v42103_v62 }
 0x17f   : > { %38333 = vmatpush3.bf16.msra.mxu1 %v42103_v62  ;;  %v42418_v62 = vand.u32 4294901760, %v2706_v31 }
 0x180   : > { %38335 = vmatprep.subr.bf16.mxu1 %v42115_v63 }
 0x181   : > { %v42427_v32 = vsub.f32 %v2706_v31, %v42418_v62 }
 0x183   : > { %38337 = vmatpush3.bf16.msra.mxu1 %v42115_v63  ;;  %v42420_v63 = vand.u32 4294901760, %v2709_v11  ;;  %v42440_v55 = vand.u32 4294901760, %v42427_v32 }
 0x184   : > { %38339 = vmatprep.subr.bf16.mxu1 %v42127_v14 }
 0x185   : > { %v42430_v57 = vsub.f32 %v2709_v11, %v42420_v63  ;;  %46208 = vst [vmem:[#allocation39_spill] sm:$0xff] %v42440_v55 }
 0x187   : > { %38341 = vmatpush3.bf16.msra.mxu1 %v42127_v14  ;;  %v42422_v14 = vand.u32 4294901760, %v2712_v13  ;;  %v42443_v61 = vand.u32 4294901760, %v42430_v57 }
 0x188   : > { %38343 = vmatprep.subr.bf16.mxu1 %v41326_v23 }
 0x189   : > { %v42434_v51 = vsub.f32 %v2712_v13, %v42422_v14  ;;  %46209 = vst [vmem:[#allocation41_spill] sm:$0xff] %v42443_v61  ;;  %v2806_v31 = vsub.f32 %v42430_v57, %v42443_v61 }
 0x18a   : > { %34419 = vmatmul.mubr.f32.vlgmr.msra.gmra.mrb[4].mxu1 %v42310_v56 }
 0x18b   : > { %38345 = vmatpush3.bf16.msra.mxu1 %v41326_v23  ;;  %34421 = vmatprep.mubr.f32.mxu1 %v42347_v20  ;;  %v42447_v25 = vand.u32 4294901760, %v42434_v51  ;;  %v42464_v5 = vand.u32 4294901760, %v2806_v31 }
 0x18c   : > { %38347 = vmatprep.subr.bf16.mxu1 %v46167_v19 }
 0x18d   : > { %46210 = vst [vmem:[#allocation43_spill] sm:$0xff] %v42447_v25  ;;  %v2816_v13 = vsub.f32 %v42434_v51, %v42447_v25 }
 0x18e   : > { %34422 = vmatmul.mubr.f32.gmra.mrb[6].mxu1 %v42351_v16 }
 0x18f   : > { %38349 = vmatpush3.bf16.msra.mxu1 %v46167_v19  ;;  %34456 = vmatprep.mubr.f32.mxu1 %v42313_v40  ;;  %v42468_v15 = vand.u32 4294901760, %v2816_v13 }
 0x190   : > { %38351 = vmatprep.subr.bf16.mxu1 %v46170_v4 }
 0x193   : > { %38353 = vmatpush3.bf16.msra.mxu1 %v46170_v4 }
 0x194   : > { %38355 = vmatprep.subr.bf16.mxu1 %v46173_v12 }
 0x197   : > { %38357 = vmatpush3.bf16.msra.mxu1 %v46173_v12 }
 0x198   : > { %38359 = vmatprep.subr.bf16.mxu1 %v46175_v42 }
 0x19b   : > { %38361 = vmatpush3.bf16.msra.mxu1 %v46175_v42 }
 0x19c   : > { %38363 = vmatprep.subr.bf16.mxu1 %v46177_v37 }
 0x19f   : > { %38365 = vmatpush3.bf16.msra.mxu1 %v46177_v37 }
 0x1a0   : > { %38367 = vmatprep.subr.bf16.mxu1 %v46179_v34 }
 0x1a3   : > { %38369 = vmatpush3.bf16.msra.mxu1 %v46179_v34 }
 0x1a4   : > { %38371 = vmatprep.subr.bf16.mxu1 %v46181_v50 }
 0x1a7   : > { %38373 = vmatpush3.bf16.msra.mxu1 %v46181_v50 }
 0x1a8   : > { %38375 = vmatprep.subr.bf16.mxu1 %v41943_v49 }
 0x1aa   : > { %34457 = vmatmul.mubr.f32.vlgmr.msra.gmra.mrb[4].mxu1 %v42317_v22 }
 0x1ab   : > { %38377 = vmatpush3.bf16.msra.mxu1 %v41943_v49  ;;  %34459 = vmatprep.mubr.f32.mxu1 %v42354_v10  ;;  %v2796_v49 = vsub.f32 %v42427_v32, %v42440_v55 }
 0x1ac   : > { %38379 = vmatprep.subr.bf16.mxu1 %v41956_v38 }
 0x1ad   : > { %v42462_v21 = vand.u32 4294901760, %v2796_v49 }
 0x1ae   : > { %34460 = vmatmul.mubr.f32.gmra.mrb[6].mxu1 %v42357_v0 }
 0x1af   : > { %38381 = vmatpush3.bf16.msra.mxu1 %v41956_v38  ;;  %34494 = vmatprep.mubr.f32.mxu1 %v42300_v6 }
 0x1b0   : > { %38383 = vmatprep.subr.bf16.mxu1 %v41968_v35 }
 0x1b3   : > { %38385 = vmatpush3.bf16.msra.mxu1 %v41968_v35 }
 0x1b4   : > { %38387 = vmatprep.subr.bf16.mxu1 %v41981_v24 }
 0x1b7   : > { %38389 = vmatpush3.bf16.msra.mxu1 %v41981_v24 }
 0x1b8   : > { %38391 = vmatprep.subr.bf16.mxu1 %v46185_v36 }
 0x1bb   : > { %38393 = vmatpush3.bf16.msra.mxu1 %v46185_v36 }
 0x1bc   : > { %38395 = vmatprep.subr.bf16.mxu1 %v42007_v47 }
 0x1bf   : > { %38397 = vmatpush3.bf16.msra.mxu1 %v42007_v47 }
 0x1c0   : > { %38399 = vmatprep.subr.bf16.mxu1 %v42021_v60 }
 0x1c3   : > { %38401 = vmatpush3.bf16.msra.mxu1 %v42021_v60  ;;  %v1106_v60 = vld [vmem:[%s41096_s13 + $0x8] sm:$0xff] }
 0x1c4   : > { %38403 = vmatprep.subr.bf16.mxu1 %v42038_v7 }
 0x1c7   : > { %38405 = vmatpush3.bf16.msra.mxu1 %v42038_v7 }
 0x1c8   : > { %38407 = vmatprep.subr.bf16.mxu1 %v41326_v23 }
 0x1ca   : > { %34495 = vmatmul.mubr.f32.vlgmr.msra.gmra.mrb[4].mxu1 %v42294_v53 }
 0x1cb   : > { %38409 = vmatpush3.bf16.msra.mxu1 %v41326_v23  ;;  %34497 = vmatprep.mubr.f32.mxu1 %v42340_v59  ;;  %v1105_v23 = vld [vmem:[%s41096_s13] sm:$0xff] }
 0x1cc   : > { %38411 = vmatprep.subr.bf16.mxu1 %v46167_v19  ;;  %v3329_v7 = vsel %vm2701_vm0, %v1105_v23, 0  ;;  %v46246_v23 = vld [vmem:[#allocation42_spill] sm:$0xff] }
 0x1ce   : > { %34498 = vmatmul.mubr.f32.gmra.mrb[6].mxu1 %v42343_v45 }
 0x1cf   : > { %38413 = vmatpush3.bf16.msra.mxu1 %v46167_v19  ;;  %34532 = vmatprep.mubr.f32.mxu1 %v42300_v6  ;;  %v42545_v19 = vand.u32 4294901760, %v3329_v7 }
 0x1d0   : > { %38415 = vmatprep.subr.bf16.mxu1 %v46170_v4 }
 0x1d1   : > { %46213 = vst [vmem:[#allocation51_spill] sm:$0xff] %v42545_v19 }
 0x1d3   : > { %38417 = vmatpush3.bf16.msra.mxu1 %v46170_v4 }
 0x1d4   : > { %38419 = vmatprep.subr.bf16.mxu1 %v46173_v12 }
 0x1d7   : > { %38421 = vmatpush3.bf16.msra.mxu1 %v46173_v12 }
 0x1d8   : > { %38423 = vmatprep.subr.bf16.mxu1 %v46175_v42 }
 0x1db   : > { %38425 = vmatpush3.bf16.msra.mxu1 %v46175_v42 }
 0x1dc   : > { %38427 = vmatprep.subr.bf16.mxu1 %v46177_v37 }
 0x1df   : > { %38429 = vmatpush3.bf16.msra.mxu1 %v46177_v37 }
 0x1e0   : > { %38431 = vmatprep.subr.bf16.mxu1 %v46179_v34 }
 0x1e3   : > { %38433 = vmatpush3.bf16.msra.mxu1 %v46179_v34 }
 0x1e4   : > { %38435 = vmatprep.subr.bf16.mxu1 %v46181_v50 }
 0x1e7   : > { %38437 = vmatpush3.bf16.msra.mxu1 %v46181_v50 }
 0x1ea   : > { %34533 = vmatmul.mubr.f32.vlgmr.msra.gmra.mrb[4].mxu1 %v42294_v53 }
 0x1eb   : > { %34535 = vmatprep.mubr.f32.mxu1 %v42340_v59 }
 0x1ee   : > { %34536 = vmatmul.mubr.f32.gmra.mrb[6].mxu1 %v42343_v45 }
 0x1fc   : > { %v33910_v11 = vpop.f32.mrb[0].mxu0  ;;  %v34138_v10 = vpop.f32.mrb[0].mxu1 }
 0x1fd   : > { %v3344_v0 = vand.u32 4294901760, %v33910_v11  ;;  %v1909_v22 = vpop.f32.mrb[1].mxu0  ;;  %v2718_v38 = vand.u32 4294901760, %v34138_v10  ;;  %v2679_v16 = vpop.f32.mrb[1].mxu1 }
 0x1fe   : > { %v3341_v40 = vand.u32 4294901760, %v1909_v22  ;;  %v2715_v56 = vand.u32 4294901760, %v2679_v16 }
 0x1ff   : > { %v42460_v20 = vsub.f32 %v33910_v11, %v3344_v0  ;;  %v2832_v17 = vsub.f32 %v34138_v10, %v2718_v38 }
 0x200   : > { %v42466_v9 = vpack.c.bf16 %v3344_v0, %v3341_v40  ;;  %v3451_v52 = vsub.f32 %v1909_v22, %v3341_v40  ;;  %v33913_v35 = vpop.f32.mrb[2].mxu0  ;;  %v42472_v43 = vpack.c.bf16 %v2718_v38, %v2715_v56  ;;  %v2825_v11 = vsub.f32 %v2679_v16, %v2715_v56  ;;  %v34141_v54 = vpop.f32.mrb[2].mxu1 }
 0x201   : > { %v3459_v27 = vand.u32 4294901760, %v42460_v20  ;;  %v3350_v8 = vand.u32 4294901760, %v33913_v35  ;;  %v1921_v49 = vpop.f32.mrb[3].mxu0  ;;  %v2833_v31 = vand.u32 4294901760, %v2832_v17  ;;  %v2724_v0 = vand.u32 4294901760, %v34141_v54  ;;  %v2691_v40 = vpop.f32.mrb[3].mxu1 }
 0x202   : > { %46211 = vst [vmem:[#allocation46_spill] sm:$0xff] %v42466_v9  ;;  %v3452_v10 = vand.u32 4294901760, %v3451_v52  ;;  %v3347_v29 = vand.u32 4294901760, %v1921_v49  ;;  %v2826_v13 = vand.u32 4294901760, %v2825_v11  ;;  %v2721_v24 = vand.u32 4294901760, %v2691_v40  ;;  %38151 = vmatprep.subr.bf16.mxu0 %v42472_v43 }
 0x203   : > { %v3460_v22 = vsub.f32 %v42460_v20, %v3459_v27  ;;  %v3472_v39 = vsub.f32 %v33913_v35, %v3350_v8  ;;  %v2834_v38 = vsub.f32 %v2832_v17, %v2833_v31  ;;  %v2846_v56 = vsub.f32 %v34141_v54, %v2724_v0  ;;  %38153 = vmatpush3.bf16.msra.mxu0 %v42472_v43 }
 0x204   : > { %v3453_v48 = vsub.f32 %v3451_v52, %v3452_v10  ;;  %v42477_v16 = vpack.c.bf16 %v3350_v8, %v3347_v29  ;;  %v2827_v41 = vsub.f32 %v2825_v11, %v2826_v13  ;;  %v3465_v46 = vsub.f32 %v1921_v49, %v3347_v29 }
 0x205   : > { %v3473_v58 = vand.u32 4294901760, %v3472_v39  ;;  %v42480_v33 = vpack.c.bf16 %v2724_v0, %v2721_v24  ;;  %v2847_v18 = vand.u32 4294901760, %v2846_v56  ;;  %v2839_v26 = vsub.f32 %v2691_v40, %v2721_v24 }
 0x206   : > { %46212 = vst [vmem:[#allocation49_spill] sm:$0xff] %v42477_v16  ;;  %v2835_v35 = vand.u32 4294901760, %v2834_v38  ;;  %v38166_v44 = vpack.c.bf16 %v2832_v17, %v2825_v11  ;;  %v3466_v1 = vand.u32 4294901760, %v3465_v46  ;;  %v2828_v8 = vand.u32 4294901760, %v2827_v41 }
 0x207   : > { %v3474_v30 = vsub.f32 %v3472_v39, %v3473_v58  ;;  %38155 = vmatprep.subr.bf16.mxu0 %v42480_v33  ;;  %v42485_v54 = vpack.c.bf16 %v2833_v31, %v2826_v13  ;;  %v2848_v16 = vsub.f32 %v2846_v56, %v2847_v18  ;;  %v2840_v9 = vand.u32 4294901760, %v2839_v26 }
 0x208   : > { %38157 = vmatpush3.bf16.msra.mxu0 %v42480_v33  ;;  %v38170_v29 = vpack.c.bf16 %v2846_v56, %v2839_v26  ;;  %v3454_v49 = vand.u32 4294901760, %v3453_v48  ;;  %v3467_v36 = vsub.f32 %v3465_v46, %v3466_v1  ;;  %v38158_v0 = vpack.c.bf16 %v2835_v35, %v2828_v8 }
 0x209   : > { %v3461_v40 = vand.u32 4294901760, %v3460_v22  ;;  %v3475_v24 = vand.u32 4294901760, %v3474_v30  ;;  %v2841_v17 = vsub.f32 %v2839_v26, %v2840_v9  ;;  %v2849_v11 = vand.u32 4294901760, %v2848_v16  ;;  %v46224_v34 = vld [vmem:[#allocation46_spill] sm:$0xff] }
 0x20a   : > { %v42489_v38 = vpack.c.bf16 %v2847_v18, %v2840_v9  ;;  %v42492_v41 = vpack.c.bf16 %v42460_v20, %v3451_v52  ;;  %38159 = vmatprep.subr.bf16.mxu0 %v38158_v0  ;;  %v3468_v48 = vand.u32 4294901760, %v3467_v36  ;;  %v42498_v13 = vpack.c.bf16 %v3472_v39, %v3465_v46  ;;  %v1108_v46 = vld [vmem:[%s41096_s13 + $0x18] sm:$0xff]  ;;  %v46230_v36 = vld [vmem:[#allocation45_spill] sm:$0xff] }
 0x20b   : > { %34151 = vmatmul.mubr.f32.vlgmr.msra.gmra.mrb[4].mxu0 %v42462_v21  ;;  %v42496_v31 = vpack.c.bf16 %v3461_v40, %v3454_v49  ;;  %v42500_v30 = vpack.c.bf16 %v3459_v27, %v3452_v10  ;;  %v2842_v47 = vand.u32 4294901760, %v2841_v17  ;;  %v42503_v9 = vpack.c.bf16 %v3473_v58, %v3466_v1  ;;  %v1107_v27 = vld [vmem:[%s41096_s13 + $0x10] sm:$0xff]  ;;  %34774 = vmatprep.mubr.f32.mxu1 %v46230_v36  ;;  %v46232_v40 = vld [vmem:[#allocation20_spill] sm:$0xff]  ;;  %v46234_v17 = vld [vmem:[#allocation27_spill] sm:$0xff] }
 0x20c   : > { %38161 = vmatpush3.bf16.msra.mxu0 %v38158_v0  ;;  %34153 = vmatprep.mubr.f32.mxu0 %v42464_v5  ;;  %v42505_v52 = vpack.c.bf16 %v3475_v24, %v3468_v48  ;;  %v3335_v4 = vsel %vm2701_vm0, %v1107_v27, 0  ;;  %v42559_v58 = vsub.f32 %v3329_v7, %v42545_v19  ;;  %v3338_v26 = vsel %vm2701_vm0, %v1108_v46, 0  ;;  %v46233_v24 = vld [vmem:[#allocation22_spill] sm:$0xff]  ;;  %v46247_v7 = vld [vmem:[#allocation44_spill] sm:$0xff] }
 0x20d   : > { %v38162_v18 = vpack.c.bf16 %v2849_v11, %v2842_v47  ;;  %v42561_v1 = vand.u32 4294901760, %v3335_v4  ;;  %v42571_v39 = vand.u32 4294901760, %v3338_v26  ;;  %v46235_v11 = vld [vmem:[#allocation24_spill] sm:$0xff]  ;;  %v46239_v48 = vld [vmem:[#allocation34_spill] sm:$0xff]  ;;  %v46242_v47 = vld [vmem:[#allocation29_spill] sm:$0xff] }
 0x20e   : > { %46215 = vst [vmem:[#allocation72_spill] sm:$0xff] %v42559_v58  ;;  %v42576_v20 = vand.u32 4294901760, %v42559_v58  ;;  %v46249_v27 = vld [vmem:[#allocation50_spill] sm:$0xff] }
 0x20f   : > { %34154 = vmatmul.mubr.f32.gmra.mrb[6].mxu0 %v42468_v15  ;;  %38163 = vmatprep.subr.bf16.mxu0 %v38162_v18  ;;  %46216 = vst [vmem:[#allocation73_spill] sm:$0xff] %v42561_v1  ;;  %46218 = vst [vmem:[#allocation75_spill] sm:$0xff] %v42571_v39  ;;  %v42579_v10 = vsub.f32 %v3335_v4, %v42561_v1  ;;  %v46251_v4 = vld [vmem:[#allocation53_spill] sm:$0xff]  ;;  %v46252_v46 = vld [vmem:[#allocation62_spill] sm:$0xff] }
 0x210   : > { %34164 = vmatprep.mubr.f32.mxu0 %v42285_v28  ;;  %38165 = vmatpush3.bf16.msra.mxu0 %v38162_v18  ;;  %46219 = vst [vmem:[#allocation76_spill] sm:$0xff] %v42576_v20  ;;  %v3412_v22 = vsub.f32 %v42559_v58, %v42576_v20  ;;  %v46245_v18 = vld [vmem:[#allocation37_spill] sm:$0xff]  ;;  %v46260_v36 = vld [vmem:[#allocation70_spill] sm:$0xff] }
 0x211   : > { %38167 = vmatprep.subr.bf16.mxu0 %v38166_v44  ;;  %46220 = vst [vmem:[#allocation77_spill] sm:$0xff] %v42579_v10  ;;  %v42596_v56 = vand.u32 4294901760, %v42579_v10 }
 0x213   : > { %34165 = vmatmul.mubr.f32.vlgmr.msra.gmra.mrb[4].mxu0 %v42418_v62  ;;  %46223 = vst [vmem:[#allocation80_spill] sm:$0xff] %v42596_v56  ;;  %v3432_v8 = vsub.f32 %v42579_v10, %v42596_v56 }
 0x214   : > { %38169 = vmatpush3.bf16.msra.mxu0 %v38166_v44  ;;  %34167 = vmatprep.mubr.f32.mxu0 %v42420_v63  ;;  %v3332_v44 = vsel %vm2701_vm0, %v1106_v60, 0  ;;  %v46248_v60 = vld [vmem:[#allocation48_spill] sm:$0xff] }
 0x215   : > { %38171 = vmatprep.subr.bf16.mxu0 %v38170_v29  ;;  %v42554_v12 = vand.u32 4294901760, %v3332_v44  ;;  %v42622_v49 = vand.u32 4294901760, %v3432_v8  ;;  %v46257_v8 = vld [vmem:[#allocation67_spill] sm:$0xff] }
 0x217   : > { %34168 = vmatmul.mubr.f32.gmra.mrb[6].mxu0 %v42422_v14  ;;  %46214 = vst [vmem:[#allocation71_spill] sm:$0xff] %v42554_v12  ;;  %v42569_v42 = vsub.f32 %v3332_v44, %v42554_v12  ;;  %46229 = vst [vmem:[#allocation82_spill] sm:$0xff] %v42622_v49  ;;  %v46250_v44 = vld [vmem:[#allocation52_spill] sm:$0xff] }
 0x218   : > { %38173 = vmatpush3.bf16.msra.mxu0 %v38170_v29  ;;  %34178 = vmatprep.mubr.f32.mxu0 %v42292_v2 }
 0x219   : > { %38175 = vmatprep.subr.bf16.mxu0 %v42472_v43  ;;  %46217 = vst [vmem:[#allocation74_spill] sm:$0xff] %v42569_v42  ;;  %v42586_v37 = vand.u32 4294901760, %v42569_v42 }
 0x21b   : > { %34179 = vmatmul.mubr.f32.vlgmr.msra.gmra.mrb[4].mxu0 %v42427_v32  ;;  %46221 = vst [vmem:[#allocation78_spill] sm:$0xff] %v42586_v37  ;;  %v3422_v16 = vsub.f32 %v42569_v42, %v42586_v37 }
 0x21c   : > { %38177 = vmatpush3.bf16.msra.mxu0 %v42472_v43  ;;  %34181 = vmatprep.mubr.f32.mxu0 %v42430_v57 }
 0x21d   : > { %38179 = vmatprep.subr.bf16.mxu0 %v42480_v33  ;;  %v42616_v50 = vand.u32 4294901760, %v3422_v16  ;;  %v46256_v16 = vld [vmem:[#allocation66_spill] sm:$0xff] }
 0x21f   : > { %34182 = vmatmul.mubr.f32.gmra.mrb[6].mxu0 %v42434_v51 }
 0x220   : > { %38181 = vmatpush3.bf16.msra.mxu0 %v42480_v33  ;;  %34192 = vmatprep.mubr.f32.mxu0 %v42297_v3 }
 0x221   : > { %38183 = vmatprep.subr.bf16.mxu0 %v42485_v54 }
 0x223   : > { %34193 = vmatmul.mubr.f32.vlgmr.msra.gmra.mrb[4].mxu0 %v42440_v55 }
 0x224   : > { %38185 = vmatpush3.bf16.msra.mxu0 %v42485_v54  ;;  %34195 = vmatprep.mubr.f32.mxu0 %v42443_v61  ;;  %v46227_v54 = vld [vmem:[#allocation49_spill] sm:$0xff] }
 0x225   : > { %38187 = vmatprep.subr.bf16.mxu0 %v42489_v38  ;;  %46228 = vst [vmem:[#allocation49_spill] sm:$0xff] %v42616_v50 }
 0x227   : > { %34196 = vmatmul.mubr.f32.gmra.mrb[6].mxu0 %v42447_v25 }
 0x228   : > { %38189 = vmatpush3.bf16.msra.mxu0 %v42489_v38  ;;  %34206 = vmatprep.mubr.f32.mxu0 %v42285_v28  ;;  %v46236_v38 = vld [vmem:[#allocation26_spill] sm:$0xff] }
 0x229   : > { %38191 = vmatprep.subr.bf16.mxu0 %v42472_v43 }
 0x22b   : > { %34207 = vmatmul.mubr.f32.vlgmr.msra.gmra.mrb[4].mxu0 %v42418_v62 }
 0x22c   : > { %38193 = vmatpush3.bf16.msra.mxu0 %v42472_v43  ;;  %34209 = vmatprep.mubr.f32.mxu0 %v42420_v63  ;;  %v42589_v43 = vsub.f32 %v3338_v26, %v42571_v39  ;;  %v46253_v26 = vld [vmem:[#allocation64_spill] sm:$0xff] }
 0x22d   : > { %38195 = vmatprep.subr.bf16.mxu0 %v42480_v33 }
 0x22e   : > { %46222 = vst [vmem:[#allocation79_spill] sm:$0xff] %v42589_v43  ;;  %v42604_v35 = vand.u32 4294901760, %v42589_v43 }
 0x22f   : > { %34210 = vmatmul.mubr.f32.gmra.mrb[6].mxu0 %v42422_v14 }
 0x230   : > { %38197 = vmatpush3.bf16.msra.mxu0 %v42480_v33  ;;  %34220 = vmatprep.mubr.f32.mxu0 %v42285_v28  ;;  %46225 = vst [vmem:[#allocation46_spill] sm:$0xff] %v42604_v35  ;;  %v42608_v33 = vand.u32 4294901760, %v3412_v22  ;;  %v3442_v29 = vsub.f32 %v42589_v43, %v42604_v35  ;;  %v46254_v22 = vld [vmem:[#allocation21_spill] sm:$0xff] }
 0x231   : > { %38199 = vmatprep.subr.bf16.mxu0 %v46224_v34 }
 0x232   : > { %46226 = vst [vmem:[#allocation81_spill] sm:$0xff] %v42608_v33  ;;  %v42628_v0 = vand.u32 4294901760, %v3442_v29  ;;  %v46259_v29 = vld [vmem:[#allocation69_spill] sm:$0xff] }
 0x233   : > { %34221 = vmatmul.mubr.f32.vlgmr.msra.gmra.mrb[4].mxu0 %v42418_v62 }
 0x234   : > { %38201 = vmatpush3.bf16.msra.mxu0 %v46224_v34  ;;  %34223 = vmatprep.mubr.f32.mxu0 %v42420_v63  ;;  %46231 = vst [vmem:[#allocation45_spill] sm:$0xff] %v42628_v0 }
 0x235   : > { %38203 = vmatprep.subr.bf16.mxu0 %v46227_v54 }
 0x237   : > { %34224 = vmatmul.mubr.f32.gmra.mrb[6].mxu0 %v42422_v14 }
 0x238   : > { %38205 = vmatpush3.bf16.msra.mxu0 %v46227_v54  ;;  %34234 = vmatprep.mubr.f32.mxu0 %v42608_v33 }
 0x239   : > { %38207 = vmatprep.subr.bf16.mxu0 %v42496_v31 }
 0x23b   : > { %34235 = vmatmul.mubr.f32.vlgmr.msra.gmra.mrb[4].mxu0 %v42616_v50 }
 0x23c   : > { %38209 = vmatpush3.bf16.msra.mxu0 %v42496_v31  ;;  %34237 = vmatprep.mubr.f32.mxu0 %v42622_v49  ;;  %v46238_v31 = vld [vmem:[#allocation30_spill] sm:$0xff] }
 0x23d   : > { %38211 = vmatprep.subr.bf16.mxu0 %v42505_v52 }
 0x23f   : > { %34238 = vmatmul.mubr.f32.gmra.mrb[6].mxu0 %v42628_v0 }
 0x240   : > { %38213 = vmatpush3.bf16.msra.mxu0 %v42505_v52  ;;  %34248 = vmatprep.mubr.f32.mxu0 %v42545_v19  ;;  %v46244_v52 = vld [vmem:[#allocation40_spill] sm:$0xff] }
 0x241   : > { %38215 = vmatprep.subr.bf16.mxu0 %v42492_v41 }
 0x243   : > { %34249 = vmatmul.mubr.f32.vlgmr.msra.gmra.mrb[4].mxu0 %v42554_v12 }
 0x244   : > { %38217 = vmatpush3.bf16.msra.mxu0 %v42492_v41  ;;  %34251 = vmatprep.mubr.f32.mxu0 %v42561_v1  ;;  %v46237_v41 = vld [vmem:[#allocation28_spill] sm:$0xff] }
 0x245   : > { %38219 = vmatprep.subr.bf16.mxu0 %v42498_v13 }
 0x247   : > { %34252 = vmatmul.mubr.f32.gmra.mrb[6].mxu0 %v42571_v39 }
 0x248   : > { %38221 = vmatpush3.bf16.msra.mxu0 %v42498_v13  ;;  %34262 = vmatprep.mubr.f32.mxu0 %v42559_v58  ;;  %v46240_v13 = vld [vmem:[#allocation36_spill] sm:$0xff] }
 0x249   : > { %38223 = vmatprep.subr.bf16.mxu0 %v46224_v34 }
 0x24b   : > { %34263 = vmatmul.mubr.f32.vlgmr.msra.gmra.mrb[4].mxu0 %v42569_v42 }
 0x24c   : > { %38225 = vmatpush3.bf16.msra.mxu0 %v46224_v34  ;;  %34265 = vmatprep.mubr.f32.mxu0 %v42579_v10 }
 0x24d   : > { %38227 = vmatprep.subr.bf16.mxu0 %v46227_v54 }
 0x24f   : > { %34266 = vmatmul.mubr.f32.gmra.mrb[6].mxu0 %v42589_v43 }
 0x250   : > { %38229 = vmatpush3.bf16.msra.mxu0 %v46227_v54  ;;  %34276 = vmatprep.mubr.f32.mxu0 %v42576_v20 }
 0x251   : > { %38231 = vmatprep.subr.bf16.mxu0 %v42500_v30 }
 0x253   : > { %34277 = vmatmul.mubr.f32.vlgmr.msra.gmra.mrb[4].mxu0 %v42586_v37  ;;  %v42846_v37 = vld [vmem:[%s46039_s3 + $0x58] sm:$0xff] }
 0x254   : > { %38233 = vmatpush3.bf16.msra.mxu0 %v42500_v30  ;;  %34279 = vmatprep.mubr.f32.mxu0 %v42596_v56  ;;  %v46241_v30 = vld [vmem:[#allocation38_spill] sm:$0xff] }
 0x255   : > { %38235 = vmatprep.subr.bf16.mxu0 %v42503_v9  ;;  %v42843_v56 = vld [vmem:[%s46039_s3 + $0x50] sm:$0xff] }
 0x256   : > { %v45950_v58 = vand.u32 4294901760, %v42843_v56 }
 0x257   : > { %34280 = vmatmul.mubr.f32.gmra.mrb[6].mxu0 %v42604_v35  ;;  %v42830_v35 = vld [vmem:[%s46039_s3 + $0x40] sm:$0xff] }
 0x258   : > { %38237 = vmatpush3.bf16.msra.mxu0 %v42503_v9  ;;  %34290 = vmatprep.mubr.f32.mxu0 %v42545_v19  ;;  %v46243_v9 = vld [vmem:[#allocation58_spill] sm:$0xff] }
 0x259   : > { %38239 = vmatprep.subr.bf16.mxu0 %v46224_v34 }
 0x25b   : > { %34291 = vmatmul.mubr.f32.vlgmr.msra.gmra.mrb[4].mxu0 %v42554_v12 }
 0x25c   : > { %38241 = vmatpush3.bf16.msra.mxu0 %v46224_v34  ;;  %34293 = vmatprep.mubr.f32.mxu0 %v42561_v1  ;;  %v46255_v34 = vld [vmem:[#allocation65_spill] sm:$0xff] }
 0x25d   : > { %38243 = vmatprep.subr.bf16.mxu0 %v46227_v54 }
 0x25f   : > { %34294 = vmatmul.mubr.f32.gmra.mrb[6].mxu0 %v42571_v39 }
 0x260   : > { %38245 = vmatpush3.bf16.msra.mxu0 %v46227_v54  ;;  %34304 = vmatprep.mubr.f32.mxu0 %v42545_v19  ;;  %v46258_v54 = vld [vmem:[#allocation68_spill] sm:$0xff] }
 0x261   : > { %38439 = vmatprep.subr.bf16.mxu0 %v46232_v40 }
 0x263   : > { %34305 = vmatmul.mubr.f32.vlgmr.msra.gmra.mrb[4].mxu0 %v42554_v12 }
 0x264   : > { %38441 = vmatpush3.bf16.msra.mxu0 %v46232_v40  ;;  %34307 = vmatprep.mubr.f32.mxu0 %v42561_v1 }
 0x265   : > { %38443 = vmatprep.subr.bf16.mxu0 %v46233_v24 }
 0x267   : > { %34308 = vmatmul.mubr.f32.gmra.mrb[6].mxu0 %v42571_v39 }
 0x268   : > { %38445 = vmatpush3.bf16.msra.mxu0 %v46233_v24  ;;  %34570 = vmatprep.mubr.f32.mxu0 %v46234_v17  ;;  %v46261_v17 = vld [vmem:[#allocation23_spill] sm:$0xff] }
 0x269   : > { %38447 = vmatprep.subr.bf16.mxu0 %v46235_v11 }
 0x26c   : > { %38449 = vmatpush3.bf16.msra.mxu0 %v46235_v11 }
 0x26d   : > { %38451 = vmatprep.subr.bf16.mxu0 %v46236_v38 }
 0x270   : > { %38453 = vmatpush3.bf16.msra.mxu0 %v46236_v38 }
 0x271   : > { %38455 = vmatprep.subr.bf16.mxu0 %v46237_v41 }
 0x274   : > { %38457 = vmatpush3.bf16.msra.mxu0 %v46237_v41 }
 0x275   : > { %38459 = vmatprep.subr.bf16.mxu0 %v46238_v31 }
 0x278   : > { %38461 = vmatpush3.bf16.msra.mxu0 %v46238_v31 }
 0x279   : > { %38463 = vmatprep.subr.bf16.mxu0 %v46239_v48 }
 0x27c   : > { %38465 = vmatpush3.bf16.msra.mxu0 %v46239_v48 }
 0x27d   : > { %38467 = vmatprep.subr.bf16.mxu0 %v46240_v13 }
 0x280   : > { %38469 = vmatpush3.bf16.msra.mxu0 %v46240_v13 }
 0x281   : > { %38471 = vmatprep.subr.bf16.mxu0 %v46241_v30 }
 0x283   : > { %34571 = vmatmul.mubr.f32.vlgmr.msra.gmra.mrb[8].mxu0 %v46242_v47  ;;  %v46263_v47 = vld [vmem:[#allocation35_spill] sm:$0xff] }
 0x284   : > { %38473 = vmatpush3.bf16.msra.mxu0 %v46241_v30  ;;  %34573 = vmatprep.mubr.f32.mxu0 %v46243_v9  ;;  %v46262_v30 = vld [vmem:[#allocation32_spill] sm:$0xff]  ;;  %v46264_v9 = vld [vmem:[#allocation31_spill] sm:$0xff] }
 0x285   : > { %38475 = vmatprep.subr.bf16.mxu0 %v46244_v52 }
 0x287   : > { %34574 = vmatmul.mubr.f32.gmra.mrb[10].mxu0 %v46245_v18  ;;  %v46266_v18 = vld [vmem:[#allocation25_spill] sm:$0xff] }
 0x288   : > { %38477 = vmatpush3.bf16.msra.mxu0 %v46244_v52  ;;  %34608 = vmatprep.mubr.f32.mxu0 %v42300_v6  ;;  %v46265_v52 = vld [vmem:[#allocation54_spill] sm:$0xff] }
 0x289   : > { %38479 = vmatprep.subr.bf16.mxu0 %v46246_v23 }
 0x28c   : > { %38481 = vmatpush3.bf16.msra.mxu0 %v46246_v23  ;;  %v46267_v23 = vld [vmem:[#allocation33_spill] sm:$0xff] }
 0x28d   : > { %38483 = vmatprep.subr.bf16.mxu0 %v46247_v7 }
 0x290   : > { %38485 = vmatpush3.bf16.msra.mxu0 %v46247_v7  ;;  %v46268_v7 = vld [vmem:[#allocation55_spill] sm:$0xff] }
 0x291   : > { %38487 = vmatprep.subr.bf16.mxu0 %v46248_v60 }
 0x294   : > { %38489 = vmatpush3.bf16.msra.mxu0 %v46248_v60  ;;  %v46269_v60 = vld [vmem:[#allocation47_spill] sm:$0xff] }
 0x295   : > { %38491 = vmatprep.subr.bf16.mxu0 %v46249_v27 }
 0x298   : > { %38493 = vmatpush3.bf16.msra.mxu0 %v46249_v27  ;;  %v46270_v27 = vld [vmem:[#allocation56_spill] sm:$0xff] }
 0x299   : > { %38495 = vmatprep.subr.bf16.mxu0 %v46250_v44 }
 0x29c   : > { %38497 = vmatpush3.bf16.msra.mxu0 %v46250_v44  ;;  %v46271_v44 = vld [vmem:[#allocation57_spill] sm:$0xff] }
 0x29d   : > { %38499 = vmatprep.subr.bf16.mxu0 %v46251_v4 }
 0x2a0   : > { %38501 = vmatpush3.bf16.msra.mxu0 %v46251_v4  ;;  %v46272_v4 = vld [vmem:[#allocation59_spill] sm:$0xff] }
 0x2a1   : > { %38503 = vmatprep.subr.bf16.mxu0 %v46252_v46 }
 0x2a3   : > { %34609 = vmatmul.mubr.f32.vlgmr.msra.gmra.mrb[8].mxu0 %v42294_v53 }
 0x2a4   : > { %38505 = vmatpush3.bf16.msra.mxu0 %v46252_v46  ;;  %34611 = vmatprep.mubr.f32.mxu0 %v42340_v59  ;;  %v46273_v46 = vld [vmem:[#allocation60_spill] sm:$0xff] }
 0x2a5   : > { %38507 = vmatprep.subr.bf16.mxu0 %v46253_v26 }
 0x2a7   : > { %34612 = vmatmul.mubr.f32.gmra.mrb[10].mxu0 %v42343_v45 }
 0x2a8   : > { %38509 = vmatpush3.bf16.msra.mxu0 %v46253_v26  ;;  %34646 = vmatprep.mubr.f32.mxu0 %v46254_v22  ;;  %v46274_v26 = vld [vmem:[#allocation61_spill] sm:$0xff]  ;;  %v46275_v22 = vld [vmem:[#allocation63_spill] sm:$0xff] }
 0x2a9   : > { %38511 = vmatprep.subr.bf16.mxu0 %v46255_v34 }
 0x2ac   : > { %38513 = vmatpush3.bf16.msra.mxu0 %v46255_v34 }
 0x2ad   : > { %38515 = vmatprep.subr.bf16.mxu0 %v46256_v16 }
 0x2b0   : > { %38517 = vmatpush3.bf16.msra.mxu0 %v46256_v16 }
 0x2b1   : > { %38519 = vmatprep.subr.bf16.mxu0 %v46257_v8 }
 0x2b4   : > { %38521 = vmatpush3.bf16.msra.mxu0 %v46257_v8 }
 0x2b5   : > { %38523 = vmatprep.subr.bf16.mxu0 %v46258_v54 }
 0x2b8   : > { %38525 = vmatpush3.bf16.msra.mxu0 %v46258_v54 }
 0x2b9   : > { %38527 = vmatprep.subr.bf16.mxu0 %v46259_v29 }
 0x2bc   : > { %38529 = vmatpush3.bf16.msra.mxu0 %v46259_v29 }
 0x2bd   : > { %38531 = vmatprep.subr.bf16.mxu0 %v46260_v36  ;;  %v34534_v34 = vpop.f32.mrb[4].mxu1 }
 0x2be   : > { %v6112_v16 = vand.u32 4294901760, %v34534_v34  ;;  %v4702_v8 = vpop.f32.mrb[5].mxu1 }
 0x2bf   : > { %v6109_v54 = vand.u32 4294901760, %v4702_v8 }
 0x2c0   : > { %38533 = vmatpush3.bf16.msra.mxu0 %v46260_v36  ;;  %v6226_v29 = vsub.f32 %v34534_v34, %v6112_v16  ;;  %v42802_v34 = vld [vmem:[%s46039_s3 + $0x20] sm:$0xff] }
 0x2c1   : > { %38535 = vmatprep.subr.bf16.mxu0 %v46232_v40  ;;  %v6219_v36 = vsub.f32 %v4702_v8, %v6109_v54 }
 0x2c3   : > { %34647 = vmatmul.mubr.f32.vlgmr.msra.gmra.mrb[8].mxu0 %v46261_v17  ;;  %v6227_v17 = vand.u32 4294901760, %v6226_v29 }
 0x2c4   : > { %38537 = vmatpush3.bf16.msra.mxu0 %v46232_v40  ;;  %34649 = vmatprep.mubr.f32.mxu0 %v46262_v30 }
 0x2c5   : > { %38539 = vmatprep.subr.bf16.mxu0 %v46233_v24  ;;  %v6228_v30 = vsub.f32 %v6226_v29, %v6227_v17 }
 0x2c7   : > { %34650 = vmatmul.mubr.f32.gmra.mrb[10].mxu0 %v46263_v47  ;;  %v42782_v47 = vpack.c.bf16 %v6226_v29, %v6219_v36  ;;  %v6766_v29 = vand.u32 4294901760, %v42802_v34 }
 0x2c8   : > { %38541 = vmatpush3.bf16.msra.mxu0 %v46233_v24  ;;  %34684 = vmatprep.mubr.f32.mxu0 %v46264_v9  ;;  %v6229_v9 = vand.u32 4294901760, %v6228_v30 }
 0x2c9   : > { %38543 = vmatprep.subr.bf16.mxu0 %v46235_v11  ;;  %46277 = vst [vmem:[#allocation22_spill] sm:$0xff] %v42782_v47  ;;  %v46292_v47 = vand.u32 4294901760, %v42830_v35 }
 0x2cc   : > { %38545 = vmatpush3.bf16.msra.mxu0 %v46235_v11 }
 0x2cd   : > { %38547 = vmatprep.subr.bf16.mxu0 %v46236_v38 }
 0x2d0   : > { %38549 = vmatpush3.bf16.msra.mxu0 %v46236_v38 }
 0x2d1   : > { %38551 = vmatprep.subr.bf16.mxu0 %v46237_v41 }
 0x2d4   : > { %38553 = vmatpush3.bf16.msra.mxu0 %v46237_v41 }
 0x2d5   : > { %38555 = vmatprep.subr.bf16.mxu0 %v46238_v31 }
 0x2d8   : > { %38557 = vmatpush3.bf16.msra.mxu0 %v46238_v31 }
 0x2d9   : > { %38559 = vmatprep.subr.bf16.mxu0 %v46239_v48 }
 0x2dc   : > { %38561 = vmatpush3.bf16.msra.mxu0 %v46239_v48 }
 0x2dd   : > { %38563 = vmatprep.subr.bf16.mxu0 %v46240_v13 }
 0x2e0   : > { %38565 = vmatpush3.bf16.msra.mxu0 %v46240_v13 }
 0x2e1   : > { %38567 = vmatprep.subr.bf16.mxu0 %v46265_v52 }
 0x2e3   : > { %34685 = vmatmul.mubr.f32.vlgmr.msra.gmra.mrb[8].mxu0 %v46266_v18 }
 0x2e4   : > { %38569 = vmatpush3.bf16.msra.mxu0 %v46265_v52  ;;  %34687 = vmatprep.mubr.f32.mxu0 %v46267_v23  ;;  %v1145_v23 = vld [vmem:[%s46039_s3] sm:$0xff] }
 0x2e5   : > { %38571 = vmatprep.subr.bf16.mxu0 %v46268_v7 }
 0x2e7   : > { %34688 = vmatmul.mubr.f32.gmra.mrb[10].mxu0 %v46269_v60 }
 0x2e8   : > { %38573 = vmatpush3.bf16.msra.mxu0 %v46268_v7  ;;  %34722 = vmatprep.mubr.f32.mxu0 %v42300_v6  ;;  %v6754_v7 = vand.u32 4294901760, %v1145_v23 }
 0x2e9   : > { %38575 = vmatprep.subr.bf16.mxu0 %v46270_v27 }
 0x2ec   : > { %38577 = vmatpush3.bf16.msra.mxu0 %v46270_v27  ;;  %v1147_v27 = vld [vmem:[%s46039_s3 + $0x10] sm:$0xff] }
 0x2ed   : > { %38579 = vmatprep.subr.bf16.mxu0 %v46271_v44 }
 0x2f0   : > { %38581 = vmatpush3.bf16.msra.mxu0 %v46271_v44  ;;  %v1148_v44 = vld [vmem:[%s46039_s3 + $0x18] sm:$0xff] }
 0x2f1   : > { %38583 = vmatprep.subr.bf16.mxu0 %v46272_v4 }
 0x2f4   : > { %38585 = vmatpush3.bf16.msra.mxu0 %v46272_v4  ;;  %v34537_v4 = vpop.f32.mrb[6].mxu1 }
 0x2f5   : > { %38587 = vmatprep.subr.bf16.mxu0 %v46273_v46 }
 0x2f8   : > { %38589 = vmatpush3.bf16.msra.mxu0 %v46273_v46  ;;  %v6760_v46 = vand.u32 4294901760, %v1147_v27 }
 0x2f9   : > { %38591 = vmatprep.subr.bf16.mxu0 %v46274_v26 }
 0x2fa   : > { %v42864_v1 = vsub.f32 %v1147_v27, %v6760_v46  ;;  %v46284_v27 = vand.u32 4294901760, %v42846_v37 }
 0x2fc   : > { %38593 = vmatpush3.bf16.msra.mxu0 %v46274_v26  ;;  %v6763_v26 = vand.u32 4294901760, %v1148_v44 }
 0x2fd   : > { %38595 = vmatprep.subr.bf16.mxu0 %v46275_v22 }
 0x300   : > { %38597 = vmatpush3.bf16.msra.mxu0 %v46275_v22  ;;  %v4714_v22 = vpop.f32.mrb[7].mxu1 }
 0x301   : > { %38599 = vmatprep.subr.bf16.mxu0 %v46232_v40  ;;  %v6115_v8 = vand.u32 4294901760, %v4714_v22 }
 0x303   : > { %34723 = vmatmul.mubr.f32.vlgmr.msra.gmra.mrb[8].mxu0 %v42294_v53 }
 0x304   : > { %38601 = vmatpush3.bf16.msra.mxu0 %v46232_v40  ;;  %34725 = vmatprep.mubr.f32.mxu0 %v42340_v59  ;;  %v42778_v40 = vpack.c.bf16 %v6112_v16, %v6109_v54  ;;  %v6118_v16 = vand.u32 4294901760, %v34537_v4 }
 0x305   : > { %38603 = vmatprep.subr.bf16.mxu0 %v46233_v24 }
 0x306   : > { %46276 = vst [vmem:[#allocation20_spill] sm:$0xff] %v42778_v40  ;;  %v42808_v54 = vpack.c.bf16 %v6118_v16, %v6115_v8  ;;  %v6240_v30 = vsub.f32 %v34537_v4, %v6118_v16  ;;  %v42833_v4 = vld [vmem:[%s46039_s3 + $0x48] sm:$0xff]  ;;  %v45949_v16 = vand.u32 4294901760, %v42830_v35 }
 0x307   : > { %34726 = vmatmul.mubr.f32.gmra.mrb[10].mxu0 %v42343_v45 }
 0x308   : > { %38605 = vmatpush3.bf16.msra.mxu0 %v46233_v24  ;;  %34760 = vmatprep.mubr.f32.mxu0 %v42300_v6  ;;  %v6220_v24 = vand.u32 4294901760, %v6219_v36  ;;  %46280 = vst [vmem:[#allocation26_spill] sm:$0xff] %v42808_v54 }
 0x309   : > { %38607 = vmatprep.subr.bf16.mxu0 %v46235_v11 }
 0x30a   : > { %v6221_v6 = vsub.f32 %v6219_v36, %v6220_v24  ;;  %v42785_v52 = vpack.c.bf16 %v6227_v17, %v6220_v24  ;;  %v42816_v17 = vld [vmem:[%s46039_s3 + $0x30] sm:$0xff]  ;;  %v42819_v24 = vld [vmem:[%s46039_s3 + $0x38] sm:$0xff] }
 0x30c   : > { %38609 = vmatpush3.bf16.msra.mxu0 %v46235_v11  ;;  %v6222_v11 = vand.u32 4294901760, %v6221_v6  ;;  %46278 = vst [vmem:[#allocation27_spill] sm:$0xff] %v42785_v52  ;;  %v6233_v6 = vsub.f32 %v4714_v22, %v6115_v8  ;;  %v6241_v22 = vand.u32 4294901760, %v6240_v30  ;;  %v45948_v8 = vand.u32 4294901760, %v42833_v4 }
 0x30d   : > { %38611 = vmatprep.subr.bf16.mxu0 %v46236_v38 }
 0x30e   : > { %v42788_v18 = vpack.c.bf16 %v6229_v9, %v6222_v11  ;;  %v6772_v11 = vand.u32 4294901760, %v42816_v17  ;;  %v6775_v9 = vand.u32 4294901760, %v42819_v24  ;;  %v6242_v52 = vsub.f32 %v6240_v30, %v6241_v22 }
 0x30f   : > { %v42853_v10 = vpack.c.bf16 %v6240_v30, %v6233_v6  ;;  %v42860_v42 = vpack.c.bf16 %v45948_v8, %v45949_v16 }
 0x310   : > { %38613 = vmatpush3.bf16.msra.mxu0 %v46236_v38  ;;  %46279 = vst [vmem:[#allocation24_spill] sm:$0xff] %v42788_v18  ;;  %v1146_v38 = vld [vmem:[%s46039_s3 + $0x8] sm:$0xff]  ;;  %v6243_v30 = vand.u32 4294901760, %v6242_v52  ;;  %v42929_v12 = vsub.f32 %v42816_v17, %v6772_v11 }
 0x311   : > { %38615 = vmatprep.subr.bf16.mxu0 %v46237_v41  ;;  %v6757_v60 = vand.u32 4294901760, %v1146_v38  ;;  %46281 = vst [vmem:[#allocation28_spill] sm:$0xff] %v42853_v10 }
 0x312   : > { %v46298_v50 = vand.u32 4294901760, %v42929_v12 }
 0x313   : > { %v42851_v43 = vsub.f32 %v1146_v38, %v6757_v60  ;;  %v42870_v38 = vld [vmem:[%s46039_s3 + $0x68] sm:$0xff] }
 0x314   : > { %38617 = vmatpush3.bf16.msra.mxu0 %v46237_v41  ;;  %v42799_v41 = vpack.c.bf16 %v6757_v60, %v6754_v7  ;;  %v45957_v52 = vand.u32 4294901760, %v42870_v38  ;;  %v6920_v18 = vsub.f32 %v42929_v12, %v46298_v50  ;;  %v46301_v50 = vand.u32 4294901760, %v42846_v37 }
 0x315   : > { %38619 = vmatprep.subr.bf16.mxu0 %v46238_v31  ;;  %v45953_v16 = vand.u32 4294901760, %v42851_v43 }
 0x318   : > { %38621 = vmatpush3.bf16.msra.mxu0 %v46238_v31  ;;  %v42805_v31 = vld [vmem:[%s46039_s3 + $0x28] sm:$0xff] }
 0x319   : > { %38623 = vmatprep.subr.bf16.mxu0 %v46239_v48  ;;  %v6769_v36 = vand.u32 4294901760, %v42805_v31 }
 0x31c   : > { %38625 = vmatpush3.bf16.msra.mxu0 %v46239_v48  ;;  %v42811_v48 = vpack.c.bf16 %v6763_v26, %v6760_v46  ;;  %v42891_v46 = vld [vmem:[%s46039_s3 + $0x70] sm:$0xff] }
 0x31d   : > { %38627 = vmatprep.subr.bf16.mxu0 %v46240_v13 }
 0x320   : > { %38629 = vmatpush3.bf16.msra.mxu0 %v46240_v13  ;;  %v42825_v13 = vpack.c.bf16 %v6769_v36, %v6766_v29 }
 0x321   : > { %38727 = vmatprep.subr.bf16.mxu0 %v42799_v41 }
 0x323   : > { %34761 = vmatmul.mubr.f32.vlgmr.msra.gmra.mrb[8].mxu0 %v42294_v53  ;;  %v6234_v53 = vand.u32 4294901760, %v6233_v6 }
 0x324   : > { %38729 = vmatpush3.bf16.msra.mxu0 %v42799_v41  ;;  %34763 = vmatprep.mubr.f32.mxu0 %v42340_v59  ;;  %v42838_v59 = vpack.c.bf16 %v6775_v9, %v6772_v11 }
 0x325   : > { %38731 = vmatprep.subr.bf16.mxu0 %v42811_v48  ;;  %v6235_v20 = vsub.f32 %v6233_v6, %v6234_v53  ;;  %v42874_v6 = vpack.c.bf16 %v6241_v22, %v6234_v53  ;;  %v45958_v22 = vand.u32 4294901760, %v42864_v1 }
 0x327   : > { %34764 = vmatmul.mubr.f32.gmra.mrb[10].mxu0 %v42343_v45  ;;  %v42849_v45 = vsub.f32 %v1145_v23, %v6754_v7  ;;  %v42867_v23 = vld [vmem:[%s46039_s3 + $0x60] sm:$0xff]  ;;  %v42872_v7 = vsub.f32 %v1148_v44, %v6763_v26  ;;  %v6236_v60 = vand.u32 4294901760, %v6235_v20  ;;  %46282 = vst [vmem:[#allocation30_spill] sm:$0xff] %v42874_v6  ;;  %v42886_v44 = vpack.c.bf16 %v46284_v27, %v45950_v58  ;;  %v42894_v26 = vld [vmem:[%s46039_s3 + $0x78] sm:$0xff] }
 0x328   : > { %38733 = vmatpush3.bf16.msra.mxu0 %v42811_v48  ;;  %v45959_v20 = vand.u32 4294901760, %v42867_v23  ;;  %v6885_v58 = vsub.f32 %v42851_v43, %v45953_v16 }
 0x329   : > { %38735 = vmatprep.subr.bf16.mxu0 %v42825_v13  ;;  %v45951_v8 = vand.u32 4294901760, %v42849_v45  ;;  %v42879_v39 = vpack.c.bf16 %v6243_v30, %v6236_v60  ;;  %v6892_v30 = vsub.f32 %v42864_v1, %v45958_v22  ;;  %v42918_v60 = vsub.f32 %v42802_v34, %v6766_v29 }
 0x32a   : > { %v42912_v53 = vpack.c.bf16 %v45957_v52, %v45959_v20  ;;  %v46286_v16 = vand.u32 4294901760, %v42872_v7  ;;  %v42932_v52 = vsub.f32 %v42819_v24, %v6775_v9  ;;  %v46288_v29 = vand.u32 4294901760, %v42891_v46 }
 0x32b   : > { %46283 = vst [vmem:[#allocation34_spill] sm:$0xff] %v42879_v39  ;;  %v6878_v27 = vsub.f32 %v42849_v45, %v45951_v8  ;;  %v42921_v8 = vsub.f32 %v42805_v31, %v6769_v36  ;;  %v46289_v36 = vand.u32 4294901760, %v42894_v26  ;;  %v6886_v11 = vand.u32 4294901760, %v6885_v58 }
 0x32c   : > { %38737 = vmatpush3.bf16.msra.mxu0 %v42825_v13  ;;  %v6899_v10 = vsub.f32 %v42872_v7, %v46286_v16  ;;  %v6893_v9 = vand.u32 4294901760, %v6892_v30  ;;  %v42973_v20 = vsub.f32 %v42830_v35, %v46292_v47  ;;  %v46295_v47 = vand.u32 4294901760, %v42918_v60 }
 0x32d   : > { %38739 = vmatprep.subr.bf16.mxu0 %v42838_v59  ;;  %v42947_v16 = vpack.c.bf16 %v46289_v36, %v46288_v29  ;;  %v6879_v17 = vand.u32 4294901760, %v6878_v27  ;;  %v46299_v33 = vand.u32 4294901760, %v42932_v52 }
 0x32e   : > { %v6900_v29 = vand.u32 4294901760, %v6899_v10 }
 0x32f   : > { %v42985_v36 = vpack.c.bf16 %v6886_v11, %v6879_v17 }
 0x330   : > { %38741 = vmatpush3.bf16.msra.mxu0 %v42838_v59 }
 0x331   : > { %38743 = vmatprep.subr.bf16.mxu0 %v42860_v42 }
 0x334   : > { %38745 = vmatpush3.bf16.msra.mxu0 %v42860_v42 }
 0x335   : > { %38747 = vmatprep.subr.bf16.mxu0 %v42886_v44 }
 0x336   : > { %v42923_v6 = vpop.f32.mrb[4].mxu0 }
 0x337   : > { %46285 = vst [vmem:[#allocation36_spill] sm:$0xff] %v42923_v6  ;;  %v42935_v22 = vand.u32 4294901760, %v42923_v6  ;;  %v42937_v34 = vpop.f32.mrb[5].mxu0 }
 0x338   : > { %46287 = vst [vmem:[#allocation38_spill] sm:$0xff] %v42937_v34  ;;  %v42940_v31 = vand.u32 4294901760, %v42937_v34  ;;  %38749 = vmatpush3.bf16.msra.mxu0 %v42886_v44 }
 0x339   : > { %v42951_v24 = vsub.f32 %v42923_v6, %v42935_v22  ;;  %38751 = vmatprep.subr.bf16.mxu0 %v42912_v53 }
 0x33a   : > { %v42958_v19 = vsub.f32 %v42937_v34, %v42940_v31  ;;  %v42960_v0 = vpop.f32.mrb[6].mxu0  ;;  %v46293_v34 = vand.u32 4294901760, %v42833_v4 }
 0x33b   : > { %46290 = vst [vmem:[#allocation29_spill] sm:$0xff] %v42960_v0  ;;  %v42966_v6 = vand.u32 4294901760, %v42960_v0  ;;  %v42968_v30 = vpop.f32.mrb[7].mxu0  ;;  %v46294_v39 = vand.u32 4294901760, %v42951_v24 }
 0x33c   : > { %46291 = vst [vmem:[#allocation58_spill] sm:$0xff] %v42968_v30  ;;  %v42978_v10 = vsub.f32 %v42833_v4, %v46293_v34  ;;  %v42981_v58 = vand.u32 4294901760, %v42968_v30  ;;  %38753 = vmatpush3.bf16.msra.mxu0 %v42912_v53  ;;  %v6906_v4 = vsub.f32 %v42918_v60, %v46295_v47  ;;  %v46296_v34 = vand.u32 4294901760, %v42921_v8 }
 0x33d   : > { %v6847_v49 = vsub.f32 %v42951_v24, %v46294_v39  ;;  %v42992_v35 = vsub.f32 %v42960_v0, %v42966_v6  ;;  %38755 = vmatprep.subr.bf16.mxu0 %v42947_v16  ;;  %v46297_v39 = vand.u32 4294901760, %v42958_v19  ;;  %v43008_v0 = vpack.c.bf16 %v6900_v29, %v6893_v9 }
 0x33e   : > { %v6913_v27 = vsub.f32 %v42921_v8, %v46296_v34  ;;  %v43003_v17 = vsub.f32 %v42968_v30, %v42981_v58  ;;  %v6927_v34 = vsub.f32 %v42932_v52, %v46299_v33  ;;  %v46300_v29 = vand.u32 4294901760, %v42843_v56 }
 0x33f   : > { %v6837_v11 = vsub.f32 %v42958_v19, %v46297_v39  ;;  %v43029_v47 = vsub.f32 %v42846_v37, %v46301_v50  ;;  %v6848_v33 = vand.u32 4294901760, %v6847_v49  ;;  %v46302_v30 = vand.u32 4294901760, %v42992_v35 }
 0x340   : > { %38757 = vmatpush3.bf16.msra.mxu0 %v42947_v16  ;;  %v45984_v9 = vand.u32 4294901760, %v43003_v17  ;;  %v43024_v39 = vsub.f32 %v42843_v56, %v46300_v29  ;;  %v6914_v25 = vand.u32 4294901760, %v6913_v27  ;;  %v6921_v29 = vand.u32 4294901760, %v6920_v18 }
 0x341   : > { %v6838_v40 = vand.u32 4294901760, %v6837_v11  ;;  %38759 = vmatprep.subr.bf16.mxu0 %v42985_v36  ;;  %v6867_v54 = vsub.f32 %v42992_v35, %v46302_v30  ;;  %v6907_v11 = vand.u32 4294901760, %v6906_v4  ;;  %v6928_v61 = vand.u32 4294901760, %v6927_v34 }
 0x342   : > { %v6857_v56 = vsub.f32 %v43003_v17, %v45984_v9  ;;  %v46303_v37 = vand.u32 4294901760, %v42973_v20  ;;  %v46304_v55 = vand.u32 4294901760, %v42978_v10  ;;  %v45978_v27 = vand.u32 4294901760, %v43029_v47 }
 0x343   : > { %34966 = vmatprep.mubr.f32.mxu0 %v6838_v40  ;;  %v45983_v40 = vand.u32 4294901760, %v43024_v39  ;;  %v6868_v4 = vand.u32 4294901760, %v6867_v54  ;;  %v43048_v18 = vpack.c.bf16 %v6914_v25, %v6907_v11  ;;  %v46305_v34 = vand.u32 4294901760, %v42867_v23 }
 0x344   : > { %34967 = vmatmul.mubr.f32.vlgmr.msra.gmra.mrb[12].mxu0 %v6848_v33  ;;  %v6934_v49 = vsub.f32 %v42973_v20, %v46303_v37  ;;  %v6858_v50 = vand.u32 4294901760, %v6857_v56  ;;  %v6941_v30 = vsub.f32 %v42978_v10, %v46304_v55  ;;  %v46306_v56 = vand.u32 4294901760, %v42870_v38 }
 0x345   : > { %38761 = vmatpush3.bf16.msra.mxu0 %v42985_v36  ;;  %v43053_v33 = vsub.f32 %v42867_v23, %v46305_v34  ;;  %v43060_v55 = vpack.c.bf16 %v6928_v61, %v6921_v29  ;;  %v6948_v23 = vsub.f32 %v43024_v39, %v45983_v40  ;;  %v6955_v11 = vsub.f32 %v43029_v47, %v45978_v27 }
 0x346   : > { %38763 = vmatprep.subr.bf16.mxu0 %v43008_v0  ;;  %v43058_v37 = vsub.f32 %v42870_v38, %v46306_v56  ;;  %34969 = vmatprep.mubr.f32.mxu0 %v6858_v50  ;;  %v6935_v25 = vand.u32 4294901760, %v6934_v49  ;;  %v6942_v54 = vand.u32 4294901760, %v6941_v30  ;;  %v46307_v29 = vand.u32 4294901760, %v42891_v46 }
 0x347   : > { %v45982_v38 = vand.u32 4294901760, %v43053_v33  ;;  %v46308_v49 = vand.u32 4294901760, %v42894_v26  ;;  %v6949_v34 = vand.u32 4294901760, %v6948_v23  ;;  %v6956_v56 = vand.u32 4294901760, %v6955_v11 }
 0x348   : > { %34970 = vmatmul.mubr.f32.gmra.mrb[14].mxu0 %v6868_v4  ;;  %v45979_v61 = vand.u32 4294901760, %v43058_v37  ;;  %v43076_v50 = vsub.f32 %v42891_v46, %v46307_v29  ;;  %v43084_v4 = vpack.c.bf16 %v6942_v54, %v6935_v25  ;;  %v46315_v40 = vand.u32 4294901760, %v42864_v1 }
 0x349   : > { %38765 = vmatpush3.bf16.msra.mxu0 %v43008_v0  ;;  %35004 = vmatprep.mubr.f32.mxu0 %v42940_v31  ;;  %v43081_v30 = vsub.f32 %v42894_v26, %v46308_v49  ;;  %v6962_v27 = vsub.f32 %v43053_v33, %v45982_v38  ;;  %v43096_v25 = vpack.c.bf16 %v6956_v56, %v6949_v34  ;;  %v46316_v9 = vand.u32 4294901760, %v42872_v7 }
 0x34a   : > { %38767 = vmatprep.subr.bf16.mxu0 %v43048_v18  ;;  %v6969_v46 = vsub.f32 %v43058_v37, %v45979_v61  ;;  %v45981_v29 = vand.u32 4294901760, %v43076_v50 }
 0x34b   : > { %v45980_v26 = vand.u32 4294901760, %v43081_v30  ;;  %v6963_v54 = vand.u32 4294901760, %v6962_v27 }
 0x34c   : > { %v6970_v23 = vand.u32 4294901760, %v6969_v46  ;;  %v6976_v11 = vsub.f32 %v43076_v50, %v45981_v29  ;;  %v43117_v46 = vpack.c.bf16 %v42851_v43, %v42849_v45  ;;  %v46312_v29 = vand.u32 4294901760, %v42958_v19 }
 0x34d   : > { %38769 = vmatpush3.bf16.msra.mxu0 %v43048_v18  ;;  %v6983_v49 = vsub.f32 %v43081_v30, %v45980_v26  ;;  %v43163_v26 = vpack.c.bf16 %v43081_v30, %v43076_v50 }
 0x34e   : > { %38771 = vmatprep.subr.bf16.mxu0 %v43060_v55  ;;  %v43107_v61 = vpack.c.bf16 %v6970_v23, %v6963_v54  ;;  %v6977_v34 = vand.u32 4294901760, %v6976_v11  ;;  %v43123_v54 = vpack.c.bf16 %v42872_v7, %v42864_v1  ;;  %v43131_v23 = vpack.c.bf16 %v42921_v8, %v42918_v60 }
 0x34f   : > { %v6984_v56 = vand.u32 4294901760, %v6983_v49  ;;  %v43139_v11 = vpack.c.bf16 %v42932_v52, %v42929_v12  ;;  %v43145_v49 = vpack.c.bf16 %v42978_v10, %v42973_v20  ;;  %46311 = vst [vmem:[#allocation42_spill] sm:$0xff] %v43163_v26  ;;  %v46321_v1 = vand.u32 4294901760, %v42992_v35 }
 0x350   : > { %v46322_v7 = vand.u32 4294901760, %v42929_v12  ;;  %v46326_v12 = vand.u32 4294901760, %v43024_v39 }
 0x351   : > { %38773 = vmatpush3.bf16.msra.mxu0 %v43060_v55  ;;  %v43111_v27 = vpack.c.bf16 %v6984_v56, %v6977_v34  ;;  %v43151_v34 = vpack.c.bf16 %v43029_v47, %v43024_v39  ;;  %v43157_v56 = vpack.c.bf16 %v43058_v37, %v43053_v33  ;;  %v46332_v39 = vand.u32 4294901760, %v43076_v50 }
 0x352   : > { %38775 = vmatprep.subr.bf16.mxu0 %v43084_v4 }
 0x353   : > { %46309 = vst [vmem:[#allocation40_spill] sm:$0xff] %v43151_v34  ;;  %46310 = vst [vmem:[#allocation37_spill] sm:$0xff] %v43157_v56 }
 0x355   : > { %38777 = vmatpush3.bf16.msra.mxu0 %v43084_v4 }
 0x356   : > { %38779 = vmatprep.subr.bf16.mxu0 %v43096_v25 }
 0x359   : > { %38781 = vmatpush3.bf16.msra.mxu0 %v43096_v25 }
 0x35a   : > { %38783 = vmatprep.subr.bf16.mxu0 %v43107_v61 }
 0x35d   : > { %38785 = vmatpush3.bf16.msra.mxu0 %v43107_v61 }
 0x35e   : > { %38787 = vmatprep.subr.bf16.mxu0 %v43111_v27 }
 0x361   : > { %38789 = vmatpush3.bf16.msra.mxu0 %v43111_v27 }
 0x362   : > { %38791 = vmatprep.subr.bf16.mxu0 %v43117_v46 }
 0x364   : > { %35005 = vmatmul.mubr.f32.vlgmr.msra.gmra.mrb[12].mxu0 %v42935_v22 }
 0x365   : > { %35007 = vmatprep.mubr.f32.mxu0 %v42981_v58  ;;  %38793 = vmatpush3.bf16.msra.mxu0 %v43117_v46 }
 0x366   : > { %38795 = vmatprep.subr.bf16.mxu0 %v43123_v54 }
 0x368   : > { %35008 = vmatmul.mubr.f32.gmra.mrb[14].mxu0 %v42966_v6 }
 0x369   : > { %38797 = vmatpush3.bf16.msra.mxu0 %v43123_v54  ;;  %35042 = vmatprep.mubr.f32.mxu0 %v42958_v19  ;;  %v46313_v19 = vand.u32 4294901760, %v42849_v45  ;;  %v46320_v45 = vand.u32 4294901760, %v42921_v8  ;;  %v46324_v8 = vand.u32 4294901760, %v42973_v20  ;;  %v46329_v20 = vand.u32 4294901760, %v43053_v33 }
 0x36a   : > { %38799 = vmatprep.subr.bf16.mxu0 %v43131_v23 }
 0x36d   : > { %38801 = vmatpush3.bf16.msra.mxu0 %v43131_v23 }
 0x36e   : > { %38803 = vmatprep.subr.bf16.mxu0 %v43139_v11 }
 0x371   : > { %38805 = vmatpush3.bf16.msra.mxu0 %v43139_v11 }
 0x372   : > { %38807 = vmatprep.subr.bf16.mxu0 %v43145_v49 }
 0x375   : > { %38809 = vmatpush3.bf16.msra.mxu0 %v43145_v49 }
 0x376   : > { %38811 = vmatprep.subr.bf16.mxu0 %v43151_v34 }
 0x379   : > { %38813 = vmatpush3.bf16.msra.mxu0 %v43151_v34  ;;  %v46318_v34 = vand.u32 4294901760, %v43003_v17 }
 0x37a   : > { %38815 = vmatprep.subr.bf16.mxu0 %v43157_v56 }
 0x37d   : > { %38817 = vmatpush3.bf16.msra.mxu0 %v43157_v56  ;;  %v46317_v56 = vand.u32 4294901760, %v42951_v24 }
 0x37e   : > { %38819 = vmatprep.subr.bf16.mxu0 %v43163_v26 }
 0x381   : > { %38821 = vmatpush3.bf16.msra.mxu0 %v43163_v26  ;;  %v43200_v26 = vpack.c.bf16 %v46316_v9, %v46315_v40 }
 0x382   : > { %38823 = vmatprep.subr.bf16.mxu0 %v42799_v41 }
 0x384   : > { %35043 = vmatmul.mubr.f32.vlgmr.msra.gmra.mrb[12].mxu0 %v42951_v24  ;;  %v46323_v24 = vand.u32 4294901760, %v42932_v52  ;;  %v46327_v52 = vand.u32 4294901760, %v43029_v47  ;;  %v46333_v47 = vand.u32 4294901760, %v43081_v30 }
 0x385   : > { %35045 = vmatprep.mubr.f32.mxu0 %v43003_v17  ;;  %38825 = vmatpush3.bf16.msra.mxu0 %v42799_v41 }
 0x386   : > { %38827 = vmatprep.subr.bf16.mxu0 %v42811_v48  ;;  %v43223_v17 = vpack.c.bf16 %v46323_v24, %v46322_v7  ;;  %v43239_v9 = vpack.c.bf16 %v46327_v52, %v46326_v12 }
 0x388   : > { %35046 = vmatmul.mubr.f32.gmra.mrb[14].mxu0 %v42992_v35  ;;  %46328 = vst [vmem:[#allocation44_spill] sm:$0xff] %v43239_v9 }
 0x389   : > { %38829 = vmatpush3.bf16.msra.mxu0 %v42811_v48  ;;  %35080 = vmatprep.mubr.f32.mxu0 %v46312_v29  ;;  %v46314_v29 = vand.u32 4294901760, %v42851_v43  ;;  %v46319_v43 = vand.u32 4294901760, %v42918_v60  ;;  %v46325_v60 = vand.u32 4294901760, %v42978_v10  ;;  %v46330_v10 = vand.u32 4294901760, %v43058_v37 }
 0x38a   : > { %38831 = vmatprep.subr.bf16.mxu0 %v42825_v13 }
 0x38b   : > { %v43192_v38 = vpack.c.bf16 %v46314_v29, %v46313_v19  ;;  %v43212_v19 = vpack.c.bf16 %v46320_v45, %v46319_v43  ;;  %v43231_v35 = vpack.c.bf16 %v46325_v60, %v46324_v8  ;;  %v43247_v40 = vpack.c.bf16 %v46330_v10, %v46329_v20 }
 0x38d   : > { %38833 = vmatpush3.bf16.msra.mxu0 %v42825_v13  ;;  %46331 = vst [vmem:[#allocation48_spill] sm:$0xff] %v43247_v40 }
 0x38e   : > { %38835 = vmatprep.subr.bf16.mxu0 %v42838_v59 }
 0x391   : > { %38837 = vmatpush3.bf16.msra.mxu0 %v42838_v59 }
 0x392   : > { %38839 = vmatprep.subr.bf16.mxu0 %v42860_v42 }
 0x395   : > { %38841 = vmatpush3.bf16.msra.mxu0 %v42860_v42 }
 0x396   : > { %38843 = vmatprep.subr.bf16.mxu0 %v42886_v44 }
 0x399   : > { %38845 = vmatpush3.bf16.msra.mxu0 %v42886_v44 }
 0x39a   : > { %38847 = vmatprep.subr.bf16.mxu0 %v42912_v53 }
 0x39d   : > { %38849 = vmatpush3.bf16.msra.mxu0 %v42912_v53 }
 0x39e   : > { %38851 = vmatprep.subr.bf16.mxu0 %v42947_v16 }
 0x3a1   : > { %38853 = vmatpush3.bf16.msra.mxu0 %v42947_v16 }
 0x3a2   : > { %38855 = vmatprep.subr.bf16.mxu0 %v43192_v38 }
 0x3a4   : > { %35081 = vmatmul.mubr.f32.vlgmr.msra.gmra.mrb[12].mxu0 %v46317_v56 }
 0x3a5   : > { %35083 = vmatprep.mubr.f32.mxu0 %v46318_v34  ;;  %38857 = vmatpush3.bf16.msra.mxu0 %v43192_v38  ;;  %v43255_v34 = vpack.c.bf16 %v46333_v47, %v46332_v39 }
 0x3a6   : > { %38859 = vmatprep.subr.bf16.mxu0 %v43200_v26 }
 0x3a7   : > { %46334 = vst [vmem:[#allocation50_spill] sm:$0xff] %v43255_v34 }
 0x3a8   : > { %35084 = vmatmul.mubr.f32.gmra.mrb[14].mxu0 %v46321_v1 }
 0x3a9   : > { %38861 = vmatpush3.bf16.msra.mxu0 %v43200_v26  ;;  %35118 = vmatprep.mubr.f32.mxu0 %v42940_v31 }
 0x3aa   : > { %38863 = vmatprep.subr.bf16.mxu0 %v43212_v19 }
 0x3ad   : > { %38865 = vmatpush3.bf16.msra.mxu0 %v43212_v19 }
 0x3ae   : > { %38867 = vmatprep.subr.bf16.mxu0 %v43223_v17 }
 0x3b1   : > { %38869 = vmatpush3.bf16.msra.mxu0 %v43223_v17 }
 0x3b2   : > { %38871 = vmatprep.subr.bf16.mxu0 %v43231_v35 }
 0x3b5   : > { %38873 = vmatpush3.bf16.msra.mxu0 %v43231_v35 }
 0x3b6   : > { %38875 = vmatprep.subr.bf16.mxu0 %v43239_v9 }
 0x3b9   : > { %38877 = vmatpush3.bf16.msra.mxu0 %v43239_v9 }
 0x3ba   : > { %38879 = vmatprep.subr.bf16.mxu0 %v43247_v40 }
 0x3bd   : > { %38881 = vmatpush3.bf16.msra.mxu0 %v43247_v40 }
 0x3be   : > { %38883 = vmatprep.subr.bf16.mxu0 %v43255_v34 }
 0x3c1   : > { %38885 = vmatpush3.bf16.msra.mxu0 %v43255_v34 }
 0x3c2   : > { %38887 = vmatprep.subr.bf16.mxu0 %v42799_v41 }
 0x3c4   : > { %35119 = vmatmul.mubr.f32.vlgmr.msra.gmra.mrb[12].mxu0 %v42935_v22 }
 0x3c5   : > { %35121 = vmatprep.mubr.f32.mxu0 %v42981_v58  ;;  %38889 = vmatpush3.bf16.msra.mxu0 %v42799_v41 }
 0x3c6   : > { %38891 = vmatprep.subr.bf16.mxu0 %v42811_v48 }
 0x3c8   : > { %35122 = vmatmul.mubr.f32.gmra.mrb[14].mxu0 %v42966_v6 }
 0x3c9   : > { %38893 = vmatpush3.bf16.msra.mxu0 %v42811_v48  ;;  %35156 = vmatprep.mubr.f32.mxu0 %v42940_v31 }
 0x3ca   : > { %38895 = vmatprep.subr.bf16.mxu0 %v42825_v13 }
 0x3cd   : > { %38897 = vmatpush3.bf16.msra.mxu0 %v42825_v13 }
 0x3ce   : > { %38899 = vmatprep.subr.bf16.mxu0 %v42838_v59 }
 0x3d1   : > { %38901 = vmatpush3.bf16.msra.mxu0 %v42838_v59 }
 0x3d2   : > { %38903 = vmatprep.subr.bf16.mxu0 %v42860_v42 }
 0x3d5   : > { %38905 = vmatpush3.bf16.msra.mxu0 %v42860_v42 }
 0x3d6   : > { %38907 = vmatprep.subr.bf16.mxu0 %v42886_v44 }
 0x3d9   : > { %38909 = vmatpush3.bf16.msra.mxu0 %v42886_v44 }
 0x3da   : > { %38911 = vmatprep.subr.bf16.mxu0 %v42912_v53 }
 0x3dd   : > { %38913 = vmatpush3.bf16.msra.mxu0 %v42912_v53 }
 0x3de   : > { %38915 = vmatprep.subr.bf16.mxu0 %v42947_v16 }
 0x3e1   : > { %38917 = vmatpush3.bf16.msra.mxu0 %v42947_v16 }
 0x3e4   : > { %35157 = vmatmul.mubr.f32.vlgmr.msra.gmra.mrb[12].mxu0 %v42935_v22 }
 0x3e5   : > { %35159 = vmatprep.mubr.f32.mxu0 %v42981_v58 }
 0x3e8   : > { %35160 = vmatmul.mubr.f32.gmra.mrb[14].mxu0 %v42966_v6 }
 0x3f6   : > { %v34762_v31 = vpop.f32.mrb[8].mxu0 }
 0x3f7   : > { %v5498_v33 = vand.u32 4294901760, %v34762_v31  ;;  %v5472_v37 = vpop.f32.mrb[9].mxu0 }
 0x3f8   : > { %v5495_v50 = vand.u32 4294901760, %v5472_v37 }
 0x3f9   : > { %v5612_v30 = vsub.f32 %v34762_v31, %v5498_v33 }
 0x3fa   : > { %v43283_v56 = vpack.c.bf16 %v5498_v33, %v5495_v50  ;;  %v5605_v29 = vsub.f32 %v5472_v37, %v5495_v50  ;;  %v34765_v43 = vpop.f32.mrb[10].mxu0 }
 0x3fb   : > { %v5613_v45 = vand.u32 4294901760, %v5612_v30  ;;  %v5504_v1 = vand.u32 4294901760, %v34765_v43  ;;  %v5484_v7 = vpop.f32.mrb[11].mxu0 }
 0x3fc   : > { %v5606_v24 = vand.u32 4294901760, %v5605_v29  ;;  %v5501_v8 = vand.u32 4294901760, %v5484_v7  ;;  %38631 = vmatprep.subr.bf16.mxu1 %v43283_v56  ;;  %v38646_v22 = vpack.c.bf16 %v5612_v30, %v5605_v29 }
 0x3fd   : > { %v5614_v58 = vsub.f32 %v5612_v30, %v5613_v45  ;;  %v5626_v60 = vsub.f32 %v34765_v43, %v5504_v1  ;;  %38633 = vmatpush3.bf16.msra.mxu1 %v43283_v56  ;;  %v7523_v43 = vld [vmem:[%s41106_s21] sm:$0xff] }
 0x3fe   : > { %v5607_v6 = vsub.f32 %v5605_v29, %v5606_v24  ;;  %v38634_v12 = vpack.c.bf16 %v5504_v1, %v5501_v8  ;;  %v5619_v52 = vsub.f32 %v5484_v7, %v5501_v8  ;;  %v38662_v20 = vpack.c.bf16 %v5613_v45, %v5606_v24  ;;  %v46351_v1 = vld [vmem:[#allocation75_spill] sm:$0xff]  ;;  %v46352_v24 = vld [vmem:[#allocation72_spill] sm:$0xff] }
 0x3ff   : > { %v5627_v10 = vand.u32 4294901760, %v5626_v60  ;;  %v5615_v39 = vand.u32 4294901760, %v5614_v58  ;;  %v7526_v45 = vsel %vm2701_vm0, %v7523_v43, 0 }
 0x400   : > { %v5620_v47 = vand.u32 4294901760, %v5619_v52  ;;  %38635 = vmatprep.subr.bf16.mxu1 %v38634_v12  ;;  %v5608_v31 = vand.u32 4294901760, %v5607_v6  ;;  %v38650_v33 = vpack.c.bf16 %v5626_v60, %v5619_v52  ;;  %v43335_v7 = vand.u32 4294901760, %v7526_v45 }
 0x401   : > { %v5628_v37 = vsub.f32 %v5626_v60, %v5627_v10  ;;  %38637 = vmatpush3.bf16.msra.mxu1 %v38634_v12  ;;  %v46354_v60 = vld [vmem:[#allocation77_spill] sm:$0xff] }
 0x402   : > { %v5621_v50 = vsub.f32 %v5619_v52, %v5620_v47  ;;  %v38638_v34 = vpack.c.bf16 %v5615_v39, %v5608_v31  ;;  %v38666_v40 = vpack.c.bf16 %v5627_v10, %v5620_v47  ;;  %v43341_v8 = vsub.f32 %v7526_v45, %v43335_v7  ;;  %v46357_v10 = vld [vmem:[#allocation27_spill] sm:$0xff]  ;;  %v46358_v39 = vld [vmem:[#allocation78_spill] sm:$0xff]  ;;  %v46359_v47 = vld [vmem:[#allocation80_spill] sm:$0xff] }
 0x403   : > { %v5629_v9 = vand.u32 4294901760, %v5628_v37  ;;  %v46360_v31 = vld [vmem:[#allocation30_spill] sm:$0xff]  ;;  %v7524_v37 = vld [vmem:[%s41106_s21 + $0x8] sm:$0xff] }
 0x404   : > { %34775 = vmatmul.mubr.f32.vlgmr.msra.gmra.mrb[8].mxu1 %v42462_v21  ;;  %38639 = vmatprep.subr.bf16.mxu1 %v38638_v34  ;;  %v5622_v30 = vand.u32 4294901760, %v5621_v50  ;;  %v46336_v21 = vld [vmem:[#allocation41_spill] sm:$0xff]  ;;  %v43345_v58 = vand.u32 4294901760, %v43341_v8  ;;  %v7529_v50 = vsel %vm2701_vm0, %v7524_v37, 0 }
 0x405   : > { %38641 = vmatpush3.bf16.msra.mxu1 %v38638_v34  ;;  %34777 = vmatprep.mubr.f32.mxu1 %v42464_v5  ;;  %v46335_v5 = vld [vmem:[#allocation39_spill] sm:$0xff]  ;;  %v46349_v34 = vld [vmem:[#allocation73_spill] sm:$0xff] }
 0x406   : > { %v38642_v29 = vpack.c.bf16 %v5629_v9, %v5622_v30  ;;  %v46347_v9 = vld [vmem:[#allocation22_spill] sm:$0xff]  ;;  %v7603_v6 = vsub.f32 %v43341_v8, %v43345_v58  ;;  %v43376_v30 = vand.u32 4294901760, %v7529_v50 }
 0x408   : > { %34778 = vmatmul.mubr.f32.gmra.mrb[10].mxu1 %v42468_v15  ;;  %38643 = vmatprep.subr.bf16.mxu1 %v38642_v29  ;;  %v46339_v15 = vld [vmem:[#allocation26_spill] sm:$0xff]  ;;  %v7604_v52 = vand.u32 4294901760, %v7603_v6 }
 0x409   : > { %38645 = vmatpush3.bf16.msra.mxu1 %v38642_v29  ;;  %34788 = vmatprep.mubr.f32.mxu1 %v42285_v28  ;;  %v43379_v29 = vsub.f32 %v7529_v50, %v43376_v30 }
 0x40a   : > { %38647 = vmatprep.subr.bf16.mxu1 %v38646_v22  ;;  %35464 = vmatprep.mubr.f32.mxu0 %v7604_v52 }
 0x40c   : > { %34789 = vmatmul.mubr.f32.vlgmr.msra.gmra.mrb[8].mxu1 %v42418_v62 }
 0x40d   : > { %38649 = vmatpush3.bf16.msra.mxu1 %v38646_v22  ;;  %34791 = vmatprep.mubr.f32.mxu1 %v42420_v63  ;;  %v46353_v22 = vld [vmem:[#allocation74_spill] sm:$0xff] }
 0x40e   : > { %38651 = vmatprep.subr.bf16.mxu1 %v38650_v33 }
 0x410   : > { %34792 = vmatmul.mubr.f32.gmra.mrb[10].mxu1 %v42422_v14 }
 0x411   : > { %38653 = vmatpush3.bf16.msra.mxu1 %v38650_v33  ;;  %34802 = vmatprep.mubr.f32.mxu1 %v42292_v2  ;;  %v46337_v2 = vld [vmem:[#allocation43_spill] sm:$0xff]  ;;  %v46361_v33 = vld [vmem:[#allocation46_spill] sm:$0xff] }
 0x412   : > { %38655 = vmatprep.subr.bf16.mxu1 %v43283_v56 }
 0x414   : > { %34803 = vmatmul.mubr.f32.vlgmr.msra.gmra.mrb[8].mxu1 %v42427_v32  ;;  %v46340_v32 = vld [vmem:[#allocation81_spill] sm:$0xff] }
 0x415   : > { %38657 = vmatpush3.bf16.msra.mxu1 %v43283_v56  ;;  %34805 = vmatprep.mubr.f32.mxu1 %v42430_v57  ;;  %v46341_v57 = vld [vmem:[#allocation24_spill] sm:$0xff] }
 0x416   : > { %38659 = vmatprep.subr.bf16.mxu1 %v38634_v12 }
 0x418   : > { %34806 = vmatmul.mubr.f32.gmra.mrb[10].mxu1 %v42434_v51  ;;  %v46344_v51 = vld [vmem:[#allocation34_spill] sm:$0xff] }
 0x419   : > { %38661 = vmatpush3.bf16.msra.mxu1 %v38634_v12  ;;  %34816 = vmatprep.mubr.f32.mxu1 %v42297_v3  ;;  %v46338_v3 = vld [vmem:[#allocation20_spill] sm:$0xff] }
 0x41a   : > { %38663 = vmatprep.subr.bf16.mxu1 %v38662_v20 }
 0x41c   : > { %34817 = vmatmul.mubr.f32.vlgmr.msra.gmra.mrb[8].mxu1 %v46335_v5 }
 0x41d   : > { %38665 = vmatpush3.bf16.msra.mxu1 %v38662_v20  ;;  %34819 = vmatprep.mubr.f32.mxu1 %v46336_v21  ;;  %v46356_v20 = vld [vmem:[#allocation76_spill] sm:$0xff] }
 0x41e   : > { %38667 = vmatprep.subr.bf16.mxu1 %v38666_v40 }
 0x420   : > { %34820 = vmatmul.mubr.f32.gmra.mrb[10].mxu1 %v46337_v2 }
 0x421   : > { %38669 = vmatpush3.bf16.msra.mxu1 %v38666_v40  ;;  %34830 = vmatprep.mubr.f32.mxu1 %v42285_v28  ;;  %v46348_v40 = vld [vmem:[#allocation71_spill] sm:$0xff] }
 0x422   : > { %38671 = vmatprep.subr.bf16.mxu1 %v43283_v56 }
 0x424   : > { %34831 = vmatmul.mubr.f32.vlgmr.msra.gmra.mrb[8].mxu1 %v42418_v62 }
 0x425   : > { %38673 = vmatpush3.bf16.msra.mxu1 %v43283_v56  ;;  %34833 = vmatprep.mubr.f32.mxu1 %v42420_v63  ;;  %v46350_v56 = vld [vmem:[#allocation28_spill] sm:$0xff] }
 0x426   : > { %38675 = vmatprep.subr.bf16.mxu1 %v38634_v12 }
 0x428   : > { %34834 = vmatmul.mubr.f32.gmra.mrb[10].mxu1 %v42422_v14 }
 0x429   : > { %38677 = vmatpush3.bf16.msra.mxu1 %v38634_v12  ;;  %34844 = vmatprep.mubr.f32.mxu1 %v42285_v28  ;;  %v46342_v28 = vld [vmem:[#allocation49_spill] sm:$0xff]  ;;  %v46355_v12 = vld [vmem:[#allocation79_spill] sm:$0xff] }
 0x42a   : > { %38679 = vmatprep.subr.bf16.mxu1 %v46338_v3 }
 0x42c   : > { %34845 = vmatmul.mubr.f32.vlgmr.msra.gmra.mrb[8].mxu1 %v42418_v62  ;;  %v46343_v62 = vld [vmem:[#allocation82_spill] sm:$0xff] }
 0x42d   : > { %38681 = vmatpush3.bf16.msra.mxu1 %v46338_v3  ;;  %34847 = vmatprep.mubr.f32.mxu1 %v42420_v63  ;;  %v46345_v63 = vld [vmem:[#allocation45_spill] sm:$0xff] }
 0x42e   : > { %38683 = vmatprep.subr.bf16.mxu1 %v46339_v15 }
 0x430   : > { %34848 = vmatmul.mubr.f32.gmra.mrb[10].mxu1 %v42422_v14  ;;  %v46346_v14 = vld [vmem:[#allocation51_spill] sm:$0xff] }
 0x431   : > { %38685 = vmatpush3.bf16.msra.mxu1 %v46339_v15  ;;  %34858 = vmatprep.mubr.f32.mxu1 %v46340_v32 }
 0x432   : > { %38687 = vmatprep.subr.bf16.mxu1 %v46341_v57 }
 0x434   : > { %34859 = vmatmul.mubr.f32.vlgmr.msra.gmra.mrb[8].mxu1 %v46342_v28 }
 0x435   : > { %38689 = vmatpush3.bf16.msra.mxu1 %v46341_v57  ;;  %34861 = vmatprep.mubr.f32.mxu1 %v46343_v62 }
 0x436   : > { %38691 = vmatprep.subr.bf16.mxu1 %v46344_v51 }
 0x438   : > { %34862 = vmatmul.mubr.f32.gmra.mrb[10].mxu1 %v46345_v63 }
 0x439   : > { %38693 = vmatpush3.bf16.msra.mxu1 %v46344_v51  ;;  %34872 = vmatprep.mubr.f32.mxu1 %v46346_v14 }
 0x43a   : > { %38695 = vmatprep.subr.bf16.mxu1 %v46347_v9 }
 0x43c   : > { %34873 = vmatmul.mubr.f32.vlgmr.msra.gmra.mrb[8].mxu1 %v46348_v40 }
 0x43d   : > { %38697 = vmatpush3.bf16.msra.mxu1 %v46347_v9  ;;  %34875 = vmatprep.mubr.f32.mxu1 %v46349_v34 }
 0x43e   : > { %38699 = vmatprep.subr.bf16.mxu1 %v46350_v56 }
 0x440   : > { %34876 = vmatmul.mubr.f32.gmra.mrb[10].mxu1 %v46351_v1 }
 0x441   : > { %38701 = vmatpush3.bf16.msra.mxu1 %v46350_v56  ;;  %34886 = vmatprep.mubr.f32.mxu1 %v46352_v24 }
 0x442   : > { %38703 = vmatprep.subr.bf16.mxu1 %v46338_v3 }
 0x444   : > { %34887 = vmatmul.mubr.f32.vlgmr.msra.gmra.mrb[8].mxu1 %v46353_v22 }
 0x445   : > { %38705 = vmatpush3.bf16.msra.mxu1 %v46338_v3  ;;  %34889 = vmatprep.mubr.f32.mxu1 %v46354_v60 }
 0x446   : > { %38707 = vmatprep.subr.bf16.mxu1 %v46339_v15 }
 0x448   : > { %34890 = vmatmul.mubr.f32.gmra.mrb[10].mxu1 %v46355_v12 }
 0x449   : > { %38709 = vmatpush3.bf16.msra.mxu1 %v46339_v15  ;;  %34900 = vmatprep.mubr.f32.mxu1 %v46356_v20 }
 0x44a   : > { %38711 = vmatprep.subr.bf16.mxu1 %v46357_v10 }
 0x44c   : > { %34901 = vmatmul.mubr.f32.vlgmr.msra.gmra.mrb[8].mxu1 %v46358_v39 }
 0x44d   : > { %38713 = vmatpush3.bf16.msra.mxu1 %v46357_v10  ;;  %34903 = vmatprep.mubr.f32.mxu1 %v46359_v47 }
 0x44e   : > { %38715 = vmatprep.subr.bf16.mxu1 %v46360_v31 }
 0x450   : > { %34904 = vmatmul.mubr.f32.gmra.mrb[10].mxu1 %v46361_v33 }
 0x451   : > { %38717 = vmatpush3.bf16.msra.mxu1 %v46360_v31  ;;  %34914 = vmatprep.mubr.f32.mxu1 %v46346_v14 }
 0x452   : > { %38719 = vmatprep.subr.bf16.mxu1 %v46338_v3 }
 0x454   : > { %34915 = vmatmul.mubr.f32.vlgmr.msra.gmra.mrb[8].mxu1 %v46348_v40 }
 0x455   : > { %38721 = vmatpush3.bf16.msra.mxu1 %v46338_v3  ;;  %34917 = vmatprep.mubr.f32.mxu1 %v46349_v34 }
 0x456   : > { %38723 = vmatprep.subr.bf16.mxu1 %v46339_v15 }
 0x458   : > { %34918 = vmatmul.mubr.f32.gmra.mrb[10].mxu1 %v46351_v1 }
 0x459   : > { %38725 = vmatpush3.bf16.msra.mxu1 %v46339_v15  ;;  %34928 = vmatprep.mubr.f32.mxu1 %v46346_v14  ;;  %v43382_v15 = vand.u32 4294901760, %v43379_v29 }
 0x45c   : > { %34929 = vmatmul.mubr.f32.vlgmr.msra.gmra.mrb[8].mxu1 %v46348_v40 }
 0x45d   : > { %34931 = vmatprep.mubr.f32.mxu1 %v46349_v34  ;;  %v7613_v34 = vsub.f32 %v43379_v29, %v43382_v15 }
 0x45f   : > { %v43386_v10 = vand.u32 4294901760, %v7613_v34  ;;  %v41015_v34 = vld [vmem:[%s42288_s18] sm:$0xff] }
 0x460   : > { %34932 = vmatmul.mubr.f32.gmra.mrb[10].mxu1 %v46351_v1 }
 0x461   : > { %35170 = vmatprep.mubr.f32.mxu1 %v7604_v52 }
 0x4b7   : > { %v35158_v5 = vpop.f32.mrb[12].mxu0 }
 0x4b8   : > { %v7535_v21 = vand.u32 4294901760, %v35158_v5  ;;  %v7501_v2 = vpop.f32.mrb[13].mxu0 }
 0x4b9   : > { %v7532_v3 = vand.u32 4294901760, %v7501_v2 }
 0x4ba   : > { %v7629_v32 = vsub.f32 %v35158_v5, %v7535_v21 }
 0x4bb   : > { %v38918_v57 = vpack.c.bf16 %v7535_v21, %v7532_v3  ;;  %v7622_v28 = vsub.f32 %v7501_v2, %v7532_v3  ;;  %v35161_v62 = vpop.f32.mrb[14].mxu0  ;;  %v41012_v3 = vld [vmem:[%s41470_s10 + $0x8] sm:$0xff] }
 0x4bc   : > { %v7630_v51 = vand.u32 4294901760, %v7629_v32  ;;  %v7541_v63 = vand.u32 4294901760, %v35161_v62  ;;  %v7513_v14 = vpop.f32.mrb[15].mxu0 }
 0x4bd   : > { %v7623_v9 = vand.u32 4294901760, %v7622_v28  ;;  %v7538_v40 = vand.u32 4294901760, %v7513_v14  ;;  %38919 = vmatprep.subr.bf16.mxu1 %v38918_v57  ;;  %v38934_v56 = vpack.c.bf16 %v7629_v32, %v7622_v28 }
 0x4be   : > { %v7631_v43 = vsub.f32 %v7629_v32, %v7630_v51  ;;  %v7643_v45 = vsub.f32 %v35161_v62, %v7541_v63  ;;  %38921 = vmatpush3.bf16.msra.mxu1 %v38918_v57  ;;  %v46362_v32 = vld [vmem:[#allocation36_spill] sm:$0xff] }
 0x4bf   : > { %v7624_v1 = vsub.f32 %v7622_v28, %v7623_v9  ;;  %v38922_v24 = vpack.c.bf16 %v7541_v63, %v7538_v40  ;;  %v7636_v22 = vsub.f32 %v7513_v14, %v7538_v40  ;;  %v38950_v60 = vpack.c.bf16 %v7630_v51, %v7623_v9  ;;  %v41013_v28 = vld [vmem:[%s42288_s18 + $0x8] sm:$0xff]  ;;  %v41014_v14 = vld [vmem:[%s41470_s10] sm:$0xff]  ;;  %v46363_v9 = vld [vmem:[#allocation38_spill] sm:$0xff] }
 0x4c0   : > { %v7644_v6 = vand.u32 4294901760, %v7643_v45  ;;  %v7632_v12 = vand.u32 4294901760, %v7631_v43  ;;  %v6722_v40 = vsub.f32 %v41014_v14, %v46363_v9 }
 0x4c1   : > { %v7637_v52 = vand.u32 4294901760, %v7636_v22  ;;  %38923 = vmatprep.subr.bf16.mxu1 %v38922_v24  ;;  %v7625_v20 = vand.u32 4294901760, %v7624_v1  ;;  %v38938_v39 = vpack.c.bf16 %v7643_v45, %v7636_v22 }
 0x4c2   : > { %v7645_v47 = vsub.f32 %v7643_v45, %v7644_v6  ;;  %38925 = vmatpush3.bf16.msra.mxu1 %v38922_v24 }
 0x4c3   : > { %v7638_v31 = vsub.f32 %v7636_v22, %v7637_v52  ;;  %v38926_v33 = vpack.c.bf16 %v7632_v12, %v7625_v20  ;;  %v38954_v37 = vpack.c.bf16 %v7644_v6, %v7637_v52  ;;  %v46364_v22 = vld [vmem:[#allocation29_spill] sm:$0xff]  ;;  %v41017_v6 = vld [vmem:[%s41470_s10 + $0x10] sm:$0xff] }
 0x4c4   : > { %v7646_v50 = vand.u32 4294901760, %v7645_v47  ;;  %v46365_v12 = vld [vmem:[#allocation58_spill] sm:$0xff] }
 0x4c5   : > { %38927 = vmatprep.subr.bf16.mxu1 %v38926_v33  ;;  %35171 = vmatmul.mubr.f32.vlgmr.msra.gmra.mrb[12].mxu1 %v43386_v10  ;;  %v7639_v5 = vand.u32 4294901760, %v7638_v31  ;;  %v6724_v52 = vsub.f32 %v41017_v6, %v46365_v12 }
 0x4c6   : > { %38929 = vmatpush3.bf16.msra.mxu1 %v38926_v33  ;;  %35181 = vmatprep.mubr.f32.mxu1 %v43335_v7  ;;  %v41018_v33 = vld [vmem:[%s42288_s18 + $0x18] sm:$0xff] }
 0x4c7   : > { %v38930_v21 = vpack.c.bf16 %v7646_v50, %v7639_v5 }
 0x4c9   : > { %38931 = vmatprep.subr.bf16.mxu1 %v38930_v21 }
 0x4ca   : > { %38933 = vmatpush3.bf16.msra.mxu1 %v38930_v21 }
 0x4cb   : > { %38935 = vmatprep.subr.bf16.mxu1 %v38934_v56 }
 0x4cd   : > { %35182 = vmatmul.mubr.f32.vlgmr.msra.gmra.mrb[12].mxu1 %v43376_v30 }
 0x4ce   : > { %38937 = vmatpush3.bf16.msra.mxu1 %v38934_v56  ;;  %35192 = vmatprep.mubr.f32.mxu1 %v43341_v8 }
 0x4cf   : > { %38939 = vmatprep.subr.bf16.mxu1 %v38938_v39 }
 0x4d2   : > { %38941 = vmatpush3.bf16.msra.mxu1 %v38938_v39 }
 0x4d3   : > { %38943 = vmatprep.subr.bf16.mxu1 %v38918_v57 }
 0x4d5   : > { %35193 = vmatmul.mubr.f32.vlgmr.msra.gmra.mrb[12].mxu1 %v43379_v29 }
 0x4d6   : > { %38945 = vmatpush3.bf16.msra.mxu1 %v38918_v57  ;;  %35203 = vmatprep.mubr.f32.mxu1 %v43345_v58 }
 0x4d7   : > { %38947 = vmatprep.subr.bf16.mxu1 %v38922_v24 }
 0x4da   : > { %38949 = vmatpush3.bf16.msra.mxu1 %v38922_v24 }
 0x4db   : > { %38951 = vmatprep.subr.bf16.mxu1 %v38950_v60 }
 0x4dd   : > { %35204 = vmatmul.mubr.f32.vlgmr.msra.gmra.mrb[12].mxu1 %v43382_v15 }
 0x4de   : > { %38953 = vmatpush3.bf16.msra.mxu1 %v38950_v60  ;;  %35214 = vmatprep.mubr.f32.mxu1 %v43335_v7 }
 0x4df   : > { %38955 = vmatprep.subr.bf16.mxu1 %v38954_v37 }
 0x4e2   : > { %38957 = vmatpush3.bf16.msra.mxu1 %v38954_v37 }
 0x4e3   : > { %38959 = vmatprep.subr.bf16.mxu1 %v38918_v57 }
 0x4e5   : > { %35215 = vmatmul.mubr.f32.vlgmr.msra.gmra.mrb[12].mxu1 %v43376_v30 }
 0x4e6   : > { %38961 = vmatpush3.bf16.msra.mxu1 %v38918_v57  ;;  %35225 = vmatprep.mubr.f32.mxu1 %v43335_v7  ;;  %v6723_v57 = vsub.f32 %v41012_v3, %v46362_v32 }
 0x4e7   : > { %38963 = vmatprep.subr.bf16.mxu1 %v38922_v24 }
 0x4ea   : > { %38965 = vmatpush3.bf16.msra.mxu1 %v38922_v24  ;;  %v41016_v24 = vld [vmem:[%s41470_s10 + $0x18] sm:$0xff]  ;;  %s46401_s10 = smov %s46400_s22 }
 0x4eb   : > { %38967 = vmatprep.subr.bf16.mxu1 %v42799_v41  ;;  %v6725_v60 = vsub.f32 %v41016_v24, %v46364_v22 }
 0x4ed   : > { %35226 = vmatmul.mubr.f32.vlgmr.msra.gmra.mrb[12].mxu1 %v43376_v30 }
 0x4ee   : > { %38969 = vmatpush3.bf16.msra.mxu1 %v42799_v41 }
 0x4ef   : > { %38971 = vmatprep.subr.bf16.mxu1 %v42811_v48 }
 0x4f2   : > { %38973 = vmatpush3.bf16.msra.mxu1 %v42811_v48 }
 0x4f3   : > { %38975 = vmatprep.subr.bf16.mxu1 %v42825_v13 }
 0x4f6   : > { %38977 = vmatpush3.bf16.msra.mxu1 %v42825_v13 }
 0x4f7   : > { %38979 = vmatprep.subr.bf16.mxu1 %v42838_v59 }
 0x4fa   : > { %38981 = vmatpush3.bf16.msra.mxu1 %v42838_v59 }
 0x4fb   : > { %38983 = vmatprep.subr.bf16.mxu1 %v42860_v42 }
 0x4fe   : > { %38985 = vmatpush3.bf16.msra.mxu1 %v42860_v42 }
 0x4ff   : > { %38987 = vmatprep.subr.bf16.mxu1 %v42886_v44 }
 0x502   : > { %38989 = vmatpush3.bf16.msra.mxu1 %v42886_v44 }
 0x503   : > { %38991 = vmatprep.subr.bf16.mxu1 %v42912_v53 }
 0x506   : > { %38993 = vmatpush3.bf16.msra.mxu1 %v42912_v53 }
 0x507   : > { %38995 = vmatprep.subr.bf16.mxu1 %v42947_v16 }
 0x50a   : > { %38997 = vmatpush3.bf16.msra.mxu1 %v42947_v16 }
 0x50b   : > { %38999 = vmatprep.subr.bf16.mxu1 %v42985_v36 }
 0x52f   : > { %v34930_v2 = vpop.f32.mrb[8].mxu1 }
 0x530   : > { %v6727_v62 = vsub.f32 %v41013_v28, %v34930_v2  ;;  %v43419_v51 = vand.u32 4294901760, %v34930_v2  ;;  %v6700_v63 = vpop.f32.mrb[9].mxu1 }
 0x531   : > { %v6726_v56 = vsub.f32 %v41015_v34, %v6700_v63  ;;  %v43424_v43 = vand.u32 4294901760, %v6700_v63 }
 0x532   : > { %v6731_v45 = vsub.f32 %v6723_v57, %v6727_v62  ;;  %v43427_v1 = vsub.f32 %v34930_v2, %v43419_v51  ;;  %v41019_v2 = vld [vmem:[%s42288_s18 + $0x10] sm:$0xff]  ;;  %s46402_s18 = sld [smem:[#allocation14_spill]] }
 0x533   : > { %v6730_v20 = vsub.f32 %v6722_v40, %v6726_v56  ;;  %v43434_v39 = vsub.f32 %v6700_v63, %v43424_v43  ;;  %v34933_v47 = vpop.f32.mrb[10].mxu1 }
 0x534   : > { %v8152_v31 = vand.u32 4294901760, %v43427_v1  ;;  %v6729_v37 = vsub.f32 %v41018_v33, %v34933_v47  ;;  %v43438_v50 = vand.u32 4294901760, %v34933_v47  ;;  %v6712_v5 = vpop.f32.mrb[11].mxu1  ;;  %v6735_v21 = vand.u32 2147483647, %v6731_v45 }
 0x535   : > { %v6728_v3 = vsub.f32 %v41019_v2, %v6712_v5  ;;  %v43441_v32 = vand.u32 4294901760, %v6712_v5  ;;  %v8142_v57 = vand.u32 4294901760, %v43434_v39  ;;  %v6734_v28 = vand.u32 2147483647, %v6730_v20 }
 0x536   : > { %v43445_v62 = vsub.f32 %v34933_v47, %v43438_v50  ;;  %v8153_v63 = vsub.f32 %v43427_v1, %v8152_v31  ;;  %v6733_v14 = vsub.f32 %v6725_v60, %v6729_v37 }
 0x537   : > { %v43451_v9 = vsub.f32 %v6712_v5, %v43441_v32  ;;  %v8143_v40 = vsub.f32 %v43434_v39, %v8142_v57  ;;  %v6732_v34 = vsub.f32 %v6724_v52, %v6728_v3  ;;  %v6738_v56 = vadd.f32 %v6735_v21, %v6734_v28  ;;  %v9374_v28 = vld [vmem:[%s41146_s30 + $0x28] sm:$0xff] }
 0x538   : > { %v8172_v45 = vand.u32 4294901760, %v43445_v62  ;;  %v8154_v12 = vand.u32 4294901760, %v8153_v63  ;;  %v6737_v47 = vand.u32 2147483647, %v6733_v14  ;;  %v9376_v63 = vld [vmem:[%s41146_s30 + $0x38] sm:$0xff] }
 0x539   : > { %v8144_v24 = vand.u32 4294901760, %v8143_v40  ;;  %v8162_v22 = vand.u32 4294901760, %v43451_v9  ;;  %v6736_v6 = vand.u32 2147483647, %v6732_v34 }
 0x53a   : > { %v8173_v60 = vsub.f32 %v43445_v62, %v8172_v45 }
 0x53b   : > { %35260 = vmatprep.mubr.f32.mxu1 %v8144_v24  ;;  %v8163_v20 = vsub.f32 %v43451_v9, %v8162_v22  ;;  %v6739_v33 = vadd.f32 %v6738_v56, %v6736_v6  ;;  %v9988_v24 = vand.u32 4294901760, %v9374_v28  ;;  %v9994_v6 = vand.u32 4294901760, %v9376_v63 }
 0x53c   : > { %35261 = vmatmul.mubr.f32.vlgmr.msra.gmra.mrb[14].mxu1 %v8154_v12  ;;  %v8174_v5 = vand.u32 4294901760, %v8173_v60 }
 0x53d   : > { %39001 = vmatpush3.bf16.msra.mxu1 %v42985_v36  ;;  %v8164_v52 = vand.u32 4294901760, %v8163_v20  ;;  %v6740_v37 = vadd.f32 %v6739_v33, %v6737_v47  ;;  %v46367_v36 = vld [vmem:[#allocation37_spill] sm:$0xff] }
 0x53e   : > { %39003 = vmatprep.subr.bf16.mxu1 %v43008_v0 }
 0x53f   : > { %35263 = vmatprep.mubr.f32.mxu1 %v8164_v52  ;;  %6741 = vadd.xlane.f32.xlu0 %v6740_v37 }
 0x540   : > { %35264 = vmatmul.mubr.f32.gmra.mrb[16].mxu1 %v8174_v5 }
 0x541   : > { %39005 = vmatpush3.bf16.msra.mxu1 %v43008_v0  ;;  %35298 = vmatprep.mubr.f32.mxu1 %v43424_v43  ;;  %v46366_v0 = vld [vmem:[#allocation40_spill] sm:$0xff] }
 0x542   : > { %39007 = vmatprep.subr.bf16.mxu1 %v43048_v18 }
 0x545   : > { %39009 = vmatpush3.bf16.msra.mxu1 %v43048_v18  ;;  %v46368_v18 = vld [vmem:[#allocation42_spill] sm:$0xff] }
 0x546   : > { %39011 = vmatprep.subr.bf16.mxu1 %v43060_v55 }
 0x549   : > { %39013 = vmatpush3.bf16.msra.mxu1 %v43060_v55  ;;  %v46369_v55 = vld [vmem:[#allocation44_spill] sm:$0xff] }
 0x54a   : > { %39015 = vmatprep.subr.bf16.mxu1 %v43084_v4 }
 0x54d   : > { %39017 = vmatpush3.bf16.msra.mxu1 %v43084_v4 }
 0x54e   : > { %39019 = vmatprep.subr.bf16.mxu1 %v43096_v25 }
 0x551   : > { %39021 = vmatpush3.bf16.msra.mxu1 %v43096_v25 }
 0x552   : > { %39023 = vmatprep.subr.bf16.mxu1 %v43107_v61 }
 0x555   : > { %39025 = vmatpush3.bf16.msra.mxu1 %v43107_v61  ;;  %v46371_v61 = vld [vmem:[#allocation50_spill] sm:$0xff] }
 0x556   : > { %39027 = vmatprep.subr.bf16.mxu1 %v43111_v27 }
 0x559   : > { %39029 = vmatpush3.bf16.msra.mxu1 %v43111_v27 }
 0x55a   : > { %39031 = vmatprep.subr.bf16.mxu1 %v43117_v46 }
 0x55c   : > { %35299 = vmatmul.mubr.f32.vlgmr.msra.gmra.mrb[14].mxu1 %v43419_v51 }
 0x55d   : > { %35301 = vmatprep.mubr.f32.mxu1 %v43441_v32  ;;  %39033 = vmatpush3.bf16.msra.mxu1 %v43117_v46  ;;  %v9369_v46 = vld [vmem:[%s41146_s30] sm:$0xff] }
 0x55e   : > { %39035 = vmatprep.subr.bf16.mxu1 %v43123_v54 }
 0x560   : > { %35302 = vmatmul.mubr.f32.gmra.mrb[16].mxu1 %v43438_v50 }
 0x561   : > { %39037 = vmatpush3.bf16.msra.mxu1 %v43123_v54  ;;  %35336 = vmatprep.mubr.f32.mxu1 %v43434_v39  ;;  %v9370_v54 = vld [vmem:[%s41146_s30 + $0x8] sm:$0xff] }
 0x562   : > { %39039 = vmatprep.subr.bf16.mxu1 %v43131_v23 }
 0x565   : > { %39041 = vmatpush3.bf16.msra.mxu1 %v43131_v23 }
 0x566   : > { %39043 = vmatprep.subr.bf16.mxu1 %v43139_v11 }
 0x569   : > { %39045 = vmatpush3.bf16.msra.mxu1 %v43139_v11  ;;  %v9976_v11 = vand.u32 4294901760, %v9370_v54 }
 0x56a   : > { %39047 = vmatprep.subr.bf16.mxu1 %v43145_v49 }
 0x56d   : > { %39049 = vmatpush3.bf16.msra.mxu1 %v43145_v49 }
 0x56e   : > { %39051 = vmatprep.subr.bf16.mxu1 %v46366_v0 }
 0x571   : > { %39053 = vmatpush3.bf16.msra.mxu1 %v46366_v0 }
 0x572   : > { %39055 = vmatprep.subr.bf16.mxu1 %v46367_v36 }
 0x575   : > { %39057 = vmatpush3.bf16.msra.mxu1 %v46367_v36 }
 0x576   : > { %39059 = vmatprep.subr.bf16.mxu1 %v46368_v18 }
 0x579   : > { %39061 = vmatpush3.bf16.msra.mxu1 %v46368_v18 }
 0x57a   : > { %39063 = vmatprep.subr.bf16.mxu1 %v42799_v41 }
 0x57c   : > { %35337 = vmatmul.mubr.f32.vlgmr.msra.gmra.mrb[14].mxu1 %v43427_v1 }
 0x57d   : > { %35339 = vmatprep.mubr.f32.mxu1 %v43451_v9  ;;  %39065 = vmatpush3.bf16.msra.mxu1 %v42799_v41 }
 0x57e   : > { %39067 = vmatprep.subr.bf16.mxu1 %v42811_v48 }
 0x580   : > { %35340 = vmatmul.mubr.f32.gmra.mrb[16].mxu1 %v43445_v62  ;;  %v9375_v62 = vld [vmem:[%s41146_s30 + $0x30] sm:$0xff] }
 0x581   : > { %39069 = vmatpush3.bf16.msra.mxu1 %v42811_v48  ;;  %35374 = vmatprep.mubr.f32.mxu1 %v8142_v57  ;;  %v9373_v57 = vld [vmem:[%s41146_s30 + $0x20] sm:$0xff] }
 0x582   : > { %39071 = vmatprep.subr.bf16.mxu1 %v42825_v13 }
 0x585   : > { %39073 = vmatpush3.bf16.msra.mxu1 %v42825_v13 }
 0x586   : > { %39075 = vmatprep.subr.bf16.mxu1 %v42838_v59 }
 0x589   : > { %39077 = vmatpush3.bf16.msra.mxu1 %v42838_v59 }
 0x58a   : > { %39079 = vmatprep.subr.bf16.mxu1 %v42860_v42 }
 0x58d   : > { %39081 = vmatpush3.bf16.msra.mxu1 %v42860_v42 }
 0x58e   : > { %39083 = vmatprep.subr.bf16.mxu1 %v42886_v44 }
 0x591   : > { %39085 = vmatpush3.bf16.msra.mxu1 %v42886_v44 }
 0x592   : > { %39087 = vmatprep.subr.bf16.mxu1 %v42912_v53 }
 0x595   : > { %39089 = vmatpush3.bf16.msra.mxu1 %v42912_v53 }
 0x596   : > { %39091 = vmatprep.subr.bf16.mxu1 %v42947_v16 }
 0x599   : > { %39093 = vmatpush3.bf16.msra.mxu1 %v42947_v16 }
 0x59a   : > { %39095 = vmatprep.subr.bf16.mxu1 %v43192_v38 }
 0x59c   : > { %35375 = vmatmul.mubr.f32.vlgmr.msra.gmra.mrb[14].mxu1 %v8152_v31 }
 0x59d   : > { %35377 = vmatprep.mubr.f32.mxu1 %v8162_v22  ;;  %39097 = vmatpush3.bf16.msra.mxu1 %v43192_v38  ;;  %v46370_v38 = vld [vmem:[#allocation48_spill] sm:$0xff]  ;;  %v9991_v22 = vand.u32 4294901760, %v9375_v62 }
 0x59e   : > { %39099 = vmatprep.subr.bf16.mxu1 %v43200_v26 }
 0x59f   : > { %v43631_v5 = vpack.c.bf16 %v9994_v6, %v9991_v22 }
 0x5a0   : > { %35378 = vmatmul.mubr.f32.gmra.mrb[16].mxu1 %v8172_v45  ;;  %v9985_v45 = vand.u32 4294901760, %v9373_v57 }
 0x5a1   : > { %39101 = vmatpush3.bf16.msra.mxu1 %v43200_v26  ;;  %35412 = vmatprep.mubr.f32.mxu1 %v43424_v43 }
 0x5a2   : > { %39103 = vmatprep.subr.bf16.mxu1 %v43212_v19  ;;  %v43618_v33 = vsub.f32 %v9373_v57, %v9985_v45  ;;  %v43624_v52 = vpack.c.bf16 %v9988_v24, %v9985_v45 }
 0x5a5   : > { %39105 = vmatpush3.bf16.msra.mxu1 %v43212_v19  ;;  %v9371_v19 = vld [vmem:[%s41146_s30 + $0x10] sm:$0xff] }
 0x5a6   : > { %39107 = vmatprep.subr.bf16.mxu1 %v43223_v17  ;;  %v9979_v39 = vand.u32 4294901760, %v9371_v19 }
 0x5a8   : > { %v43596_v9 = vsub.f32 %v9371_v19, %v9979_v39 }
 0x5a9   : > { %39109 = vmatpush3.bf16.msra.mxu1 %v43223_v17  ;;  %v9372_v17 = vld [vmem:[%s41146_s30 + $0x18] sm:$0xff] }
 0x5aa   : > { %39111 = vmatprep.subr.bf16.mxu1 %v43231_v35  ;;  %v9982_v31 = vand.u32 4294901760, %v9372_v17  ;;  %v10082_v20 = vand.u32 4294901760, %v43596_v9 }
 0x5ac   : > { %v43598_v40 = vsub.f32 %v9372_v17, %v9982_v31  ;;  %v43603_v56 = vpack.c.bf16 %v9982_v31, %v9979_v39  ;;  %v10083_v18 = vsub.f32 %v43596_v9, %v10082_v20 }
 0x5ad   : > { %39113 = vmatpush3.bf16.msra.mxu1 %v43231_v35 }
 0x5ae   : > { %39115 = vmatprep.subr.bf16.mxu1 %v46369_v55  ;;  %v10089_v47 = vand.u32 4294901760, %v43598_v40  ;;  %v43693_v45 = vpack.c.bf16 %v43598_v40, %v43596_v9 }
 0x5b0   : > { %46376 = vst [vmem:[#allocation21_spill] sm:$0xff] %v43693_v45 }
 0x5b1   : > { %39117 = vmatpush3.bf16.msra.mxu1 %v46369_v55  ;;  %v10090_v55 = vsub.f32 %v43598_v40, %v10089_v47 }
 0x5b2   : > { %39119 = vmatprep.subr.bf16.mxu1 %v46370_v38 }
 0x5b5   : > { %39121 = vmatpush3.bf16.msra.mxu1 %v46370_v38  ;;  %v10096_v38 = vand.u32 4294901760, %v43618_v33 }
 0x5b6   : > { %39123 = vmatprep.subr.bf16.mxu1 %v46371_v61 }
 0x5b9   : > { %39125 = vmatpush3.bf16.msra.mxu1 %v46371_v61 }
 0x5ba   : > { %39127 = vmatprep.subr.bf16.mxu1 %v42799_v41 }
 0x5bc   : > { %35413 = vmatmul.mubr.f32.vlgmr.msra.gmra.mrb[14].mxu1 %v43419_v51 }
 0x5bd   : > { %35415 = vmatprep.mubr.f32.mxu1 %v43441_v32  ;;  %39129 = vmatpush3.bf16.msra.mxu1 %v42799_v41 }
 0x5be   : > { %39131 = vmatprep.subr.bf16.mxu1 %v42811_v48 }
 0x5c0   : > { %v43549_v4 = vpop.f32.mrb[12].mxu1  ;;  %35416 = vmatmul.mubr.f32.gmra.mrb[16].mxu1 %v43438_v50 }
 0x5c1   : > { %46372 = vst [vmem:[#allocation52_spill] sm:$0xff] %v43549_v4  ;;  %v43552_v26 = vpop.f32.mrb[13].mxu1  ;;  %39133 = vmatpush3.bf16.msra.mxu1 %v42811_v48  ;;  %35450 = vmatprep.mubr.f32.mxu1 %v43424_v43  ;;  %v9390_v21 = vsel %vm9385_vm1, %v43549_v4, 0 }
 0x5c2   : > { %46373 = vst [vmem:[#allocation53_spill] sm:$0xff] %v43552_v26  ;;  %39135 = vmatprep.subr.bf16.mxu1 %v42825_v13  ;;  %v9387_v41 = vsel %vm9385_vm1, %v43552_v26, 0  ;;  %v43600_v34 = vand.u32 4294901760, %v9390_v21 }
 0x5c3   : > { %v43565_v27 = vand.u32 4294901760, %v9387_v41 }
 0x5c5   : > { %39137 = vmatpush3.bf16.msra.mxu1 %v42825_v13  ;;  %v43572_v49 = vsub.f32 %v9387_v41, %v43565_v27  ;;  %v43647_v41 = vsub.f32 %v9375_v62, %v9991_v22 }
 0x5c6   : > { %39139 = vmatprep.subr.bf16.mxu1 %v42838_v59 }
 0x5c7   : > { %v43587_v3 = vand.u32 4294901760, %v43572_v49 }
 0x5c9   : > { %39141 = vmatpush3.bf16.msra.mxu1 %v42838_v59  ;;  %v9973_v59 = vand.u32 4294901760, %v9369_v46 }
 0x5ca   : > { %39143 = vmatprep.subr.bf16.mxu1 %v42860_v42 }
 0x5cb   : > { %v43576_v35 = vsub.f32 %v9369_v46, %v9973_v59  ;;  %v43582_v1 = vpack.c.bf16 %v9976_v11, %v9973_v59  ;;  %v10091_v46 = vand.u32 4294901760, %v10090_v55 }
 0x5cc   : > { %v6742_v25 = vpop.xlane.xlu0 %6741 }
 0x5cd   : > { %39145 = vmatpush3.bf16.msra.mxu1 %v42860_v42  ;;  %v6743_v48 = vrot.slane %v6742_v25, 4 }
 0x5ce   : > { %39147 = vmatprep.subr.bf16.mxu1 %v42886_v44 }
 0x5cf   : > { %v6744_v13 = vadd.f32 %v6743_v48, %v6742_v25  ;;  %v43649_v25 = vsub.f32 %v9376_v63, %v9994_v6  ;;  %v43733_v6 = vpack.c.bf16 %v10089_v47, %v10082_v20 }
 0x5d1   : > { %v6745_v23 = vrot.slane %v6744_v13, 2  ;;  %39149 = vmatpush3.bf16.msra.mxu1 %v42886_v44  ;;  %v43579_v44 = vsub.f32 %v9370_v54, %v9976_v11  ;;  %v10097_v54 = vsub.f32 %v43618_v33, %v10096_v38  ;;  %v10110_v11 = vand.u32 4294901760, %v43647_v41  ;;  %46380 = vst [vmem:[#allocation68_spill] sm:$0xff] %v43733_v6 }
 0x5d2   : > { %39151 = vmatprep.subr.bf16.mxu1 %v42912_v53 }
 0x5d3   : > { %v6746_v42 = vadd.f32 %v6745_v23, %v6744_v13  ;;  %v10075_v14 = vand.u32 4294901760, %v43579_v44  ;;  %v10084_v13 = vand.u32 4294901760, %v10083_v18  ;;  %v10098_v17 = vand.u32 4294901760, %v10097_v54 }
 0x5d4   : > { %v10111_v31 = vsub.f32 %v43647_v41, %v10110_v11  ;;  %v43687_v63 = vpack.c.bf16 %v43579_v44, %v43576_v35 }
 0x5d5   : > { %39153 = vmatpush3.bf16.msra.mxu1 %v42912_v53  ;;  %v6747_v43 = vrot.slane %v6746_v42, 1  ;;  %v10068_v53 = vand.u32 4294901760, %v43576_v35  ;;  %v10076_v60 = vsub.f32 %v43579_v44, %v10075_v14  ;;  %v43666_v19 = vpack.c.bf16 %v10091_v46, %v10084_v13 }
 0x5d6   : > { %39155 = vmatprep.subr.bf16.mxu1 %v42947_v16  ;;  %v10112_v57 = vand.u32 4294901760, %v10111_v31  ;;  %46375 = vst [vmem:[#allocation64_spill] sm:$0xff] %v43687_v63 }
 0x5d7   : > { %v6748_v2 = vadd.f32 %v6747_v43, %v6746_v42  ;;  %v10069_v12 = vsub.f32 %v43576_v35, %v10068_v53  ;;  %v10077_v36 = vand.u32 4294901760, %v10076_v60  ;;  %v10117_v42 = vand.u32 4294901760, %v43649_v25  ;;  %v9364_v60 = vld [vmem:[%s41141_s24 + $0x18] sm:$0xff] }
 0x5d8   : > { %v43725_v22 = vpack.c.bf16 %v10075_v14, %v10068_v53  ;;  %v9361_v53 = vld [vmem:[%s41141_s24] sm:$0xff]  ;;  %v9362_v14 = vld [vmem:[%s41141_s24 + $0x8] sm:$0xff]  ;;  %v9402_v47 = vand.u32 4294901760, %v9364_v60 }
 0x5d9   : > { %39157 = vmatpush3.bf16.msra.mxu1 %v42947_v16  ;;  %40942 = vpush %v6748_v2  ;;  %v9468_v16 = vsub.f32 %v43572_v49, %v43587_v3  ;;  %v10070_v0 = vand.u32 4294901760, %v10069_v12  ;;  %v43747_v44 = vpack.c.bf16 %v10117_v42, %v10110_v11  ;;  %v9393_v9 = vand.u32 4294901760, %v9361_v53  ;;  %v9363_v12 = vld [vmem:[%s41141_s24 + $0x10] sm:$0xff] }
 0x5da   : > { %39303 = vmatprep.subr.bf16.mxu1 %v43582_v1  ;;  %46379 = vst [vmem:[#allocation67_spill] sm:$0xff] %v43725_v22  ;;  %v9396_v40 = vand.u32 4294901760, %v9362_v14  ;;  %v9399_v20 = vand.u32 4294901760, %v9363_v12  ;;  %v9508_v31 = vsub.f32 %v9364_v60, %v9402_v47 }
 0x5db   : > { %v43628_v37 = vand.u32 4294901760, %v9468_v16  ;;  %v43652_v48 = vpack.c.bf16 %v10077_v36, %v10070_v0  ;;  %v43707_v16 = vpack.c.bf16 %v43649_v25, %v43647_v41  ;;  %46382 = vst [vmem:[#allocation70_spill] sm:$0xff] %v43747_v44  ;;  %v9365_v0 = vld [vmem:[%s41141_s24 + $0x20] sm:$0xff]  ;;  %v9366_v36 = vld [vmem:[%s41141_s24 + $0x28] sm:$0xff]  ;;  %v9368_v41 = vld [vmem:[%s41141_s24 + $0x38] sm:$0xff]  ;;  %v9487_v46 = vsub.f32 %v9361_v53, %v9393_v9 }
 0x5dc   : > { %35451 = vmatmul.mubr.f32.vlgmr.msra.gmra.mrb[14].mxu1 %v43419_v51  ;;  %v43621_v51 = vsub.f32 %v9390_v21, %v43600_v34  ;;  %v10118_v21 = vsub.f32 %v43649_v25, %v10117_v42  ;;  %v9405_v18 = vand.u32 4294901760, %v9365_v0  ;;  %v9408_v55 = vand.u32 4294901760, %v9366_v36 }
 0x5dd   : > { %35453 = vmatprep.mubr.f32.mxu1 %v43441_v32  ;;  %39305 = vmatpush3.bf16.msra.mxu1 %v43582_v1  ;;  %v43626_v32 = vsub.f32 %v9374_v28, %v9988_v24  ;;  %46378 = vst [vmem:[#allocation66_spill] sm:$0xff] %v43707_v16  ;;  %v9414_v13 = vand.u32 4294901760, %v9368_v41  ;;  %v9494_v54 = vsub.f32 %v9362_v14, %v9396_v40  ;;  %v9509_v26 = vand.u32 4294901760, %v9508_v31 }
 0x5de   : > { %39307 = vmatprep.subr.bf16.mxu1 %v43603_v56  ;;  %v10119_v28 = vand.u32 4294901760, %v10118_v21  ;;  %v9522_v4 = vsub.f32 %v9366_v36, %v9408_v55 }
 0x5df   : > { %v10103_v61 = vand.u32 4294901760, %v43626_v32  ;;  %v43701_v24 = vpack.c.bf16 %v43626_v32, %v43618_v33  ;;  %v43767_v33 = vpack.c.bf16 %v9396_v40, %v9393_v9  ;;  %v9495_v11 = vand.u32 4294901760, %v9494_v54 }
 0x5e0   : > { %35454 = vmatmul.mubr.f32.gmra.mrb[16].mxu1 %v43438_v50  ;;  %v43643_v50 = vand.u32 4294901760, %v43621_v51  ;;  %v43681_v62 = vpack.c.bf16 %v10119_v28, %v10112_v57  ;;  %v9510_v9 = vsub.f32 %v9508_v31, %v9509_v26  ;;  %v9515_v40 = vsub.f32 %v9365_v0, %v9405_v18 }
 0x5e1   : > { %39309 = vmatpush3.bf16.msra.mxu1 %v43603_v56  ;;  %35652 = vmatprep.mubr.f32.mxu1 %v43628_v37  ;;  %v10104_v59 = vsub.f32 %v43626_v32, %v10103_v61  ;;  %46377 = vst [vmem:[#allocation65_spill] sm:$0xff] %v43701_v24  ;;  %v43743_v35 = vpack.c.bf16 %v10103_v61, %v10096_v38  ;;  %v9367_v61 = vld [vmem:[%s41141_s24 + $0x30] sm:$0xff] }
 0x5e2   : > { %39311 = vmatprep.subr.bf16.mxu1 %v43624_v52  ;;  %v9478_v23 = vsub.f32 %v43621_v51, %v43643_v50  ;;  %46374 = vst [vmem:[#allocation62_spill] sm:$0xff] %v43681_v62  ;;  %v43769_v32 = vpack.c.bf16 %v9402_v47, %v9399_v20  ;;  %v43776_v38 = vpack.c.bf16 %v9408_v55, %v9405_v18  ;;  %v9411_v25 = vand.u32 4294901760, %v9367_v61 }
 0x5e3   : > { %v10105_v39 = vand.u32 4294901760, %v10104_v59  ;;  %46381 = vst [vmem:[#allocation69_spill] sm:$0xff] %v43743_v35  ;;  %v9488_v59 = vand.u32 4294901760, %v9487_v46 }
 0x5e4   : > { %v43668_v43 = vand.u32 4294901760, %v9478_v23  ;;  %v43782_v23 = vpack.c.bf16 %v9414_v13, %v9411_v25  ;;  %v9529_v47 = vsub.f32 %v9367_v61, %v9411_v25 }
 0x5e5   : > { %39313 = vmatpush3.bf16.msra.mxu1 %v43624_v52  ;;  %v43677_v2 = vpack.c.bf16 %v10105_v39, %v10098_v17  ;;  %v9489_v42 = vsub.f32 %v9487_v46, %v9488_v59  ;;  %v9496_v17 = vsub.f32 %v9494_v54, %v9495_v11  ;;  %v9501_v39 = vsub.f32 %v9363_v12, %v9399_v20 }
 0x5e6   : > { %39315 = vmatprep.subr.bf16.mxu1 %v43631_v5  ;;  %v9523_v12 = vand.u32 4294901760, %v9522_v4 }
 0x5e7   : > { %v9490_v21 = vand.u32 4294901760, %v9489_v42  ;;  %v9497_v57 = vand.u32 4294901760, %v9496_v17  ;;  %v9502_v28 = vand.u32 4294901760, %v9501_v39  ;;  %v9536_v42 = vsub.f32 %v9368_v41, %v9414_v13 }
 0x5e8   : > { %v9524_v17 = vsub.f32 %v9522_v4, %v9523_v12  ;;  %v43804_v41 = vpack.c.bf16 %v9495_v11, %v9488_v59 }
 0x5e9   : > { %39317 = vmatpush3.bf16.msra.mxu1 %v43631_v5  ;;  %v43787_v53 = vpack.c.bf16 %v9497_v57, %v9490_v21  ;;  %v9503_v14 = vsub.f32 %v9501_v39, %v9502_v28  ;;  %v9537_v21 = vand.u32 4294901760, %v9536_v42  ;;  %v43802_v61 = vpack.c.bf16 %v9536_v42, %v9529_v47 }
 0x5ea   : > { %39319 = vmatprep.subr.bf16.mxu1 %v43652_v48  ;;  %v9525_v57 = vand.u32 4294901760, %v9524_v17  ;;  %v43806_v25 = vpack.c.bf16 %v9509_v26, %v9502_v28 }
 0x5ec   : > { %35653 = vmatmul.mubr.f32.vlgmr.msra.gmra.mrb[18].mxu1 %v43668_v43 }
 0x5ed   : > { %39321 = vmatpush3.bf16.msra.mxu1 %v43652_v48  ;;  %35671 = vmatprep.mubr.f32.mxu1 %v43565_v27 }
 0x5ee   : > { %39323 = vmatprep.subr.bf16.mxu1 %v43666_v19 }
 0x5f1   : > { %39325 = vmatpush3.bf16.msra.mxu1 %v43666_v19 }
 0x5f2   : > { %39327 = vmatprep.subr.bf16.mxu1 %v43677_v2 }
 0x5f5   : > { %39329 = vmatpush3.bf16.msra.mxu1 %v43677_v2 }
 0x5f6   : > { %39331 = vmatprep.subr.bf16.mxu1 %v43681_v62 }
 0x5f9   : > { %39333 = vmatpush3.bf16.msra.mxu1 %v43681_v62 }
 0x5fa   : > { %39335 = vmatprep.subr.bf16.mxu1 %v43687_v63 }
 0x5fc   : > { %35672 = vmatmul.mubr.f32.vlgmr.msra.gmra.mrb[18].mxu1 %v43600_v34 }
 0x5fd   : > { %39337 = vmatpush3.bf16.msra.mxu1 %v43687_v63  ;;  %35690 = vmatprep.mubr.f32.mxu1 %v43572_v49 }
 0x5fe   : > { %39339 = vmatprep.subr.bf16.mxu1 %v43693_v45 }
 0x601   : > { %39341 = vmatpush3.bf16.msra.mxu1 %v43693_v45  ;;  %v9538_v45 = vsub.f32 %v9536_v42, %v9537_v21 }
 0x602   : > { %39343 = vmatprep.subr.bf16.mxu1 %v43701_v24 }
 0x603   : > { %v9539_v18 = vand.u32 4294901760, %v9538_v45 }
 0x605   : > { %39345 = vmatpush3.bf16.msra.mxu1 %v43701_v24 }
 0x606   : > { %39347 = vmatprep.subr.bf16.mxu1 %v43707_v16 }
 0x609   : > { %39349 = vmatpush3.bf16.msra.mxu1 %v43707_v16  ;;  %v9530_v16 = vand.u32 4294901760, %v9529_v47 }
 0x60a   : > { %39351 = vmatprep.subr.bf16.mxu1 %v43582_v1 }
 0x60b   : > { %v9531_v24 = vsub.f32 %v9529_v47, %v9530_v16 }
 0x60c   : > { %35691 = vmatmul.mubr.f32.vlgmr.msra.gmra.mrb[18].mxu1 %v43621_v51 }
 0x60d   : > { %39353 = vmatpush3.bf16.msra.mxu1 %v43582_v1  ;;  %35709 = vmatprep.mubr.f32.mxu1 %v43587_v3  ;;  %v9532_v36 = vand.u32 4294901760, %v9531_v24 }
 0x60e   : > { %39355 = vmatprep.subr.bf16.mxu1 %v43603_v56 }
 0x60f   : > { %v43794_v55 = vpack.c.bf16 %v9539_v18, %v9532_v36 }
 0x611   : > { %39357 = vmatpush3.bf16.msra.mxu1 %v43603_v56 }
 0x612   : > { %39359 = vmatprep.subr.bf16.mxu1 %v43624_v52 }
 0x615   : > { %39361 = vmatpush3.bf16.msra.mxu1 %v43624_v52 }
 0x616   : > { %39363 = vmatprep.subr.bf16.mxu1 %v43631_v5 }
 0x619   : > { %39365 = vmatpush3.bf16.msra.mxu1 %v43631_v5 }
 0x61a   : > { %39367 = vmatprep.subr.bf16.mxu1 %v43725_v22 }
 0x61c   : > { %35710 = vmatmul.mubr.f32.vlgmr.msra.gmra.mrb[18].mxu1 %v43643_v50 }
 0x61d   : > { %39369 = vmatpush3.bf16.msra.mxu1 %v43725_v22  ;;  %35728 = vmatprep.mubr.f32.mxu1 %v43565_v27 }
 0x61e   : > { %39371 = vmatprep.subr.bf16.mxu1 %v43733_v6 }
 0x621   : > { %39373 = vmatpush3.bf16.msra.mxu1 %v43733_v6  ;;  %v9516_v6 = vand.u32 4294901760, %v9515_v40 }
 0x622   : > { %39375 = vmatprep.subr.bf16.mxu1 %v43743_v35 }
 0x623   : > { %v9517_v20 = vsub.f32 %v9515_v40, %v9516_v6  ;;  %v43808_v13 = vpack.c.bf16 %v9523_v12, %v9516_v6 }
 0x625   : > { %39377 = vmatpush3.bf16.msra.mxu1 %v43743_v35  ;;  %v9511_v35 = vand.u32 4294901760, %v9510_v9  ;;  %v9518_v22 = vand.u32 4294901760, %v9517_v20 }
 0x626   : > { %39379 = vmatprep.subr.bf16.mxu1 %v43747_v44 }
 0x627   : > { %v43792_v0 = vpack.c.bf16 %v9525_v57, %v9518_v22  ;;  %v43810_v22 = vpack.c.bf16 %v9537_v21, %v9530_v16 }
 0x629   : > { %39381 = vmatpush3.bf16.msra.mxu1 %v43747_v44  ;;  %v9504_v44 = vand.u32 4294901760, %v9503_v14  ;;  %v43796_v14 = vpack.c.bf16 %v9494_v54, %v9487_v46 }
 0x62a   : > { %39383 = vmatprep.subr.bf16.mxu1 %v43582_v1 }
 0x62b   : > { %v43790_v60 = vpack.c.bf16 %v9511_v35, %v9504_v44  ;;  %v43798_v35 = vpack.c.bf16 %v9508_v31, %v9501_v39  ;;  %v43800_v44 = vpack.c.bf16 %v9522_v4, %v9515_v40 }
 0x62c   : > { %35729 = vmatmul.mubr.f32.vlgmr.msra.gmra.mrb[18].mxu1 %v43600_v34 }
 0x62d   : > { %39385 = vmatpush3.bf16.msra.mxu1 %v43582_v1  ;;  %35747 = vmatprep.mubr.f32.mxu1 %v43565_v27 }
 0x62e   : > { %39387 = vmatprep.subr.bf16.mxu1 %v43603_v56 }
 0x631   : > { %39389 = vmatpush3.bf16.msra.mxu1 %v43603_v56 }
 0x632   : > { %39391 = vmatprep.subr.bf16.mxu1 %v43624_v52 }
 0x635   : > { %39393 = vmatpush3.bf16.msra.mxu1 %v43624_v52 }
 0x636   : > { %39395 = vmatprep.subr.bf16.mxu1 %v43631_v5 }
 0x639   : > { %39397 = vmatpush3.bf16.msra.mxu1 %v43631_v5 }
 0x63a   : > { %39447 = vmatprep.subr.bf16.mxu1 %v43767_v33 }
 0x63c   : > { %35748 = vmatmul.mubr.f32.vlgmr.msra.gmra.mrb[18].mxu1 %v43600_v34 }
 0x63d   : > { %39449 = vmatpush3.bf16.msra.mxu1 %v43767_v33 }
 0x63e   : > { %39451 = vmatprep.subr.bf16.mxu1 %v43769_v32 }
 0x641   : > { %39453 = vmatpush3.bf16.msra.mxu1 %v43769_v32 }
 0x642   : > { %39455 = vmatprep.subr.bf16.mxu1 %v43776_v38 }
 0x645   : > { %39457 = vmatpush3.bf16.msra.mxu1 %v43776_v38 }
 0x646   : > { %39459 = vmatprep.subr.bf16.mxu1 %v43782_v23 }
 0x649   : > { %39461 = vmatpush3.bf16.msra.mxu1 %v43782_v23 }
 0x64a   : > { %39463 = vmatprep.subr.bf16.mxu1 %v43787_v53 }
 0x6af   : > { %v35452_v24 = vpop.f32.mrb[14].mxu1 }
 0x6b0   : > { %v8833_v45 = vand.u32 4294901760, %v35452_v24  ;;  %v8807_v9 = vpop.f32.mrb[15].mxu1 }
 0x6b1   : > { %v8830_v20 = vand.u32 4294901760, %v8807_v9 }
 0x6b2   : > { %v8927_v46 = vsub.f32 %v35452_v24, %v8833_v45 }
 0x6b3   : > { %v39158_v54 = vpack.c.bf16 %v8833_v45, %v8830_v20  ;;  %v8920_v39 = vsub.f32 %v8807_v9, %v8830_v20  ;;  %v35455_v31 = vpop.f32.mrb[16].mxu1 }
 0x6b4   : > { %v8928_v4 = vand.u32 4294901760, %v8927_v46  ;;  %v8839_v40 = vand.u32 4294901760, %v35455_v31  ;;  %v8819_v47 = vpop.f32.mrb[17].mxu1 }
 0x6b5   : > { %v8921_v42 = vand.u32 4294901760, %v8920_v39  ;;  %v8836_v59 = vand.u32 4294901760, %v8819_v47  ;;  %39159 = vmatprep.subr.bf16.mxu0 %v39158_v54  ;;  %v39174_v26 = vpack.c.bf16 %v8927_v46, %v8920_v39 }
 0x6b6   : > { %v8929_v11 = vsub.f32 %v8927_v46, %v8928_v4  ;;  %v8941_v6 = vsub.f32 %v35455_v31, %v8839_v40  ;;  %39161 = vmatpush3.bf16.msra.mxu0 %v39158_v54 }
 0x6b7   : > { %v8922_v16 = vsub.f32 %v8920_v39, %v8921_v42  ;;  %v39162_v28 = vpack.c.bf16 %v8839_v40, %v8836_v59  ;;  %v8934_v12 = vsub.f32 %v8819_v47, %v8836_v59  ;;  %v39190_v17 = vpack.c.bf16 %v8928_v4, %v8921_v42  ;;  %v9360_v47 = vld [vmem:[%s41131_s14 + $0x8] sm:$0xff] }
 0x6b8   : > { %v8942_v21 = vand.u32 4294901760, %v8941_v6  ;;  %v8930_v57 = vand.u32 4294901760, %v8929_v11  ;;  %v10557_v42 = vsel %vm10552_vm2, %v9360_v47, 0  ;;  %v46384_v47 = vld [vmem:[#allocation64_spill] sm:$0xff] }
 0x6b9   : > { %v8935_v36 = vand.u32 4294901760, %v8934_v12  ;;  %39163 = vmatprep.subr.bf16.mxu0 %v39162_v28  ;;  %v8923_v18 = vand.u32 4294901760, %v8922_v16  ;;  %v39178_v24 = vpack.c.bf16 %v8941_v6, %v8934_v12  ;;  %v43882_v59 = vand.u32 4294901760, %v10557_v42 }
 0x6ba   : > { %v8943_v45 = vsub.f32 %v8941_v6, %v8942_v21  ;;  %39165 = vmatpush3.bf16.msra.mxu0 %v39162_v28 }
 0x6bb   : > { %v8936_v9 = vsub.f32 %v8934_v12, %v8935_v36  ;;  %v39166_v20 = vpack.c.bf16 %v8930_v57, %v8923_v18  ;;  %v39194_v63 = vpack.c.bf16 %v8942_v21, %v8935_v36  ;;  %v43891_v11 = vsub.f32 %v10557_v42, %v43882_v59  ;;  %v46388_v42 = vld [vmem:[#allocation67_spill] sm:$0xff] }
 0x6bc   : > { %v8944_v62 = vand.u32 4294901760, %v8943_v45 }
 0x6bd   : > { %35465 = vmatmul.mubr.f32.vlgmr.msra.gmra.mrb[16].mxu0 %v43386_v10  ;;  %39167 = vmatprep.subr.bf16.mxu0 %v39166_v20  ;;  %v8937_v46 = vand.u32 4294901760, %v8936_v9  ;;  %v43899_v16 = vand.u32 4294901760, %v43891_v11 }
 0x6be   : > { %39169 = vmatpush3.bf16.msra.mxu0 %v39166_v20  ;;  %35475 = vmatprep.mubr.f32.mxu0 %v43335_v7 }
 0x6bf   : > { %v39170_v39 = vpack.c.bf16 %v8944_v62, %v8937_v46 }
 0x6c1   : > { %39171 = vmatprep.subr.bf16.mxu0 %v39170_v39 }
 0x6c2   : > { %39173 = vmatpush3.bf16.msra.mxu0 %v39170_v39 }
 0x6c3   : > { %39175 = vmatprep.subr.bf16.mxu0 %v39174_v26 }
 0x6c5   : > { %35476 = vmatmul.mubr.f32.vlgmr.msra.gmra.mrb[16].mxu0 %v43376_v30 }
 0x6c6   : > { %39177 = vmatpush3.bf16.msra.mxu0 %v39174_v26  ;;  %35486 = vmatprep.mubr.f32.mxu0 %v43341_v8 }
 0x6c7   : > { %39179 = vmatprep.subr.bf16.mxu0 %v39178_v24 }
 0x6ca   : > { %39181 = vmatpush3.bf16.msra.mxu0 %v39178_v24 }
 0x6cb   : > { %39183 = vmatprep.subr.bf16.mxu0 %v39158_v54 }
 0x6cd   : > { %35487 = vmatmul.mubr.f32.vlgmr.msra.gmra.mrb[16].mxu0 %v43379_v29 }
 0x6ce   : > { %39185 = vmatpush3.bf16.msra.mxu0 %v39158_v54  ;;  %35497 = vmatprep.mubr.f32.mxu0 %v43345_v58 }
 0x6cf   : > { %39187 = vmatprep.subr.bf16.mxu0 %v39162_v28 }
 0x6d2   : > { %39189 = vmatpush3.bf16.msra.mxu0 %v39162_v28 }
 0x6d3   : > { %39191 = vmatprep.subr.bf16.mxu0 %v39190_v17 }
 0x6d5   : > { %35498 = vmatmul.mubr.f32.vlgmr.msra.gmra.mrb[16].mxu0 %v43382_v15 }
 0x6d6   : > { %39193 = vmatpush3.bf16.msra.mxu0 %v39190_v17  ;;  %35508 = vmatprep.mubr.f32.mxu0 %v43335_v7 }
 0x6d7   : > { %39195 = vmatprep.subr.bf16.mxu0 %v39194_v63 }
 0x6da   : > { %39197 = vmatpush3.bf16.msra.mxu0 %v39194_v63 }
 0x6db   : > { %39199 = vmatprep.subr.bf16.mxu0 %v39158_v54 }
 0x6dd   : > { %35509 = vmatmul.mubr.f32.vlgmr.msra.gmra.mrb[16].mxu0 %v43376_v30 }
 0x6de   : > { %39201 = vmatpush3.bf16.msra.mxu0 %v39158_v54  ;;  %35519 = vmatprep.mubr.f32.mxu0 %v43335_v7 }
 0x6df   : > { %39203 = vmatprep.subr.bf16.mxu0 %v39162_v28 }
 0x6e2   : > { %39205 = vmatpush3.bf16.msra.mxu0 %v39162_v28  ;;  %v10639_v28 = vsub.f32 %v43891_v11, %v43899_v16 }
 0x6e3   : > { %39207 = vmatprep.subr.bf16.mxu0 %v43767_v33 }
 0x6e4   : > { %v43912_v17 = vand.u32 4294901760, %v10639_v28  ;;  %v46390_v28 = vld [vmem:[#allocation69_spill] sm:$0xff] }
 0x6e5   : > { %35520 = vmatmul.mubr.f32.vlgmr.msra.gmra.mrb[16].mxu0 %v43376_v30 }
 0x6e6   : > { %39209 = vmatpush3.bf16.msra.mxu0 %v43767_v33  ;;  %35538 = vmatprep.mubr.f32.mxu0 %v43628_v37 }
 0x6e7   : > { %39211 = vmatprep.subr.bf16.mxu0 %v43769_v32 }
 0x6ea   : > { %39213 = vmatpush3.bf16.msra.mxu0 %v43769_v32 }
 0x6eb   : > { %39215 = vmatprep.subr.bf16.mxu0 %v43776_v38 }
 0x6ee   : > { %39217 = vmatpush3.bf16.msra.mxu0 %v43776_v38 }
 0x6ef   : > { %39219 = vmatprep.subr.bf16.mxu0 %v43782_v23 }
 0x6f2   : > { %39221 = vmatpush3.bf16.msra.mxu0 %v43782_v23 }
 0x6f3   : > { %39223 = vmatprep.subr.bf16.mxu0 %v43787_v53 }
 0x6f5   : > { %35539 = vmatmul.mubr.f32.vlgmr.msra.gmra.mrb[18].mxu0 %v43668_v43 }
 0x6f6   : > { %39225 = vmatpush3.bf16.msra.mxu0 %v43787_v53  ;;  %35557 = vmatprep.mubr.f32.mxu0 %v43565_v27 }
 0x6f7   : > { %39227 = vmatprep.subr.bf16.mxu0 %v43790_v60 }
 0x6fa   : > { %39229 = vmatpush3.bf16.msra.mxu0 %v43790_v60 }
 0x6fb   : > { %39231 = vmatprep.subr.bf16.mxu0 %v43792_v0 }
 0x6fe   : > { %39233 = vmatpush3.bf16.msra.mxu0 %v43792_v0 }
 0x6ff   : > { %39235 = vmatprep.subr.bf16.mxu0 %v43794_v55 }
 0x702   : > { %39237 = vmatpush3.bf16.msra.mxu0 %v43794_v55 }
 0x703   : > { %39239 = vmatprep.subr.bf16.mxu0 %v43796_v14 }
 0x705   : > { %35558 = vmatmul.mubr.f32.vlgmr.msra.gmra.mrb[18].mxu0 %v43600_v34 }
 0x706   : > { %39241 = vmatpush3.bf16.msra.mxu0 %v43796_v14  ;;  %35576 = vmatprep.mubr.f32.mxu0 %v43572_v49 }
 0x707   : > { %39243 = vmatprep.subr.bf16.mxu0 %v43798_v35 }
 0x70a   : > { %39245 = vmatpush3.bf16.msra.mxu0 %v43798_v35 }
 0x70b   : > { %39247 = vmatprep.subr.bf16.mxu0 %v43800_v44 }
 0x70e   : > { %39249 = vmatpush3.bf16.msra.mxu0 %v43800_v44 }
 0x70f   : > { %v35749_v7 = vpop.f32.mrb[18].mxu1  ;;  %39251 = vmatprep.subr.bf16.mxu0 %v43802_v61 }
 0x710   : > { %v10563_v8 = vand.u32 4294901760, %v35749_v7  ;;  %v10542_v58 = vpop.f32.mrb[19].mxu1 }
 0x711   : > { %v10560_v30 = vand.u32 4294901760, %v10542_v58 }
 0x712   : > { %v10655_v29 = vsub.f32 %v35749_v7, %v10563_v8  ;;  %39253 = vmatpush3.bf16.msra.mxu0 %v43802_v61 }
 0x713   : > { %v43852_v15 = vpack.c.bf16 %v10563_v8, %v10560_v30  ;;  %v10648_v10 = vsub.f32 %v10542_v58, %v10560_v30  ;;  %39255 = vmatprep.subr.bf16.mxu0 %v43767_v33 }
 0x714   : > { %v10656_v49 = vand.u32 4294901760, %v10655_v29 }
 0x715   : > { %v10649_v37 = vand.u32 4294901760, %v10648_v10  ;;  %35577 = vmatmul.mubr.f32.vlgmr.msra.gmra.mrb[18].mxu0 %v43621_v51  ;;  %v39406_v43 = vpack.c.bf16 %v10655_v29, %v10648_v10 }
 0x716   : > { %v10657_v62 = vsub.f32 %v10655_v29, %v10656_v49  ;;  %39257 = vmatpush3.bf16.msra.mxu0 %v43767_v33  ;;  %35595 = vmatprep.mubr.f32.mxu0 %v43587_v3  ;;  %v9359_v3 = vld [vmem:[%s41131_s14] sm:$0xff] }
 0x717   : > { %v10650_v63 = vsub.f32 %v10648_v10, %v10649_v37  ;;  %39259 = vmatprep.subr.bf16.mxu0 %v43769_v32  ;;  %v39414_v54 = vpack.c.bf16 %v10656_v49, %v10649_v37  ;;  %v10554_v51 = vsel %vm10552_vm2, %v9359_v3, 0 }
 0x718   : > { %v10658_v31 = vand.u32 4294901760, %v10657_v62 }
 0x719   : > { %v10651_v4 = vand.u32 4294901760, %v10650_v63 }
 0x71a   : > { %39261 = vmatpush3.bf16.msra.mxu0 %v43769_v32 }
 0x71b   : > { %39263 = vmatprep.subr.bf16.mxu0 %v43776_v38  ;;  %v39402_v40 = vpack.c.bf16 %v10658_v31, %v10651_v4 }
 0x71e   : > { %39265 = vmatpush3.bf16.msra.mxu0 %v43776_v38 }
 0x71f   : > { %39267 = vmatprep.subr.bf16.mxu0 %v43782_v23 }
 0x722   : > { %39269 = vmatpush3.bf16.msra.mxu0 %v43782_v23 }
 0x723   : > { %39271 = vmatprep.subr.bf16.mxu0 %v43804_v41 }
 0x725   : > { %35596 = vmatmul.mubr.f32.vlgmr.msra.gmra.mrb[18].mxu0 %v43643_v50  ;;  %v43877_v50 = vand.u32 4294901760, %v10554_v51 }
 0x726   : > { %39273 = vmatpush3.bf16.msra.mxu0 %v43804_v41  ;;  %35614 = vmatprep.mubr.f32.mxu0 %v43565_v27 }
 0x727   : > { %39275 = vmatprep.subr.bf16.mxu0 %v43806_v25  ;;  %v43887_v26 = vsub.f32 %v10554_v51, %v43877_v50  ;;  %v46383_v51 = vld [vmem:[#allocation62_spill] sm:$0xff] }
 0x729   : > { %v43895_v6 = vand.u32 4294901760, %v43887_v26 }
 0x72a   : > { %39277 = vmatpush3.bf16.msra.mxu0 %v43806_v25 }
 0x72b   : > { %39279 = vmatprep.subr.bf16.mxu0 %v43808_v13 }
 0x72e   : > { %39281 = vmatpush3.bf16.msra.mxu0 %v43808_v13 }
 0x72f   : > { %39283 = vmatprep.subr.bf16.mxu0 %v43810_v22 }
 0x732   : > { %39285 = vmatpush3.bf16.msra.mxu0 %v43810_v22 }
 0x733   : > { %39287 = vmatprep.subr.bf16.mxu0 %v43767_v33 }
 0x735   : > { %35615 = vmatmul.mubr.f32.vlgmr.msra.gmra.mrb[18].mxu0 %v43600_v34 }
 0x736   : > { %39289 = vmatpush3.bf16.msra.mxu0 %v43767_v33  ;;  %35633 = vmatprep.mubr.f32.mxu0 %v43565_v27  ;;  %v10629_v27 = vsub.f32 %v43887_v26, %v43895_v6 }
 0x737   : > { %39291 = vmatprep.subr.bf16.mxu0 %v43769_v32 }
 0x738   : > { %v43908_v12 = vand.u32 4294901760, %v10629_v27  ;;  %v46389_v27 = vld [vmem:[#allocation68_spill] sm:$0xff] }
 0x73a   : > { %39293 = vmatpush3.bf16.msra.mxu0 %v43769_v32 }
 0x73b   : > { %39295 = vmatprep.subr.bf16.mxu0 %v43776_v38 }
 0x73e   : > { %39297 = vmatpush3.bf16.msra.mxu0 %v43776_v38 }
 0x73f   : > { %39299 = vmatprep.subr.bf16.mxu0 %v43782_v23 }
 0x742   : > { %39301 = vmatpush3.bf16.msra.mxu0 %v43782_v23 }
 0x743   : > { %39399 = vmatprep.subr.bf16.mxu0 %v43852_v15 }
 0x745   : > { %35634 = vmatmul.mubr.f32.vlgmr.msra.gmra.mrb[18].mxu0 %v43600_v34  ;;  %v9357_v34 = vld [vmem:[%s41126_s8] sm:$0xff] }
 0x746   : > { %39401 = vmatpush3.bf16.msra.mxu0 %v43852_v15  ;;  %35754 = vmatprep.mubr.f32.mxu0 %v43908_v12  ;;  %v11062_v21 = vsel %vm10552_vm2, %v9357_v34, 0  ;;  %v9377_v34 = vld [vmem:[%s41151_s6] sm:$0xff] }
 0x747   : > { %39403 = vmatprep.subr.bf16.mxu0 %v39402_v40  ;;  %v43933_v57 = vand.u32 4294901760, %v11062_v21 }
 0x749   : > { %35755 = vmatmul.mubr.f32.vlgmr.msra.gmra.mrb[20].mxu0 %v43912_v17  ;;  %v43936_v36 = vsub.f32 %v11062_v21, %v43933_v57  ;;  %v9378_v21 = vld [vmem:[%s41151_s6 + $0x8] sm:$0xff] }
 0x74a   : > { %39405 = vmatpush3.bf16.msra.mxu0 %v39402_v40  ;;  %35761 = vmatprep.mubr.f32.mxu0 %v43877_v50 }
 0x74b   : > { %39407 = vmatprep.subr.bf16.mxu0 %v39406_v43  ;;  %v43939_v18 = vand.u32 4294901760, %v43936_v36 }
 0x74d   : > { %v11137_v24 = vsub.f32 %v43936_v36, %v43939_v18 }
 0x74f   : > { %v43943_v45 = vand.u32 4294901760, %v11137_v24  ;;  %v13769_v24 = vand.u32 4294901760, %v9377_v34 }
 0x751   : > { %35762 = vmatmul.mubr.f32.vlgmr.msra.gmra.mrb[20].mxu0 %v43882_v59 }
 0x752   : > { %39409 = vmatpush3.bf16.msra.mxu0 %v39406_v43  ;;  %35768 = vmatprep.mubr.f32.mxu0 %v43887_v26 }
 0x753   : > { %39411 = vmatprep.subr.bf16.mxu0 %v43852_v15 }
 0x759   : > { %35769 = vmatmul.mubr.f32.vlgmr.msra.gmra.mrb[20].mxu0 %v43891_v11 }
 0x75a   : > { %39413 = vmatpush3.bf16.msra.mxu0 %v43852_v15  ;;  %35775 = vmatprep.mubr.f32.mxu0 %v43895_v6 }
 0x75b   : > { %39415 = vmatprep.subr.bf16.mxu0 %v39414_v54 }
 0x761   : > { %35776 = vmatmul.mubr.f32.vlgmr.msra.gmra.mrb[20].mxu0 %v43899_v16 }
 0x762   : > { %39417 = vmatpush3.bf16.msra.mxu0 %v39414_v54  ;;  %35782 = vmatprep.mubr.f32.mxu0 %v43877_v50 }
 0x763   : > { %39419 = vmatprep.subr.bf16.mxu0 %v43852_v15 }
 0x769   : > { %35783 = vmatmul.mubr.f32.vlgmr.msra.gmra.mrb[20].mxu0 %v43882_v59 }
 0x76a   : > { %39421 = vmatpush3.bf16.msra.mxu0 %v43852_v15  ;;  %35789 = vmatprep.mubr.f32.mxu0 %v43877_v50 }
 0x771   : > { %35790 = vmatmul.mubr.f32.vlgmr.msra.gmra.mrb[20].mxu0 %v43882_v59 }
 0x772   : > { %35796 = vmatprep.mubr.f32.mxu0 %v43943_v45 }
 0x7b8   : > { %v43946_v9 = vpop.f32.mrb[16].mxu0 }
 0x7b9   : > { %v11573_v20 = vsel %vm9385_vm1, %v43946_v9, 0  ;;  %v43950_v46 = vpop.f32.mrb[17].mxu0 }
 0x7ba   : > { %v43952_v39 = vand.u32 4294901760, %v11573_v20  ;;  %v11570_v7 = vsel %vm9385_vm1, %v43950_v46, 0 }
 0x7bb   : > { %v43956_v8 = vand.u32 4294901760, %v11570_v7 }
 0x7bc   : > { %v43959_v58 = vsub.f32 %v11573_v20, %v43952_v39  ;;  %v13772_v20 = vand.u32 4294901760, %v9378_v21 }
 0x7bd   : > { %v43962_v30 = vsub.f32 %v11570_v7, %v43956_v8  ;;  %v9379_v7 = vld [vmem:[%s41151_s6 + $0x10] sm:$0xff] }
 0x7be   : > { %v43965_v29 = vand.u32 4294901760, %v43959_v58 }
 0x7bf   : > { %v43968_v15 = vand.u32 4294901760, %v43962_v30 }
 0x7c0   : > { %v11661_v10 = vsub.f32 %v43959_v58, %v43965_v29 }
 0x7c1   : > { %v11651_v49 = vsub.f32 %v43962_v30, %v43968_v15 }
 0x7c2   : > { %v43976_v43 = vand.u32 4294901760, %v11661_v10  ;;  %v13863_v10 = vsub.f32 %v9377_v34, %v13769_v24 }
 0x7c3   : > { %v43974_v37 = vand.u32 4294901760, %v11651_v49 }
 0x7c5   : > { %35850 = vmatprep.mubr.f32.mxu1 %v43974_v37 }
 0x7c6   : > { %35851 = vmatmul.mubr.f32.vlgmr.msra.gmra.mrb[20].mxu1 %v43976_v43 }
 0x7c7   : > { %39465 = vmatpush3.bf16.msra.mxu1 %v43787_v53  ;;  %35869 = vmatprep.mubr.f32.mxu1 %v43956_v8  ;;  %v9358_v53 = vld [vmem:[%s41126_s8 + $0x8] sm:$0xff] }
 0x7c8   : > { %39467 = vmatprep.subr.bf16.mxu1 %v43790_v60 }
 0x7cb   : > { %39469 = vmatpush3.bf16.msra.mxu1 %v43790_v60  ;;  %v11065_v60 = vsel %vm10552_vm2, %v9358_v53, 0 }
 0x7cc   : > { %39471 = vmatprep.subr.bf16.mxu1 %v43792_v0 }
 0x7cf   : > { %39473 = vmatpush3.bf16.msra.mxu1 %v43792_v0  ;;  %v44027_v0 = vand.u32 4294901760, %v11065_v60 }
 0x7d0   : > { %39475 = vmatprep.subr.bf16.mxu1 %v43794_v55 }
 0x7d3   : > { %39477 = vmatpush3.bf16.msra.mxu1 %v43794_v55  ;;  %v44032_v55 = vsub.f32 %v11065_v60, %v44027_v0  ;;  %v9383_v60 = vld [vmem:[%s41151_s6 + $0x30] sm:$0xff] }
 0x7d4   : > { %39479 = vmatprep.subr.bf16.mxu1 %v43796_v14 }
 0x7d6   : > { %35870 = vmatmul.mubr.f32.vlgmr.msra.gmra.mrb[20].mxu1 %v43952_v39 }
 0x7d7   : > { %39481 = vmatpush3.bf16.msra.mxu1 %v43796_v14  ;;  %35888 = vmatprep.mubr.f32.mxu1 %v43962_v30 }
 0x7d8   : > { %39483 = vmatprep.subr.bf16.mxu1 %v43798_v35 }
 0x7db   : > { %39485 = vmatpush3.bf16.msra.mxu1 %v43798_v35 }
 0x7dc   : > { %39487 = vmatprep.subr.bf16.mxu1 %v43800_v44 }
 0x7df   : > { %39489 = vmatpush3.bf16.msra.mxu1 %v43800_v44 }
 0x7e0   : > { %39491 = vmatprep.subr.bf16.mxu1 %v43802_v61 }
 0x7e3   : > { %39493 = vmatpush3.bf16.msra.mxu1 %v43802_v61 }
 0x7e4   : > { %39495 = vmatprep.subr.bf16.mxu1 %v43767_v33 }
 0x7e6   : > { %35889 = vmatmul.mubr.f32.vlgmr.msra.gmra.mrb[20].mxu1 %v43959_v58 }
 0x7e7   : > { %39497 = vmatpush3.bf16.msra.mxu1 %v43767_v33  ;;  %35907 = vmatprep.mubr.f32.mxu1 %v43968_v15 }
 0x7e8   : > { %39499 = vmatprep.subr.bf16.mxu1 %v43769_v32 }
 0x7eb   : > { %39501 = vmatpush3.bf16.msra.mxu1 %v43769_v32 }
 0x7ec   : > { %39503 = vmatprep.subr.bf16.mxu1 %v43776_v38 }
 0x7ef   : > { %39505 = vmatpush3.bf16.msra.mxu1 %v43776_v38 }
 0x7f0   : > { %39507 = vmatprep.subr.bf16.mxu1 %v43782_v23 }
 0x7f3   : > { %39509 = vmatpush3.bf16.msra.mxu1 %v43782_v23 }
 0x7f4   : > { %39511 = vmatprep.subr.bf16.mxu1 %v43804_v41 }
 0x7f6   : > { %35908 = vmatmul.mubr.f32.vlgmr.msra.gmra.mrb[20].mxu1 %v43965_v29 }
 0x7f7   : > { %39513 = vmatpush3.bf16.msra.mxu1 %v43804_v41  ;;  %35926 = vmatprep.mubr.f32.mxu1 %v43956_v8 }
 0x7f8   : > { %39515 = vmatprep.subr.bf16.mxu1 %v43806_v25 }
 0x7fb   : > { %39517 = vmatpush3.bf16.msra.mxu1 %v43806_v25 }
 0x7fc   : > { %39519 = vmatprep.subr.bf16.mxu1 %v43808_v13 }
 0x7ff   : > { %39521 = vmatpush3.bf16.msra.mxu1 %v43808_v13 }
 0x800   : > { %39523 = vmatprep.subr.bf16.mxu1 %v43810_v22 }
 0x803   : > { %39525 = vmatpush3.bf16.msra.mxu1 %v43810_v22 }
 0x804   : > { %39527 = vmatprep.subr.bf16.mxu1 %v43767_v33 }
 0x806   : > { %35927 = vmatmul.mubr.f32.vlgmr.msra.gmra.mrb[20].mxu1 %v43952_v39 }
 0x807   : > { %39529 = vmatpush3.bf16.msra.mxu1 %v43767_v33  ;;  %35945 = vmatprep.mubr.f32.mxu1 %v43956_v8  ;;  %v44037_v33 = vand.u32 4294901760, %v44032_v55 }
 0x808   : > { %39531 = vmatprep.subr.bf16.mxu1 %v43769_v32 }
 0x80b   : > { %39533 = vmatpush3.bf16.msra.mxu1 %v43769_v32 }
 0x80c   : > { %39535 = vmatprep.subr.bf16.mxu1 %v43776_v38 }
 0x80f   : > { %39537 = vmatpush3.bf16.msra.mxu1 %v43776_v38  ;;  %v11147_v38 = vsub.f32 %v44032_v55, %v44037_v33 }
 0x810   : > { %39539 = vmatprep.subr.bf16.mxu1 %v43782_v23 }
 0x813   : > { %39541 = vmatpush3.bf16.msra.mxu1 %v43782_v23  ;;  %v44042_v23 = vand.u32 4294901760, %v11147_v38 }
 0x816   : > { %35946 = vmatmul.mubr.f32.vlgmr.msra.gmra.mrb[20].mxu1 %v43952_v39 }
 0x817   : > { %36066 = vmatprep.mubr.f32.mxu1 %v43908_v12  ;;  %v46391_v12 = vld [vmem:[#allocation70_spill] sm:$0xff] }
 0x818   : > { %v35635_v32 = vpop.f32.mrb[18].mxu0 }
 0x819   : > { %v11071_v14 = vand.u32 4294901760, %v35635_v32  ;;  %v9962_v35 = vpop.f32.mrb[19].mxu0 }
 0x81a   : > { %v11068_v44 = vand.u32 4294901760, %v9962_v35 }
 0x81b   : > { %v11163_v61 = vsub.f32 %v35635_v32, %v11071_v14  ;;  %v9384_v32 = vld [vmem:[%s41151_s6 + $0x38] sm:$0xff] }
 0x81c   : > { %v39422_v41 = vpack.c.bf16 %v11071_v14, %v11068_v44  ;;  %v11156_v25 = vsub.f32 %v9962_v35, %v11068_v44 }
 0x81d   : > { %v11164_v13 = vand.u32 4294901760, %v11163_v61 }
 0x81e   : > { %v11157_v22 = vand.u32 4294901760, %v11156_v25  ;;  %39423 = vmatprep.subr.bf16.mxu0 %v39422_v41  ;;  %v39430_v62 = vpack.c.bf16 %v11163_v61, %v11156_v25 }
 0x81f   : > { %v11165_v63 = vsub.f32 %v11163_v61, %v11164_v13  ;;  %39425 = vmatpush3.bf16.msra.mxu0 %v39422_v41  ;;  %v13787_v61 = vand.u32 4294901760, %v9383_v60 }
 0x820   : > { %v11158_v54 = vsub.f32 %v11156_v25, %v11157_v22  ;;  %v39438_v31 = vpack.c.bf16 %v11164_v13, %v11157_v22 }
 0x821   : > { %v11166_v4 = vand.u32 4294901760, %v11165_v63 }
 0x822   : > { %35797 = vmatmul.mubr.f32.vlgmr.msra.gmra.mrb[20].mxu0 %v44042_v23  ;;  %v11159_v40 = vand.u32 4294901760, %v11158_v54 }
 0x823   : > { %35803 = vmatprep.mubr.f32.mxu0 %v43933_v57 }
 0x824   : > { %v39426_v3 = vpack.c.bf16 %v11166_v4, %v11159_v40 }
 0x826   : > { %39427 = vmatprep.subr.bf16.mxu0 %v39426_v3 }
 0x827   : > { %39429 = vmatpush3.bf16.msra.mxu0 %v39426_v3 }
 0x828   : > { %39431 = vmatprep.subr.bf16.mxu0 %v39430_v62 }
 0x82a   : > { %35804 = vmatmul.mubr.f32.vlgmr.msra.gmra.mrb[20].mxu0 %v44027_v0 }
 0x82b   : > { %39433 = vmatpush3.bf16.msra.mxu0 %v39430_v62  ;;  %35810 = vmatprep.mubr.f32.mxu0 %v43936_v36 }
 0x82c   : > { %39435 = vmatprep.subr.bf16.mxu0 %v39422_v41 }
 0x832   : > { %35811 = vmatmul.mubr.f32.vlgmr.msra.gmra.mrb[20].mxu0 %v44032_v55 }
 0x833   : > { %39437 = vmatpush3.bf16.msra.mxu0 %v39422_v41  ;;  %35817 = vmatprep.mubr.f32.mxu0 %v43939_v18 }
 0x834   : > { %39439 = vmatprep.subr.bf16.mxu0 %v39438_v31 }
 0x83a   : > { %35818 = vmatmul.mubr.f32.vlgmr.msra.gmra.mrb[20].mxu0 %v44037_v33 }
 0x83b   : > { %39441 = vmatpush3.bf16.msra.mxu0 %v39438_v31  ;;  %35824 = vmatprep.mubr.f32.mxu0 %v43933_v57 }
 0x83c   : > { %39443 = vmatprep.subr.bf16.mxu0 %v39422_v41 }
 0x842   : > { %35825 = vmatmul.mubr.f32.vlgmr.msra.gmra.mrb[20].mxu0 %v44027_v0 }
 0x843   : > { %39445 = vmatpush3.bf16.msra.mxu0 %v39422_v41  ;;  %35831 = vmatprep.mubr.f32.mxu0 %v43933_v57  ;;  %v13790_v41 = vand.u32 4294901760, %v9384_v32 }
 0x844   : > { %39543 = vmatprep.subr.bf16.mxu0 %v43582_v1 }
 0x845   : > { %v44134_v40 = vpack.c.bf16 %v13790_v41, %v13787_v61 }
 0x84a   : > { %35832 = vmatmul.mubr.f32.vlgmr.msra.gmra.mrb[20].mxu0 %v44027_v0 }
 0x84b   : > { %39545 = vmatpush3.bf16.msra.mxu0 %v43582_v1  ;;  %35964 = vmatprep.mubr.f32.mxu0 %v43974_v37 }
 0x84c   : > { %39547 = vmatprep.subr.bf16.mxu0 %v43603_v56 }
 0x84f   : > { %39549 = vmatpush3.bf16.msra.mxu0 %v43603_v56 }
 0x850   : > { %39551 = vmatprep.subr.bf16.mxu0 %v43624_v52 }
 0x853   : > { %39553 = vmatpush3.bf16.msra.mxu0 %v43624_v52 }
 0x854   : > { %39555 = vmatprep.subr.bf16.mxu0 %v43631_v5 }
 0x857   : > { %39557 = vmatpush3.bf16.msra.mxu0 %v43631_v5 }
 0x858   : > { %39559 = vmatprep.subr.bf16.mxu0 %v43652_v48 }
 0x85a   : > { %35965 = vmatmul.mubr.f32.vlgmr.msra.gmra.mrb[22].mxu0 %v43976_v43 }
 0x85b   : > { %39561 = vmatpush3.bf16.msra.mxu0 %v43652_v48  ;;  %35983 = vmatprep.mubr.f32.mxu0 %v43956_v8  ;;  %v46385_v48 = vld [vmem:[#allocation21_spill] sm:$0xff] }
 0x85c   : > { %39563 = vmatprep.subr.bf16.mxu0 %v43666_v19 }
 0x85f   : > { %39565 = vmatpush3.bf16.msra.mxu0 %v43666_v19  ;;  %v46386_v19 = vld [vmem:[#allocation65_spill] sm:$0xff] }
 0x860   : > { %39567 = vmatprep.subr.bf16.mxu0 %v43677_v2 }
 0x863   : > { %39569 = vmatpush3.bf16.msra.mxu0 %v43677_v2  ;;  %v46387_v2 = vld [vmem:[#allocation66_spill] sm:$0xff] }
 0x864   : > { %39571 = vmatprep.subr.bf16.mxu0 %v46383_v51 }
 0x867   : > { %39573 = vmatpush3.bf16.msra.mxu0 %v46383_v51 }
 0x868   : > { %39575 = vmatprep.subr.bf16.mxu0 %v46384_v47 }
 0x86a   : > { %35984 = vmatmul.mubr.f32.vlgmr.msra.gmra.mrb[22].mxu0 %v43952_v39 }
 0x86b   : > { %39577 = vmatpush3.bf16.msra.mxu0 %v46384_v47  ;;  %36002 = vmatprep.mubr.f32.mxu0 %v43962_v30 }
 0x86c   : > { %39579 = vmatprep.subr.bf16.mxu0 %v46385_v48 }
 0x86f   : > { %39581 = vmatpush3.bf16.msra.mxu0 %v46385_v48 }
 0x870   : > { %39583 = vmatprep.subr.bf16.mxu0 %v46386_v19 }
 0x873   : > { %39585 = vmatpush3.bf16.msra.mxu0 %v46386_v19 }
 0x874   : > { %39587 = vmatprep.subr.bf16.mxu0 %v46387_v2 }
 0x877   : > { %39589 = vmatpush3.bf16.msra.mxu0 %v46387_v2  ;;  %v13905_v2 = vsub.f32 %v9383_v60, %v13787_v61 }
 0x878   : > { %39591 = vmatprep.subr.bf16.mxu0 %v43582_v1 }
 0x87a   : > { %36003 = vmatmul.mubr.f32.vlgmr.msra.gmra.mrb[22].mxu0 %v43959_v58  ;;  %v9380_v58 = vld [vmem:[%s41151_s6 + $0x18] sm:$0xff] }
 0x87b   : > { %39593 = vmatpush3.bf16.msra.mxu0 %v43582_v1  ;;  %36021 = vmatprep.mubr.f32.mxu0 %v43968_v15  ;;  %v13778_v30 = vand.u32 4294901760, %v9380_v58  ;;  %v9382_v15 = vld [vmem:[%s41151_s6 + $0x28] sm:$0xff] }
 0x87c   : > { %39595 = vmatprep.subr.bf16.mxu0 %v43603_v56  ;;  %v13784_v37 = vand.u32 4294901760, %v9382_v15 }
 0x87d   : > { %v13884_v35 = vsub.f32 %v9380_v58, %v13778_v30 }
 0x87e   : > { %v13898_v54 = vsub.f32 %v9382_v15, %v13784_v37 }
 0x87f   : > { %39597 = vmatpush3.bf16.msra.mxu0 %v43603_v56 }
 0x880   : > { %39599 = vmatprep.subr.bf16.mxu0 %v43624_v52  ;;  %v13899_v47 = vand.u32 4294901760, %v13898_v54 }
 0x883   : > { %39601 = vmatpush3.bf16.msra.mxu0 %v43624_v52 }
 0x884   : > { %39603 = vmatprep.subr.bf16.mxu0 %v43631_v5 }
 0x887   : > { %39605 = vmatpush3.bf16.msra.mxu0 %v43631_v5 }
 0x888   : > { %39607 = vmatprep.subr.bf16.mxu0 %v46388_v42 }
 0x88a   : > { %36022 = vmatmul.mubr.f32.vlgmr.msra.gmra.mrb[22].mxu0 %v43965_v29  ;;  %v9381_v29 = vld [vmem:[%s41151_s6 + $0x20] sm:$0xff] }
 0x88b   : > { %39609 = vmatpush3.bf16.msra.mxu0 %v46388_v42  ;;  %36040 = vmatprep.mubr.f32.mxu0 %v43956_v8  ;;  %v13781_v49 = vand.u32 4294901760, %v9381_v29  ;;  %v13912_v42 = vsub.f32 %v9384_v32, %v13790_v41 }
 0x88c   : > { %39611 = vmatprep.subr.bf16.mxu0 %v46389_v27 }
 0x88d   : > { %v44129_v44 = vpack.c.bf16 %v13784_v37, %v13781_v49  ;;  %v13891_v63 = vsub.f32 %v9381_v29, %v13781_v49  ;;  %v13913_v34 = vand.u32 4294901760, %v13912_v42  ;;  %v44154_v60 = vpack.c.bf16 %v13912_v42, %v13905_v2 }
 0x88f   : > { %39613 = vmatpush3.bf16.msra.mxu0 %v46389_v27  ;;  %v13892_v4 = vand.u32 4294901760, %v13891_v63  ;;  %v13900_v27 = vsub.f32 %v13898_v54, %v13899_v47  ;;  %v44152_v37 = vpack.c.bf16 %v13898_v54, %v13891_v63 }
 0x890   : > { %39615 = vmatprep.subr.bf16.mxu0 %v46390_v28 }
 0x891   : > { %v13893_v19 = vsub.f32 %v13891_v63, %v13892_v4  ;;  %v44160_v41 = vpack.c.bf16 %v13899_v47, %v13892_v4 }
 0x893   : > { %39617 = vmatpush3.bf16.msra.mxu0 %v46390_v28  ;;  %v13894_v28 = vand.u32 4294901760, %v13893_v19 }
 0x894   : > { %39619 = vmatprep.subr.bf16.mxu0 %v46391_v12 }
 0x897   : > { %39621 = vmatpush3.bf16.msra.mxu0 %v46391_v12  ;;  %v13906_v12 = vand.u32 4294901760, %v13905_v2 }
 0x898   : > { %39623 = vmatprep.subr.bf16.mxu0 %v43582_v1 }
 0x89a   : > { %36041 = vmatmul.mubr.f32.vlgmr.msra.gmra.mrb[22].mxu0 %v43952_v39 }
 0x89b   : > { %39625 = vmatpush3.bf16.msra.mxu0 %v43582_v1  ;;  %36059 = vmatprep.mubr.f32.mxu0 %v43956_v8  ;;  %v44117_v1 = vpack.c.bf16 %v13772_v20, %v13769_v24  ;;  %v13775_v8 = vand.u32 4294901760, %v9379_v7  ;;  %v13901_v24 = vand.u32 4294901760, %v13900_v27  ;;  %v46393_v27 = vld [vmem:[#allocation53_spill] sm:$0xff] }
 0x89c   : > { %39627 = vmatprep.subr.bf16.mxu0 %v43603_v56 }
 0x89d   : > { %v44123_v43 = vpack.c.bf16 %v13778_v30, %v13775_v8  ;;  %v13877_v14 = vsub.f32 %v9379_v7, %v13775_v8  ;;  %v13914_v7 = vsub.f32 %v13912_v42, %v13913_v34  ;;  %v44142_v58 = vpack.c.bf16 %v13901_v24, %v13894_v28 }
 0x89f   : > { %39629 = vmatpush3.bf16.msra.mxu0 %v43603_v56  ;;  %v13870_v56 = vsub.f32 %v9378_v21, %v13772_v20  ;;  %v13878_v38 = vand.u32 4294901760, %v13877_v14  ;;  %v13907_v20 = vsub.f32 %v13905_v2, %v13906_v12  ;;  %v13915_v30 = vand.u32 4294901760, %v13914_v7 }
 0x8a0   : > { %39631 = vmatprep.subr.bf16.mxu0 %v43624_v52  ;;  %v44150_v49 = vpack.c.bf16 %v13884_v35, %v13877_v14 }
 0x8a1   : > { %v13871_v53 = vand.u32 4294901760, %v13870_v56  ;;  %v13879_v22 = vsub.f32 %v13877_v14, %v13878_v38  ;;  %v13908_v8 = vand.u32 4294901760, %v13907_v20  ;;  %v44148_v15 = vpack.c.bf16 %v13870_v56, %v13863_v10 }
 0x8a3   : > { %39633 = vmatpush3.bf16.msra.mxu0 %v43624_v52  ;;  %v13864_v52 = vand.u32 4294901760, %v13863_v10  ;;  %v13872_v13 = vsub.f32 %v13870_v56, %v13871_v53  ;;  %v13880_v31 = vand.u32 4294901760, %v13879_v22  ;;  %v44146_v29 = vpack.c.bf16 %v13915_v30, %v13908_v8 }
 0x8a4   : > { %39635 = vmatprep.subr.bf16.mxu0 %v43631_v5 }
 0x8a5   : > { %v13865_v25 = vsub.f32 %v13863_v10, %v13864_v52  ;;  %v13873_v51 = vand.u32 4294901760, %v13872_v13  ;;  %v44156_v32 = vpack.c.bf16 %v13871_v53, %v13864_v52 }
 0x8a7   : > { %39637 = vmatpush3.bf16.msra.mxu0 %v43631_v5  ;;  %v13885_v5 = vand.u32 4294901760, %v13884_v35  ;;  %v13866_v3 = vand.u32 4294901760, %v13865_v25  ;;  %v44162_v25 = vpack.c.bf16 %v13913_v34, %v13906_v12 }
 0x8a8   : > { %39687 = vmatprep.subr.bf16.mxu0 %v44117_v1 }
 0x8a9   : > { %v13886_v62 = vsub.f32 %v13884_v35, %v13885_v5  ;;  %v44140_v21 = vpack.c.bf16 %v13873_v51, %v13866_v3  ;;  %v44158_v61 = vpack.c.bf16 %v13885_v5, %v13878_v38  ;;  %v46392_v51 = vld [vmem:[#allocation52_spill] sm:$0xff] }
 0x8aa   : > { %36060 = vmatmul.mubr.f32.vlgmr.msra.gmra.mrb[22].mxu0 %v43952_v39 }
 0x8ab   : > { %39689 = vmatpush3.bf16.msra.mxu0 %v44117_v1  ;;  %v13887_v39 = vand.u32 4294901760, %v13886_v62 }
 0x8ac   : > { %39691 = vmatprep.subr.bf16.mxu0 %v44123_v43 }
 0x8ad   : > { %v44136_v48 = vpack.c.bf16 %v13887_v39, %v13880_v31 }
 0x8af   : > { %39693 = vmatpush3.bf16.msra.mxu0 %v44123_v43 }
 0x8b0   : > { %39695 = vmatprep.subr.bf16.mxu0 %v44129_v44 }
 0x8b3   : > { %39697 = vmatpush3.bf16.msra.mxu0 %v44129_v44 }
 0x8b4   : > { %39699 = vmatprep.subr.bf16.mxu0 %v44134_v40 }
 0x8b7   : > { %39701 = vmatpush3.bf16.msra.mxu0 %v44134_v40 }
 0x8b8   : > { %39703 = vmatprep.subr.bf16.mxu0 %v44140_v21 }
 0x8e9   : > { %v35947_v13 = vpop.f32.mrb[20].mxu1 }
 0x8ea   : > { %v13241_v22 = vand.u32 4294901760, %v35947_v13  ;;  %v12145_v62 = vpop.f32.mrb[21].mxu1 }
 0x8eb   : > { %v13238_v31 = vand.u32 4294901760, %v12145_v62 }
 0x8ec   : > { %v13333_v10 = vsub.f32 %v35947_v13, %v13241_v22 }
 0x8ed   : > { %v44164_v56 = vpack.c.bf16 %v13241_v22, %v13238_v31  ;;  %v13326_v14 = vsub.f32 %v12145_v62, %v13238_v31 }
 0x8ee   : > { %v13334_v35 = vand.u32 4294901760, %v13333_v10 }
 0x8ef   : > { %v13327_v63 = vand.u32 4294901760, %v13326_v14  ;;  %v44166_v54 = vpack.c.bf16 %v13333_v10, %v13326_v14 }
 0x8f0   : > { %v13335_v52 = vsub.f32 %v13333_v10, %v13334_v35 }
 0x8f1   : > { %v13328_v53 = vsub.f32 %v13326_v14, %v13327_v63  ;;  %v44168_v38 = vpack.c.bf16 %v13334_v35, %v13327_v63 }
 0x8f2   : > { %v13336_v5 = vand.u32 4294901760, %v13335_v52 }
 0x8f3   : > { %v13329_v39 = vand.u32 4294901760, %v13328_v53 }
 0x8f5   : > { %v44170_v4 = vpack.c.bf16 %v13336_v5, %v13329_v39 }
 0x91d   : > { %v44172_v3 = vpop.f32.mrb[20].mxu0 }
 0x91e   : > { %v13740_v47 = vsub.f32 %v46392_v51, %v44172_v3  ;;  %v13766_v19 = vsel %vm9385_vm1, %v44172_v3, 0  ;;  %v44178_v2 = vpop.f32.mrb[21].mxu0 }
 0x91f   : > { %v13851_v42 = vand.u32 4294901760, %v13766_v19  ;;  %v13739_v28 = vsub.f32 %v46393_v27, %v44178_v2  ;;  %v13763_v12 = vsel %vm9385_vm1, %v44178_v2, 0 }
 0x920   : > { %v13841_v34 = vand.u32 4294901760, %v13763_v12 }
 0x921   : > { %v13852_v24 = vsub.f32 %v13766_v19, %v13851_v42 }
 0x922   : > { %v13842_v20 = vsub.f32 %v13763_v12, %v13841_v34 }
 0x923   : > { %v13853_v7 = vand.u32 4294901760, %v13852_v24 }
 0x924   : > { %v13843_v8 = vand.u32 4294901760, %v13842_v20 }
 0x925   : > { %v13854_v30 = vsub.f32 %v13852_v24, %v13853_v7 }
 0x926   : > { %v13844_v13 = vsub.f32 %v13842_v20, %v13843_v8 }
 0x927   : > { %v13855_v62 = vand.u32 4294901760, %v13854_v30 }
 0x928   : > { %v13845_v22 = vand.u32 4294901760, %v13844_v13 }
 0x92a   : > { %36162 = vmatprep.mubr.f32.mxu0 %v13845_v22 }
 0x92b   : > { %36163 = vmatmul.mubr.f32.vlgmr.msra.gmra.mrb[24].mxu0 %v13855_v62 }
 0x92c   : > { %39705 = vmatpush3.bf16.msra.mxu0 %v44140_v21  ;;  %36181 = vmatprep.mubr.f32.mxu0 %v13841_v34 }
 0x92d   : > { %39707 = vmatprep.subr.bf16.mxu0 %v44136_v48 }
 0x930   : > { %39709 = vmatpush3.bf16.msra.mxu0 %v44136_v48 }
 0x931   : > { %39711 = vmatprep.subr.bf16.mxu0 %v44142_v58 }
 0x934   : > { %39713 = vmatpush3.bf16.msra.mxu0 %v44142_v58 }
 0x935   : > { %39715 = vmatprep.subr.bf16.mxu0 %v44146_v29 }
 0x938   : > { %39717 = vmatpush3.bf16.msra.mxu0 %v44146_v29 }
 0x939   : > { %39719 = vmatprep.subr.bf16.mxu0 %v44148_v15 }
 0x93b   : > { %36182 = vmatmul.mubr.f32.vlgmr.msra.gmra.mrb[24].mxu0 %v13851_v42 }
 0x93c   : > { %39721 = vmatpush3.bf16.msra.mxu0 %v44148_v15  ;;  %36200 = vmatprep.mubr.f32.mxu0 %v13842_v20 }
 0x93d   : > { %39723 = vmatprep.subr.bf16.mxu0 %v44150_v49 }
 0x940   : > { %39725 = vmatpush3.bf16.msra.mxu0 %v44150_v49 }
 0x941   : > { %39727 = vmatprep.subr.bf16.mxu0 %v44152_v37 }
 0x944   : > { %39729 = vmatpush3.bf16.msra.mxu0 %v44152_v37 }
 0x945   : > { %39731 = vmatprep.subr.bf16.mxu0 %v44154_v60 }
 0x948   : > { %39733 = vmatpush3.bf16.msra.mxu0 %v44154_v60 }
 0x949   : > { %39735 = vmatprep.subr.bf16.mxu0 %v44117_v1 }
 0x94b   : > { %36201 = vmatmul.mubr.f32.vlgmr.msra.gmra.mrb[24].mxu0 %v13852_v24 }
 0x94c   : > { %39737 = vmatpush3.bf16.msra.mxu0 %v44117_v1  ;;  %36219 = vmatprep.mubr.f32.mxu0 %v13843_v8 }
 0x94d   : > { %39739 = vmatprep.subr.bf16.mxu0 %v44123_v43 }
 0x950   : > { %39741 = vmatpush3.bf16.msra.mxu0 %v44123_v43 }
 0x951   : > { %39743 = vmatprep.subr.bf16.mxu0 %v44129_v44 }
 0x954   : > { %39745 = vmatpush3.bf16.msra.mxu0 %v44129_v44 }
 0x955   : > { %39747 = vmatprep.subr.bf16.mxu0 %v44134_v40 }
 0x958   : > { %39749 = vmatpush3.bf16.msra.mxu0 %v44134_v40 }
 0x959   : > { %39751 = vmatprep.subr.bf16.mxu0 %v44156_v32 }
 0x95b   : > { %36220 = vmatmul.mubr.f32.vlgmr.msra.gmra.mrb[24].mxu0 %v13853_v7 }
 0x95c   : > { %39753 = vmatpush3.bf16.msra.mxu0 %v44156_v32  ;;  %36238 = vmatprep.mubr.f32.mxu0 %v13841_v34 }
 0x95d   : > { %39755 = vmatprep.subr.bf16.mxu0 %v44158_v61 }
 0x960   : > { %39757 = vmatpush3.bf16.msra.mxu0 %v44158_v61 }
 0x961   : > { %39759 = vmatprep.subr.bf16.mxu0 %v44160_v41 }
 0x964   : > { %39761 = vmatpush3.bf16.msra.mxu0 %v44160_v41 }
 0x965   : > { %39763 = vmatprep.subr.bf16.mxu0 %v44162_v25 }
 0x968   : > { %39765 = vmatpush3.bf16.msra.mxu0 %v44162_v25 }
 0x969   : > { %39767 = vmatprep.subr.bf16.mxu0 %v44117_v1 }
 0x96b   : > { %36239 = vmatmul.mubr.f32.vlgmr.msra.gmra.mrb[24].mxu0 %v13851_v42 }
 0x96c   : > { %39769 = vmatpush3.bf16.msra.mxu0 %v44117_v1  ;;  %36257 = vmatprep.mubr.f32.mxu0 %v13841_v34 }
 0x96d   : > { %39771 = vmatprep.subr.bf16.mxu0 %v44123_v43 }
 0x970   : > { %39773 = vmatpush3.bf16.msra.mxu0 %v44123_v43 }
 0x971   : > { %39775 = vmatprep.subr.bf16.mxu0 %v44129_v44 }
 0x974   : > { %39777 = vmatpush3.bf16.msra.mxu0 %v44129_v44 }
 0x975   : > { %39779 = vmatprep.subr.bf16.mxu0 %v44134_v40 }
 0x978   : > { %39781 = vmatpush3.bf16.msra.mxu0 %v44134_v40 }
 0x97b   : > { %36258 = vmatmul.mubr.f32.vlgmr.msra.gmra.mrb[24].mxu0 %v13851_v42 }
 0x97d   : > { %v36061_v31 = vpop.f32.mrb[22].mxu0 }
 0x97e   : > { %v12739_v10 = vand.u32 4294901760, %v36061_v31  ;;  %v12725_v14 = vpop.f32.mrb[23].mxu0 }
 0x97f   : > { %v12736_v35 = vand.u32 4294901760, %v12725_v14 }
 0x980   : > { %v12831_v63 = vsub.f32 %v36061_v31, %v12739_v10 }
 0x981   : > { %v39638_v52 = vpack.c.bf16 %v12739_v10, %v12736_v35  ;;  %v12824_v53 = vsub.f32 %v12725_v14, %v12736_v35 }
 0x982   : > { %v12832_v5 = vand.u32 4294901760, %v12831_v63 }
 0x983   : > { %v12825_v39 = vand.u32 4294901760, %v12824_v53  ;;  %39639 = vmatprep.subr.bf16.mxu1 %v39638_v52  ;;  %v39646_v19 = vpack.c.bf16 %v12831_v63, %v12824_v53 }
 0x984   : > { %v12833_v12 = vsub.f32 %v12831_v63, %v12832_v5  ;;  %39641 = vmatpush3.bf16.msra.mxu1 %v39638_v52 }
 0x985   : > { %v12826_v34 = vsub.f32 %v12824_v53, %v12825_v39  ;;  %v39654_v24 = vpack.c.bf16 %v12832_v5, %v12825_v39 }
 0x986   : > { %v12834_v20 = vand.u32 4294901760, %v12833_v12 }
 0x987   : > { %36067 = vmatmul.mubr.f32.vlgmr.msra.gmra.mrb[22].mxu1 %v43912_v17  ;;  %v12827_v7 = vand.u32 4294901760, %v12826_v34 }
 0x988   : > { %36073 = vmatprep.mubr.f32.mxu1 %v43877_v50 }
 0x989   : > { %v39642_v42 = vpack.c.bf16 %v12834_v20, %v12827_v7 }
 0x98b   : > { %39643 = vmatprep.subr.bf16.mxu1 %v39642_v42 }
 0x98c   : > { %39645 = vmatpush3.bf16.msra.mxu1 %v39642_v42 }
 0x98d   : > { %39647 = vmatprep.subr.bf16.mxu1 %v39646_v19 }
 0x98f   : > { %36074 = vmatmul.mubr.f32.vlgmr.msra.gmra.mrb[22].mxu1 %v43882_v59 }
 0x990   : > { %39649 = vmatpush3.bf16.msra.mxu1 %v39646_v19  ;;  %36080 = vmatprep.mubr.f32.mxu1 %v43887_v26  ;;  %v14348_v26 = vld [vmem:[%s41136_s19] sm:$0xff] }
 0x991   : > { %39651 = vmatprep.subr.bf16.mxu1 %v39638_v52 }
 0x997   : > { %36081 = vmatmul.mubr.f32.vlgmr.msra.gmra.mrb[22].mxu1 %v43891_v11  ;;  %v14350_v11 = vsel %vm10552_vm2, %v14348_v26, 0 }
 0x998   : > { %39653 = vmatpush3.bf16.msra.mxu1 %v39638_v52  ;;  %36087 = vmatprep.mubr.f32.mxu1 %v43895_v6  ;;  %v44266_v6 = vand.u32 4294901760, %v14350_v11 }
 0x999   : > { %39655 = vmatprep.subr.bf16.mxu1 %v39654_v24 }
 0x99f   : > { %36088 = vmatmul.mubr.f32.vlgmr.msra.gmra.mrb[22].mxu1 %v43899_v16  ;;  %v44269_v16 = vsub.f32 %v14350_v11, %v44266_v6  ;;  %v44358_v11 = vld [vmem:[%s46394_s1 + $0x18] sm:$0xff] }
 0x9a0   : > { %39657 = vmatpush3.bf16.msra.mxu1 %v39654_v24  ;;  %36094 = vmatprep.mubr.f32.mxu1 %v43877_v50 }
 0x9a1   : > { %39659 = vmatprep.subr.bf16.mxu1 %v39638_v52  ;;  %v44272_v17 = vand.u32 4294901760, %v44269_v16 }
 0x9a7   : > { %36095 = vmatmul.mubr.f32.vlgmr.msra.gmra.mrb[22].mxu1 %v43882_v59 }
 0x9a8   : > { %39661 = vmatpush3.bf16.msra.mxu1 %v39638_v52  ;;  %36101 = vmatprep.mubr.f32.mxu1 %v43877_v50  ;;  %v41075_v50 = vmov 0.0|0.0  }
 0x9a9   : > { %39663 = vmatprep.subr.bf16.mxu1 %v44164_v56  ;;  %39896 = vmatprep.subr.bf16.mxu0 %v41075_v50 }
 0x9af   : > { %36102 = vmatmul.mubr.f32.vlgmr.msra.gmra.mrb[22].mxu1 %v43882_v59  ;;  %v41077_v59 = vmov 0.0  }
 0x9b0   : > { %39665 = vmatpush3.bf16.msra.mxu1 %v44164_v56  ;;  %36108 = vmatprep.mubr.f32.mxu1 %v43943_v45  ;;  %v14422_v45 = vsub.f32 %v44269_v16, %v44272_v17 }
 0x9b1   : > { %39667 = vmatprep.subr.bf16.mxu1 %v44170_v4  ;;  %36420 = vmatprep.mubr.msk.f32.mxu0 %vm41076_vm3, %v41077_v59 }
 0x9b7   : > { %36109 = vmatmul.mubr.f32.vlgmr.msra.gmra.mrb[22].mxu1 %v44042_v23 }
 0x9b8   : > { %39669 = vmatpush3.bf16.msra.mxu1 %v44170_v4  ;;  %36115 = vmatprep.mubr.f32.mxu1 %v43933_v57 }
 0x9b9   : > { %39671 = vmatprep.subr.bf16.mxu1 %v44166_v54 }
 0x9bf   : > { %36116 = vmatmul.mubr.f32.vlgmr.msra.gmra.mrb[22].mxu1 %v44027_v0 }
 0x9c0   : > { %39673 = vmatpush3.bf16.msra.mxu1 %v44166_v54  ;;  %36122 = vmatprep.mubr.f32.mxu1 %v43936_v36  ;;  %v44276_v54 = vand.u32 4294901760, %v14422_v45 }
 0x9c1   : > { %39675 = vmatprep.subr.bf16.mxu1 %v44164_v56 }
 0x9c7   : > { %36123 = vmatmul.mubr.f32.vlgmr.msra.gmra.mrb[22].mxu1 %v44032_v55 }
 0x9c8   : > { %39677 = vmatpush3.bf16.msra.mxu1 %v44164_v56  ;;  %36129 = vmatprep.mubr.f32.mxu1 %v43939_v18 }
 0x9c9   : > { %39679 = vmatprep.subr.bf16.mxu1 %v44168_v38 }
 0x9cf   : > { %36130 = vmatmul.mubr.f32.vlgmr.msra.gmra.mrb[22].mxu1 %v44037_v33 }
 0x9d0   : > { %39681 = vmatpush3.bf16.msra.mxu1 %v44168_v38  ;;  %36136 = vmatprep.mubr.f32.mxu1 %v43933_v57 }
 0x9d1   : > { %39683 = vmatprep.subr.bf16.mxu1 %v44164_v56 }
 0x9d7   : > { %36137 = vmatmul.mubr.f32.vlgmr.msra.gmra.mrb[22].mxu1 %v44027_v0 }
 0x9d8   : > { %39685 = vmatpush3.bf16.msra.mxu1 %v44164_v56  ;;  %36143 = vmatprep.mubr.f32.mxu1 %v43933_v57 }
 0x9d9   : > { %39782 = vmatprep.subr.bf16.mxu1 %v41075_v50 }
 0x9df   : > { %36144 = vmatmul.mubr.f32.vlgmr.msra.gmra.mrb[22].mxu1 %v44027_v0 }
 0x9e0   : > { %36264 = vmatprep.mubr.msk.f32.mxu1 %vm41076_vm3, %v41077_v59 }
 0xa4e   : > { %v36259_v57 = vpop.f32.mrb[24].mxu0 }
 0xa4f   : > { %v14356_v36 = vand.u32 4294901760, %v36259_v57  ;;  %v14338_v18 = vpop.f32.mrb[25].mxu0 }
 0xa50   : > { %v14353_v0 = vand.u32 4294901760, %v14338_v18 }
 0xa51   : > { %v14438_v55 = vsub.f32 %v36259_v57, %v14356_v36 }
 0xa52   : > { %v39783_v33 = vpack.c.bf16 %v14356_v36, %v14353_v0  ;;  %v14431_v23 = vsub.f32 %v14338_v18, %v14353_v0 }
 0xa53   : > { %v14439_v56 = vand.u32 4294901760, %v14438_v55 }
 0xa54   : > { %v14432_v38 = vand.u32 4294901760, %v14431_v23  ;;  %v39789_v4 = vpack.c.bf16 %v14438_v55, %v14431_v23  ;;  %39784 = vmatpush3.bf16.msra.mxu1 %v39783_v33 }
 0xa55   : > { %v14440_v8 = vsub.f32 %v14438_v55, %v14439_v56  ;;  %39785 = vmatprep.subr.bf16.mxu1 %v41075_v50 }
 0xa56   : > { %v14433_v30 = vsub.f32 %v14431_v23, %v14432_v38  ;;  %v39795_v13 = vpack.c.bf16 %v14439_v56, %v14432_v38 }
 0xa57   : > { %v14441_v22 = vand.u32 4294901760, %v14440_v8  ;;  %36265 = vmatmul.mubr.f32.vlgmr.msra.gmra.mrb[24].mxu1 %v44276_v54 }
 0xa58   : > { %v14434_v62 = vand.u32 4294901760, %v14433_v30  ;;  %36271 = vmatprep.mubr.msk.f32.mxu1 %vm41076_vm3, %v41077_v59 }
 0xa5a   : > { %v39786_v31 = vpack.c.bf16 %v14441_v22, %v14434_v62 }
 0xa5c   : > { %39787 = vmatpush3.bf16.msra.mxu1 %v39786_v31 }
 0xa5d   : > { %39788 = vmatprep.subr.bf16.mxu1 %v41075_v50 }
 0xa5f   : > { %36272 = vmatmul.mubr.f32.vlgmr.msra.gmra.mrb[24].mxu1 %v44266_v6 }
 0xa60   : > { %39790 = vmatpush3.bf16.msra.mxu1 %v39789_v4  ;;  %36278 = vmatprep.mubr.msk.f32.mxu1 %vm41076_vm3, %v41077_v59 }
 0xa61   : > { %39791 = vmatprep.subr.bf16.mxu1 %v41075_v50 }
 0xa67   : > { %36279 = vmatmul.mubr.f32.vlgmr.msra.gmra.mrb[24].mxu1 %v44269_v16 }
 0xa68   : > { %39793 = vmatpush3.bf16.msra.mxu1 %v39783_v33  ;;  %36285 = vmatprep.mubr.msk.f32.mxu1 %vm41076_vm3, %v41077_v59 }
 0xa69   : > { %39794 = vmatprep.subr.bf16.mxu1 %v41075_v50 }
 0xa6f   : > { %36286 = vmatmul.mubr.f32.vlgmr.msra.gmra.mrb[24].mxu1 %v44272_v17 }
 0xa70   : > { %39796 = vmatpush3.bf16.msra.mxu1 %v39795_v13  ;;  %36292 = vmatprep.mubr.msk.f32.mxu1 %vm41076_vm3, %v41077_v59 }
 0xa71   : > { %39797 = vmatprep.subr.bf16.mxu1 %v41075_v50 }
 0xa77   : > { %36293 = vmatmul.mubr.f32.vlgmr.msra.gmra.mrb[24].mxu1 %v44266_v6 }
 0xa78   : > { %39799 = vmatpush3.bf16.msra.mxu1 %v39783_v33  ;;  %36299 = vmatprep.mubr.msk.f32.mxu1 %vm41076_vm3, %v41077_v59 }
 0xa79   : > { %39801 = vmatprep.subr.bf16.mxu1 %v44117_v1 }
 0xa7f   : > { %36300 = vmatmul.mubr.f32.vlgmr.msra.gmra.mrb[24].mxu1 %v44266_v6 }
 0xa80   : > { %39803 = vmatpush3.bf16.msra.mxu1 %v44117_v1 }
 0xa81   : > { %39805 = vmatprep.subr.bf16.mxu1 %v44123_v43 }
 0xa84   : > { %39807 = vmatpush3.bf16.msra.mxu1 %v44123_v43 }
 0xa85   : > { %39809 = vmatprep.subr.bf16.mxu1 %v44129_v44 }
 0xa88   : > { %39811 = vmatpush3.bf16.msra.mxu1 %v44129_v44 }
 0xa89   : > { %39813 = vmatprep.subr.bf16.mxu1 %v44134_v40 }
 0xa8c   : > { %39815 = vmatpush3.bf16.msra.mxu1 %v44134_v40 }
 0xa8d   : > { %39817 = vmatprep.subr.bf16.mxu1 %v44140_v21 }
 0xab2   : > { %v36145_v10 = vpop.f32.mrb[22].mxu1 }
 0xab3   : > { %v13742_v14 = vsub.f32 %v43946_v9, %v36145_v10  ;;  %v14815_v35 = vsel %vm9385_vm1, %v36145_v10, 0  ;;  %v13729_v63 = vpop.f32.mrb[23].mxu1 }
 0xab4   : > { %v44310_v52 = vand.u32 4294901760, %v14815_v35  ;;  %v13741_v53 = vsub.f32 %v43950_v46, %v13729_v63  ;;  %v14812_v5 = vsel %vm9385_vm1, %v13729_v63, 0 }
 0xab5   : > { %v13744_v39 = vsub.f32 %v13740_v47, %v13742_v14  ;;  %v44317_v19 = vand.u32 4294901760, %v14812_v5 }
 0xab6   : > { %v44320_v12 = vsub.f32 %v14815_v35, %v44310_v52  ;;  %v13743_v9 = vsub.f32 %v13739_v28, %v13741_v53  ;;  %v44355_v28 = vld [vmem:[%s46394_s1 + $0x10] sm:$0xff] }
 0xab7   : > { %v13746_v34 = vand.u32 2147483647, %v13744_v39  ;;  %v14891_v24 = vsub.f32 %v14812_v5, %v44317_v19 }
 0xab8   : > { %v14902_v46 = vand.u32 4294901760, %v44320_v12  ;;  %v13745_v20 = vand.u32 2147483647, %v13743_v9 }
 0xab9   : > { %v13748_v7 = vsel %vm9385_vm1, %v13746_v34, 0.0  ;;  %v14892_v42 = vand.u32 4294901760, %v14891_v24 }
 0xaba   : > { %v14903_v3 = vsub.f32 %v44320_v12, %v14902_v46  ;;  %v13747_v51 = vsel %vm9385_vm1, %v13745_v20, 0.0 }
 0xabb   : > { %v13749_v47 = vadd.f32 %v13748_v7, %v13747_v51  ;;  %v14893_v26 = vsub.f32 %v14891_v24, %v14892_v42 }
 0xabc   : > { %v14904_v27 = vand.u32 4294901760, %v14903_v3 }
 0xabd   : > { %13750 = vadd.xlane.f32.xlu0 %v13749_v47  ;;  %v14894_v2 = vand.u32 4294901760, %v14893_v26  ;;  %v15860_v47 = vld [vmem:[%s46395_s2 + $0x10] sm:$0xff]  ;;  %v15861_v26 = vld [vmem:[%s46395_s2 + $0x18] sm:$0xff] }
 0xabf   : > { %36318 = vmatprep.mubr.f32.mxu1 %v14894_v2  ;;  %v15880_v2 = vand.u32 4294901760, %v15860_v47 }
 0xac0   : > { %36319 = vmatmul.mubr.f32.vlgmr.msra.gmra.mrb[26].mxu1 %v14904_v27  ;;  %v15883_v27 = vand.u32 4294901760, %v15861_v26 }
 0xac1   : > { %39819 = vmatpush3.bf16.msra.mxu1 %v44140_v21  ;;  %36337 = vmatprep.mubr.f32.mxu1 %v44317_v19  ;;  %v44350_v21 = vld [vmem:[%s46394_s1 + $0x8] sm:$0xff] }
 0xac2   : > { %39821 = vmatprep.subr.bf16.mxu1 %v44136_v48 }
 0xac5   : > { %39823 = vmatpush3.bf16.msra.mxu1 %v44136_v48  ;;  %v44347_v48 = vld [vmem:[%s46394_s1] sm:$0xff] }
 0xac6   : > { %39825 = vmatprep.subr.bf16.mxu1 %v44142_v58 }
 0xac9   : > { %39827 = vmatpush3.bf16.msra.mxu1 %v44142_v58  ;;  %v16359_v58 = vand.u32 4294901760, %v44347_v48 }
 0xaca   : > { %39829 = vmatprep.subr.bf16.mxu1 %v44146_v29 }
 0xacb   : > { %v16439_v57 = vsub.f32 %v44347_v48, %v16359_v58 }
 0xacd   : > { %39831 = vmatpush3.bf16.msra.mxu1 %v44146_v29  ;;  %v16362_v29 = vand.u32 4294901760, %v44350_v21  ;;  %v16440_v18 = vand.u32 4294901760, %v16439_v57 }
 0xace   : > { %39833 = vmatprep.subr.bf16.mxu1 %v44148_v15 }
 0xacf   : > { %v16446_v36 = vsub.f32 %v44350_v21, %v16362_v29  ;;  %v16441_v0 = vsub.f32 %v16439_v57, %v16440_v18 }
 0xad0   : > { %36338 = vmatmul.mubr.f32.vlgmr.msra.gmra.mrb[26].mxu1 %v44310_v52 }
 0xad1   : > { %39835 = vmatpush3.bf16.msra.mxu1 %v44148_v15  ;;  %36356 = vmatprep.mubr.f32.mxu1 %v14891_v24  ;;  %v16365_v15 = vand.u32 4294901760, %v44355_v28  ;;  %v16447_v45 = vand.u32 4294901760, %v16446_v36  ;;  %v16442_v23 = vand.u32 4294901760, %v16441_v0  ;;  %v44379_v31 = vpack.c.bf16 %v16446_v36, %v16439_v57  ;;  %v15858_v24 = vld [vmem:[%s46395_s2] sm:$0xff] }
 0xad2   : > { %39837 = vmatprep.subr.bf16.mxu1 %v44150_v49  ;;  %v15874_v20 = vand.u32 4294901760, %v15858_v24 }
 0xad3   : > { %v16453_v55 = vsub.f32 %v44355_v28, %v16365_v15  ;;  %v44394_v14 = vpack.c.bf16 %v16447_v45, %v16440_v18 }
 0xad4   : > { %v15954_v3 = vsub.f32 %v15858_v24, %v15874_v20 }
 0xad5   : > { %39839 = vmatpush3.bf16.msra.mxu1 %v44150_v49  ;;  %v16368_v49 = vand.u32 4294901760, %v44358_v11  ;;  %v16454_v56 = vand.u32 4294901760, %v16453_v55 }
 0xad6   : > { %39841 = vmatprep.subr.bf16.mxu1 %v44152_v37  ;;  %v15955_v48 = vand.u32 4294901760, %v15954_v3 }
 0xad7   : > { %v16460_v33 = vsub.f32 %v44358_v11, %v16368_v49  ;;  %v16455_v8 = vsub.f32 %v16453_v55, %v16454_v56  ;;  %v15968_v11 = vsub.f32 %v15860_v47, %v15880_v2 }
 0xad9   : > { %39843 = vmatpush3.bf16.msra.mxu1 %v44152_v37  ;;  %v16448_v37 = vsub.f32 %v16446_v36, %v16447_v45  ;;  %v16461_v38 = vand.u32 4294901760, %v16460_v33  ;;  %v16456_v13 = vand.u32 4294901760, %v16455_v8  ;;  %v44381_v10 = vpack.c.bf16 %v16460_v33, %v16453_v55 }
 0xada   : > { %39845 = vmatprep.subr.bf16.mxu1 %v44154_v60  ;;  %v15969_v36 = vand.u32 4294901760, %v15968_v11 }
 0xadb   : > { %v16449_v4 = vand.u32 4294901760, %v16448_v37  ;;  %v16462_v30 = vsub.f32 %v16460_v33, %v16461_v38  ;;  %v44396_v35 = vpack.c.bf16 %v16461_v38, %v16454_v56 }
 0xadc   : > { %v15970_v0 = vsub.f32 %v15968_v11, %v15969_v36 }
 0xadd   : > { %39847 = vmatpush3.bf16.msra.mxu1 %v44154_v60  ;;  %v44373_v60 = vpack.c.bf16 %v16449_v4, %v16442_v23  ;;  %v16463_v22 = vand.u32 4294901760, %v16462_v30 }
 0xade   : > { %39849 = vmatprep.subr.bf16.mxu1 %v44117_v1  ;;  %v15971_v33 = vand.u32 4294901760, %v15970_v0 }
 0xadf   : > { %v44376_v62 = vpack.c.bf16 %v16463_v22, %v16456_v13 }
 0xae0   : > { %36357 = vmatmul.mubr.f32.vlgmr.msra.gmra.mrb[26].mxu1 %v44320_v12 }
 0xae1   : > { %39851 = vmatpush3.bf16.msra.mxu1 %v44117_v1  ;;  %36375 = vmatprep.mubr.f32.mxu1 %v14892_v42 }
 0xae2   : > { %39853 = vmatprep.subr.bf16.mxu1 %v44123_v43 }
 0xae5   : > { %39855 = vmatpush3.bf16.msra.mxu1 %v44123_v43 }
 0xae6   : > { %39857 = vmatprep.subr.bf16.mxu1 %v44129_v44 }
 0xae9   : > { %39859 = vmatpush3.bf16.msra.mxu1 %v44129_v44 }
 0xaea   : > { %39861 = vmatprep.subr.bf16.mxu1 %v44134_v40 }
 0xaed   : > { %39863 = vmatpush3.bf16.msra.mxu1 %v44134_v40 }
 0xaee   : > { %39865 = vmatprep.subr.bf16.mxu1 %v44156_v32 }
 0xaf0   : > { %36376 = vmatmul.mubr.f32.vlgmr.msra.gmra.mrb[26].mxu1 %v14902_v46  ;;  %v15859_v46 = vld [vmem:[%s46395_s2 + $0x8] sm:$0xff]  ;;  %s46410_s2 = sadd.s32 4294967295, %s41042_s26  }
 0xaf1   : > { %39867 = vmatpush3.bf16.msra.mxu1 %v44156_v32  ;;  %36394 = vmatprep.mubr.f32.mxu1 %v44317_v19  ;;  %v44411_v32 = vpack.c.bf16 %v16362_v29, %v16359_v58  ;;  %v15877_v7 = vand.u32 4294901760, %v15859_v46  ;;  %v44485_v58 = vpack.c.bf16 %v15883_v27, %v15880_v2  ;;  %v15956_v29 = vsub.f32 %v15954_v3, %v15955_v48  ;;  %p1093_p8 = scmp.lt.s32.totalorder %s46410_s2, 1  ;;  %s46411_s3 = smov %s46410_s2 }
 0xaf2   : > { %39869 = vmatprep.subr.bf16.mxu1 %v44158_v61 }
 0xaf3   : > { %v44479_v42 = vpack.c.bf16 %v15877_v7, %v15874_v20  ;;  %v15961_v51 = vsub.f32 %v15859_v46, %v15877_v7  ;;  %s46416_s3 = smov (!%p1093_p8, %s46411_s3), 1 }
 0xaf5   : > { %39871 = vmatpush3.bf16.msra.mxu1 %v44158_v61  ;;  %v15962_v21 = vand.u32 4294901760, %v15961_v51  ;;  %v44493_v56 = vpack.c.bf16 %v15961_v51, %v15954_v3 }
 0xaf6   : > { %39873 = vmatprep.subr.bf16.mxu1 %v44160_v41 }
 0xaf7   : > { %v15963_v28 = vsub.f32 %v15961_v51, %v15962_v21  ;;  %v44497_v4 = vpack.c.bf16 %v15962_v21, %v15955_v48 }
 0xaf9   : > { %39875 = vmatpush3.bf16.msra.mxu1 %v44160_v41  ;;  %v15964_v57 = vand.u32 4294901760, %v15963_v28 }
 0xafa   : > { %39877 = vmatprep.subr.bf16.mxu1 %v44162_v25 }
 0xafd   : > { %39879 = vmatpush3.bf16.msra.mxu1 %v44162_v25 }
 0xafe   : > { %39881 = vmatprep.subr.bf16.mxu1 %v44117_v1 }
 0xb00   : > { %36395 = vmatmul.mubr.f32.vlgmr.msra.gmra.mrb[26].mxu1 %v44310_v52 }
 0xb01   : > { %39883 = vmatpush3.bf16.msra.mxu1 %v44117_v1  ;;  %36413 = vmatprep.mubr.f32.mxu1 %v44317_v19  ;;  %v44416_v1 = vpack.c.bf16 %v16368_v49, %v16365_v15  ;;  %v15975_v15 = vsub.f32 %v15861_v26, %v15883_v27  ;;  %v15957_v49 = vand.u32 4294901760, %v15956_v29 }
 0xb02   : > { %39885 = vmatprep.subr.bf16.mxu1 %v44123_v43 }
 0xb03   : > { %v15976_v18 = vand.u32 4294901760, %v15975_v15  ;;  %v44489_v45 = vpack.c.bf16 %v15964_v57, %v15957_v49  ;;  %v44495_v38 = vpack.c.bf16 %v15975_v15, %v15968_v11  ;;  %v15856_v57 = vld [vmem:[%s46397_s15] sm:$0xff]  ;;  %s46404_s15 = sld [smem:[#allocation11_spill]] }
 0xb05   : > { %39887 = vmatpush3.bf16.msra.mxu1 %v44123_v43  ;;  %v15977_v55 = vsub.f32 %v15975_v15, %v15976_v18  ;;  %v44499_v8 = vpack.c.bf16 %v15976_v18, %v15969_v36  ;;  %v17294_v36 = vsel %vm16843_vm4, %v15856_v57, 0 }
 0xb06   : > { %39889 = vmatprep.subr.bf16.mxu1 %v44129_v44  ;;  %v44642_v18 = vand.u32 4294901760, %v17294_v36 }
 0xb07   : > { %v15978_v37 = vand.u32 4294901760, %v15977_v55 }
 0xb09   : > { %39891 = vmatpush3.bf16.msra.mxu1 %v44129_v44  ;;  %v44491_v23 = vpack.c.bf16 %v15978_v37, %v15971_v33 }
 0xb0a   : > { %39893 = vmatprep.subr.bf16.mxu1 %v44134_v40 }
 0xb0d   : > { %39895 = vmatpush3.bf16.msra.mxu1 %v44134_v40 }
 0xb0e   : > { %39950 = vmatprep.subr.bf16.mxu1 %v41075_v50 }
 0xb10   : > { %36414 = vmatmul.mubr.f32.vlgmr.msra.gmra.mrb[26].mxu1 %v44310_v52 }
 0xb11   : > { %39952 = vmatpush3.bf16.msra.mxu1 %v44411_v32  ;;  %36532 = vmatprep.mubr.msk.f32.mxu1 %vm41076_vm3, %v41077_v59 }
 0xb12   : > { %39953 = vmatprep.subr.bf16.mxu1 %v41075_v50 }
 0xb15   : > { %39955 = vmatpush3.bf16.msra.mxu1 %v44416_v1 }
 0xb16   : > { %39956 = vmatprep.subr.bf16.mxu1 %v41075_v50 }
 0xb4a   : > { %v13751_v43 = vpop.xlane.xlu0 %13750 }
 0xb4b   : > { %v13752_v44 = vrot.slane %v13751_v43, 4 }
 0xb4d   : > { %v13753_v40 = vadd.f32 %v13752_v44, %v13751_v43 }
 0xb4f   : > { %v13754_v61 = vrot.slane %v13753_v40, 2 }
 0xb51   : > { %v13755_v41 = vadd.f32 %v13754_v61, %v13753_v40 }
 0xb52   : > { %v44423_v25 = vpop.f32.mrb[24].mxu1 }
 0xb53   : > { %v15871_v63 = vsel %vm2701_vm0, %v44423_v25, 0  ;;  %v13756_v52 = vrot.slane %v13755_v41, 1  ;;  %v36301_v53 = vpop.f32.mrb[25].mxu1 }
 0xb54   : > { %v44427_v5 = vand.u32 4294901760, %v15871_v63 }
 0xb55   : > { %v13757_v39 = vadd.f32 %v13756_v52, %v13755_v41 }
 0xb56   : > { %v44430_v19 = vsub.f32 %v15871_v63, %v44427_v5 }
 0xb57   : > { %40944 = vpush %v13757_v39 }
 0xb58   : > { %v44433_v12 = vand.u32 4294901760, %v44430_v19 }
 0xb5a   : > { %v15945_v9 = vsub.f32 %v44430_v19, %v44433_v12 }
 0xb5c   : > { %v44437_v34 = vand.u32 4294901760, %v15945_v9 }
 0xb5e   : > { %36533 = vmatmul.mubr.f32.vlgmr.msra.gmra.mrb[28].mxu1 %v44437_v34 }
 0xb5f   : > { %39958 = vmatpush3.bf16.msra.mxu1 %v44373_v60  ;;  %36543 = vmatprep.mubr.msk.f32.mxu1 %vm41076_vm3, %v41077_v59 }
 0xb60   : > { %39959 = vmatprep.subr.bf16.mxu1 %v41075_v50 }
 0xb63   : > { %39961 = vmatpush3.bf16.msra.mxu1 %v44376_v62 }
 0xb64   : > { %39962 = vmatprep.subr.bf16.mxu1 %v41075_v50 }
 0xb66   : > { %36544 = vmatmul.mubr.f32.vlgmr.msra.gmra.mrb[28].mxu1 %v44427_v5 }
 0xb67   : > { %39964 = vmatpush3.bf16.msra.mxu1 %v44379_v31  ;;  %36554 = vmatprep.mubr.msk.f32.mxu1 %vm41076_vm3, %v41077_v59 }
 0xb68   : > { %39965 = vmatprep.subr.bf16.mxu1 %v41075_v50 }
 0xb6b   : > { %39967 = vmatpush3.bf16.msra.mxu1 %v44381_v10 }
 0xb6c   : > { %39968 = vmatprep.subr.bf16.mxu1 %v41075_v50 }
 0xb6e   : > { %36555 = vmatmul.mubr.f32.vlgmr.msra.gmra.mrb[28].mxu1 %v44430_v19 }
 0xb6f   : > { %39970 = vmatpush3.bf16.msra.mxu1 %v44411_v32  ;;  %36565 = vmatprep.mubr.msk.f32.mxu1 %vm41076_vm3, %v41077_v59 }
 0xb70   : > { %39971 = vmatprep.subr.bf16.mxu1 %v41075_v50 }
 0xb73   : > { %39973 = vmatpush3.bf16.msra.mxu1 %v44416_v1 }
 0xb74   : > { %39974 = vmatprep.subr.bf16.mxu1 %v41075_v50 }
 0xb76   : > { %36566 = vmatmul.mubr.f32.vlgmr.msra.gmra.mrb[28].mxu1 %v44433_v12 }
 0xb77   : > { %39976 = vmatpush3.bf16.msra.mxu1 %v44394_v14  ;;  %36576 = vmatprep.mubr.msk.f32.mxu1 %vm41076_vm3, %v41077_v59 }
 0xb78   : > { %39977 = vmatprep.subr.bf16.mxu1 %v41075_v50 }
 0xb7b   : > { %39979 = vmatpush3.bf16.msra.mxu1 %v44396_v35 }
 0xb7c   : > { %39980 = vmatprep.subr.bf16.mxu1 %v41075_v50 }
 0xb7e   : > { %36577 = vmatmul.mubr.f32.vlgmr.msra.gmra.mrb[28].mxu1 %v44427_v5 }
 0xb7f   : > { %39982 = vmatpush3.bf16.msra.mxu1 %v44411_v32  ;;  %36587 = vmatprep.mubr.msk.f32.mxu1 %vm41076_vm3, %v41077_v59 }
 0xb80   : > { %39983 = vmatprep.subr.bf16.mxu1 %v41075_v50 }
 0xb83   : > { %39985 = vmatpush3.bf16.msra.mxu1 %v44416_v1 }
 0xb84   : > { %39986 = vmatprep.subr.bf16.mxu1 %v41075_v50 }
 0xb86   : > { %36588 = vmatmul.mubr.f32.vlgmr.msra.gmra.mrb[28].mxu1 %v44427_v5 }
 0xb87   : > { %36658 = vmatprep.mubr.msk.f32.mxu1 %vm41076_vm3, %v41077_v59  ;;  %39988 = vmatpush3.bf16.msra.mxu1 %v44479_v42 }
 0xb88   : > { %39989 = vmatprep.subr.bf16.mxu1 %v41075_v50 }
 0xb8b   : > { %39991 = vmatpush3.bf16.msra.mxu1 %v44485_v58 }
 0xb8c   : > { %39992 = vmatprep.subr.bf16.mxu1 %v41075_v50 }
 0xbe3   : > { %v36415_v30 = vpop.f32.mrb[26].mxu1 }
 0xbe4   : > { %v15401_v13 = vand.u32 4294901760, %v36415_v30  ;;  %v15387_v22 = vpop.f32.mrb[27].mxu1 }
 0xbe5   : > { %v15398_v43 = vand.u32 4294901760, %v15387_v22 }
 0xbe6   : > { %v15483_v44 = vsub.f32 %v36415_v30, %v15401_v13  ;;  %v15869_v30 = vld [vmem:[%s46398_s16 + $0x18] sm:$0xff] }
 0xbe7   : > { %v39897_v40 = vpack.c.bf16 %v15401_v13, %v15398_v43  ;;  %v15476_v61 = vsub.f32 %v15387_v22, %v15398_v43  ;;  %v19637_v13 = vand.u32 4294901760, %v15869_v30 }
 0xbe8   : > { %v15484_v41 = vand.u32 4294901760, %v15483_v44 }
 0xbe9   : > { %v15477_v63 = vand.u32 4294901760, %v15476_v61  ;;  %v39903_v52 = vpack.c.bf16 %v15483_v44, %v15476_v61  ;;  %39898 = vmatpush3.bf16.msra.mxu0 %v39897_v40 }
 0xbea   : > { %v15485_v53 = vsub.f32 %v15483_v44, %v15484_v41  ;;  %39899 = vmatprep.subr.bf16.mxu0 %v41075_v50 }
 0xbeb   : > { %v15478_v39 = vsub.f32 %v15476_v61, %v15477_v63  ;;  %v39909_v9 = vpack.c.bf16 %v15484_v41, %v15477_v63  ;;  %v19729_v63 = vsub.f32 %v15869_v30, %v19637_v13 }
 0xbec   : > { %v15486_v24 = vand.u32 4294901760, %v15485_v53  ;;  %36421 = vmatmul.mubr.f32.vlgmr.msra.gmra.mrb[26].mxu0 %v44276_v54 }
 0xbed   : > { %v15479_v46 = vand.u32 4294901760, %v15478_v39  ;;  %36427 = vmatprep.mubr.msk.f32.mxu0 %vm41076_vm3, %v41077_v59 }
 0xbef   : > { %v39900_v20 = vpack.c.bf16 %v15486_v24, %v15479_v46 }
 0xbf1   : > { %39901 = vmatpush3.bf16.msra.mxu0 %v39900_v20 }
 0xbf2   : > { %39902 = vmatprep.subr.bf16.mxu0 %v41075_v50 }
 0xbf4   : > { %36428 = vmatmul.mubr.f32.vlgmr.msra.gmra.mrb[26].mxu0 %v44266_v6 }
 0xbf5   : > { %39904 = vmatpush3.bf16.msra.mxu0 %v39903_v52  ;;  %36434 = vmatprep.mubr.msk.f32.mxu0 %vm41076_vm3, %v41077_v59 }
 0xbf6   : > { %39905 = vmatprep.subr.bf16.mxu0 %v41075_v50 }
 0xbfc   : > { %36435 = vmatmul.mubr.f32.vlgmr.msra.gmra.mrb[26].mxu0 %v44269_v16 }
 0xbfd   : > { %39907 = vmatpush3.bf16.msra.mxu0 %v39897_v40  ;;  %36441 = vmatprep.mubr.msk.f32.mxu0 %vm41076_vm3, %v41077_v59 }
 0xbfe   : > { %39908 = vmatprep.subr.bf16.mxu0 %v41075_v50 }
 0xc04   : > { %36442 = vmatmul.mubr.f32.vlgmr.msra.gmra.mrb[26].mxu0 %v44272_v17 }
 0xc05   : > { %39910 = vmatpush3.bf16.msra.mxu0 %v39909_v9  ;;  %36448 = vmatprep.mubr.msk.f32.mxu0 %vm41076_vm3, %v41077_v59  ;;  %v19730_v9 = vand.u32 4294901760, %v19729_v63 }
 0xc06   : > { %39911 = vmatprep.subr.bf16.mxu0 %v41075_v50 }
 0xc07   : > { %v19731_v20 = vsub.f32 %v19729_v63, %v19730_v9 }
 0xc0c   : > { %36449 = vmatmul.mubr.f32.vlgmr.msra.gmra.mrb[26].mxu0 %v44266_v6 }
 0xc0d   : > { %39913 = vmatpush3.bf16.msra.mxu0 %v39897_v40  ;;  %36455 = vmatprep.mubr.msk.f32.mxu0 %vm41076_vm3, %v41077_v59 }
 0xc0e   : > { %39914 = vmatprep.subr.bf16.mxu0 %v41075_v50 }
 0xc14   : > { %36456 = vmatmul.mubr.f32.vlgmr.msra.gmra.mrb[26].mxu0 %v44266_v6  ;;  %v15857_v6 = vld [vmem:[%s46396_s11] sm:$0xff]  ;;  %s46403_s11 = sld [smem:[#allocation12_spill]] }
 0xc15   : > { %39916 = vmatpush3.bf16.msra.mxu0 %v44479_v42  ;;  %36466 = vmatprep.mubr.msk.f32.mxu0 %vm41076_vm3, %v41077_v59  ;;  %v16845_v16 = vsel %vm16843_vm4, %v15857_v6, 0 }
 0xc16   : > { %39917 = vmatprep.subr.bf16.mxu0 %v41075_v50  ;;  %v44569_v17 = vand.u32 4294901760, %v16845_v16 }
 0xc18   : > { %v44572_v54 = vsub.f32 %v16845_v16, %v44569_v17  ;;  %v19732_v16 = vand.u32 4294901760, %v19731_v20 }
 0xc19   : > { %39919 = vmatpush3.bf16.msra.mxu0 %v44485_v58 }
 0xc1a   : > { %39920 = vmatprep.subr.bf16.mxu0 %v41075_v50 }
 0xc1c   : > { %36467 = vmatmul.mubr.f32.vlgmr.msra.gmra.mrb[28].mxu0 %v44437_v34 }
 0xc1d   : > { %39922 = vmatpush3.bf16.msra.mxu0 %v44489_v45  ;;  %36477 = vmatprep.mubr.msk.f32.mxu0 %vm41076_vm3, %v41077_v59 }
 0xc1e   : > { %39923 = vmatprep.subr.bf16.mxu0 %v41075_v50 }
 0xc21   : > { %39925 = vmatpush3.bf16.msra.mxu0 %v44491_v23 }
 0xc22   : > { %39926 = vmatprep.subr.bf16.mxu0 %v41075_v50 }
 0xc24   : > { %36478 = vmatmul.mubr.f32.vlgmr.msra.gmra.mrb[28].mxu0 %v44427_v5 }
 0xc25   : > { %39928 = vmatpush3.bf16.msra.mxu0 %v44493_v56  ;;  %36488 = vmatprep.mubr.msk.f32.mxu0 %vm41076_vm3, %v41077_v59 }
 0xc26   : > { %39929 = vmatprep.subr.bf16.mxu0 %v41075_v50 }
 0xc29   : > { %39931 = vmatpush3.bf16.msra.mxu0 %v44495_v38 }
 0xc2a   : > { %39932 = vmatprep.subr.bf16.mxu0 %v41075_v50 }
 0xc2c   : > { %36489 = vmatmul.mubr.f32.vlgmr.msra.gmra.mrb[28].mxu0 %v44430_v19  ;;  %v44575_v19 = vand.u32 4294901760, %v44572_v54 }
 0xc2d   : > { %39934 = vmatpush3.bf16.msra.mxu0 %v44479_v42  ;;  %36499 = vmatprep.mubr.msk.f32.mxu0 %vm41076_vm3, %v41077_v59 }
 0xc2e   : > { %39935 = vmatprep.subr.bf16.mxu0 %v41075_v50 }
 0xc31   : > { %39937 = vmatpush3.bf16.msra.mxu0 %v44485_v58 }
 0xc32   : > { %39938 = vmatprep.subr.bf16.mxu0 %v41075_v50 }
 0xc34   : > { %36500 = vmatmul.mubr.f32.vlgmr.msra.gmra.mrb[28].mxu0 %v44433_v12  ;;  %v16916_v12 = vsub.f32 %v44572_v54, %v44575_v19 }
 0xc35   : > { %39940 = vmatpush3.bf16.msra.mxu0 %v44497_v4  ;;  %36510 = vmatprep.mubr.msk.f32.mxu0 %vm41076_vm3, %v41077_v59 }
 0xc36   : > { %39941 = vmatprep.subr.bf16.mxu0 %v41075_v50  ;;  %v44579_v7 = vand.u32 4294901760, %v16916_v12 }
 0xc39   : > { %39943 = vmatpush3.bf16.msra.mxu0 %v44499_v8 }
 0xc3a   : > { %39944 = vmatprep.subr.bf16.mxu0 %v41075_v50 }
 0xc3c   : > { %36511 = vmatmul.mubr.f32.vlgmr.msra.gmra.mrb[28].mxu0 %v44427_v5 }
 0xc3d   : > { %39946 = vmatpush3.bf16.msra.mxu0 %v44479_v42  ;;  %36521 = vmatprep.mubr.msk.f32.mxu0 %vm41076_vm3, %v41077_v59 }
 0xc3e   : > { %39947 = vmatprep.subr.bf16.mxu0 %v41075_v50 }
 0xc41   : > { %39949 = vmatpush3.bf16.msra.mxu0 %v44485_v58 }
 0xc42   : > { %36590 = vmatprep.subr.mxu0 %v41077_v59 }
 0xc44   : > { %36522 = vmatmul.mubr.f32.vlgmr.msra.gmra.mrb[28].mxu0 %v44427_v5 }
 0xc45   : > { %36592 = vmatprep.mubr.msk.f32.mxu0 %vm41076_vm3, %v41077_v59 }
 0xc59   : > { %v16839_v34 = vpop.f32.mrb[28].mxu1 }
 0xc5a   : > { %v16848_v5 = vand.u32 4294901760, %v16839_v34  ;;  %v36589_v3 = vpop.f32.mrb[29].mxu1 }
 0xc5c   : > { %v16925_v51 = vsub.f32 %v16839_v34, %v16848_v5  ;;  %36591 = vmatpush3.msra.mxu0 %v16848_v5 }
 0xc5d   : > { %36593 = vmatmul.mubr.f32.vlgmr.msra.gmra.mrb[30].mxu0 %v44579_v7  ;;  %36595 = vmatprep.subr.mxu0 %v41077_v59 }
 0xc5e   : > { %v16926_v47 = vand.u32 4294901760, %v16925_v51  ;;  %36597 = vmatprep.mubr.msk.f32.mxu0 %vm41076_vm3, %v41077_v59 }
 0xc60   : > { %v16927_v26 = vsub.f32 %v16925_v51, %v16926_v47 }
 0xc62   : > { %v16928_v2 = vand.u32 4294901760, %v16927_v26 }
 0xc64   : > { %36596 = vmatpush3.msra.mxu0 %v16928_v2 }
 0xc65   : > { %36598 = vmatmul.mubr.f32.vlgmr.msra.gmra.mrb[30].mxu0 %v44569_v17  ;;  %36600 = vmatprep.subr.mxu0 %v41077_v59 }
 0xc66   : > { %36601 = vmatpush3.msra.mxu0 %v16925_v51  ;;  %36602 = vmatprep.mubr.msk.f32.mxu0 %vm41076_vm3, %v41077_v59 }
 0xc67   : > { %36605 = vmatprep.subr.mxu0 %v41077_v59 }
 0xc6d   : > { %36603 = vmatmul.mubr.f32.vlgmr.msra.gmra.mrb[30].mxu0 %v44572_v54 }
 0xc6e   : > { %36606 = vmatpush3.msra.mxu0 %v16848_v5  ;;  %36607 = vmatprep.mubr.msk.f32.mxu0 %vm41076_vm3, %v41077_v59 }
 0xc6f   : > { %36610 = vmatprep.subr.mxu0 %v41077_v59 }
 0xc75   : > { %36608 = vmatmul.mubr.f32.vlgmr.msra.gmra.mrb[30].mxu0 %v44575_v19 }
 0xc76   : > { %36611 = vmatpush3.msra.mxu0 %v16926_v47  ;;  %36612 = vmatprep.mubr.msk.f32.mxu0 %vm41076_vm3, %v41077_v59 }
 0xc77   : > { %36615 = vmatprep.subr.mxu0 %v41077_v59 }
 0xc7d   : > { %36613 = vmatmul.mubr.f32.vlgmr.msra.gmra.mrb[30].mxu0 %v44569_v17 }
 0xc7e   : > { %36616 = vmatpush3.msra.mxu0 %v16848_v5  ;;  %36617 = vmatprep.mubr.msk.f32.mxu0 %vm41076_vm3, %v41077_v59 }
 0xc7f   : > { %36620 = vmatprep.subr.mxu0 %v41077_v59 }
 0xc85   : > { %36618 = vmatmul.mubr.f32.vlgmr.msra.gmra.mrb[30].mxu0 %v44569_v17 }
 0xc86   : > { %36622 = vmatprep.mubr.msk.f32.mxu0 %vm41076_vm3, %v41077_v59 }
 0xce7   : > { %v44605_v27 = vpop.f32.mrb[26].mxu0 }
 0xce8   : > { %v17743_v48 = vsel %vm2701_vm0, %v44605_v27, 0  ;;  %v36457_v21 = vpop.f32.mrb[27].mxu0 }
 0xce9   : > { %v44609_v29 = vand.u32 4294901760, %v17743_v48 }
 0xceb   : > { %v44612_v28 = vsub.f32 %v17743_v48, %v44609_v29 }
 0xced   : > { %v44615_v11 = vand.u32 4294901760, %v44612_v28 }
 0xcef   : > { %v17817_v15 = vsub.f32 %v44612_v28, %v44615_v11 }
 0xcf1   : > { %v44619_v49 = vand.u32 4294901760, %v17817_v15 }
 0xcf3   : > { %36659 = vmatmul.mubr.f32.vlgmr.msra.gmra.mrb[30].mxu1 %v44619_v49 }
 0xcf4   : > { %39994 = vmatpush3.bf16.msra.mxu1 %v44489_v45  ;;  %36669 = vmatprep.mubr.msk.f32.mxu1 %vm41076_vm3, %v41077_v59  ;;  %v44648_v45 = vsub.f32 %v17294_v36, %v44642_v18 }
 0xcf5   : > { %39995 = vmatprep.subr.bf16.mxu1 %v41075_v50 }
 0xcf6   : > { %v44655_v0 = vand.u32 4294901760, %v44648_v45 }
 0xcf8   : > { %39997 = vmatpush3.bf16.msra.mxu1 %v44491_v23  ;;  %v17365_v55 = vsub.f32 %v44648_v45, %v44655_v0 }
 0xcf9   : > { %39998 = vmatprep.subr.bf16.mxu1 %v41075_v50 }
 0xcfa   : > { %v44666_v37 = vand.u32 4294901760, %v17365_v55 }
 0xcfb   : > { %36670 = vmatmul.mubr.f32.vlgmr.msra.gmra.mrb[30].mxu1 %v44609_v29 }
 0xcfc   : > { %40000 = vmatpush3.bf16.msra.mxu1 %v44493_v56  ;;  %36680 = vmatprep.mubr.msk.f32.mxu1 %vm41076_vm3, %v41077_v59 }
 0xcfd   : > { %40001 = vmatprep.subr.bf16.mxu1 %v41075_v50 }
 0xd00   : > { %40003 = vmatpush3.bf16.msra.mxu1 %v44495_v38 }
 0xd01   : > { %40004 = vmatprep.subr.bf16.mxu1 %v41075_v50 }
 0xd03   : > { %36681 = vmatmul.mubr.f32.vlgmr.msra.gmra.mrb[30].mxu1 %v44612_v28 }
 0xd04   : > { %40006 = vmatpush3.bf16.msra.mxu1 %v44479_v42  ;;  %36691 = vmatprep.mubr.msk.f32.mxu1 %vm41076_vm3, %v41077_v59 }
 0xd05   : > { %40007 = vmatprep.subr.bf16.mxu1 %v41075_v50 }
 0xd08   : > { %40009 = vmatpush3.bf16.msra.mxu1 %v44485_v58 }
 0xd09   : > { %40010 = vmatprep.subr.bf16.mxu1 %v41075_v50 }
 0xd0b   : > { %36692 = vmatmul.mubr.f32.vlgmr.msra.gmra.mrb[30].mxu1 %v44615_v11 }
 0xd0c   : > { %40012 = vmatpush3.bf16.msra.mxu1 %v44497_v4  ;;  %36702 = vmatprep.mubr.msk.f32.mxu1 %vm41076_vm3, %v41077_v59 }
 0xd0d   : > { %40013 = vmatprep.subr.bf16.mxu1 %v41075_v50 }
 0xd10   : > { %40015 = vmatpush3.bf16.msra.mxu1 %v44499_v8 }
 0xd11   : > { %40016 = vmatprep.subr.bf16.mxu1 %v41075_v50 }
 0xd13   : > { %36703 = vmatmul.mubr.f32.vlgmr.msra.gmra.mrb[30].mxu1 %v44609_v29 }
 0xd14   : > { %40018 = vmatpush3.bf16.msra.mxu1 %v44479_v42  ;;  %36713 = vmatprep.mubr.msk.f32.mxu1 %vm41076_vm3, %v41077_v59 }
 0xd15   : > { %40019 = vmatprep.subr.bf16.mxu1 %v41075_v50 }
 0xd17   : > { %v16354_v33 = vpop.f32.mrb[28].mxu0 }
 0xd18   : > { %v17297_v23 = vand.u32 4294901760, %v16354_v33  ;;  %v36523_v56 = vpop.f32.mrb[29].mxu0  ;;  %40021 = vmatpush3.bf16.msra.mxu1 %v44485_v58  ;;  %v15868_v58 = vld [vmem:[%s46398_s16 + $0x10] sm:$0xff] }
 0xd19   : > { %36782 = vmatprep.subr.mxu1 %v41077_v59 }
 0xd1a   : > { %v17374_v38 = vsub.f32 %v16354_v33, %v17297_v23  ;;  %36621 = vmatpush3.msra.mxu0 %v17297_v23 }
 0xd1b   : > { %36623 = vmatmul.mubr.f32.vlgmr.msra.gmra.mrb[30].mxu0 %v44666_v37  ;;  %36714 = vmatmul.mubr.f32.vlgmr.msra.gmra.mrb[30].mxu1 %v44609_v29 }
 0xd1c   : > { %v17375_v42 = vand.u32 4294901760, %v17374_v38  ;;  %36625 = vmatprep.subr.mxu0 %v41077_v59  ;;  %36627 = vmatprep.mubr.msk.f32.mxu0 %vm41076_vm3, %v41077_v59 }
 0xd1d   : > { %36784 = vmatprep.mubr.msk.f32.mxu1 %vm41076_vm3, %v41077_v59 }
 0xd1e   : > { %v17376_v4 = vsub.f32 %v17374_v38, %v17375_v42 }
 0xd20   : > { %v17377_v8 = vand.u32 4294901760, %v17376_v4 }
 0xd22   : > { %36626 = vmatpush3.msra.mxu0 %v17377_v8 }
 0xd23   : > { %36628 = vmatmul.mubr.f32.vlgmr.msra.gmra.mrb[30].mxu0 %v44642_v18  ;;  %36630 = vmatprep.subr.mxu0 %v41077_v59 }
 0xd24   : > { %36631 = vmatpush3.msra.mxu0 %v17374_v38  ;;  %36632 = vmatprep.mubr.msk.f32.mxu0 %vm41076_vm3, %v41077_v59 }
 0xd25   : > { %36635 = vmatprep.subr.mxu0 %v41077_v59 }
 0xd2b   : > { %36633 = vmatmul.mubr.f32.vlgmr.msra.gmra.mrb[30].mxu0 %v44648_v45 }
 0xd2c   : > { %36636 = vmatpush3.msra.mxu0 %v17297_v23  ;;  %36637 = vmatprep.mubr.msk.f32.mxu0 %vm41076_vm3, %v41077_v59 }
 0xd2d   : > { %36640 = vmatprep.subr.mxu0 %v41077_v59 }
 0xd33   : > { %36638 = vmatmul.mubr.f32.vlgmr.msra.gmra.mrb[30].mxu0 %v44655_v0 }
 0xd34   : > { %36641 = vmatpush3.msra.mxu0 %v17375_v42  ;;  %36642 = vmatprep.mubr.msk.f32.mxu0 %vm41076_vm3, %v41077_v59 }
 0xd35   : > { %36645 = vmatprep.subr.mxu0 %v41077_v59 }
 0xd3b   : > { %36643 = vmatmul.mubr.f32.vlgmr.msra.gmra.mrb[30].mxu0 %v44642_v18 }
 0xd3c   : > { %36646 = vmatpush3.msra.mxu0 %v17297_v23  ;;  %36647 = vmatprep.mubr.msk.f32.mxu0 %vm41076_vm3, %v41077_v59 }
 0xd3d   : > { %40022 = vmatprep.subr.bf16.mxu0 %v41075_v50 }
 0xd43   : > { %36648 = vmatmul.mubr.f32.vlgmr.msra.gmra.mrb[30].mxu0 %v44642_v18 }
 0xd44   : > { %40024 = vmatpush3.bf16.msra.mxu0 %v44411_v32  ;;  %36724 = vmatprep.mubr.msk.f32.mxu0 %vm41076_vm3, %v41077_v59 }
 0xd45   : > { %40025 = vmatprep.subr.bf16.mxu0 %v41075_v50 }
 0xd48   : > { %40027 = vmatpush3.bf16.msra.mxu0 %v44416_v1 }
 0xd49   : > { %40028 = vmatprep.subr.bf16.mxu0 %v41075_v50 }
 0xd4b   : > { %36725 = vmatmul.mubr.f32.vlgmr.msra.gmra.mrb[32].mxu0 %v44619_v49 }
 0xd4c   : > { %40030 = vmatpush3.bf16.msra.mxu0 %v44373_v60  ;;  %36735 = vmatprep.mubr.msk.f32.mxu0 %vm41076_vm3, %v41077_v59  ;;  %v15866_v60 = vld [vmem:[%s46398_s16] sm:$0xff] }
 0xd4d   : > { %40031 = vmatprep.subr.bf16.mxu0 %v41075_v50 }
 0xd50   : > { %40033 = vmatpush3.bf16.msra.mxu0 %v44376_v62  ;;  %v15867_v62 = vld [vmem:[%s46398_s16 + $0x8] sm:$0xff] }
 0xd51   : > { %40034 = vmatprep.subr.bf16.mxu0 %v41075_v50 }
 0xd53   : > { %36736 = vmatmul.mubr.f32.vlgmr.msra.gmra.mrb[32].mxu0 %v44609_v29 }
 0xd54   : > { %40036 = vmatpush3.bf16.msra.mxu0 %v44379_v31  ;;  %36746 = vmatprep.mubr.msk.f32.mxu0 %vm41076_vm3, %v41077_v59  ;;  %v19628_v31 = vand.u32 4294901760, %v15866_v60 }
 0xd55   : > { %40037 = vmatprep.subr.bf16.mxu0 %v41075_v50 }
 0xd58   : > { %40039 = vmatpush3.bf16.msra.mxu0 %v44381_v10  ;;  %v19631_v10 = vand.u32 4294901760, %v15867_v62 }
 0xd59   : > { %40040 = vmatprep.subr.bf16.mxu0 %v41075_v50 }
 0xd5b   : > { %36747 = vmatmul.mubr.f32.vlgmr.msra.gmra.mrb[32].mxu0 %v44612_v28 }
 0xd5c   : > { %40042 = vmatpush3.bf16.msra.mxu0 %v44411_v32  ;;  %36757 = vmatprep.mubr.msk.f32.mxu0 %vm41076_vm3, %v41077_v59 }
 0xd5d   : > { %40043 = vmatprep.subr.bf16.mxu0 %v41075_v50 }
 0xd60   : > { %40045 = vmatpush3.bf16.msra.mxu0 %v44416_v1 }
 0xd61   : > { %40046 = vmatprep.subr.bf16.mxu0 %v41075_v50 }
 0xd63   : > { %36758 = vmatmul.mubr.f32.vlgmr.msra.gmra.mrb[32].mxu0 %v44615_v11 }
 0xd64   : > { %40048 = vmatpush3.bf16.msra.mxu0 %v44394_v14  ;;  %36768 = vmatprep.mubr.msk.f32.mxu0 %vm41076_vm3, %v41077_v59  ;;  %v44741_v14 = vpack.c.bf16 %v19631_v10, %v19628_v31 }
 0xd65   : > { %40049 = vmatprep.subr.bf16.mxu0 %v41075_v50 }
 0xd68   : > { %40051 = vmatpush3.bf16.msra.mxu0 %v44396_v35  ;;  %v19708_v35 = vsub.f32 %v15866_v60, %v19628_v31 }
 0xd69   : > { %40052 = vmatprep.subr.bf16.mxu0 %v41075_v50 }
 0xd6a   : > { %v19709_v22 = vand.u32 4294901760, %v19708_v35 }
 0xd6b   : > { %36769 = vmatmul.mubr.f32.vlgmr.msra.gmra.mrb[32].mxu0 %v44609_v29 }
 0xd6c   : > { %40054 = vmatpush3.bf16.msra.mxu0 %v44411_v32  ;;  %36779 = vmatprep.mubr.msk.f32.mxu0 %vm41076_vm3, %v41077_v59  ;;  %v19715_v32 = vsub.f32 %v15867_v62, %v19631_v10  ;;  %v19710_v40 = vsub.f32 %v19708_v35, %v19709_v22 }
 0xd6d   : > { %40055 = vmatprep.subr.bf16.mxu0 %v41075_v50 }
 0xd6e   : > { %v19716_v43 = vand.u32 4294901760, %v19715_v32  ;;  %v19711_v52 = vand.u32 4294901760, %v19710_v40  ;;  %v44755_v34 = vpack.c.bf16 %v19715_v32, %v19708_v35 }
 0xd70   : > { %40057 = vmatpush3.bf16.msra.mxu0 %v44416_v1  ;;  %v19634_v1 = vand.u32 4294901760, %v15868_v58  ;;  %v19717_v61 = vsub.f32 %v19715_v32, %v19716_v43  ;;  %v44759_v3 = vpack.c.bf16 %v19716_v43, %v19709_v22 }
 0xd71   : > { %40058 = vmatprep.subr.bf16.mxu0 %v41075_v50 }
 0xd72   : > { %v44747_v44 = vpack.c.bf16 %v19637_v13, %v19634_v1  ;;  %v19722_v41 = vsub.f32 %v15868_v58, %v19634_v1  ;;  %v19718_v53 = vand.u32 4294901760, %v19717_v61 }
 0xd73   : > { %36780 = vmatmul.mubr.f32.vlgmr.msra.gmra.mrb[32].mxu0 %v44609_v29 }
 0xd74   : > { %36850 = vmatprep.mubr.msk.f32.mxu0 %vm41076_vm3, %v41077_v59  ;;  %40060 = vmatpush3.bf16.msra.mxu0 %v44741_v14  ;;  %v19723_v39 = vand.u32 4294901760, %v19722_v41  ;;  %v44751_v24 = vpack.c.bf16 %v19718_v53, %v19711_v52  ;;  %v44757_v5 = vpack.c.bf16 %v19729_v63, %v19722_v41 }
 0xd75   : > { %40061 = vmatprep.subr.bf16.mxu0 %v41075_v50 }
 0xd76   : > { %v19724_v46 = vsub.f32 %v19722_v41, %v19723_v39  ;;  %v44761_v51 = vpack.c.bf16 %v19730_v9, %v19723_v39 }
 0xd78   : > { %40063 = vmatpush3.bf16.msra.mxu0 %v44747_v44  ;;  %v19725_v6 = vand.u32 4294901760, %v19724_v46 }
 0xd79   : > { %40064 = vmatprep.subr.bf16.mxu0 %v41075_v50 }
 0xd7a   : > { %v44753_v12 = vpack.c.bf16 %v19732_v16, %v19725_v6 }
 0xdee   : > { %v44763_v47 = vpop.f32.mrb[30].mxu1 }
 0xdef   : > { %v36715_v26 = vpop.f32.mrb[31].mxu1 }
 0xe16   : > { %v44765_v2 = vpop.f32.mrb[30].mxu0 }
 0xe17   : > { %v19607_v48 = vsub.f32 %v44423_v25, %v44765_v2  ;;  %v19625_v21 = vsel %vm2701_vm0, %v44765_v2, 0  ;;  %v36649_v29 = vpop.f32.mrb[31].mxu0  ;;  %v21500_v25 = vld [vmem:[%s46400_s22] sm:$0xff]  ;;  %s46406_s22 = sld [smem:[#allocation13_spill]] }
 0xe18   : > { %v19696_v28 = vand.u32 4294901760, %v19625_v21 }
 0xe1a   : > { %v19697_v11 = vsub.f32 %v19625_v21, %v19696_v28 }
 0xe1c   : > { %v19698_v15 = vand.u32 4294901760, %v19697_v11 }
 0xe1e   : > { %v19699_v49 = vsub.f32 %v19697_v11, %v19698_v15 }
 0xe20   : > { %v19700_v57 = vand.u32 4294901760, %v19699_v49 }
 0xe22   : > { %36851 = vmatmul.mubr.f32.vlgmr.msra.gmra.mrb[34].mxu0 %v19700_v57 }
 0xe23   : > { %40066 = vmatpush3.bf16.msra.mxu0 %v44751_v24  ;;  %36861 = vmatprep.mubr.msk.f32.mxu0 %vm41076_vm3, %v41077_v59 }
 0xe24   : > { %40067 = vmatprep.subr.bf16.mxu0 %v41075_v50 }
 0xe27   : > { %40069 = vmatpush3.bf16.msra.mxu0 %v44753_v12 }
 0xe28   : > { %40070 = vmatprep.subr.bf16.mxu0 %v41075_v50 }
 0xe2a   : > { %36862 = vmatmul.mubr.f32.vlgmr.msra.gmra.mrb[34].mxu0 %v19696_v28 }
 0xe2b   : > { %40072 = vmatpush3.bf16.msra.mxu0 %v44755_v34  ;;  %36872 = vmatprep.mubr.msk.f32.mxu0 %vm41076_vm3, %v41077_v59 }
 0xe2c   : > { %40073 = vmatprep.subr.bf16.mxu0 %v41075_v50 }
 0xe2f   : > { %40075 = vmatpush3.bf16.msra.mxu0 %v44757_v5 }
 0xe30   : > { %40076 = vmatprep.subr.bf16.mxu0 %v41075_v50 }
 0xe32   : > { %36873 = vmatmul.mubr.f32.vlgmr.msra.gmra.mrb[34].mxu0 %v19697_v11 }
 0xe33   : > { %40078 = vmatpush3.bf16.msra.mxu0 %v44741_v14  ;;  %36883 = vmatprep.mubr.msk.f32.mxu0 %vm41076_vm3, %v41077_v59 }
 0xe34   : > { %40079 = vmatprep.subr.bf16.mxu0 %v41075_v50 }
 0xe37   : > { %40081 = vmatpush3.bf16.msra.mxu0 %v44747_v44 }
 0xe38   : > { %40082 = vmatprep.subr.bf16.mxu0 %v41075_v50 }
 0xe3a   : > { %36884 = vmatmul.mubr.f32.vlgmr.msra.gmra.mrb[34].mxu0 %v19698_v15 }
 0xe3b   : > { %40084 = vmatpush3.bf16.msra.mxu0 %v44759_v3  ;;  %36894 = vmatprep.mubr.msk.f32.mxu0 %vm41076_vm3, %v41077_v59 }
 0xe3c   : > { %40085 = vmatprep.subr.bf16.mxu0 %v41075_v50 }
 0xe3f   : > { %40087 = vmatpush3.bf16.msra.mxu0 %v44761_v51 }
 0xe40   : > { %40088 = vmatprep.subr.bf16.mxu0 %v41075_v50 }
 0xe42   : > { %36895 = vmatmul.mubr.f32.vlgmr.msra.gmra.mrb[34].mxu0 %v19696_v28 }
 0xe43   : > { %40090 = vmatpush3.bf16.msra.mxu0 %v44741_v14  ;;  %36905 = vmatprep.mubr.msk.f32.mxu0 %vm41076_vm3, %v41077_v59 }
 0xe44   : > { %40091 = vmatprep.subr.bf16.mxu0 %v41075_v50 }
 0xe46   : > { %v18711_v36 = vpop.f32.mrb[32].mxu0 }
 0xe47   : > { %v18716_v55 = vand.u32 4294901760, %v18711_v36  ;;  %v36781_v33 = vpop.f32.mrb[33].mxu0  ;;  %40093 = vmatpush3.bf16.msra.mxu0 %v44747_v44 }
 0xe48   : > { %37004 = vmatprep.subr.mxu0 %v41077_v59 }
 0xe49   : > { %v18793_v23 = vsub.f32 %v18711_v36, %v18716_v55  ;;  %36783 = vmatpush3.msra.mxu1 %v18716_v55 }
 0xe4a   : > { %36785 = vmatmul.mubr.f32.vlgmr.msra.gmra.mrb[32].mxu1 %v44579_v7  ;;  %36906 = vmatmul.mubr.f32.vlgmr.msra.gmra.mrb[34].mxu0 %v19696_v28  ;;  %v19162_v7 = vand.u32 4294901760, %v44763_v47 }
 0xe4b   : > { %v18794_v56 = vand.u32 4294901760, %v18793_v23  ;;  %36787 = vmatprep.subr.mxu1 %v41077_v59  ;;  %36789 = vmatprep.mubr.msk.f32.mxu1 %vm41076_vm3, %v41077_v59 }
 0xe4c   : > { %37006 = vmatprep.mubr.msk.f32.mxu0 %vm41076_vm3, %v41077_v59 }
 0xe4d   : > { %v18795_v38 = vsub.f32 %v18793_v23, %v18794_v56 }
 0xe4f   : > { %v18796_v42 = vand.u32 4294901760, %v18795_v38 }
 0xe51   : > { %36788 = vmatpush3.msra.mxu1 %v18796_v42  ;;  %v21498_v42 = vld [vmem:[%s46402_s18] sm:$0xff] }
 0xe52   : > { %36790 = vmatmul.mubr.f32.vlgmr.msra.gmra.mrb[32].mxu1 %v44569_v17  ;;  %36792 = vmatprep.subr.mxu1 %v41077_v59 }
 0xe53   : > { %36793 = vmatpush3.msra.mxu1 %v18793_v23  ;;  %36794 = vmatprep.mubr.msk.f32.mxu1 %vm41076_vm3, %v41077_v59 }
 0xe54   : > { %36797 = vmatprep.subr.mxu1 %v41077_v59 }
 0xe5a   : > { %36795 = vmatmul.mubr.f32.vlgmr.msra.gmra.mrb[32].mxu1 %v44572_v54  ;;  %v19239_v54 = vsub.f32 %v44763_v47, %v19162_v7 }
 0xe5b   : > { %36798 = vmatpush3.msra.mxu1 %v18716_v55  ;;  %36799 = vmatprep.mubr.msk.f32.mxu1 %vm41076_vm3, %v41077_v59 }
 0xe5c   : > { %36802 = vmatprep.subr.mxu1 %v41077_v59  ;;  %v19240_v4 = vand.u32 4294901760, %v19239_v54 }
 0xe62   : > { %36800 = vmatmul.mubr.f32.vlgmr.msra.gmra.mrb[32].mxu1 %v44575_v19  ;;  %v19241_v19 = vsub.f32 %v19239_v54, %v19240_v4 }
 0xe63   : > { %36803 = vmatpush3.msra.mxu1 %v18794_v56  ;;  %36804 = vmatprep.mubr.msk.f32.mxu1 %vm41076_vm3, %v41077_v59 }
 0xe64   : > { %36807 = vmatprep.subr.mxu1 %v41077_v59  ;;  %v19242_v8 = vand.u32 4294901760, %v19241_v19 }
 0xe6a   : > { %36805 = vmatmul.mubr.f32.vlgmr.msra.gmra.mrb[32].mxu1 %v44569_v17 }
 0xe6b   : > { %36808 = vmatpush3.msra.mxu1 %v18716_v55  ;;  %36809 = vmatprep.mubr.msk.f32.mxu1 %vm41076_vm3, %v41077_v59 }
 0xe6c   : > { %36812 = vmatprep.subr.mxu1 %v41077_v59 }
 0xe72   : > { %36810 = vmatmul.mubr.f32.vlgmr.msra.gmra.mrb[32].mxu1 %v44569_v17  ;;  %v20112_v17 = vld [vmem:[%s46399_s0] sm:$0xf]  ;;  %s46405_s0 = sld [smem:[#allocation16_spill]] }
 0xe73   : > { %36813 = vmatpush3.msra.mxu1 %v19162_v7  ;;  %36814 = vmatprep.mubr.msk.f32.mxu1 %vm41076_vm3, %v41077_v59 }
 0xe74   : > { %36817 = vmatprep.subr.mxu1 %v41077_v59 }
 0xe7a   : > { %36815 = vmatmul.mubr.f32.vlgmr.msra.gmra.mrb[32].mxu1 %v44666_v37 }
 0xe7b   : > { %36818 = vmatpush3.msra.mxu1 %v19242_v8  ;;  %36819 = vmatprep.mubr.msk.f32.mxu1 %vm41076_vm3, %v41077_v59 }
 0xe7c   : > { %36822 = vmatprep.subr.mxu1 %v41077_v59 }
 0xe82   : > { %36820 = vmatmul.mubr.f32.vlgmr.msra.gmra.mrb[32].mxu1 %v44642_v18 }
 0xe83   : > { %36823 = vmatpush3.msra.mxu1 %v19239_v54  ;;  %36824 = vmatprep.mubr.msk.f32.mxu1 %vm41076_vm3, %v41077_v59 }
 0xe84   : > { %36827 = vmatprep.subr.mxu1 %v41077_v59 }
 0xe8a   : > { %36825 = vmatmul.mubr.f32.vlgmr.msra.gmra.mrb[32].mxu1 %v44648_v45  ;;  %v20114_v45 = vsel %vm16843_vm4, %v20112_v17, 0 }
 0xe8b   : > { %36828 = vmatpush3.msra.mxu1 %v19162_v7  ;;  %36829 = vmatprep.mubr.msk.f32.mxu1 %vm41076_vm3, %v41077_v59 }
 0xe8c   : > { %36832 = vmatprep.subr.mxu1 %v41077_v59 }
 0xe92   : > { %36830 = vmatmul.mubr.f32.vlgmr.msra.gmra.mrb[32].mxu1 %v44655_v0  ;;  %v44855_v0 = vand.u32 4294901760, %v20114_v45 }
 0xe93   : > { %36833 = vmatpush3.msra.mxu1 %v19240_v4  ;;  %36834 = vmatprep.mubr.msk.f32.mxu1 %vm41076_vm3, %v41077_v59  ;;  %v21508_v4 = vand.u32 4294901760, %v21498_v42 }
 0xe94   : > { %36837 = vmatprep.subr.mxu1 %v41077_v59  ;;  %v44858_v37 = vsub.f32 %v20114_v45, %v44855_v0 }
 0xe95   : > { %v21586_v8 = vsub.f32 %v21498_v42, %v21508_v4 }
 0xe96   : > { %v44861_v60 = vand.u32 4294901760, %v44858_v37 }
 0xe97   : > { %v21587_v45 = vand.u32 4294901760, %v21586_v8 }
 0xe98   : > { %v20185_v62 = vsub.f32 %v44858_v37, %v44861_v60 }
 0xe9a   : > { %36835 = vmatmul.mubr.f32.vlgmr.msra.gmra.mrb[32].mxu1 %v44642_v18  ;;  %v44865_v10 = vand.u32 4294901760, %v20185_v62 }
 0xe9b   : > { %36838 = vmatpush3.msra.mxu1 %v19162_v7  ;;  %36839 = vmatprep.mubr.msk.f32.mxu1 %vm41076_vm3, %v41077_v59  ;;  %v21499_v7 = vld [vmem:[%s46402_s18 + $0x8] sm:$0xff] }
 0xe9c   : > { %36908 = vmatprep.subr.mxu1 %v41077_v59  ;;  %v21511_v19 = vand.u32 4294901760, %v21499_v7 }
 0xe9e   : > { %v21593_v17 = vsub.f32 %v21499_v7, %v21511_v19 }
 0xea0   : > { %v21594_v62 = vand.u32 4294901760, %v21593_v17 }
 0xea2   : > { %36840 = vmatmul.mubr.f32.vlgmr.msra.gmra.mrb[32].mxu1 %v44642_v18 }
 0xea3   : > { %36910 = vmatprep.mubr.msk.f32.mxu1 %vm41076_vm3, %v41077_v59 }
 0xf1d   : > { %v20108_v31 = vpop.f32.mrb[34].mxu0 }
 0xf1e   : > { %v20117_v18 = vand.u32 4294901760, %v20108_v31  ;;  %v36907_v35 = vpop.f32.mrb[35].mxu0 }
 0xf20   : > { %v20194_v32 = vsub.f32 %v20108_v31, %v20117_v18  ;;  %36909 = vmatpush3.msra.mxu1 %v20117_v18  ;;  %v21588_v31 = vsub.f32 %v21586_v8, %v21587_v45 }
 0xf21   : > { %36911 = vmatmul.mubr.f32.vlgmr.msra.gmra.mrb[34].mxu1 %v44865_v10  ;;  %36913 = vmatprep.subr.mxu1 %v41077_v59 }
 0xf22   : > { %v20195_v58 = vand.u32 4294901760, %v20194_v32  ;;  %36915 = vmatprep.mubr.msk.f32.mxu1 %vm41076_vm3, %v41077_v59  ;;  %v21589_v35 = vand.u32 4294901760, %v21588_v31 }
 0xf24   : > { %v20196_v30 = vsub.f32 %v20194_v32, %v20195_v58 }
 0xf26   : > { %v20197_v1 = vand.u32 4294901760, %v20196_v30  ;;  %v44975_v30 = vpack.c.bf16 %v21593_v17, %v21586_v8 }
 0xf28   : > { %36914 = vmatpush3.msra.mxu1 %v20197_v1  ;;  %v44987_v1 = vpack.c.bf16 %v21594_v62, %v21587_v45 }
 0xf29   : > { %36916 = vmatmul.mubr.f32.vlgmr.msra.gmra.mrb[34].mxu1 %v44855_v0  ;;  %36918 = vmatprep.subr.mxu1 %v41077_v59 }
 0xf2a   : > { %36919 = vmatpush3.msra.mxu1 %v20194_v32  ;;  %36920 = vmatprep.mubr.msk.f32.mxu1 %vm41076_vm3, %v41077_v59 }
 0xf2b   : > { %36923 = vmatprep.subr.mxu1 %v41077_v59 }
 0xf31   : > { %36921 = vmatmul.mubr.f32.vlgmr.msra.gmra.mrb[34].mxu1 %v44858_v37 }
 0xf32   : > { %36924 = vmatpush3.msra.mxu1 %v20117_v18  ;;  %36925 = vmatprep.mubr.msk.f32.mxu1 %vm41076_vm3, %v41077_v59 }
 0xf33   : > { %36928 = vmatprep.subr.mxu1 %v41077_v59 }
 0xf39   : > { %36926 = vmatmul.mubr.f32.vlgmr.msra.gmra.mrb[34].mxu1 %v44861_v60 }
 0xf3a   : > { %36929 = vmatpush3.msra.mxu1 %v20195_v58  ;;  %36930 = vmatprep.mubr.msk.f32.mxu1 %vm41076_vm3, %v41077_v59 }
 0xf3b   : > { %36933 = vmatprep.subr.mxu1 %v41077_v59 }
 0xf41   : > { %36931 = vmatmul.mubr.f32.vlgmr.msra.gmra.mrb[34].mxu1 %v44855_v0 }
 0xf42   : > { %36934 = vmatpush3.msra.mxu1 %v20117_v18  ;;  %36935 = vmatprep.mubr.msk.f32.mxu1 %vm41076_vm3, %v41077_v59  ;;  %v21595_v18 = vsub.f32 %v21593_v17, %v21594_v62 }
 0xf43   : > { %40094 = vmatprep.subr.bf16.mxu1 %v41075_v50 }
 0xf44   : > { %v21596_v32 = vand.u32 4294901760, %v21595_v18 }
 0xf46   : > { %v44969_v58 = vpack.c.bf16 %v21596_v32, %v21589_v35 }
 0xf49   : > { %36936 = vmatmul.mubr.f32.vlgmr.msra.gmra.mrb[34].mxu1 %v44855_v0 }
 0xf4a   : > { %40096 = vmatpush3.bf16.msra.mxu1 %v44741_v14  ;;  %36946 = vmatprep.mubr.msk.f32.mxu1 %vm41076_vm3, %v41077_v59 }
 0xf4b   : > { %40097 = vmatprep.subr.bf16.mxu1 %v41075_v50 }
 0xf4e   : > { %40099 = vmatpush3.bf16.msra.mxu1 %v44747_v44 }
 0xf4f   : > { %40100 = vmatprep.subr.bf16.mxu1 %v41075_v50 }
 0xf75   : > { %v19603_v13 = vpop.f32.mrb[32].mxu1 }
 0xf76   : > { %v19608_v22 = vsub.f32 %v44605_v27, %v19603_v13  ;;  %v20563_v43 = vsel %vm2701_vm0, %v19603_v13, 0  ;;  %v36841_v40 = vpop.f32.mrb[33].mxu1  ;;  %v21501_v27 = vld [vmem:[%s46401_s10 + $0x8] sm:$0xff]  ;;  %v44994_v13 = vpack.c.bf16 %v21511_v19, %v21508_v4 }
 0xf77   : > { %v20634_v61 = vand.u32 4294901760, %v20563_v43  ;;  %v21970_v20 = vand.u32 4294901760, %v21501_v27 }
 0xf78   : > { %v19609_v41 = vsub.f32 %v19607_v48, %v19608_v22 }
 0xf79   : > { %v20635_v63 = vsub.f32 %v20563_v43, %v20634_v61  ;;  %v22052_v16 = vsub.f32 %v21501_v27, %v21970_v20 }
 0xf7a   : > { %v19610_v52 = vand.u32 2147483647, %v19609_v41 }
 0xf7b   : > { %v20636_v53 = vand.u32 4294901760, %v20635_v63 }
 0xf7c   : > { %v19611_v39 = vsel %vm2701_vm0, %v19610_v52, 0.0 }
 0xf7d   : > { %v20637_v9 = vsub.f32 %v20635_v63, %v20636_v53  ;;  %19612 = vadd.xlane.f32.xlu1 %v19611_v39 }
 0xf7f   : > { %v20638_v46 = vand.u32 4294901760, %v20637_v9 }
 0xf81   : > { %36947 = vmatmul.mubr.f32.vlgmr.msra.gmra.mrb[36].mxu1 %v20638_v46 }
 0xf82   : > { %40102 = vmatpush3.bf16.msra.mxu1 %v44751_v24  ;;  %36957 = vmatprep.mubr.msk.f32.mxu1 %vm41076_vm3, %v41077_v59  ;;  %v21967_v24 = vand.u32 4294901760, %v21500_v25 }
 0xf83   : > { %40103 = vmatprep.subr.bf16.mxu1 %v41075_v50 }
 0xf84   : > { %v22045_v6 = vsub.f32 %v21500_v25, %v21967_v24 }
 0xf86   : > { %40105 = vmatpush3.bf16.msra.mxu1 %v44753_v12  ;;  %v44932_v12 = vpack.c.bf16 %v21970_v20, %v21967_v24 }
 0xf87   : > { %40106 = vmatprep.subr.bf16.mxu1 %v41075_v50 }
 0xf89   : > { %36958 = vmatmul.mubr.f32.vlgmr.msra.gmra.mrb[36].mxu1 %v20634_v61 }
 0xf8a   : > { %40108 = vmatpush3.bf16.msra.mxu1 %v44755_v34  ;;  %36968 = vmatprep.mubr.msk.f32.mxu1 %vm41076_vm3, %v41077_v59  ;;  %v22046_v34 = vand.u32 4294901760, %v22045_v6 }
 0xf8b   : > { %40109 = vmatprep.subr.bf16.mxu1 %v41075_v50 }
 0xf8e   : > { %40111 = vmatpush3.bf16.msra.mxu1 %v44757_v5  ;;  %v22053_v5 = vand.u32 4294901760, %v22052_v16 }
 0xf8f   : > { %40112 = vmatprep.subr.bf16.mxu1 %v41075_v50 }
 0xf90   : > { %v44943_v2 = vpack.c.bf16 %v22053_v5, %v22046_v34 }
 0xf91   : > { %36969 = vmatmul.mubr.f32.vlgmr.msra.gmra.mrb[36].mxu1 %v20635_v63 }
 0xf92   : > { %40114 = vmatpush3.bf16.msra.mxu1 %v44741_v14  ;;  %36979 = vmatprep.mubr.msk.f32.mxu1 %vm41076_vm3, %v41077_v59 }
 0xf93   : > { %40115 = vmatprep.subr.bf16.mxu1 %v41075_v50 }
 0xf96   : > { %40117 = vmatpush3.bf16.msra.mxu1 %v44747_v44 }
 0xf97   : > { %40118 = vmatprep.subr.bf16.mxu1 %v41075_v50 }
 0xf99   : > { %36980 = vmatmul.mubr.f32.vlgmr.msra.gmra.mrb[36].mxu1 %v20636_v53 }
 0xf9a   : > { %40120 = vmatpush3.bf16.msra.mxu1 %v44759_v3  ;;  %36990 = vmatprep.mubr.msk.f32.mxu1 %vm41076_vm3, %v41077_v59  ;;  %v22054_v3 = vsub.f32 %v22052_v16, %v22053_v5 }
 0xf9b   : > { %40121 = vmatprep.subr.bf16.mxu1 %v41075_v50 }
 0xf9c   : > { %v22055_v47 = vand.u32 4294901760, %v22054_v3 }
 0xf9e   : > { %40123 = vmatpush3.bf16.msra.mxu1 %v44761_v51 }
 0xf9f   : > { %40124 = vmatprep.subr.bf16.mxu1 %v41075_v50 }
 0xfa1   : > { %36991 = vmatmul.mubr.f32.vlgmr.msra.gmra.mrb[36].mxu1 %v20634_v61 }
 0xfa2   : > { %40126 = vmatpush3.bf16.msra.mxu1 %v44741_v14  ;;  %37001 = vmatprep.mubr.msk.f32.mxu1 %vm41076_vm3, %v41077_v59  ;;  %v22047_v14 = vsub.f32 %v22045_v6, %v22046_v34 }
 0xfa3   : > { %40127 = vmatprep.subr.bf16.mxu1 %v41075_v50 }
 0xfa4   : > { %v22048_v51 = vand.u32 4294901760, %v22047_v14 }
 0xfa6   : > { %40129 = vmatpush3.bf16.msra.mxu1 %v44747_v44  ;;  %v44939_v26 = vpack.c.bf16 %v22055_v47, %v22048_v51  ;;  %v44941_v44 = vpack.c.bf16 %v22052_v16, %v22045_v6 }
 0xfa7   : > { %40148 = vmatprep.subr.bf16.mxu1 %v41075_v50 }
 0xfa9   : > { %37002 = vmatmul.mubr.f32.vlgmr.msra.gmra.mrb[36].mxu1 %v20634_v61 }
 0xfaa   : > { %40150 = vmatpush3.bf16.msra.mxu1 %v44932_v12  ;;  %37080 = vmatprep.mubr.msk.f32.mxu1 %vm41076_vm3, %v41077_v59 }
 0xfab   : > { %40151 = vmatprep.subr.bf16.mxu1 %v41075_v50 }
0x100a   : > { %v19613_v48 = vpop.xlane.xlu1 %19612 }
0x100b   : > { %v19614_v21 = vrot.slane %v19613_v48, 4 }
0x100d   : > { %v19615_v29 = vadd.f32 %v19614_v21, %v19613_v48 }
0x100f   : > { %v19616_v28 = vrot.slane %v19615_v29, 2 }
0x1011   : > { %v19617_v11 = vadd.f32 %v19616_v28, %v19615_v29  ;;  %v21496_v28 = vld [vmem:[%s46404_s15] sm:$0xf]  ;;  %s46409_s15 = sld [smem:[#allocation17_spill]] }
0x1013   : > { %v19618_v15 = vrot.slane %v19617_v11, 1 }
0x1015   : > { %v19619_v49 = vadd.f32 %v19618_v15, %v19617_v11  ;;  %v22880_v11 = vsel %vm22425_vm5, %v21496_v28, 0 }
0x1016   : > { %v45123_v15 = vand.u32 4294901760, %v22880_v11 }
0x1017   : > { %40946 = vpush %v19619_v49 }
0x1018   : > { %v45127_v49 = vsub.f32 %v22880_v11, %v45123_v15 }
0x101c   : > { %v44945_v57 = vpop.f32.mrb[34].mxu1 }
0x101d   : > { %v21505_v36 = vsel %vm10552_vm2, %v44945_v57, 0  ;;  %v36937_v55 = vpop.f32.mrb[35].mxu1 }
0x101e   : > { %v44949_v33 = vand.u32 4294901760, %v21505_v36 }
0x1020   : > { %v44952_v23 = vsub.f32 %v21505_v36, %v44949_v33  ;;  %v45134_v36 = vand.u32 4294901760, %v45127_v49 }
0x1022   : > { %v44955_v56 = vand.u32 4294901760, %v44952_v23  ;;  %v22954_v55 = vsub.f32 %v45127_v49, %v45134_v36 }
0x1024   : > { %v21577_v38 = vsub.f32 %v44952_v23, %v44955_v56 }
0x1026   : > { %v44961_v54 = vand.u32 4294901760, %v21577_v38  ;;  %v45141_v38 = vand.u32 4294901760, %v22954_v55 }
0x1028   : > { %37081 = vmatmul.mubr.f32.vlgmr.msra.gmra.mrb[38].mxu1 %v44961_v54 }
0x1029   : > { %40153 = vmatpush3.bf16.msra.mxu1 %v44939_v26  ;;  %37087 = vmatprep.mubr.msk.f32.mxu1 %vm41076_vm3, %v41077_v59 }
0x102a   : > { %40154 = vmatprep.subr.bf16.mxu1 %v41075_v50 }
0x1030   : > { %37088 = vmatmul.mubr.f32.vlgmr.msra.gmra.mrb[38].mxu1 %v44949_v33 }
0x1031   : > { %40156 = vmatpush3.bf16.msra.mxu1 %v44941_v44  ;;  %37094 = vmatprep.mubr.msk.f32.mxu1 %vm41076_vm3, %v41077_v59 }
0x1032   : > { %40157 = vmatprep.subr.bf16.mxu1 %v41075_v50 }
0x1038   : > { %37095 = vmatmul.mubr.f32.vlgmr.msra.gmra.mrb[38].mxu1 %v44952_v23 }
0x1039   : > { %40159 = vmatpush3.bf16.msra.mxu1 %v44932_v12  ;;  %37101 = vmatprep.mubr.msk.f32.mxu1 %vm41076_vm3, %v41077_v59 }
0x103a   : > { %40160 = vmatprep.subr.bf16.mxu1 %v41075_v50 }
0x1040   : > { %37102 = vmatmul.mubr.f32.vlgmr.msra.gmra.mrb[38].mxu1 %v44955_v56 }
0x1041   : > { %40162 = vmatpush3.bf16.msra.mxu1 %v44943_v2  ;;  %37108 = vmatprep.mubr.msk.f32.mxu1 %vm41076_vm3, %v41077_v59 }
0x1042   : > { %40163 = vmatprep.subr.bf16.mxu1 %v41075_v50 }
0x1048   : > { %37109 = vmatmul.mubr.f32.vlgmr.msra.gmra.mrb[38].mxu1 %v44949_v33 }
0x1049   : > { %40165 = vmatpush3.bf16.msra.mxu1 %v44932_v12  ;;  %37115 = vmatprep.mubr.msk.f32.mxu1 %vm41076_vm3, %v41077_v59 }
0x104a   : > { %40166 = vmatprep.subr.bf16.mxu1 %v41075_v50 }
0x1050   : > { %37116 = vmatmul.mubr.f32.vlgmr.msra.gmra.mrb[38].mxu1 %v44949_v33 }
0x1051   : > { %40168 = vmatpush3.bf16.msra.mxu1 %v44994_v13  ;;  %37182 = vmatprep.mubr.msk.f32.mxu1 %vm41076_vm3, %v41077_v59 }
0x1052   : > { %40169 = vmatprep.subr.bf16.mxu1 %v41075_v50 }
0x107c   : > { %v21046_v22 = vpop.f32.mrb[36].mxu1 }
0x107d   : > { %v21051_v43 = vand.u32 4294901760, %v21046_v22  ;;  %v37003_v40 = vpop.f32.mrb[37].mxu1 }
0x107f   : > { %v21128_v61 = vsub.f32 %v21046_v22, %v21051_v43  ;;  %37005 = vmatpush3.msra.mxu0 %v21051_v43 }
0x1080   : > { %37007 = vmatmul.mubr.f32.vlgmr.msra.gmra.mrb[36].mxu0 %v44865_v10  ;;  %37009 = vmatprep.subr.mxu0 %v41077_v59 }
0x1081   : > { %v21129_v41 = vand.u32 4294901760, %v21128_v61  ;;  %37011 = vmatprep.mubr.msk.f32.mxu0 %vm41076_vm3, %v41077_v59 }
0x1083   : > { %v21130_v63 = vsub.f32 %v21128_v61, %v21129_v41 }
0x1085   : > { %v21131_v52 = vand.u32 4294901760, %v21130_v63 }
0x1087   : > { %37010 = vmatpush3.msra.mxu0 %v21131_v52 }
0x1088   : > { %37012 = vmatmul.mubr.f32.vlgmr.msra.gmra.mrb[36].mxu0 %v44855_v0  ;;  %37014 = vmatprep.subr.mxu0 %v41077_v59 }
0x1089   : > { %37015 = vmatpush3.msra.mxu0 %v21128_v61  ;;  %37016 = vmatprep.mubr.msk.f32.mxu0 %vm41076_vm3, %v41077_v59 }
0x108a   : > { %37019 = vmatprep.subr.mxu0 %v41077_v59 }
0x1090   : > { %37017 = vmatmul.mubr.f32.vlgmr.msra.gmra.mrb[36].mxu0 %v44858_v37 }
0x1091   : > { %37020 = vmatpush3.msra.mxu0 %v21051_v43  ;;  %37021 = vmatprep.mubr.msk.f32.mxu0 %vm41076_vm3, %v41077_v59 }
0x1092   : > { %37024 = vmatprep.subr.mxu0 %v41077_v59 }
0x1098   : > { %37022 = vmatmul.mubr.f32.vlgmr.msra.gmra.mrb[36].mxu0 %v44861_v60 }
0x1099   : > { %37025 = vmatpush3.msra.mxu0 %v21129_v41  ;;  %37026 = vmatprep.mubr.msk.f32.mxu0 %vm41076_vm3, %v41077_v59 }
0x109a   : > { %37029 = vmatprep.subr.mxu0 %v41077_v59 }
0x10a0   : > { %37027 = vmatmul.mubr.f32.vlgmr.msra.gmra.mrb[36].mxu0 %v44855_v0 }
0x10a1   : > { %37030 = vmatpush3.msra.mxu0 %v21051_v43  ;;  %37031 = vmatprep.mubr.msk.f32.mxu0 %vm41076_vm3, %v41077_v59 }
0x10a2   : > { %40130 = vmatprep.subr.bf16.mxu0 %v41075_v50 }
0x10a8   : > { %37032 = vmatmul.mubr.f32.vlgmr.msra.gmra.mrb[36].mxu0 %v44855_v0  ;;  %v21497_v0 = vld [vmem:[%s46403_s11] sm:$0xf]  ;;  %s46408_s11 = sld [smem:[#allocation18_spill]] }
0x10a9   : > { %40132 = vmatpush3.bf16.msra.mxu0 %v44994_v13  ;;  %37038 = vmatprep.mubr.msk.f32.mxu0 %vm41076_vm3, %v41077_v59  ;;  %v22427_v37 = vsel %vm22425_vm5, %v21497_v0, 0 }
0x10aa   : > { %40133 = vmatprep.subr.bf16.mxu0 %v41075_v50  ;;  %v45057_v60 = vand.u32 4294901760, %v22427_v37 }
0x10ac   : > { %37039 = vmatmul.mubr.f32.vlgmr.msra.gmra.mrb[38].mxu0 %v44961_v54  ;;  %v45060_v10 = vsub.f32 %v22427_v37, %v45057_v60 }
0x10ad   : > { %40135 = vmatpush3.bf16.msra.mxu0 %v44969_v58  ;;  %37045 = vmatprep.mubr.msk.f32.mxu0 %vm41076_vm3, %v41077_v59 }
0x10ae   : > { %40136 = vmatprep.subr.bf16.mxu0 %v41075_v50  ;;  %v45063_v53 = vand.u32 4294901760, %v45060_v10 }
0x10b0   : > { %v22502_v39 = vsub.f32 %v45060_v10, %v45063_v53 }
0x10b2   : > { %v45068_v27 = vand.u32 4294901760, %v22502_v39 }
0x10b4   : > { %37046 = vmatmul.mubr.f32.vlgmr.msra.gmra.mrb[38].mxu0 %v44949_v33 }
0x10b5   : > { %40138 = vmatpush3.bf16.msra.mxu0 %v44975_v30  ;;  %37052 = vmatprep.mubr.msk.f32.mxu0 %vm41076_vm3, %v41077_v59 }
0x10b6   : > { %40139 = vmatprep.subr.bf16.mxu0 %v41075_v50 }
0x10bc   : > { %37053 = vmatmul.mubr.f32.vlgmr.msra.gmra.mrb[38].mxu0 %v44952_v23 }
0x10bd   : > { %40141 = vmatpush3.bf16.msra.mxu0 %v44994_v13  ;;  %37059 = vmatprep.mubr.msk.f32.mxu0 %vm41076_vm3, %v41077_v59 }
0x10be   : > { %40142 = vmatprep.subr.bf16.mxu0 %v41075_v50 }
0x10c4   : > { %37060 = vmatmul.mubr.f32.vlgmr.msra.gmra.mrb[38].mxu0 %v44955_v56 }
0x10c5   : > { %40144 = vmatpush3.bf16.msra.mxu0 %v44987_v1  ;;  %37066 = vmatprep.mubr.msk.f32.mxu0 %vm41076_vm3, %v41077_v59 }
0x10c6   : > { %40145 = vmatprep.subr.bf16.mxu0 %v41075_v50 }
0x10cc   : > { %37067 = vmatmul.mubr.f32.vlgmr.msra.gmra.mrb[38].mxu0 %v44949_v33 }
0x10cd   : > { %40147 = vmatpush3.bf16.msra.mxu0 %v44994_v13  ;;  %37073 = vmatprep.mubr.msk.f32.mxu0 %vm41076_vm3, %v41077_v59 }
0x10ce   : > { %37118 = vmatprep.subr.mxu0 %v41077_v59 }
0x10d4   : > { %37074 = vmatmul.mubr.f32.vlgmr.msra.gmra.mrb[38].mxu0 %v44949_v33 }
0x10d5   : > { %37120 = vmatprep.mubr.msk.f32.mxu0 %vm41076_vm3, %v41077_v59 }
0x1123   : > { %v22421_v9 = vpop.f32.mrb[38].mxu1 }
0x1124   : > { %v22431_v46 = vsel %vm22429_vm6, %v22421_v9, 0  ;;  %v37117_v25 = vpop.f32.mrb[39].mxu1 }
0x1125   : > { %v22434_v24 = vand.u32 4294901760, %v22431_v46 }
0x1127   : > { %v22511_v20 = vsub.f32 %v22431_v46, %v22434_v24  ;;  %37119 = vmatpush3.msra.mxu0 %v22434_v24 }
0x1128   : > { %37121 = vmatmul.mubr.f32.vlgmr.msra.gmra.mrb[40].mxu0 %v45068_v27  ;;  %37123 = vmatprep.subr.mxu0 %v41077_v59 }
0x1129   : > { %v22512_v6 = vand.u32 4294901760, %v22511_v20  ;;  %37125 = vmatprep.mubr.msk.f32.mxu0 %vm41076_vm3, %v41077_v59 }
0x112b   : > { %v22513_v16 = vsub.f32 %v22511_v20, %v22512_v6 }
0x112d   : > { %v22514_v34 = vand.u32 4294901760, %v22513_v16 }
0x112f   : > { %37124 = vmatpush3.msra.mxu0 %v22514_v34 }
0x1130   : > { %37126 = vmatmul.mubr.f32.vlgmr.msra.gmra.mrb[40].mxu0 %v45057_v60  ;;  %37128 = vmatprep.subr.mxu0 %v41077_v59 }
0x1131   : > { %37129 = vmatpush3.msra.mxu0 %v22511_v20  ;;  %37130 = vmatprep.mubr.msk.f32.mxu0 %vm41076_vm3, %v41077_v59 }
0x1132   : > { %37133 = vmatprep.subr.mxu0 %v41077_v59 }
0x1138   : > { %37131 = vmatmul.mubr.f32.vlgmr.msra.gmra.mrb[40].mxu0 %v45060_v10 }
0x1139   : > { %37134 = vmatpush3.msra.mxu0 %v22434_v24  ;;  %37135 = vmatprep.mubr.msk.f32.mxu0 %vm41076_vm3, %v41077_v59 }
0x113a   : > { %37138 = vmatprep.subr.mxu0 %v41077_v59 }
0x1140   : > { %37136 = vmatmul.mubr.f32.vlgmr.msra.gmra.mrb[40].mxu0 %v45063_v53 }
0x1141   : > { %37139 = vmatpush3.msra.mxu0 %v22512_v6  ;;  %37140 = vmatprep.mubr.msk.f32.mxu0 %vm41076_vm3, %v41077_v59 }
0x1142   : > { %37143 = vmatprep.subr.mxu0 %v41077_v59 }
0x1148   : > { %37141 = vmatmul.mubr.f32.vlgmr.msra.gmra.mrb[40].mxu0 %v45057_v60 }
0x1149   : > { %37144 = vmatpush3.msra.mxu0 %v22434_v24  ;;  %37145 = vmatprep.mubr.msk.f32.mxu0 %vm41076_vm3, %v41077_v59 }
0x114a   : > { %37148 = vmatprep.subr.mxu0 %v41077_v59 }
0x1150   : > { %37146 = vmatmul.mubr.f32.vlgmr.msra.gmra.mrb[40].mxu0 %v45057_v60 }
0x1151   : > { %37150 = vmatprep.mubr.msk.f32.mxu0 %vm41076_vm3, %v41077_v59 }
0x117b   : > { %v45094_v5 = vpop.f32.mrb[36].mxu0 }
0x117c   : > { %v23332_v14 = vsel %vm10552_vm2, %v45094_v5, 0  ;;  %v37033_v3 = vpop.f32.mrb[37].mxu0 }
0x117d   : > { %v45098_v51 = vand.u32 4294901760, %v23332_v14 }
0x117f   : > { %v45101_v47 = vsub.f32 %v23332_v14, %v45098_v51 }
0x1181   : > { %v45104_v48 = vand.u32 4294901760, %v45101_v47 }
0x1183   : > { %v23404_v21 = vsub.f32 %v45101_v47, %v45104_v48 }
0x1185   : > { %v23405_v29 = vand.u32 4294901760, %v23404_v21 }
0x1187   : > { %37183 = vmatmul.mubr.f32.vlgmr.msra.gmra.mrb[40].mxu1 %v23405_v29 }
0x1188   : > { %40171 = vmatpush3.bf16.msra.mxu1 %v44969_v58  ;;  %37189 = vmatprep.mubr.msk.f32.mxu1 %vm41076_vm3, %v41077_v59 }
0x1189   : > { %40172 = vmatprep.subr.bf16.mxu1 %v41075_v50 }
0x118f   : > { %37190 = vmatmul.mubr.f32.vlgmr.msra.gmra.mrb[40].mxu1 %v45098_v51 }
0x1190   : > { %40174 = vmatpush3.bf16.msra.mxu1 %v44975_v30  ;;  %37196 = vmatprep.mubr.msk.f32.mxu1 %vm41076_vm3, %v41077_v59 }
0x1191   : > { %40175 = vmatprep.subr.bf16.mxu1 %v41075_v50 }
0x1197   : > { %37197 = vmatmul.mubr.f32.vlgmr.msra.gmra.mrb[40].mxu1 %v45101_v47 }
0x1198   : > { %40177 = vmatpush3.bf16.msra.mxu1 %v44994_v13  ;;  %37203 = vmatprep.mubr.msk.f32.mxu1 %vm41076_vm3, %v41077_v59 }
0x1199   : > { %40178 = vmatprep.subr.bf16.mxu1 %v41075_v50 }
0x119f   : > { %37204 = vmatmul.mubr.f32.vlgmr.msra.gmra.mrb[40].mxu1 %v45104_v48 }
0x11a0   : > { %40180 = vmatpush3.bf16.msra.mxu1 %v44987_v1  ;;  %37210 = vmatprep.mubr.msk.f32.mxu1 %vm41076_vm3, %v41077_v59 }
0x11a1   : > { %40181 = vmatprep.subr.bf16.mxu1 %v41075_v50 }
0x11a7   : > { %v21962_v33 = vpop.f32.mrb[38].mxu0  ;;  %37211 = vmatmul.mubr.f32.vlgmr.msra.gmra.mrb[40].mxu1 %v45098_v51 }
0x11a8   : > { %v22883_v23 = vsel %vm22429_vm6, %v21962_v33, 0  ;;  %v37075_v56 = vpop.f32.mrb[39].mxu0  ;;  %40183 = vmatpush3.bf16.msra.mxu1 %v44994_v13  ;;  %37217 = vmatprep.mubr.msk.f32.mxu1 %vm41076_vm3, %v41077_v59 }
0x11a9   : > { %v22886_v42 = vand.u32 4294901760, %v22883_v23  ;;  %40184 = vmatprep.subr.bf16.mxu1 %v41075_v50 }
0x11ab   : > { %v22963_v7 = vsub.f32 %v22883_v23, %v22886_v42  ;;  %37149 = vmatpush3.msra.mxu0 %v22886_v42 }
0x11ac   : > { %37151 = vmatmul.mubr.f32.vlgmr.msra.gmra.mrb[40].mxu0 %v45141_v38  ;;  %37153 = vmatprep.subr.mxu0 %v41077_v59 }
0x11ad   : > { %v22964_v54 = vand.u32 4294901760, %v22963_v7  ;;  %37155 = vmatprep.mubr.msk.f32.mxu0 %vm41076_vm3, %v41077_v59 }
0x11af   : > { %v22965_v4 = vsub.f32 %v22963_v7, %v22964_v54  ;;  %37218 = vmatmul.mubr.f32.vlgmr.msra.gmra.mrb[40].mxu1 %v45098_v51 }
0x11b0   : > { %40186 = vmatpush3.bf16.msra.mxu1 %v44932_v12  ;;  %37224 = vmatprep.mubr.msk.f32.mxu1 %vm41076_vm3, %v41077_v59 }
0x11b1   : > { %v22966_v19 = vand.u32 4294901760, %v22965_v4  ;;  %40187 = vmatprep.subr.bf16.mxu1 %v41075_v50 }
0x11b3   : > { %37154 = vmatpush3.msra.mxu0 %v22966_v19  ;;  %37225 = vmatmul.mubr.f32.vlgmr.msra.gmra.mrb[42].mxu1 %v23405_v29 }
0x11b4   : > { %37156 = vmatmul.mubr.f32.vlgmr.msra.gmra.mrb[40].mxu0 %v45123_v15  ;;  %37158 = vmatprep.subr.mxu0 %v41077_v59 }
0x11b5   : > { %37159 = vmatpush3.msra.mxu0 %v22963_v7  ;;  %40189 = vmatpush3.bf16.msra.mxu1 %v44939_v26  ;;  %v21502_v26 = vld [vmem:[%s46405_s0] sm:$0xff] }
0x11b6   : > { %37231 = vmatprep.mubr.msk.f32.mxu1 %vm41076_vm3, %v41077_v59  ;;  %37160 = vmatprep.mubr.msk.f32.mxu0 %vm41076_vm3, %v41077_v59 }
0x11b7   : > { %37163 = vmatprep.subr.mxu0 %v41077_v59  ;;  %40190 = vmatprep.subr.bf16.mxu1 %v41075_v50 }
0x11bb   : > { %37232 = vmatmul.mubr.f32.vlgmr.msra.gmra.mrb[42].mxu1 %v45098_v51 }
0x11bc   : > { %37161 = vmatmul.mubr.f32.vlgmr.msra.gmra.mrb[40].mxu0 %v45127_v49  ;;  %40192 = vmatpush3.bf16.msra.mxu1 %v44941_v44  ;;  %v21503_v44 = vld [vmem:[%s46405_s0 + $0x8] sm:$0xff] }
0x11bd   : > { %37164 = vmatpush3.msra.mxu0 %v22886_v42  ;;  %37238 = vmatprep.mubr.msk.f32.mxu1 %vm41076_vm3, %v41077_v59  ;;  %v25175_v8 = vand.u32 4294901760, %v21503_v44 }
0x11be   : > { %37165 = vmatprep.mubr.msk.f32.mxu0 %vm41076_vm3, %v41077_v59  ;;  %37168 = vmatprep.subr.mxu0 %v41077_v59 }
0x11bf   : > { %40193 = vmatprep.subr.bf16.mxu1 %v41075_v50  ;;  %v25257_v45 = vsub.f32 %v21503_v44, %v25175_v8 }
0x11c1   : > { %v25258_v31 = vand.u32 4294901760, %v25257_v45 }
0x11c3   : > { %37239 = vmatmul.mubr.f32.vlgmr.msra.gmra.mrb[42].mxu1 %v45101_v47  ;;  %v25259_v35 = vsub.f32 %v25257_v45, %v25258_v31 }
0x11c4   : > { %37166 = vmatmul.mubr.f32.vlgmr.msra.gmra.mrb[40].mxu0 %v45134_v36  ;;  %40195 = vmatpush3.bf16.msra.mxu1 %v44932_v12 }
0x11c5   : > { %37169 = vmatpush3.msra.mxu0 %v22964_v54  ;;  %37245 = vmatprep.mubr.msk.f32.mxu1 %vm41076_vm3, %v41077_v59  ;;  %v25260_v58 = vand.u32 4294901760, %v25259_v35 }
0x11c6   : > { %37170 = vmatprep.mubr.msk.f32.mxu0 %vm41076_vm3, %v41077_v59  ;;  %37173 = vmatprep.subr.mxu0 %v41077_v59 }
0x11c7   : > { %40196 = vmatprep.subr.bf16.mxu1 %v41075_v50 }
0x11cb   : > { %37246 = vmatmul.mubr.f32.vlgmr.msra.gmra.mrb[42].mxu1 %v45104_v48 }
0x11cc   : > { %37171 = vmatmul.mubr.f32.vlgmr.msra.gmra.mrb[40].mxu0 %v45123_v15  ;;  %40198 = vmatpush3.bf16.msra.mxu1 %v44943_v2  ;;  %v25172_v2 = vand.u32 4294901760, %v21502_v26 }
0x11cd   : > { %37174 = vmatpush3.msra.mxu0 %v22886_v42  ;;  %37252 = vmatprep.mubr.msk.f32.mxu1 %vm41076_vm3, %v41077_v59 }
0x11ce   : > { %37175 = vmatprep.mubr.msk.f32.mxu0 %vm41076_vm3, %v41077_v59  ;;  %40199 = vmatprep.subr.bf16.mxu1 %v41075_v50  ;;  %v45205_v17 = vpack.c.bf16 %v25175_v8, %v25172_v2 }
0x11cf   : > { %37262 = vmatprep.subr.mxu0 %v41077_v59 }
0x11d3   : > { %37253 = vmatmul.mubr.f32.vlgmr.msra.gmra.mrb[42].mxu1 %v45098_v51 }
0x11d4   : > { %37176 = vmatmul.mubr.f32.vlgmr.msra.gmra.mrb[40].mxu0 %v45123_v15  ;;  %40201 = vmatpush3.bf16.msra.mxu1 %v44932_v12  ;;  %v25250_v12 = vsub.f32 %v21502_v26, %v25172_v2 }
0x11d5   : > { %37259 = vmatprep.mubr.msk.f32.mxu1 %vm41076_vm3, %v41077_v59  ;;  %37264 = vmatprep.mubr.msk.f32.mxu0 %vm41076_vm3, %v41077_v59 }
0x11d6   : > { %40202 = vmatprep.subr.bf16.mxu1 %v41075_v50  ;;  %v25251_v62 = vand.u32 4294901760, %v25250_v12  ;;  %v45211_v1 = vpack.c.bf16 %v25257_v45, %v25250_v12 }
0x11d8   : > { %v25252_v18 = vsub.f32 %v25250_v12, %v25251_v62  ;;  %v45213_v13 = vpack.c.bf16 %v25258_v31, %v25251_v62 }
0x11da   : > { %v25253_v32 = vand.u32 4294901760, %v25252_v18 }
0x11db   : > { %37260 = vmatmul.mubr.f32.vlgmr.msra.gmra.mrb[42].mxu1 %v45098_v51 }
0x11dc   : > { %37326 = vmatprep.mubr.msk.f32.mxu1 %vm41076_vm3, %v41077_v59  ;;  %40204 = vmatpush3.bf16.msra.mxu1 %v45205_v17  ;;  %v45209_v30 = vpack.c.bf16 %v25260_v58, %v25253_v32 }
0x11dd   : > { %40205 = vmatprep.subr.bf16.mxu1 %v41075_v50 }
0x1282   : > { %v23789_v22 = vpop.f32.mrb[40].mxu1 }
0x1283   : > { %v37219_v43 = vpop.f32.mrb[41].mxu1 }
0x12a7   : > { %v45215_v40 = vpop.f32.mrb[40].mxu0 }
0x12a8   : > { %v25150_v61 = vsub.f32 %v44945_v57, %v45215_v40  ;;  %v25169_v41 = vsel %vm10552_vm2, %v45215_v40, 0  ;;  %v37177_v63 = vpop.f32.mrb[41].mxu0 }
0x12a9   : > { %v25238_v52 = vand.u32 4294901760, %v25169_v41 }
0x12ab   : > { %v25239_v0 = vsub.f32 %v25169_v41, %v25238_v52 }
0x12ad   : > { %v25240_v37 = vand.u32 4294901760, %v25239_v0 }
0x12ae   : > { %v24248_v39 = vpop.f32.mrb[42].mxu1 }
0x12af   : > { %v25241_v9 = vsub.f32 %v25239_v0, %v25240_v37  ;;  %v24253_v46 = vsel %vm22429_vm6, %v24248_v39, 0  ;;  %v37261_v25 = vpop.f32.mrb[43].mxu1 }
0x12b0   : > { %v24256_v24 = vand.u32 4294901760, %v24253_v46 }
0x12b1   : > { %v25242_v20 = vand.u32 4294901760, %v25241_v9 }
0x12b2   : > { %v24333_v6 = vsub.f32 %v24253_v46, %v24256_v24  ;;  %37263 = vmatpush3.msra.mxu0 %v24256_v24 }
0x12b3   : > { %37265 = vmatmul.mubr.f32.vlgmr.msra.gmra.mrb[42].mxu0 %v45068_v27  ;;  %37267 = vmatprep.subr.mxu0 %v41077_v59 }
0x12b4   : > { %v24334_v16 = vand.u32 4294901760, %v24333_v6  ;;  %37269 = vmatprep.mubr.msk.f32.mxu0 %vm41076_vm3, %v41077_v59  ;;  %37327 = vmatmul.mubr.f32.vlgmr.msra.gmra.mrb[44].mxu1 %v25242_v20 }
0x12b5   : > { %40207 = vmatpush3.bf16.msra.mxu1 %v45209_v30  ;;  %37333 = vmatprep.mubr.msk.f32.mxu1 %vm41076_vm3, %v41077_v59 }
0x12b6   : > { %v24335_v34 = vsub.f32 %v24333_v6, %v24334_v16  ;;  %40208 = vmatprep.subr.bf16.mxu1 %v41075_v50 }
0x12b8   : > { %v24336_v14 = vand.u32 4294901760, %v24335_v34 }
0x12ba   : > { %37268 = vmatpush3.msra.mxu0 %v24336_v14  ;;  %v26997_v14 = vld [vmem:[%s46407_s4] sm:$0xff] }
0x12bb   : > { %37270 = vmatmul.mubr.f32.vlgmr.msra.gmra.mrb[42].mxu0 %v45057_v60  ;;  %37272 = vmatprep.subr.mxu0 %v41077_v59 }
0x12bc   : > { %37273 = vmatpush3.msra.mxu0 %v24333_v6  ;;  %37274 = vmatprep.mubr.msk.f32.mxu0 %vm41076_vm3, %v41077_v59 }
0x12bd   : > { %37277 = vmatprep.subr.mxu0 %v41077_v59  ;;  %37334 = vmatmul.mubr.f32.vlgmr.msra.gmra.mrb[44].mxu1 %v25238_v52 }
0x12be   : > { %40210 = vmatpush3.bf16.msra.mxu1 %v45211_v1  ;;  %37340 = vmatprep.mubr.msk.f32.mxu1 %vm41076_vm3, %v41077_v59 }
0x12bf   : > { %40211 = vmatprep.subr.bf16.mxu1 %v41075_v50 }
0x12c3   : > { %37275 = vmatmul.mubr.f32.vlgmr.msra.gmra.mrb[42].mxu0 %v45060_v10  ;;  %v24702_v10 = vsel %vm22429_vm6, %v23789_v22, 0 }
0x12c4   : > { %37278 = vmatpush3.msra.mxu0 %v24256_v24  ;;  %37279 = vmatprep.mubr.msk.f32.mxu0 %vm41076_vm3, %v41077_v59  ;;  %v24705_v27 = vand.u32 4294901760, %v24702_v10 }
0x12c5   : > { %37282 = vmatprep.subr.mxu0 %v41077_v59  ;;  %37341 = vmatmul.mubr.f32.vlgmr.msra.gmra.mrb[44].mxu1 %v25239_v0 }
0x12c6   : > { %40213 = vmatpush3.bf16.msra.mxu1 %v45205_v17  ;;  %37347 = vmatprep.mubr.msk.f32.mxu1 %vm41076_vm3, %v41077_v59 }
0x12c7   : > { %40214 = vmatprep.subr.bf16.mxu1 %v41075_v50 }
0x12cb   : > { %37280 = vmatmul.mubr.f32.vlgmr.msra.gmra.mrb[42].mxu0 %v45063_v53  ;;  %v24782_v53 = vsub.f32 %v24702_v10, %v24705_v27  ;;  %v45438_v10 = vand.u32 4294901760, %v26997_v14 }
0x12cc   : > { %37283 = vmatpush3.msra.mxu0 %v24334_v16  ;;  %37284 = vmatprep.mubr.msk.f32.mxu0 %vm41076_vm3, %v41077_v59 }
0x12cd   : > { %37287 = vmatprep.subr.mxu0 %v41077_v59  ;;  %37348 = vmatmul.mubr.f32.vlgmr.msra.gmra.mrb[44].mxu1 %v25240_v37  ;;  %v24783_v3 = vand.u32 4294901760, %v24782_v53 }
0x12ce   : > { %40216 = vmatpush3.bf16.msra.mxu1 %v45213_v13  ;;  %37354 = vmatprep.mubr.msk.f32.mxu1 %vm41076_vm3, %v41077_v59 }
0x12cf   : > { %40217 = vmatprep.subr.bf16.mxu1 %v41075_v50  ;;  %v24784_v51 = vsub.f32 %v24782_v53, %v24783_v3 }
0x12d1   : > { %v24785_v47 = vand.u32 4294901760, %v24784_v51 }
0x12d3   : > { %37285 = vmatmul.mubr.f32.vlgmr.msra.gmra.mrb[42].mxu0 %v45057_v60 }
0x12d4   : > { %37288 = vmatpush3.msra.mxu0 %v24256_v24  ;;  %37289 = vmatprep.mubr.msk.f32.mxu0 %vm41076_vm3, %v41077_v59 }
0x12d5   : > { %37292 = vmatprep.subr.mxu0 %v41077_v59  ;;  %37355 = vmatmul.mubr.f32.vlgmr.msra.gmra.mrb[44].mxu1 %v25238_v52 }
0x12d6   : > { %40219 = vmatpush3.bf16.msra.mxu1 %v45205_v17  ;;  %37361 = vmatprep.mubr.msk.f32.mxu1 %vm41076_vm3, %v41077_v59 }
0x12d7   : > { %37364 = vmatprep.subr.mxu1 %v41077_v59 }
0x12db   : > { %37290 = vmatmul.mubr.f32.vlgmr.msra.gmra.mrb[42].mxu0 %v45057_v60  ;;  %v25630_v60 = vld [vmem:[%s46406_s22] sm:$0x3]  ;;  %s40943_s22 = spop %40942 }
0x12dc   : > { %37293 = vmatpush3.msra.mxu0 %v24705_v27  ;;  %37294 = vmatprep.mubr.msk.f32.mxu0 %vm41076_vm3, %v41077_v59  ;;  %v25632_v48 = vsel %vm22425_vm5, %v25630_v60, 0 }
0x12dd   : > { %37297 = vmatprep.subr.mxu0 %v41077_v59  ;;  %37362 = vmatmul.mubr.f32.vlgmr.msra.gmra.mrb[44].mxu1 %v25238_v52  ;;  %v45297_v21 = vand.u32 4294901760, %v25632_v48 }
0x12de   : > { %37366 = vmatprep.mubr.msk.f32.mxu1 %vm41076_vm3, %v41077_v59 }
0x12df   : > { %v45300_v29 = vsub.f32 %v25632_v48, %v45297_v21 }
0x12e1   : > { %v45303_v28 = vand.u32 4294901760, %v45300_v29 }
0x12e3   : > { %37295 = vmatmul.mubr.f32.vlgmr.msra.gmra.mrb[42].mxu0 %v45141_v38  ;;  %v25706_v11 = vsub.f32 %v45300_v29, %v45303_v28 }
0x12e4   : > { %37298 = vmatpush3.msra.mxu0 %v24785_v47  ;;  %37299 = vmatprep.mubr.msk.f32.mxu0 %vm41076_vm3, %v41077_v59 }
0x12e5   : > { %37302 = vmatprep.subr.mxu0 %v41077_v59 }
0x12eb   : > { %37300 = vmatmul.mubr.f32.vlgmr.msra.gmra.mrb[42].mxu0 %v45123_v15 }
0x12ec   : > { %37303 = vmatpush3.msra.mxu0 %v24782_v53  ;;  %37304 = vmatprep.mubr.msk.f32.mxu0 %vm41076_vm3, %v41077_v59 }
0x12ed   : > { %37307 = vmatprep.subr.mxu0 %v41077_v59 }
0x12f3   : > { %37305 = vmatmul.mubr.f32.vlgmr.msra.gmra.mrb[42].mxu0 %v45127_v49 }
0x12f4   : > { %37308 = vmatpush3.msra.mxu0 %v24705_v27  ;;  %37309 = vmatprep.mubr.msk.f32.mxu0 %vm41076_vm3, %v41077_v59 }
0x12f5   : > { %37312 = vmatprep.subr.mxu0 %v41077_v59 }
0x12fb   : > { %37310 = vmatmul.mubr.f32.vlgmr.msra.gmra.mrb[42].mxu0 %v45134_v36  ;;  %v45308_v36 = vand.u32 4294901760, %v25706_v11 }
0x12fc   : > { %37313 = vmatpush3.msra.mxu0 %v24783_v3  ;;  %37314 = vmatprep.mubr.msk.f32.mxu0 %vm41076_vm3, %v41077_v59 }
0x12fd   : > { %37317 = vmatprep.subr.mxu0 %v41077_v59 }
0x1303   : > { %37315 = vmatmul.mubr.f32.vlgmr.msra.gmra.mrb[42].mxu0 %v45123_v15 }
0x1304   : > { %37318 = vmatpush3.msra.mxu0 %v24705_v27  ;;  %37319 = vmatprep.mubr.msk.f32.mxu0 %vm41076_vm3, %v41077_v59  ;;  %v45442_v27 = vsub.f32 %v26997_v14, %v45438_v10 }
0x1305   : > { %40220 = vmatprep.subr.bf16.mxu0 %v41075_v50 }
0x1306   : > { %v45448_v53 = vand.u32 4294901760, %v45442_v27 }
0x1308   : > { %v27528_v3 = vsub.f32 %v45442_v27, %v45448_v53 }
0x130a   : > { %v45457_v51 = vand.u32 4294901760, %v27528_v3 }
0x130b   : > { %37320 = vmatmul.mubr.f32.vlgmr.msra.gmra.mrb[42].mxu0 %v45123_v15 }
0x130c   : > { %40222 = vmatpush3.bf16.msra.mxu0 %v45205_v17  ;;  %37398 = vmatprep.mubr.msk.f32.mxu0 %vm41076_vm3, %v41077_v59 }
0x130d   : > { %40223 = vmatprep.subr.bf16.mxu0 %v41075_v50 }
0x13b0   : > { %v25626_v15 = vpop.f32.mrb[44].mxu1 }
0x13b1   : > { %v25635_v49 = vsel %vm22429_vm6, %v25626_v15, 0  ;;  %v37363_v55 = vpop.f32.mrb[45].mxu1 }
0x13b2   : > { %v25638_v33 = vand.u32 4294901760, %v25635_v49  ;;  %v26995_v55 = vld [vmem:[%s46408_s11] sm:$0x3]  ;;  %s40945_s11 = spop %40944 }
0x13b4   : > { %v25715_v23 = vsub.f32 %v25635_v49, %v25638_v33  ;;  %37365 = vmatpush3.msra.mxu1 %v25638_v33 }
0x13b5   : > { %37367 = vmatmul.mubr.f32.vlgmr.msra.gmra.mrb[46].mxu1 %v45308_v36  ;;  %37369 = vmatprep.subr.mxu1 %v41077_v59 }
0x13b6   : > { %v25716_v56 = vand.u32 4294901760, %v25715_v23  ;;  %37371 = vmatprep.mubr.msk.f32.mxu1 %vm41076_vm3, %v41077_v59 }
0x13b8   : > { %v25717_v38 = vsub.f32 %v25715_v23, %v25716_v56 }
0x13ba   : > { %v25718_v42 = vand.u32 4294901760, %v25717_v38 }
0x13bc   : > { %37370 = vmatpush3.msra.mxu1 %v25718_v42 }
0x13bd   : > { %37372 = vmatmul.mubr.f32.vlgmr.msra.gmra.mrb[46].mxu1 %v45297_v21  ;;  %37374 = vmatprep.subr.mxu1 %v41077_v59 }
0x13be   : > { %37375 = vmatpush3.msra.mxu1 %v25715_v23  ;;  %37376 = vmatprep.mubr.msk.f32.mxu1 %vm41076_vm3, %v41077_v59 }
0x13bf   : > { %37379 = vmatprep.subr.mxu1 %v41077_v59 }
0x13c5   : > { %37377 = vmatmul.mubr.f32.vlgmr.msra.gmra.mrb[46].mxu1 %v45300_v29 }
0x13c6   : > { %37380 = vmatpush3.msra.mxu1 %v25638_v33  ;;  %37381 = vmatprep.mubr.msk.f32.mxu1 %vm41076_vm3, %v41077_v59 }
0x13c7   : > { %37384 = vmatprep.subr.mxu1 %v41077_v59 }
0x13cd   : > { %37382 = vmatmul.mubr.f32.vlgmr.msra.gmra.mrb[46].mxu1 %v45303_v28 }
0x13ce   : > { %37385 = vmatpush3.msra.mxu1 %v25716_v56  ;;  %37386 = vmatprep.mubr.msk.f32.mxu1 %vm41076_vm3, %v41077_v59 }
0x13cf   : > { %37389 = vmatprep.subr.mxu1 %v41077_v59 }
0x13d5   : > { %37387 = vmatmul.mubr.f32.vlgmr.msra.gmra.mrb[46].mxu1 %v45297_v21 }
0x13d6   : > { %37390 = vmatpush3.msra.mxu1 %v25638_v33  ;;  %37391 = vmatprep.mubr.msk.f32.mxu1 %vm41076_vm3, %v41077_v59  ;;  %v27896_v33 = vsel %vm27894_vm8, %v26995_v55, 0 }
0x13d7   : > { %37436 = vmatprep.subr.mxu1 %v41077_v59  ;;  %v45521_v23 = vand.u32 4294901760, %v27896_v33 }
0x13d9   : > { %v45525_v56 = vsub.f32 %v27896_v33, %v45521_v23 }
0x13db   : > { %v45532_v38 = vand.u32 4294901760, %v45525_v56 }
0x13dd   : > { %37392 = vmatmul.mubr.f32.vlgmr.msra.gmra.mrb[46].mxu1 %v45297_v21  ;;  %v27971_v42 = vsub.f32 %v45525_v56, %v45532_v38 }
0x13de   : > { %v25146_v7 = vpop.f32.mrb[42].mxu0  ;;  %37438 = vmatprep.mubr.msk.f32.mxu1 %vm41076_vm3, %v41077_v59 }
0x13df   : > { %v25151_v54 = vsub.f32 %v45094_v5, %v25146_v7  ;;  %v26084_v4 = vsel %vm10552_vm2, %v25146_v7, 0  ;;  %v37321_v19 = vpop.f32.mrb[43].mxu0 }
0x13e0   : > { %v26153_v26 = vand.u32 4294901760, %v26084_v4 }
0x13e1   : > { %v25152_v44 = vsub.f32 %v25150_v61, %v25151_v54  ;;  %v26996_v61 = vld [vmem:[%s41226_s27] sm:$0xff] }
0x13e2   : > { %v26154_v2 = vsub.f32 %v26084_v4, %v26153_v26  ;;  %v45376_v41 = vand.u32 4294901760, %v26996_v61  ;;  %v45539_v4 = vand.u32 4294901760, %v27971_v42 }
0x13e3   : > { %v25153_v8 = vand.u32 2147483647, %v25152_v44 }
0x13e4   : > { %v26155_v12 = vand.u32 4294901760, %v26154_v2  ;;  %v45382_v52 = vsub.f32 %v26996_v61, %v45376_v41 }
0x13e5   : > { %v25155_v45 = vsel %vm25154_vm7, %v25153_v8, 0.0 }
0x13e6   : > { %v26156_v62 = vsub.f32 %v26154_v2, %v26155_v12  ;;  %25156 = vadd.xlane.f32.xlu1 %v25155_v45  ;;  %v45387_v0 = vand.u32 4294901760, %v45382_v52  ;;  %v26994_v45 = vld [vmem:[%s46409_s15] sm:$0x3]  ;;  %s40947_s15 = spop %40946 }
0x13e8   : > { %v26157_v31 = vand.u32 4294901760, %v26156_v62  ;;  %v27082_v37 = vsub.f32 %v45382_v52, %v45387_v0  ;;  %v28349_v62 = vsel %vm27894_vm8, %v26994_v45, 0 }
0x13ea   : > { %37399 = vmatmul.mubr.f32.vlgmr.msra.gmra.mrb[44].mxu0 %v26157_v31  ;;  %v45393_v39 = vand.u32 4294901760, %v27082_v37 }
0x13eb   : > { %40225 = vmatpush3.bf16.msra.mxu0 %v45209_v30  ;;  %37405 = vmatprep.mubr.msk.f32.mxu0 %vm41076_vm3, %v41077_v59 }
0x13ec   : > { %40226 = vmatprep.subr.bf16.mxu0 %v41075_v50 }
0x13f2   : > { %37406 = vmatmul.mubr.f32.vlgmr.msra.gmra.mrb[44].mxu0 %v26153_v26 }
0x13f3   : > { %40228 = vmatpush3.bf16.msra.mxu0 %v45211_v1  ;;  %37412 = vmatprep.mubr.msk.f32.mxu0 %vm41076_vm3, %v41077_v59 }
0x13f4   : > { %40229 = vmatprep.subr.bf16.mxu0 %v41075_v50 }
0x13fa   : > { %37413 = vmatmul.mubr.f32.vlgmr.msra.gmra.mrb[44].mxu0 %v26154_v2 }
0x13fb   : > { %40231 = vmatpush3.bf16.msra.mxu0 %v45205_v17  ;;  %37419 = vmatprep.mubr.msk.f32.mxu0 %vm41076_vm3, %v41077_v59 }
0x13fc   : > { %40232 = vmatprep.subr.bf16.mxu0 %v41075_v50 }
0x1402   : > { %37420 = vmatmul.mubr.f32.vlgmr.msra.gmra.mrb[44].mxu0 %v26155_v12 }
0x1403   : > { %40234 = vmatpush3.bf16.msra.mxu0 %v45213_v13  ;;  %37426 = vmatprep.mubr.msk.f32.mxu0 %vm41076_vm3, %v41077_v59 }
0x1404   : > { %40235 = vmatprep.subr.bf16.mxu0 %v41075_v50 }
0x140a   : > { %37427 = vmatmul.mubr.f32.vlgmr.msra.gmra.mrb[44].mxu0 %v26153_v26 }
0x140b   : > { %40237 = vmatpush3.bf16.msra.mxu0 %v45205_v17  ;;  %37433 = vmatprep.mubr.msk.f32.mxu0 %vm41076_vm3, %v41077_v59 }
0x140c   : > { %37466 = vmatprep.subr.mxu0 %v41077_v59 }
0x1412   : > { %37434 = vmatmul.mubr.f32.vlgmr.msra.gmra.mrb[44].mxu0 %v26153_v26 }
0x1413   : > { %37468 = vmatprep.mubr.msk.f32.mxu0 %vm41076_vm3, %v41077_v59  ;;  %37467 = vmatpush3.msra.mxu0 %v45376_v41 }
0x1414   : > { %37471 = vmatprep.subr.mxu0 %v41077_v59 }
0x1473   : > { %v25157_v57 = vpop.xlane.xlu1 %25156 }
0x1474   : > { %v25158_v5 = vrot.slane %v25157_v57, 4 }
0x1476   : > { %v25159_v18 = vadd.f32 %v25158_v5, %v25157_v57  ;;  %v45585_v57 = vand.u32 4294901760, %v28349_v62 }
0x1478   : > { %v25160_v35 = vrot.slane %v25159_v18, 2 }
0x147a   : > { %v25161_v32 = vadd.f32 %v25160_v35, %v25159_v18  ;;  %v45591_v18 = vsub.f32 %v28349_v62, %v45585_v57 }
0x147c   : > { %v25162_v58 = vrot.slane %v25161_v32, 1 }
0x147e   : > { %v25163_v50 = vadd.f32 %v25162_v58, %v25161_v32  ;;  %v45600_v32 = vand.u32 4294901760, %v45591_v18 }
0x1480   : > { %40948 = vpush %v25163_v50  ;;  %v28423_v50 = vsub.f32 %v45591_v18, %v45600_v32 }
0x14b0   : > { %v45361_v30 = vpop.f32.mrb[46].mxu1 }
0x14b1   : > { %v27000_v17 = vsel %vm16843_vm4, %v45361_v30, 0  ;;  %v37393_v1 = vpop.f32.mrb[47].mxu1  ;;  %s40949_s0 = spop %40948 }
0x14b2   : > { %v45365_v13 = vand.u32 4294901760, %v27000_v17  ;;  %v45613_v1 = vand.u32 4294901760, %v28423_v50 }
0x14b4   : > { %v45368_v22 = vsub.f32 %v27000_v17, %v45365_v13 }
0x14b6   : > { %v45371_v43 = vand.u32 4294901760, %v45368_v22 }
0x14b8   : > { %v27071_v40 = vsub.f32 %v45368_v22, %v45371_v43 }
0x14ba   : > { %v45378_v63 = vand.u32 4294901760, %v27071_v40 }
0x14bc   : > { %37469 = vmatmul.mubr.f32.vlgmr.msra.gmra.mrb[46].mxu0 %v45378_v63 }
0x14bd   : > { %37473 = vmatprep.mubr.msk.f32.mxu0 %vm41076_vm3, %v41077_v59  ;;  %37472 = vmatpush3.msra.mxu0 %v45393_v39 }
0x14be   : > { %37476 = vmatprep.subr.mxu0 %v41077_v59 }
0x14c4   : > { %37474 = vmatmul.mubr.f32.vlgmr.msra.gmra.mrb[46].mxu0 %v45365_v13 }
0x14c5   : > { %37477 = vmatpush3.msra.mxu0 %v45382_v52  ;;  %37478 = vmatprep.mubr.msk.f32.mxu0 %vm41076_vm3, %v41077_v59 }
0x14c6   : > { %37481 = vmatprep.subr.mxu0 %v41077_v59 }
0x14cc   : > { %37479 = vmatmul.mubr.f32.vlgmr.msra.gmra.mrb[46].mxu0 %v45368_v22 }
0x14cd   : > { %37482 = vmatpush3.msra.mxu0 %v45376_v41  ;;  %37483 = vmatprep.mubr.msk.f32.mxu0 %vm41076_vm3, %v41077_v59 }
0x14ce   : > { %37486 = vmatprep.subr.mxu0 %v41077_v59 }
0x14d4   : > { %37484 = vmatmul.mubr.f32.vlgmr.msra.gmra.mrb[46].mxu0 %v45371_v43 }
0x14d5   : > { %37487 = vmatpush3.msra.mxu0 %v45387_v0  ;;  %37488 = vmatprep.mubr.msk.f32.mxu0 %vm41076_vm3, %v41077_v59 }
0x14d6   : > { %37491 = vmatprep.subr.mxu0 %v41077_v59 }
0x14dc   : > { %37489 = vmatmul.mubr.f32.vlgmr.msra.gmra.mrb[46].mxu0 %v45365_v13 }
0x14dd   : > { %37492 = vmatpush3.msra.mxu0 %v45376_v41  ;;  %37493 = vmatprep.mubr.msk.f32.mxu0 %vm41076_vm3, %v41077_v59 }
0x14de   : > { %37526 = vmatprep.subr.mxu0 %v41077_v59 }
0x14e4   : > { %37494 = vmatmul.mubr.f32.vlgmr.msra.gmra.mrb[46].mxu0 %v45365_v13 }
0x14e5   : > { %v26541_v9 = vpop.f32.mrb[44].mxu0  ;;  %37528 = vmatprep.mubr.msk.f32.mxu0 %vm41076_vm3, %v41077_v59 }
0x14e6   : > { %v26546_v46 = vsel %vm22429_vm6, %v26541_v9, 0  ;;  %v37435_v25 = vpop.f32.mrb[45].mxu0 }
0x14e7   : > { %v26549_v24 = vand.u32 4294901760, %v26546_v46 }
0x14e9   : > { %v26626_v20 = vsub.f32 %v26546_v46, %v26549_v24  ;;  %37437 = vmatpush3.msra.mxu1 %v26549_v24 }
0x14ea   : > { %37439 = vmatmul.mubr.f32.vlgmr.msra.gmra.mrb[48].mxu1 %v45308_v36  ;;  %37441 = vmatprep.subr.mxu1 %v41077_v59 }
0x14eb   : > { %v26627_v6 = vand.u32 4294901760, %v26626_v20  ;;  %37443 = vmatprep.mubr.msk.f32.mxu1 %vm41076_vm3, %v41077_v59 }
0x14ed   : > { %v26628_v16 = vsub.f32 %v26626_v20, %v26627_v6 }
0x14ef   : > { %v26629_v34 = vand.u32 4294901760, %v26628_v16 }
0x14f1   : > { %37442 = vmatpush3.msra.mxu1 %v26629_v34 }
0x14f2   : > { %37444 = vmatmul.mubr.f32.vlgmr.msra.gmra.mrb[48].mxu1 %v45297_v21  ;;  %37446 = vmatprep.subr.mxu1 %v41077_v59 }
0x14f3   : > { %37447 = vmatpush3.msra.mxu1 %v26626_v20  ;;  %37448 = vmatprep.mubr.msk.f32.mxu1 %vm41076_vm3, %v41077_v59 }
0x14f4   : > { %37451 = vmatprep.subr.mxu1 %v41077_v59 }
0x14fa   : > { %37449 = vmatmul.mubr.f32.vlgmr.msra.gmra.mrb[48].mxu1 %v45300_v29 }
0x14fb   : > { %37452 = vmatpush3.msra.mxu1 %v26549_v24  ;;  %37453 = vmatprep.mubr.msk.f32.mxu1 %vm41076_vm3, %v41077_v59 }
0x14fc   : > { %37456 = vmatprep.subr.mxu1 %v41077_v59 }
0x1502   : > { %37454 = vmatmul.mubr.f32.vlgmr.msra.gmra.mrb[48].mxu1 %v45303_v28 }
0x1503   : > { %37457 = vmatpush3.msra.mxu1 %v26627_v6  ;;  %37458 = vmatprep.mubr.msk.f32.mxu1 %vm41076_vm3, %v41077_v59 }
0x1504   : > { %37461 = vmatprep.subr.mxu1 %v41077_v59 }
0x150a   : > { %37459 = vmatmul.mubr.f32.vlgmr.msra.gmra.mrb[48].mxu1 %v45297_v21 }
0x150b   : > { %37462 = vmatpush3.msra.mxu1 %v26549_v24  ;;  %37463 = vmatprep.mubr.msk.f32.mxu1 %vm41076_vm3, %v41077_v59 }
0x150c   : > { %37496 = vmatprep.subr.mxu1 %v41077_v59 }
0x1512   : > { %37464 = vmatmul.mubr.f32.vlgmr.msra.gmra.mrb[48].mxu1 %v45297_v21 }
0x1513   : > { %37497 = vmatpush3.msra.mxu1 %v45438_v10  ;;  %37498 = vmatprep.mubr.msk.f32.mxu1 %vm41076_vm3, %v41077_v59 }
0x1514   : > { %37501 = vmatprep.subr.mxu1 %v41077_v59 }
0x1516   : > { %37499 = vmatmul.mubr.f32.vlgmr.msra.gmra.mrb[50].mxu1 %v45378_v63 }
0x1517   : > { %37502 = vmatpush3.msra.mxu1 %v45457_v51  ;;  %37503 = vmatprep.mubr.msk.f32.mxu1 %vm41076_vm3, %v41077_v59 }
0x1518   : > { %37506 = vmatprep.subr.mxu1 %v41077_v59 }
0x151e   : > { %37504 = vmatmul.mubr.f32.vlgmr.msra.gmra.mrb[50].mxu1 %v45365_v13 }
0x151f   : > { %37507 = vmatpush3.msra.mxu1 %v45442_v27  ;;  %37508 = vmatprep.mubr.msk.f32.mxu1 %vm41076_vm3, %v41077_v59 }
0x1520   : > { %37511 = vmatprep.subr.mxu1 %v41077_v59 }
0x1526   : > { %37509 = vmatmul.mubr.f32.vlgmr.msra.gmra.mrb[50].mxu1 %v45368_v22  ;;  %v26998_v22 = vld [vmem:[%s41236_s12] sm:$0xff] }
0x1527   : > { %37512 = vmatpush3.msra.mxu1 %v45438_v10  ;;  %37513 = vmatprep.mubr.msk.f32.mxu1 %vm41076_vm3, %v41077_v59  ;;  %v45642_v40 = vand.u32 4294901760, %v26998_v22 }
0x1528   : > { %37516 = vmatprep.subr.mxu1 %v41077_v59 }
0x1529   : > { %v45670_v20 = vsub.f32 %v26998_v22, %v45642_v40 }
0x152e   : > { %37514 = vmatmul.mubr.f32.vlgmr.msra.gmra.mrb[50].mxu1 %v45371_v43 }
0x152f   : > { %37517 = vmatpush3.msra.mxu1 %v45448_v53  ;;  %37518 = vmatprep.mubr.msk.f32.mxu1 %vm41076_vm3, %v41077_v59 }
0x1530   : > { %37521 = vmatprep.subr.mxu1 %v41077_v59 }
0x1536   : > { %37519 = vmatmul.mubr.f32.vlgmr.msra.gmra.mrb[50].mxu1 %v45365_v13 }
0x1537   : > { %37522 = vmatpush3.msra.mxu1 %v45438_v10  ;;  %37523 = vmatprep.mubr.msk.f32.mxu1 %vm41076_vm3, %v41077_v59 }
0x1538   : > { %37586 = vmatprep.subr.mxu1 %v41077_v59 }
0x153e   : > { %37524 = vmatmul.mubr.f32.vlgmr.msra.gmra.mrb[50].mxu1 %v45365_v13 }
0x153f   : > { %37587 = vmatpush3.msra.mxu1 %v45376_v41  ;;  %37588 = vmatprep.mubr.msk.f32.mxu1 %vm41076_vm3, %v41077_v59 }
0x1540   : > { %37591 = vmatprep.subr.mxu1 %v41077_v59 }
0x15b7   : > { %v45490_v47 = vpop.f32.mrb[46].mxu0 }
0x15b8   : > { %v37495_v60 = vpop.f32.mrb[47].mxu0  ;;  %v28352_v31 = vsel %vm27898_vm9, %v45490_v47, 0 }
0x15b9   : > { %v28355_v5 = vand.u32 4294901760, %v28352_v31 }
0x15bb   : > { %v28432_v35 = vsub.f32 %v28352_v31, %v28355_v5 }
0x15bd   : > { %v28433_v58 = vand.u32 4294901760, %v28432_v35 }
0x15bf   : > { %v28434_v17 = vsub.f32 %v28432_v35, %v28433_v58 }
0x15c1   : > { %v28435_v13 = vand.u32 4294901760, %v28434_v17 }
0x15e5   : > { %v45492_v48 = vpop.f32.mrb[48].mxu1 }
0x15e6   : > { %v28801_v21 = vsel %vm16843_vm4, %v45492_v48, 0  ;;  %v37465_v29 = vpop.f32.mrb[49].mxu1 }
0x15e7   : > { %v45496_v28 = vand.u32 4294901760, %v28801_v21 }
0x15e9   : > { %v45499_v11 = vsub.f32 %v28801_v21, %v45496_v28 }
0x15eb   : > { %v45502_v15 = vand.u32 4294901760, %v45499_v11 }
0x15ed   : > { %v28872_v49 = vsub.f32 %v45499_v11, %v45502_v15 }
0x15ef   : > { %v28873_v36 = vand.u32 4294901760, %v28872_v49 }
0x15f1   : > { %37589 = vmatmul.mubr.f32.vlgmr.msra.gmra.mrb[52].mxu1 %v28873_v36 }
0x15f2   : > { %37592 = vmatpush3.msra.mxu1 %v45393_v39  ;;  %37593 = vmatprep.mubr.msk.f32.mxu1 %vm41076_vm3, %v41077_v59 }
0x15f3   : > { %37596 = vmatprep.subr.mxu1 %v41077_v59 }
0x15f9   : > { %37594 = vmatmul.mubr.f32.vlgmr.msra.gmra.mrb[52].mxu1 %v45496_v28 }
0x15fa   : > { %37597 = vmatpush3.msra.mxu1 %v45382_v52  ;;  %37598 = vmatprep.mubr.msk.f32.mxu1 %vm41076_vm3, %v41077_v59 }
0x15fb   : > { %37601 = vmatprep.subr.mxu1 %v41077_v59 }
0x1601   : > { %37599 = vmatmul.mubr.f32.vlgmr.msra.gmra.mrb[52].mxu1 %v45499_v11 }
0x1602   : > { %37602 = vmatpush3.msra.mxu1 %v45376_v41  ;;  %37603 = vmatprep.mubr.msk.f32.mxu1 %vm41076_vm3, %v41077_v59 }
0x1603   : > { %37606 = vmatprep.subr.mxu1 %v41077_v59 }
0x1609   : > { %37604 = vmatmul.mubr.f32.vlgmr.msra.gmra.mrb[52].mxu1 %v45502_v15 }
0x160a   : > { %37607 = vmatpush3.msra.mxu1 %v45387_v0  ;;  %37608 = vmatprep.mubr.msk.f32.mxu1 %vm41076_vm3, %v41077_v59 }
0x160b   : > { %37611 = vmatprep.subr.mxu1 %v41077_v59 }
0x1611   : > { %v27890_v7 = vpop.f32.mrb[50].mxu1  ;;  %37609 = vmatmul.mubr.f32.vlgmr.msra.gmra.mrb[52].mxu1 %v45496_v28 }
0x1612   : > { %v27900_v54 = vsel %vm27898_vm9, %v27890_v7, 0  ;;  %37612 = vmatpush3.msra.mxu1 %v45376_v41  ;;  %37613 = vmatprep.mubr.msk.f32.mxu1 %vm41076_vm3, %v41077_v59  ;;  %v37525_v19 = vpop.f32.mrb[51].mxu1 }
0x1613   : > { %v27903_v26 = vand.u32 4294901760, %v27900_v54  ;;  %37616 = vmatprep.subr.mxu1 %v41077_v59 }
0x1615   : > { %v27980_v44 = vsub.f32 %v27900_v54, %v27903_v26  ;;  %37527 = vmatpush3.msra.mxu0 %v27903_v26 }
0x1616   : > { %37529 = vmatmul.mubr.f32.vlgmr.msra.gmra.mrb[48].mxu0 %v45539_v4  ;;  %37531 = vmatprep.subr.mxu0 %v41077_v59 }
0x1617   : > { %v27981_v2 = vand.u32 4294901760, %v27980_v44  ;;  %37533 = vmatprep.mubr.msk.f32.mxu0 %vm41076_vm3, %v41077_v59 }
0x1619   : > { %v27982_v8 = vsub.f32 %v27980_v44, %v27981_v2  ;;  %37614 = vmatmul.mubr.f32.vlgmr.msra.gmra.mrb[52].mxu1 %v45496_v28 }
0x161a   : > { %37617 = vmatpush3.msra.mxu1 %v45438_v10  ;;  %37618 = vmatprep.mubr.msk.f32.mxu1 %vm41076_vm3, %v41077_v59 }
0x161b   : > { %v27983_v12 = vand.u32 4294901760, %v27982_v8  ;;  %37621 = vmatprep.subr.mxu1 %v41077_v59 }
0x161d   : > { %37532 = vmatpush3.msra.mxu0 %v27983_v12  ;;  %37619 = vmatmul.mubr.f32.vlgmr.msra.gmra.mrb[54].mxu1 %v28873_v36 }
0x161e   : > { %37534 = vmatmul.mubr.f32.vlgmr.msra.gmra.mrb[48].mxu0 %v45521_v23  ;;  %37536 = vmatprep.subr.mxu0 %v41077_v59 }
0x161f   : > { %37622 = vmatpush3.msra.mxu1 %v45457_v51  ;;  %37623 = vmatprep.mubr.msk.f32.mxu1 %vm41076_vm3, %v41077_v59 }
0x1620   : > { %37537 = vmatpush3.msra.mxu0 %v27980_v44  ;;  %37538 = vmatprep.mubr.msk.f32.mxu0 %vm41076_vm3, %v41077_v59 }
0x1621   : > { %37626 = vmatprep.subr.mxu1 %v41077_v59  ;;  %37541 = vmatprep.subr.mxu0 %v41077_v59 }
0x1625   : > { %37624 = vmatmul.mubr.f32.vlgmr.msra.gmra.mrb[54].mxu1 %v45496_v28 }
0x1626   : > { %37539 = vmatmul.mubr.f32.vlgmr.msra.gmra.mrb[48].mxu0 %v45525_v56  ;;  %37627 = vmatpush3.msra.mxu1 %v45442_v27 }
0x1627   : > { %37628 = vmatprep.mubr.msk.f32.mxu1 %vm41076_vm3, %v41077_v59  ;;  %37542 = vmatpush3.msra.mxu0 %v27903_v26 }
0x1628   : > { %37543 = vmatprep.mubr.msk.f32.mxu0 %vm41076_vm3, %v41077_v59  ;;  %37631 = vmatprep.subr.mxu1 %v41077_v59 }
0x1629   : > { %37546 = vmatprep.subr.mxu0 %v41077_v59 }
0x162d   : > { %37629 = vmatmul.mubr.f32.vlgmr.msra.gmra.mrb[54].mxu1 %v45499_v11 }
0x162e   : > { %37544 = vmatmul.mubr.f32.vlgmr.msra.gmra.mrb[48].mxu0 %v45532_v38  ;;  %37632 = vmatpush3.msra.mxu1 %v45438_v10 }
0x162f   : > { %37633 = vmatprep.mubr.msk.f32.mxu1 %vm41076_vm3, %v41077_v59  ;;  %37547 = vmatpush3.msra.mxu0 %v27981_v2 }
0x1630   : > { %37548 = vmatprep.mubr.msk.f32.mxu0 %vm41076_vm3, %v41077_v59  ;;  %37636 = vmatprep.subr.mxu1 %v41077_v59 }
0x1631   : > { %37551 = vmatprep.subr.mxu0 %v41077_v59 }
0x1635   : > { %37634 = vmatmul.mubr.f32.vlgmr.msra.gmra.mrb[54].mxu1 %v45502_v15 }
0x1636   : > { %37549 = vmatmul.mubr.f32.vlgmr.msra.gmra.mrb[48].mxu0 %v45521_v23  ;;  %37637 = vmatpush3.msra.mxu1 %v45448_v53  ;;  %v45679_v53 = vand.u32 4294901760, %v45670_v20 }
0x1637   : > { %37638 = vmatprep.mubr.msk.f32.mxu1 %vm41076_vm3, %v41077_v59  ;;  %37552 = vmatpush3.msra.mxu0 %v27903_v26 }
0x1638   : > { %37553 = vmatprep.mubr.msk.f32.mxu0 %vm41076_vm3, %v41077_v59  ;;  %37641 = vmatprep.subr.mxu1 %v41077_v59  ;;  %v30694_v60 = vsub.f32 %v45670_v20, %v45679_v53 }
0x1639   : > { %37556 = vmatprep.subr.mxu0 %v41077_v59 }
0x163a   : > { %v30695_v11 = vand.u32 4294901760, %v30694_v60 }
0x163d   : > { %37639 = vmatmul.mubr.f32.vlgmr.msra.gmra.mrb[54].mxu1 %v45496_v28 }
0x163e   : > { %37554 = vmatmul.mubr.f32.vlgmr.msra.gmra.mrb[48].mxu0 %v45521_v23  ;;  %37642 = vmatpush3.msra.mxu1 %v45438_v10 }
0x163f   : > { %37643 = vmatprep.mubr.msk.f32.mxu1 %vm41076_vm3, %v41077_v59  ;;  %37557 = vmatpush3.msra.mxu0 %v28355_v5 }
0x1640   : > { %37558 = vmatprep.mubr.msk.f32.mxu0 %vm41076_vm3, %v41077_v59  ;;  %37561 = vmatprep.subr.mxu0 %v41077_v59 }
0x1641   : > { %37706 = vmatprep.subr.mxu1 %v41077_v59 }
0x1645   : > { %37644 = vmatmul.mubr.f32.vlgmr.msra.gmra.mrb[54].mxu1 %v45496_v28 }
0x1646   : > { %37559 = vmatmul.mubr.f32.vlgmr.msra.gmra.mrb[48].mxu0 %v45613_v1  ;;  %37708 = vmatprep.mubr.msk.f32.mxu1 %vm41076_vm3, %v41077_v59 }
0x1647   : > { %37562 = vmatpush3.msra.mxu0 %v28435_v13  ;;  %37563 = vmatprep.mubr.msk.f32.mxu0 %vm41076_vm3, %v41077_v59 }
0x1648   : > { %37566 = vmatprep.subr.mxu0 %v41077_v59  ;;  %37707 = vmatpush3.msra.mxu1 %v45642_v40 }
0x1649   : > { %37711 = vmatprep.subr.mxu1 %v41077_v59 }
0x164e   : > { %37564 = vmatmul.mubr.f32.vlgmr.msra.gmra.mrb[48].mxu0 %v45585_v57 }
0x164f   : > { %37567 = vmatpush3.msra.mxu0 %v28432_v35  ;;  %37568 = vmatprep.mubr.msk.f32.mxu0 %vm41076_vm3, %v41077_v59 }
0x1650   : > { %37571 = vmatprep.subr.mxu0 %v41077_v59 }
0x1656   : > { %37569 = vmatmul.mubr.f32.vlgmr.msra.gmra.mrb[48].mxu0 %v45591_v18 }
0x1657   : > { %37572 = vmatpush3.msra.mxu0 %v28355_v5  ;;  %37573 = vmatprep.mubr.msk.f32.mxu0 %vm41076_vm3, %v41077_v59 }
0x1658   : > { %37576 = vmatprep.subr.mxu0 %v41077_v59 }
0x165e   : > { %37574 = vmatmul.mubr.f32.vlgmr.msra.gmra.mrb[48].mxu0 %v45600_v32 }
0x165f   : > { %37577 = vmatpush3.msra.mxu0 %v28433_v58  ;;  %37578 = vmatprep.mubr.msk.f32.mxu0 %vm41076_vm3, %v41077_v59 }
0x1660   : > { %37581 = vmatprep.subr.mxu0 %v41077_v59 }
0x1666   : > { %37579 = vmatmul.mubr.f32.vlgmr.msra.gmra.mrb[48].mxu0 %v45585_v57 }
0x1667   : > { %37582 = vmatpush3.msra.mxu0 %v28355_v5  ;;  %37583 = vmatprep.mubr.msk.f32.mxu0 %vm41076_vm3, %v41077_v59 }
0x1668   : > { %37646 = vmatprep.subr.mxu0 %v41077_v59 }
0x166e   : > { %37584 = vmatmul.mubr.f32.vlgmr.msra.gmra.mrb[48].mxu0 %v45585_v57 }
0x166f   : > { %37648 = vmatprep.mubr.msk.f32.mxu0 %vm41076_vm3, %v41077_v59 }
0x16ec   : > { %v29245_v43 = vpop.f32.mrb[52].mxu1 }
0x16ed   : > { %v37615_v61 = vpop.f32.mrb[53].mxu1  ;;  %v30145_v25 = vsel %vm27898_vm9, %v29245_v43, 0 }
0x16ee   : > { %v30148_v24 = vand.u32 4294901760, %v30145_v25 }
0x16f0   : > { %v30225_v6 = vsub.f32 %v30145_v25, %v30148_v24 }
0x16f2   : > { %v30226_v3 = vand.u32 4294901760, %v30225_v6 }
0x16f4   : > { %v30227_v21 = vsub.f32 %v30225_v6, %v30226_v3 }
0x16f6   : > { %v30228_v15 = vand.u32 4294901760, %v30227_v21 }
0x1718   : > { %v29691_v41 = vpop.f32.mrb[54].mxu1 }
0x1719   : > { %v29696_v63 = vsel %vm27898_vm9, %v29691_v41, 0  ;;  %v37645_v52 = vpop.f32.mrb[55].mxu1 }
0x171a   : > { %v29699_v0 = vand.u32 4294901760, %v29696_v63  ;;  %v13759_v52 = vstv %s40945_s11  ;;  %s31655_s11 = sshll.u32 %s46416_s3, 3 }
0x171c   : > { %v29776_v37 = vsub.f32 %v29696_v63, %v29699_v0  ;;  %37647 = vmatpush3.msra.mxu0 %v29699_v0 }
0x171d   : > { %37649 = vmatmul.mubr.f32.vlgmr.msra.gmra.mrb[50].mxu0 %v45539_v4  ;;  %37651 = vmatprep.subr.mxu0 %v41077_v59 }
0x171e   : > { %v29777_v39 = vand.u32 4294901760, %v29776_v37  ;;  %37653 = vmatprep.mubr.msk.f32.mxu0 %vm41076_vm3, %v41077_v59 }
0x1720   : > { %v29778_v9 = vsub.f32 %v29776_v37, %v29777_v39 }
0x1722   : > { %v29779_v46 = vand.u32 4294901760, %v29778_v9  ;;  %v25165_v9 = vstv %s40949_s0 }
0x1724   : > { %37652 = vmatpush3.msra.mxu0 %v29779_v46 }
0x1725   : > { %37654 = vmatmul.mubr.f32.vlgmr.msra.gmra.mrb[50].mxu0 %v45521_v23  ;;  %37656 = vmatprep.subr.mxu0 %v41077_v59 }
0x1726   : > { %37657 = vmatpush3.msra.mxu0 %v29776_v37  ;;  %37658 = vmatprep.mubr.msk.f32.mxu0 %vm41076_vm3, %v41077_v59  ;;  %v19621_v37 = vstv %s40947_s15 }
0x1727   : > { %37661 = vmatprep.subr.mxu0 %v41077_v59  ;;  %v19622_v25 = vmul.f32 0.001953125, %v19621_v37 }
0x172d   : > { %37659 = vmatmul.mubr.f32.vlgmr.msra.gmra.mrb[50].mxu0 %v45525_v56 }
0x172e   : > { %37662 = vmatpush3.msra.mxu0 %v29699_v0  ;;  %37663 = vmatprep.mubr.msk.f32.mxu0 %vm41076_vm3, %v41077_v59 }
0x172f   : > { %37666 = vmatprep.subr.mxu0 %v41077_v59 }
0x1735   : > { %37664 = vmatmul.mubr.f32.vlgmr.msra.gmra.mrb[50].mxu0 %v45532_v38 }
0x1736   : > { %37667 = vmatpush3.msra.mxu0 %v29777_v39  ;;  %37668 = vmatprep.mubr.msk.f32.mxu0 %vm41076_vm3, %v41077_v59  ;;  %v13760_v39 = vmul.f32 0.00048828125, %v13759_v52 }
0x1737   : > { %37671 = vmatprep.subr.mxu0 %v41077_v59 }
0x173d   : > { %37669 = vmatmul.mubr.f32.vlgmr.msra.gmra.mrb[50].mxu0 %v45521_v23 }
0x173e   : > { %37672 = vmatpush3.msra.mxu0 %v29699_v0  ;;  %37673 = vmatprep.mubr.msk.f32.mxu0 %vm41076_vm3, %v41077_v59  ;;  %v6750_v0 = vstv %s40943_s22  ;;  %s1096_s22 = scalar_lea.vmem %s41241_s20, %s31655_s11 }
0x173f   : > { %37676 = vmatprep.subr.mxu0 %v41077_v59  ;;  %v6751_v46 = vmul.f32 0.00012207031, %v6750_v0 }
0x1741   : > { %v45672_v16 = vpop.f32.mrb[48].mxu0 }
0x1742   : > { %v30593_v34 = vsub.f32 %v45361_v30, %v45672_v16  ;;  %v30612_v14 = vsel %vm16843_vm4, %v45672_v16, 0  ;;  %v37585_v10 = vpop.f32.mrb[49].mxu0 }
0x1743   : > { %v30680_v27 = vand.u32 4294901760, %v30612_v14 }
0x1745   : > { %v30681_v51 = vsub.f32 %v30612_v14, %v30680_v27  ;;  %37674 = vmatmul.mubr.f32.vlgmr.msra.gmra.mrb[50].mxu0 %v45521_v23 }
0x1746   : > { %37677 = vmatpush3.msra.mxu0 %v30148_v24  ;;  %37678 = vmatprep.mubr.msk.f32.mxu0 %vm41076_vm3, %v41077_v59 }
0x1747   : > { %v30682_v47 = vand.u32 4294901760, %v30681_v51  ;;  %37681 = vmatprep.subr.mxu0 %v41077_v59 }
0x1749   : > { %v30683_v29 = vsub.f32 %v30681_v51, %v30682_v47 }
0x174b   : > { %v30684_v28 = vand.u32 4294901760, %v30683_v29 }
0x174d   : > { %37679 = vmatmul.mubr.f32.vlgmr.msra.gmra.mrb[50].mxu0 %v45613_v1  ;;  %37709 = vmatmul.mubr.f32.vlgmr.msra.gmra.mrb[56].mxu1 %v30684_v28 }
0x174e   : > { %37682 = vmatpush3.msra.mxu0 %v30228_v15  ;;  %37683 = vmatprep.mubr.msk.f32.mxu0 %vm41076_vm3, %v41077_v59 }
0x174f   : > { %37686 = vmatprep.subr.mxu0 %v41077_v59  ;;  %37712 = vmatpush3.msra.mxu1 %v30695_v11 }
0x1750   : > { %37713 = vmatprep.mubr.msk.f32.mxu1 %vm41076_vm3, %v41077_v59  ;;  %37716 = vmatprep.subr.mxu1 %v41077_v59 }
0x1755   : > { %37684 = vmatmul.mubr.f32.vlgmr.msra.gmra.mrb[50].mxu0 %v45585_v57  ;;  %37714 = vmatmul.mubr.f32.vlgmr.msra.gmra.mrb[56].mxu1 %v30680_v27 }
0x1756   : > { %37687 = vmatpush3.msra.mxu0 %v30225_v6  ;;  %37688 = vmatprep.mubr.msk.f32.mxu0 %vm41076_vm3, %v41077_v59  ;;  %v25166_v6 = vmul.f32 0.0078125, %v25165_v9 }
0x1757   : > { %37691 = vmatprep.subr.mxu0 %v41077_v59  ;;  %37717 = vmatpush3.msra.mxu1 %v45670_v20 }
0x1758   : > { %37718 = vmatprep.mubr.msk.f32.mxu1 %vm41076_vm3, %v41077_v59  ;;  %37721 = vmatprep.subr.mxu1 %v41077_v59 }
0x175d   : > { %37689 = vmatmul.mubr.f32.vlgmr.msra.gmra.mrb[50].mxu0 %v45591_v18  ;;  %37719 = vmatmul.mubr.f32.vlgmr.msra.gmra.mrb[56].mxu1 %v30681_v51 }
0x175e   : > { %37692 = vmatpush3.msra.mxu0 %v30148_v24  ;;  %37693 = vmatprep.mubr.msk.f32.mxu0 %vm41076_vm3, %v41077_v59 }
0x175f   : > { %37696 = vmatprep.subr.mxu0 %v41077_v59  ;;  %37722 = vmatpush3.msra.mxu1 %v45642_v40 }
0x1760   : > { %37723 = vmatprep.mubr.msk.f32.mxu1 %vm41076_vm3, %v41077_v59  ;;  %37726 = vmatprep.subr.mxu1 %v41077_v59 }
0x1765   : > { %37694 = vmatmul.mubr.f32.vlgmr.msra.gmra.mrb[50].mxu0 %v45600_v32  ;;  %37724 = vmatmul.mubr.f32.vlgmr.msra.gmra.mrb[56].mxu1 %v30682_v47 }
0x1766   : > { %37697 = vmatpush3.msra.mxu0 %v30226_v3  ;;  %37698 = vmatprep.mubr.msk.f32.mxu0 %vm41076_vm3, %v41077_v59 }
0x1767   : > { %37701 = vmatprep.subr.mxu0 %v41077_v59  ;;  %37727 = vmatpush3.msra.mxu1 %v45679_v53 }
0x1768   : > { %37728 = vmatprep.mubr.msk.f32.mxu1 %vm41076_vm3, %v41077_v59  ;;  %37731 = vmatprep.subr.mxu1 %v41077_v59 }
0x176d   : > { %37699 = vmatmul.mubr.f32.vlgmr.msra.gmra.mrb[50].mxu0 %v45585_v57  ;;  %37729 = vmatmul.mubr.f32.vlgmr.msra.gmra.mrb[56].mxu1 %v30680_v27 }
0x176e   : > { %37702 = vmatpush3.msra.mxu0 %v30148_v24  ;;  %37703 = vmatprep.mubr.msk.f32.mxu0 %vm41076_vm3, %v41077_v59 }
0x176f   : > { %37732 = vmatpush3.msra.mxu1 %v45642_v40  ;;  %37733 = vmatprep.mubr.msk.f32.mxu1 %vm41076_vm3, %v41077_v59 }
0x1770   : > { %37736 = vmatprep.subr.mxu1 %v41077_v59 }
0x1775   : > { %37704 = vmatmul.mubr.f32.vlgmr.msra.gmra.mrb[50].mxu0 %v45585_v57  ;;  %37734 = vmatmul.mubr.f32.vlgmr.msra.gmra.mrb[56].mxu1 %v30680_v27 }
0x1776   : > { %37737 = vmatpush3.msra.mxu1 %v45642_v40  ;;  %37738 = vmatprep.mubr.msk.f32.mxu1 %vm41076_vm3, %v41077_v59 }
0x1777   : > { %37741 = vmatprep.subr.mxu1 %v41077_v59 }
0x1848   : > { %v30589_v49 = vpop.f32.mrb[50].mxu0  ;;  %v31056_v36 = vpop.f32.mrb[56].mxu1 }
0x1849   : > { %v30594_v55 = vsub.f32 %v45492_v48, %v30589_v49  ;;  %v31066_v33 = vsel %vm16843_vm4, %v30589_v49, 0  ;;  %v37705_v23 = vpop.f32.mrb[51].mxu0  ;;  %v37735_v56 = vpop.f32.mrb[57].mxu1  ;;  %v31061_v31 = vrot.slane %v31056_v36, 1 }
0x184a   : > { %v31134_v38 = vand.u32 4294901760, %v31066_v33 }
0x184b   : > { %v30595_v42 = vsub.f32 %v30593_v34, %v30594_v55  ;;  %v31063_v5 = vadd.f32 %v31061_v31, %v31056_v36 }
0x184c   : > { %v31135_v7 = vsub.f32 %v31066_v33, %v31134_v38 }
0x184d   : > { %v30596_v54 = vand.u32 2147483647, %v30595_v42  ;;  %v31064_v58 = vmul.f32 0.5, %v31063_v5 }
0x184e   : > { %v31136_v4 = vand.u32 4294901760, %v31135_v7 }
0x184f   : > { %v30598_v19 = vsel %vm30597_vm10, %v30596_v54, 0.0 }
0x1850   : > { %v31137_v26 = vsub.f32 %v31135_v7, %v31136_v4  ;;  %30599 = vadd.xlane.f32.xlu0 %v30598_v19 }
0x1852   : > { %v31138_v44 = vand.u32 4294901760, %v31137_v26 }
0x1854   : > { %37739 = vmatmul.mubr.f32.vlgmr.msra.gmra.mrb[58].mxu1 %v31138_v44 }
0x1855   : > { %37742 = vmatpush3.msra.mxu1 %v30695_v11  ;;  %37743 = vmatprep.mubr.msk.f32.mxu1 %vm41076_vm3, %v41077_v59 }
0x1856   : > { %37746 = vmatprep.subr.mxu1 %v41077_v59 }
0x185c   : > { %37744 = vmatmul.mubr.f32.vlgmr.msra.gmra.mrb[58].mxu1 %v31134_v38 }
0x185d   : > { %37747 = vmatpush3.msra.mxu1 %v45670_v20  ;;  %37748 = vmatprep.mubr.msk.f32.mxu1 %vm41076_vm3, %v41077_v59  ;;  %v13761_v20 = vadd.f32 %v13760_v39, %v6751_v46 }
0x185e   : > { %37751 = vmatprep.subr.mxu1 %v41077_v59 }
0x185f   : > { %v19623_v16 = vadd.f32 %v19622_v25, %v13761_v20 }
0x1861   : > { %v25167_v14 = vadd.f32 %v25166_v6, %v19623_v16 }
0x1864   : > { %37749 = vmatmul.mubr.f32.vlgmr.msra.gmra.mrb[58].mxu1 %v31135_v7 }
0x1865   : > { %37752 = vmatpush3.msra.mxu1 %v45642_v40  ;;  %37753 = vmatprep.mubr.msk.f32.mxu1 %vm41076_vm3, %v41077_v59 }
0x1866   : > { %37756 = vmatprep.subr.mxu1 %v41077_v59 }
0x186c   : > { %37754 = vmatmul.mubr.f32.vlgmr.msra.gmra.mrb[58].mxu1 %v31136_v4 }
0x186d   : > { %37757 = vmatpush3.msra.mxu1 %v45679_v53  ;;  %37758 = vmatprep.mubr.msk.f32.mxu1 %vm41076_vm3, %v41077_v59 }
0x186e   : > { %37761 = vmatprep.subr.mxu1 %v41077_v59 }
0x1874   : > { %37759 = vmatmul.mubr.f32.vlgmr.msra.gmra.mrb[58].mxu1 %v31134_v38 }
0x1875   : > { %37762 = vmatpush3.msra.mxu1 %v45642_v40  ;;  %37763 = vmatprep.mubr.msk.f32.mxu1 %vm41076_vm3, %v41077_v59 }
0x187c   : > { %37764 = vmatmul.mubr.f32.vlgmr.msra.gmra.mrb[58].mxu1 %v31134_v38 }
0x18dd   : > { %v30600_v30 = vpop.xlane.xlu0 %30599 }
0x18de   : > { %v30601_v48 = vrot.slane %v30600_v30, 4 }
0x18e0   : > { %v30602_v2 = vadd.f32 %v30601_v48, %v30600_v30 }
0x18e2   : > { %v30603_v8 = vrot.slane %v30602_v2, 2 }
0x18e4   : > { %v30604_v12 = vadd.f32 %v30603_v8, %v30602_v2 }
0x18e6   : > { %v30605_v45 = vrot.slane %v30604_v12, 1 }
0x18e8   : > { %v30606_v62 = vadd.f32 %v30605_v45, %v30604_v12 }
0x18ea   : > { %40950 = vpush %v30606_v62 }
0x191b   : > { %s40951_s1 = spop %40950 }
0x191c   : > { %v30608_v24 = vstv %s40951_s1 }
0x191d   : > { %v30609_v34 = vmul.f32 0.03125, %v30608_v24 }
0x191f   : > { %v30610_v27 = vadd.f32 %v30609_v34, %v25167_v14 }
0x194f   : > { %v31510_v57 = vpop.f32.mrb[58].mxu1 }
0x1950   : > { %v31515_v18 = vrot.slane %v31510_v57, 1  ;;  %v37765_v35 = vpop.f32.mrb[59].mxu1 }
0x1952   : > { %v31517_v32 = vadd.f32 %v31515_v18, %v31510_v57 }
0x1954   : > { %v31518_v50 = vmul.f32 0.5, %v31517_v32 }
0x1956   : > { %v31519_v17 = vsub.f32 %v31064_v58, %v31518_v50 }
0x1958   : > { %v31520_v59 = vand.u32 2147483647, %v31519_v17 }
0x195a   : > { %v31522_v1 = vsel %vm31521_vm11, %v31520_v59, 0.0 }
0x195b   : > { %31523 = vadd.xlane.f32.xlu1 %v31522_v1 }
0x19e8   : > { %v31524_v13 = vpop.xlane.xlu1 %31523 }
0x19e9   : > { %v31525_v22 = vrot.slane %v31524_v13, 4 }
0x19eb   : > { %v31526_v43 = vadd.f32 %v31525_v22, %v31524_v13 }
0x19ed   : > { %v31527_v40 = vrot.slane %v31526_v43, 2 }
0x19ef   : > { %v31528_v61 = vadd.f32 %v31527_v40, %v31526_v43 }
0x19f1   : > { %v31529_v41 = vrot.slane %v31528_v61, 1 }
0x19f3   : > { %v31530_v63 = vadd.f32 %v31529_v41, %v31528_v61 }
0x19f5   : > { %40952 = vpush %v31530_v63 }
0x1a26   : > { %s40953_s4 = spop %40952 }
0x1a27   : > { %v31532_v10 = vstv %s40953_s4 }
0x1a28   : > { %v31533_v53 = vmul.f32 0.125, %v31532_v10 }
0x1a2a   : > { %v31534_v3 = vadd.f32 %v31533_v53, %v30610_v27 }
0x1a2c   : > { %31535 = vst [vmem:[%s1096_s22] sm:$0xff] %v31534_v3 }
0x1a2d PF: > { %p72_p9 = scmp.ge.s32.totalorder %s41260_s28, 4   ;;  %s46412_s22 = smov %s41038_s23 }
0x1a2e   : > { %s46413_s23 = smov %s41269_s7  ;;  %s46414_s26 = smov %s41260_s28 }
0x1a2f   :  { %74 = sbr.rel (!%p72_p9) target bundleno = 59 (0x3b), region = 299 }

</bundles_post_ra>
